<compile_context>
chip_gen: v7x
topology: tpu7x:2x2x1
jax: 0.10.0
libtpu: 0.0.40
codegen_flags: <defaults>
</compile_context>

<pallas_src>
import functools

import jax
import jax.numpy as jnp
from jax.experimental import pallas as pl
from jax.experimental.pallas import tpu as pltpu


# -----------------------------------------------------------------------------
# Fused per-layer kernel: Wcompute (adjacency) + Gconv, entirely in VMEM
# -----------------------------------------------------------------------------

def _fused_layer_kernel(x_ref, *refs, n, apply_lrelu):
    (w1, s1, h1, w2, s2, h2, w3, s3, h3, w4, s4, h4,
     gamma_ref, wlast_ref, wg_ref, sg_ref, hg_ref, o_ref) = refs

    x = x_ref[...]                                    # (bb, n, f) f32
    bb, _, f = x.shape
    xb = x.astype(jnp.bfloat16)                       # bf16 copy for MXU inputs

    # ---- Wcompute: pairwise |x_i - x_j| map, channels-last (stays in VMEM) ----
    diff = jnp.abs(x[:, :, None, :] - x[:, None, :, :])          # (bb, n, n, f)
    feat = diff.reshape(bb * n * n, f).astype(jnp.bfloat16)      # (M, f) bf16

    # ---- 4x (1x1 conv == matmul) + folded eval-BN + leaky_relu ----------------
    # bf16 MXU inputs, f32 accumulation; BN/lrelu epilogue in f32.
    y = None
    for w_ref, s_ref, h_ref in ((w1, s1, h1), (w2, s2, h2),
                                (w3, s3, h3), (w4, s4, h4)):
        y = jnp.dot(feat, w_ref[...], preferred_element_type=jnp.float32)
        y = y * s_ref[...] + h_ref[...]
        y = jnp.where(y > 0, y, 0.01 * y)
        feat = y.astype(jnp.bfloat16)
    c = y.shape[-1]
    # TODO(synk): dropout(p=0.3) of w_comp_last is inference-mode identity here.

    # ---- CAM channel attention (kept in f32) ----------------------------------
    yf = y.reshape(bb, n * n, c)                                  # (bb, P, c)
    # energy[b, i, j] = sum_p yf[b, p, i] * yf[b, p, j] (Gram over positions).
    # Broadcast-multiply + major-axis reduce (pure VPU) instead of a
    # transposed-lhs batched dot_general, which Mosaic may not lower.
    energy = jnp.sum(yf[:, :, :, None] * yf[:, :, None, :], axis=1)  # (bb, c, c)
    e_new = jnp.max(energy, axis=-1, keepdims=True) - energy
    e_new = e_new - jnp.max(e_new, axis=-1, keepdims=True)        # stable softmax
    pe = jnp.exp(e_new)
    att = pe * pl.reciprocal(jnp.sum(pe, axis=-1, keepdims=True), approx=True)
    # cam[b,p,k] = sum_d yf[b,p,d] * att[b,k,d]   ('bqd,bkd->bqk' pattern)
    cam = jax.lax.dot_general(yf, att, (((2,), (2,)), ((0,), (0,))),
                              preferred_element_type=jnp.float32)     # (bb, P, c)
    yf = gamma_ref[...] * cam + yf

    # ---- conv2d_last (C -> 1) + identity mask + row softmax (f32) -------------
    logits = jnp.sum(yf.reshape(bb, n, n, c) * wlast_ref[...], axis=-1)  # (bb,n,n)
    row = jax.lax.broadcasted_iota(jnp.int32, (n, n), 0)
    col = jax.lax.broadcasted_iota(jnp.int32, (n, n), 1)
    logits = jnp.where((row == col)[None], logits - 1e8, logits)  # W_new - W_id*1e8
    logits = logits - jnp.max(logits, axis=-1, keepdims=True)
    pj = jnp.exp(logits)
    adj = pj * pl.reciprocal(jnp.sum(pj, axis=-1, keepdims=True), approx=True)

    # ---- Gconv: gmul (J=2) + single stacked fc matmul + folded eval-BN --------
    # agg = adj @ x   ('bqk,bkd->bqd' pattern)
    agg = jax.lax.dot_general(adj.astype(jnp.bfloat16), xb,
                              (((2,), (1,)), ((0,), (0,))),
                              preferred_element_type=jnp.float32)     # (bb, n, f)
    z = jnp.concatenate([x, agg], axis=-1).astype(jnp.bfloat16)       # (bb, n, 2f)
    out = jnp.dot(z.reshape(bb * n, 2 * f), wg_ref[...],
                  preferred_element_type=jnp.float32)                  # (bb*n, fo)
    out = out * sg_ref[...] + hg_ref[...]
    if apply_lrelu:
        out = jnp.where(out > 0, out, 0.01 * out)
    o_ref[...] = out.reshape(bb, n, out.shape[-1])


# -----------------------------------------------------------------------------
# Wrapper
# -----------------------------------------------------------------------------

def _pick_batch_block(b, n, f, cmax, budget_bytes=8 << 20):
    # Rough per-batch live-VMEM estimate for the fused layer: f32 pairwise slabs
    # and conv activations, plus the (P, C, C) CAM Gram intermediate.
    per_batch = (4 * n * n * (f + 4 * cmax + 4)
                 + 4 * n * n * cmax * cmax
                 + 4096)
    bb = max(1, min(b, budget_bytes // per_batch))
    if b >= 2:
        # Keep at least 2 grid steps so v7x's two TensorCores can split the
        # (parallel) batch axis; each step still carries a large fused block.
        bb = min(bb, max(1, b // 2))
    while b % bb:
        bb -= 1
    return bb


def pallas_gnn_layer(x, wp, lp, *, apply_lrelu):
    """One full GNN layer (Wcompute adjacency + Gconv) as a single pallas_call."""
    b, n, f = x.shape
    fout = lp["wg"].shape[1]
    cmax = max(int(w.shape[1]) for (w, _, _) in wp["convs"])
    bb = _pick_batch_block(b, n, f, cmax)
    # TODO(synk): for very large N, where a single batch's (N*N, C) slab exceeds
    # VMEM (v7x: 64 MiB), a two-pass row-tiled CAM (accumulate the (C,C) energy
    # over row tiles, then apply) would be needed; unnecessary at these sizes.

    args = [x]
    in_specs = [pl.BlockSpec((bb, n, f), lambda i: (i, 0, 0))]
    for (w, s, h) in wp["convs"]:
        args += [w, s, h]
        in_specs += [pl.BlockSpec(w.shape, lambda i: (0, 0)),
                     pl.BlockSpec(s.shape, lambda i: (0, 0)),
                     pl.BlockSpec(h.shape, lambda i: (0, 0))]
    args += [wp["gamma"], wp["w_last"], lp["wg"], lp["scale"], lp["shift"]]
    in_specs += [pl.BlockSpec(wp["gamma"].shape, lambda i: (0, 0)),
                 pl.BlockSpec(wp["w_last"].shape, lambda i: (0, 0)),
                 pl.BlockSpec(lp["wg"].shape, lambda i: (0, 0)),
                 pl.BlockSpec(lp["scale"].shape, lambda i: (0, 0)),
                 pl.BlockSpec(lp["shift"].shape, lambda i: (0, 0))]

    kern = functools.partial(_fused_layer_kernel, n=n, apply_lrelu=apply_lrelu)
    return pl.pallas_call(
        kern,
        out_shape=jax.ShapeDtypeStruct((b, n, fout), jnp.float32),
        grid=(b // bb,),
        in_specs=in_specs,
        out_specs=pl.BlockSpec((bb, n, fout), lambda i: (i, 0, 0)),
        compiler_params=pltpu.CompilerParams(
            dimension_semantics=("parallel",),
            vmem_limit_bytes=32 * 1024 * 1024),
    )(*args)


def gnn_forward(x, params, num_layers=2):
    for i in range(num_layers):
        x_new = pallas_gnn_layer(x, params[f"w{i}"], params[f"l{i}"],
                                 apply_lrelu=True)
        # x_new is tiny (B, N, nf//2): this concat is the only remaining
        # inter-layer HBM traffic (all (B,N,N,C) intermediates stay in VMEM).
        x = jnp.concatenate([x, x_new], axis=2)
    out = pallas_gnn_layer(x, params["w_last"], params["l_last"],
                           apply_lrelu=False)
    return out[:, 0, :]


# -----------------------------------------------------------------------------
# Parameter initialization (deterministic, eval-mode BN folded into scale/shift)
# -----------------------------------------------------------------------------

_EPS = 1e-5


def _bn_fold(key, cout, bias):
    k1, k2, k3, k4 = jax.random.split(key, 4)
    g = 1.0 + 0.1 * jax.random.normal(k1, (cout,), jnp.float32)
    beta = 0.1 * jax.random.normal(k2, (cout,), jnp.float32)
    rm = 0.1 * jax.random.normal(k3, (cout,), jnp.float32)
    rv = jax.random.uniform(k4, (cout,), jnp.float32, 0.5, 1.5)
    scale = g / jnp.sqrt(rv + _EPS)
    shift = (bias - rm) * scale + beta
    return scale.reshape(1, cout), shift.reshape(1, cout)


def make_wcompute_params(key, f_in, nf):
    c1, c2, c3, c4 = int(nf * 2), int(nf * 1.5), nf, nf
    dims = [(f_in, c1), (c1, c2), (c2, c3), (c3, c4)]
    convs = []
    for (ci, co) in dims:
        key, kw, kb, kbn = jax.random.split(key, 4)
        w = jax.random.normal(kw, (ci, co), jnp.float32) * (float(ci) ** -0.5)
        b = 0.1 * jax.random.normal(kb, (co,), jnp.float32)
        scale, shift = _bn_fold(kbn, co, b)
        convs.append((w.astype(jnp.bfloat16), scale, shift))   # bf16 MXU weights
    key, kl = jax.random.split(key)
    w_last = jax.random.normal(kl, (1, c4), jnp.float32) * (float(c4) ** -0.5)
    gamma = jnp.zeros((1, 1), jnp.float32)   # CAM gamma init (PyTorch: zeros(1))
    return {"convs": convs, "w_last": w_last, "gamma": gamma}


def make_gconv_params(key, f_in, f_out):
    kw, kb, kbn = jax.random.split(key, 3)
    w_fc = jax.random.normal(kw, (f_out, 2 * f_in), jnp.float32) \
        * (float(2 * f_in) ** -0.5)
    b_fc = 0.1 * jax.random.normal(kb, (f_out,), jnp.float32)
    scale, shift = _bn_fold(kbn, f_out, b_fc)
    # Single stacked fc weight:  [x, adj@x] @ wg  ==  x @ W1 + (adj@x) @ W2.
    return {"wg": w_fc.T.astype(jnp.bfloat16), "scale": scale, "shift": shift}


def init_gnn_params(key, input_features, label_num, nf, num_layers=2):
    params = {}
    feats = input_features
    for i in range(num_layers):
        key, kw, kl = jax.random.split(key, 3)
        params[f"w{i}"] = make_wcompute_params(kw, feats, feats)
        params[f"l{i}"] = make_gconv_params(kl, feats, nf // 2)
        feats += nf // 2
    key, kw, kl = jax.random.split(key, 3)
    params["w_last"] = make_wcompute_params(
        kw, feats, input_features + (nf // 2) * (num_layers - 1))
    params["l_last"] = make_gconv_params(kl, feats, label_num)
    return params


# -----------------------------------------------------------------------------
# Pure-JAX reference (identical bf16-input / f32-accumulate math) for checking
# -----------------------------------------------------------------------------

def _lrelu(y):
    return jnp.where(y > 0, y, 0.01 * y)


def _layer_ref(x, wp, lp, apply_lrelu):
    b, n, f = x.shape
    xb = x.astype(jnp.bfloat16)
    diff = jnp.abs(x[:, :, None, :] - x[:, None, :, :])
    feat = diff.reshape(b * n * n, f).astype(jnp.bfloat16)
    y = None
    for (w, s, h) in wp["convs"]:
        y = _lrelu(jnp.dot(feat, w, preferred_element_type=jnp.float32) * s + h)
        feat = y.astype(jnp.bfloat16)
    c = y.shape[-1]
    yf = y.reshape(b, n * n, c)
    energy = jnp.einsum("bpc,bpd->bcd", yf, yf,
                        preferred_element_type=jnp.float32)
    e_new = jnp.max(energy, axis=-1, keepdims=True) - energy
    att = jax.nn.softmax(e_new, axis=-1)
    cam = jnp.einsum("bpc,bdc->bpd", yf, att,
                     preferred_element_type=jnp.float32)
    yf = wp["gamma"][0, 0] * cam + yf
    logits = jnp.sum(yf.reshape(b, n, n, c) * wp["w_last"], axis=-1)
    logits = logits - 1e8 * jnp.eye(n, dtype=jnp.float32)[None]
    adj = jax.nn.softmax(logits, axis=-1)
    agg = jnp.einsum("bij,bjf->bif", adj.astype(jnp.bfloat16), xb,
                     preferred_element_type=jnp.float32)
    z = jnp.concatenate([x, agg], axis=-1).astype(jnp.bfloat16)
    out = jnp.einsum("bnk,ko->bno", z, lp["wg"],
                     preferred_element_type=jnp.float32)
    out = out * lp["scale"] + lp["shift"]
    return _lrelu(out) if apply_lrelu else out


def gnn_forward_ref(x, params, num_layers=2):
    for i in range(num_layers):
        x_new = _layer_ref(x, params[f"w{i}"], params[f"l{i}"], True)
        x = jnp.concatenate([x, x_new], axis=2)
    out = _layer_ref(x, params["w_last"], params["l_last"], False)
    return out[:, 0, :]


# -----------------------------------------------------------------------------

if __name__ == "__main__":
    B, N = 2, 8                      # batch, nodes
    input_features, label_num, nf, J = 8, 4, 8, 2

    key = jax.random.PRNGKey(0)
    key, kx = jax.random.split(key)
    x = jax.random.normal(kx, (B, N, input_features), jnp.float32)
    params = init_gnn_params(key, input_features, label_num, nf)

    out = jax.block_until_ready(jax.jit(gnn_forward)(x, params))
    assert out.shape == (B, label_num), out.shape

    ref = jax.block_until_ready(gnn_forward_ref(x, params))
    # Tolerance budget: the reference uses the same bf16-input / f32-accumulate
    # matmul math as the kernel; residual differences come from MXU
    # accumulation order and the EUP approximate-reciprocal softmax denominators.
    max_diff = float(jnp.max(jnp.abs(out - ref)))
    assert jnp.allclose(out, ref, atol=3e-2, rtol=3e-2), (max_diff, out, ref)

    print("KERNEL_OK")
</pallas_src>

<mosaic_0001>
module attributes {stable_mosaic.version = 11 : i64} {
  func.func @_fused_layer_kernel(%arg0: i32, %arg1: memref<1x8x8xf32, #tpu.memory_space<vmem>>, %arg2: memref<8x16xbf16, #tpu.memory_space<vmem>>, %arg3: memref<1x16xf32, #tpu.memory_space<vmem>>, %arg4: memref<1x16xf32, #tpu.memory_space<vmem>>, %arg5: memref<16x12xbf16, #tpu.memory_space<vmem>>, %arg6: memref<1x12xf32, #tpu.memory_space<vmem>>, %arg7: memref<1x12xf32, #tpu.memory_space<vmem>>, %arg8: memref<12x8xbf16, #tpu.memory_space<vmem>>, %arg9: memref<1x8xf32, #tpu.memory_space<vmem>>, %arg10: memref<1x8xf32, #tpu.memory_space<vmem>>, %arg11: memref<8x8xbf16, #tpu.memory_space<vmem>>, %arg12: memref<1x8xf32, #tpu.memory_space<vmem>>, %arg13: memref<1x8xf32, #tpu.memory_space<vmem>>, %arg14: memref<1x1xf32, #tpu.memory_space<vmem>>, %arg15: memref<1x8xf32, #tpu.memory_space<vmem>>, %arg16: memref<16x4xbf16, #tpu.memory_space<vmem>>, %arg17: memref<1x4xf32, #tpu.memory_space<vmem>>, %arg18: memref<1x4xf32, #tpu.memory_space<vmem>>, %arg19: memref<1x8x4xf32, #tpu.memory_space<vmem>>) attributes {dimension_semantics = [#tpu.dimension_semantics<parallel>], iteration_bounds = array<i64: 2>, scalar_prefetch = 0 : i64, scratch_operands = 0 : i64, tpu.core_type = #tpu.core_type<tc>, window_params = [{transform_indices = @transform_0, window_bounds = array<i64: 1, 8, 8>}, {pipeline_mode = #tpu.pipeline_mode<synchronous>, transform_indices = @transform_1, window_bounds = array<i64: 8, 16>}, {pipeline_mode = #tpu.pipeline_mode<synchronous>, transform_indices = @transform_2, window_bounds = array<i64: 1, 16>}, {pipeline_mode = #tpu.pipeline_mode<synchronous>, transform_indices = @transform_3, window_bounds = array<i64: 1, 16>}, {pipeline_mode = #tpu.pipeline_mode<synchronous>, transform_indices = @transform_4, window_bounds = array<i64: 16, 12>}, {pipeline_mode = #tpu.pipeline_mode<synchronous>, transform_indices = @transform_5, window_bounds = array<i64: 1, 12>}, {pipeline_mode = #tpu.pipeline_mode<synchronous>, transform_indices = @transform_6, window_bounds = array<i64: 1, 12>}, {pipeline_mode = #tpu.pipeline_mode<synchronous>, transform_indices = @transform_7, window_bounds = array<i64: 12, 8>}, {pipeline_mode = #tpu.pipeline_mode<synchronous>, transform_indices = @transform_8, window_bounds = array<i64: 1, 8>}, {pipeline_mode = #tpu.pipeline_mode<synchronous>, transform_indices = @transform_9, window_bounds = array<i64: 1, 8>}, {pipeline_mode = #tpu.pipeline_mode<synchronous>, transform_indices = @transform_10, window_bounds = array<i64: 8, 8>}, {pipeline_mode = #tpu.pipeline_mode<synchronous>, transform_indices = @transform_11, window_bounds = array<i64: 1, 8>}, {pipeline_mode = #tpu.pipeline_mode<synchronous>, transform_indices = @transform_12, window_bounds = array<i64: 1, 8>}, {pipeline_mode = #tpu.pipeline_mode<synchronous>, transform_indices = @transform_13, window_bounds = array<i64: 1, 1>}, {pipeline_mode = #tpu.pipeline_mode<synchronous>, transform_indices = @transform_14, window_bounds = array<i64: 1, 8>}, {pipeline_mode = #tpu.pipeline_mode<synchronous>, transform_indices = @transform_15, window_bounds = array<i64: 16, 4>}, {pipeline_mode = #tpu.pipeline_mode<synchronous>, transform_indices = @transform_16, window_bounds = array<i64: 1, 4>}, {pipeline_mode = #tpu.pipeline_mode<synchronous>, transform_indices = @transform_17, window_bounds = array<i64: 1, 4>}, {transform_indices = @transform_18, window_bounds = array<i64: 1, 8, 4>}]} {
    %c0 = arith.constant 0 : index
    %c0_0 = arith.constant 0 : index
    %c0_1 = arith.constant 0 : index
    %0 = vector.load %arg1[%c0, %c0_0, %c0_1] : memref<1x8x8xf32, #tpu.memory_space<vmem>>, vector<1x8x8xf32>
    %1 = arith.truncf %0 : vector<1x8x8xf32> to vector<1x8x8xbf16>
    %2 = vector.shape_cast %0 : vector<1x8x8xf32> to vector<1x8x1x8xf32>
    %3 = vector.shape_cast %0 : vector<1x8x8xf32> to vector<1x1x8x8xf32>
    %4 = vector.broadcast %2 : vector<1x8x1x8xf32> to vector<1x8x8x8xf32>
    %5 = vector.broadcast %3 : vector<1x1x8x8xf32> to vector<1x8x8x8xf32>
    %6 = arith.subf %4, %5 : vector<1x8x8x8xf32>
    %7 = math.absf %6 : vector<1x8x8x8xf32>
    %8 = vector.shape_cast %7 : vector<1x8x8x8xf32> to vector<64x8xf32>
    %9 = arith.truncf %8 : vector<64x8xf32> to vector<64x8xbf16>
    %c0_2 = arith.constant 0 : index
    %c0_3 = arith.constant 0 : index
    %10 = vector.load %arg2[%c0_2, %c0_3] : memref<8x16xbf16, #tpu.memory_space<vmem>>, vector<8x16xbf16>
    %cst = arith.constant dense<0.000000e+00> : vector<64x16xf32>
    %11 = tpu.matmul %9, %10, %cst {dimension_numbers = #tpu.dot_dimension_numbers<[1], [0], [0], [1], [0, 0, 1, 1], [], []>} : vector<64x8xbf16>, vector<8x16xbf16>, vector<64x16xf32> -> vector<64x16xf32>
    %c0_4 = arith.constant 0 : index
    %c0_5 = arith.constant 0 : index
    %12 = vector.load %arg3[%c0_4, %c0_5] : memref<1x16xf32, #tpu.memory_space<vmem>>, vector<1x16xf32>
    %13 = vector.broadcast %12 : vector<1x16xf32> to vector<64x16xf32>
    %14 = arith.mulf %11, %13 : vector<64x16xf32>
    %c0_6 = arith.constant 0 : index
    %c0_7 = arith.constant 0 : index
    %15 = vector.load %arg4[%c0_6, %c0_7] : memref<1x16xf32, #tpu.memory_space<vmem>>, vector<1x16xf32>
    %16 = vector.broadcast %15 : vector<1x16xf32> to vector<64x16xf32>
    %17 = arith.addf %14, %16 : vector<64x16xf32>
    %cst_8 = arith.constant 0.000000e+00 : f32
    %18 = vector.broadcast %cst_8 : f32 to vector<64x16xf32>
    %19 = arith.cmpf ogt, %17, %18 : vector<64x16xf32>
    %cst_9 = arith.constant 0.00999999977 : f32
    %20 = vector.broadcast %cst_9 : f32 to vector<64x16xf32>
    %21 = arith.mulf %20, %17 : vector<64x16xf32>
    %22 = arith.select %19, %17, %21 : vector<64x16xi1>, vector<64x16xf32>
    %23 = arith.truncf %22 : vector<64x16xf32> to vector<64x16xbf16>
    %c0_10 = arith.constant 0 : index
    %c0_11 = arith.constant 0 : index
    %24 = vector.load %arg5[%c0_10, %c0_11] : memref<16x12xbf16, #tpu.memory_space<vmem>>, vector<16x12xbf16>
    %cst_12 = arith.constant dense<0.000000e+00> : vector<64x12xf32>
    %25 = tpu.matmul %23, %24, %cst_12 {dimension_numbers = #tpu.dot_dimension_numbers<[1], [0], [0], [1], [0, 0, 1, 1], [], []>} : vector<64x16xbf16>, vector<16x12xbf16>, vector<64x12xf32> -> vector<64x12xf32>
    %c0_13 = arith.constant 0 : index
    %c0_14 = arith.constant 0 : index
    %26 = vector.load %arg6[%c0_13, %c0_14] : memref<1x12xf32, #tpu.memory_space<vmem>>, vector<1x12xf32>
    %27 = vector.broadcast %26 : vector<1x12xf32> to vector<64x12xf32>
    %28 = arith.mulf %25, %27 : vector<64x12xf32>
    %c0_15 = arith.constant 0 : index
    %c0_16 = arith.constant 0 : index
    %29 = vector.load %arg7[%c0_15, %c0_16] : memref<1x12xf32, #tpu.memory_space<vmem>>, vector<1x12xf32>
    %30 = vector.broadcast %29 : vector<1x12xf32> to vector<64x12xf32>
    %31 = arith.addf %28, %30 : vector<64x12xf32>
    %cst_17 = arith.constant 0.000000e+00 : f32
    %32 = vector.broadcast %cst_17 : f32 to vector<64x12xf32>
    %33 = arith.cmpf ogt, %31, %32 : vector<64x12xf32>
    %cst_18 = arith.constant 0.00999999977 : f32
    %34 = vector.broadcast %cst_18 : f32 to vector<64x12xf32>
    %35 = arith.mulf %34, %31 : vector<64x12xf32>
    %36 = arith.select %33, %31, %35 : vector<64x12xi1>, vector<64x12xf32>
    %37 = arith.truncf %36 : vector<64x12xf32> to vector<64x12xbf16>
    %c0_19 = arith.constant 0 : index
    %c0_20 = arith.constant 0 : index
    %38 = vector.load %arg8[%c0_19, %c0_20] : memref<12x8xbf16, #tpu.memory_space<vmem>>, vector<12x8xbf16>
    %cst_21 = arith.constant dense<0.000000e+00> : vector<64x8xf32>
    %39 = tpu.matmul %37, %38, %cst_21 {dimension_numbers = #tpu.dot_dimension_numbers<[1], [0], [0], [1], [0, 0, 1, 1], [], []>} : vector<64x12xbf16>, vector<12x8xbf16>, vector<64x8xf32> -> vector<64x8xf32>
    %c0_22 = arith.constant 0 : index
    %c0_23 = arith.constant 0 : index
    %40 = vector.load %arg9[%c0_22, %c0_23] : memref<1x8xf32, #tpu.memory_space<vmem>>, vector<1x8xf32>
    %41 = vector.broadcast %40 : vector<1x8xf32> to vector<64x8xf32>
    %42 = arith.mulf %39, %41 : vector<64x8xf32>
    %c0_24 = arith.constant 0 : index
    %c0_25 = arith.constant 0 : index
    %43 = vector.load %arg10[%c0_24, %c0_25] : memref<1x8xf32, #tpu.memory_space<vmem>>, vector<1x8xf32>
    %44 = vector.broadcast %43 : vector<1x8xf32> to vector<64x8xf32>
    %45 = arith.addf %42, %44 : vector<64x8xf32>
    %cst_26 = arith.constant 0.000000e+00 : f32
    %46 = vector.broadcast %cst_26 : f32 to vector<64x8xf32>
    %47 = arith.cmpf ogt, %45, %46 : vector<64x8xf32>
    %cst_27 = arith.constant 0.00999999977 : f32
    %48 = vector.broadcast %cst_27 : f32 to vector<64x8xf32>
    %49 = arith.mulf %48, %45 : vector<64x8xf32>
    %50 = arith.select %47, %45, %49 : vector<64x8xi1>, vector<64x8xf32>
    %51 = arith.truncf %50 : vector<64x8xf32> to vector<64x8xbf16>
    %c0_28 = arith.constant 0 : index
    %c0_29 = arith.constant 0 : index
    %52 = vector.load %arg11[%c0_28, %c0_29] : memref<8x8xbf16, #tpu.memory_space<vmem>>, vector<8x8xbf16>
    %cst_30 = arith.constant dense<0.000000e+00> : vector<64x8xf32>
    %53 = tpu.matmul %51, %52, %cst_30 {dimension_numbers = #tpu.dot_dimension_numbers<[1], [0], [0], [1], [0, 0, 1, 1], [], []>} : vector<64x8xbf16>, vector<8x8xbf16>, vector<64x8xf32> -> vector<64x8xf32>
    %c0_31 = arith.constant 0 : index
    %c0_32 = arith.constant 0 : index
    %54 = vector.load %arg12[%c0_31, %c0_32] : memref<1x8xf32, #tpu.memory_space<vmem>>, vector<1x8xf32>
    %55 = vector.broadcast %54 : vector<1x8xf32> to vector<64x8xf32>
    %56 = arith.mulf %53, %55 : vector<64x8xf32>
    %c0_33 = arith.constant 0 : index
    %c0_34 = arith.constant 0 : index
    %57 = vector.load %arg13[%c0_33, %c0_34] : memref<1x8xf32, #tpu.memory_space<vmem>>, vector<1x8xf32>
    %58 = vector.broadcast %57 : vector<1x8xf32> to vector<64x8xf32>
    %59 = arith.addf %56, %58 : vector<64x8xf32>
    %cst_35 = arith.constant 0.000000e+00 : f32
    %60 = vector.broadcast %cst_35 : f32 to vector<64x8xf32>
    %61 = arith.cmpf ogt, %59, %60 : vector<64x8xf32>
    %cst_36 = arith.constant 0.00999999977 : f32
    %62 = vector.broadcast %cst_36 : f32 to vector<64x8xf32>
    %63 = arith.mulf %62, %59 : vector<64x8xf32>
    %64 = arith.select %61, %59, %63 : vector<64x8xi1>, vector<64x8xf32>
    %65 = vector.shape_cast %64 : vector<64x8xf32> to vector<1x64x8xf32>
    %66 = vector.shape_cast %65 : vector<1x64x8xf32> to vector<1x64x8x1xf32>
    %67 = vector.shape_cast %65 : vector<1x64x8xf32> to vector<1x64x1x8xf32>
    %68 = vector.broadcast %66 : vector<1x64x8x1xf32> to vector<1x64x8x8xf32>
    %69 = vector.broadcast %67 : vector<1x64x1x8xf32> to vector<1x64x8x8xf32>
    %70 = arith.mulf %68, %69 : vector<1x64x8x8xf32>
    %cst_37 = arith.constant dense<0.000000e+00> : vector<1x8x8xf32>
    %71 = vector.multi_reduction <add>, %70, %cst_37 [1] : vector<1x64x8x8xf32> to vector<1x8x8xf32>
    %cst_38 = arith.constant dense<0xFF800000> : vector<1x8xf32>
    %72 = vector.multi_reduction <maximumf>, %71, %cst_38 [2] : vector<1x8x8xf32> to vector<1x8xf32>
    %73 = vector.shape_cast %72 : vector<1x8xf32> to vector<1x8x1xf32>
    %74 = vector.broadcast %73 : vector<1x8x1xf32> to vector<1x8x8xf32>
    %75 = arith.subf %74, %71 : vector<1x8x8xf32>
    %cst_39 = arith.constant dense<0xFF800000> : vector<1x8xf32>
    %76 = vector.multi_reduction <maximumf>, %75, %cst_39 [2] : vector<1x8x8xf32> to vector<1x8xf32>
    %77 = vector.shape_cast %76 : vector<1x8xf32> to vector<1x8x1xf32>
    %78 = vector.broadcast %77 : vector<1x8x1xf32> to vector<1x8x8xf32>
    %79 = arith.subf %75, %78 : vector<1x8x8xf32>
    %80 = math.exp %79 : vector<1x8x8xf32>
    %cst_40 = arith.constant dense<0.000000e+00> : vector<1x8xf32>
    %81 = vector.multi_reduction <add>, %80, %cst_40 [2] : vector<1x8x8xf32> to vector<1x8xf32>
    %82 = vector.shape_cast %81 : vector<1x8xf32> to vector<1x8x1xf32>
    %83 = tpu.reciprocal %82 {approx = true} : vector<1x8x1xf32> -> vector<1x8x1xf32>
    %84 = vector.broadcast %83 : vector<1x8x1xf32> to vector<1x8x8xf32>
    %85 = arith.mulf %80, %84 : vector<1x8x8xf32>
    %cst_41 = arith.constant dense<0.000000e+00> : vector<1x64x8xf32>
    %86 = tpu.matmul %65, %85, %cst_41 {dimension_numbers = #tpu.dot_dimension_numbers<[2], [2], [1], [1], [0, 0, 0, 1, 1, 1], [0], [0]>} : vector<1x64x8xf32>, vector<1x8x8xf32>, vector<1x64x8xf32> -> vector<1x64x8xf32>
    %c0_42 = arith.constant 0 : index
    %c0_43 = arith.constant 0 : index
    %87 = vector.load %arg14[%c0_42, %c0_43] : memref<1x1xf32, #tpu.memory_space<vmem>>, vector<1x1xf32>
    %88 = vector.shape_cast %87 : vector<1x1xf32> to vector<1x1x1xf32>
    %89 = vector.broadcast %88 : vector<1x1x1xf32> to vector<1x64x8xf32>
    %90 = arith.mulf %89, %86 : vector<1x64x8xf32>
    %91 = arith.addf %90, %65 : vector<1x64x8xf32>
    %92 = vector.shape_cast %91 : vector<1x64x8xf32> to vector<1x8x8x8xf32>
    %c0_44 = arith.constant 0 : index
    %c0_45 = arith.constant 0 : index
    %93 = vector.load %arg15[%c0_44, %c0_45] : memref<1x8xf32, #tpu.memory_space<vmem>>, vector<1x8xf32>
    %94 = vector.shape_cast %93 : vector<1x8xf32> to vector<1x1x1x8xf32>
    %95 = vector.broadcast %94 : vector<1x1x1x8xf32> to vector<1x8x8x8xf32>
    %96 = arith.mulf %92, %95 : vector<1x8x8x8xf32>
    %cst_46 = arith.constant dense<0.000000e+00> : vector<1x8x8xf32>
    %97 = vector.multi_reduction <add>, %96, %cst_46 [3] : vector<1x8x8x8xf32> to vector<1x8x8xf32>
    %98 = tpu.iota {dimensions = array<i32: 0>} : vector<8x8xi32>
    %99 = tpu.iota {dimensions = array<i32: 1>} : vector<8x8xi32>
    %100 = arith.cmpi eq, %98, %99 : vector<8x8xi32>
    %101 = vector.shape_cast %100 : vector<8x8xi1> to vector<1x8x8xi1>
    %cst_47 = arith.constant 1.000000e+08 : f32
    %102 = vector.broadcast %cst_47 : f32 to vector<1x8x8xf32>
    %103 = arith.subf %97, %102 : vector<1x8x8xf32>
    %104 = arith.select %101, %103, %97 : vector<1x8x8xi1>, vector<1x8x8xf32>
    %cst_48 = arith.constant dense<0xFF800000> : vector<1x8xf32>
    %105 = vector.multi_reduction <maximumf>, %104, %cst_48 [2] : vector<1x8x8xf32> to vector<1x8xf32>
    %106 = vector.shape_cast %105 : vector<1x8xf32> to vector<1x8x1xf32>
    %107 = vector.broadcast %106 : vector<1x8x1xf32> to vector<1x8x8xf32>
    %108 = arith.subf %104, %107 : vector<1x8x8xf32>
    %109 = math.exp %108 : vector<1x8x8xf32>
    %cst_49 = arith.constant dense<0.000000e+00> : vector<1x8xf32>
    %110 = vector.multi_reduction <add>, %109, %cst_49 [2] : vector<1x8x8xf32> to vector<1x8xf32>
    %111 = vector.shape_cast %110 : vector<1x8xf32> to vector<1x8x1xf32>
    %112 = tpu.reciprocal %111 {approx = true} : vector<1x8x1xf32> -> vector<1x8x1xf32>
    %113 = vector.broadcast %112 : vector<1x8x1xf32> to vector<1x8x8xf32>
    %114 = arith.mulf %109, %113 : vector<1x8x8xf32>
    %115 = arith.truncf %114 : vector<1x8x8xf32> to vector<1x8x8xbf16>
    %cst_50 = arith.constant dense<0.000000e+00> : vector<1x8x8xf32>
    %116 = tpu.matmul %115, %1, %cst_50 {dimension_numbers = #tpu.dot_dimension_numbers<[2], [1], [1], [2], [0, 0, 0, 1, 1, 2], [0], [0]>} : vector<1x8x8xbf16>, vector<1x8x8xbf16>, vector<1x8x8xf32> -> vector<1x8x8xf32>
    %117 = tpu.concatenate %0, %116 in 2 : vector<1x8x8xf32>, vector<1x8x8xf32> -> vector<1x8x16xf32>
    %118 = arith.truncf %117 : vector<1x8x16xf32> to vector<1x8x16xbf16>
    %119 = vector.shape_cast %118 : vector<1x8x16xbf16> to vector<8x16xbf16>
    %c0_51 = arith.constant 0 : index
    %c0_52 = arith.constant 0 : index
    %120 = vector.load %arg16[%c0_51, %c0_52] : memref<16x4xbf16, #tpu.memory_space<vmem>>, vector<16x4xbf16>
    %cst_53 = arith.constant dense<0.000000e+00> : vector<8x4xf32>
    %121 = tpu.matmul %119, %120, %cst_53 {dimension_numbers = #tpu.dot_dimension_numbers<[1], [0], [0], [1], [0, 0, 1, 1], [], []>} : vector<8x16xbf16>, vector<16x4xbf16>, vector<8x4xf32> -> vector<8x4xf32>
    %c0_54 = arith.constant 0 : index
    %c0_55 = arith.constant 0 : index
    %122 = vector.load %arg17[%c0_54, %c0_55] : memref<1x4xf32, #tpu.memory_space<vmem>>, vector<1x4xf32>
    %123 = vector.broadcast %122 : vector<1x4xf32> to vector<8x4xf32>
    %124 = arith.mulf %121, %123 : vector<8x4xf32>
    %c0_56 = arith.constant 0 : index
    %c0_57 = arith.constant 0 : index
    %125 = vector.load %arg18[%c0_56, %c0_57] : memref<1x4xf32, #tpu.memory_space<vmem>>, vector<1x4xf32>
    %126 = vector.broadcast %125 : vector<1x4xf32> to vector<8x4xf32>
    %127 = arith.addf %124, %126 : vector<8x4xf32>
    %cst_58 = arith.constant 0.000000e+00 : f32
    %128 = vector.broadcast %cst_58 : f32 to vector<8x4xf32>
    %129 = arith.cmpf ogt, %127, %128 : vector<8x4xf32>
    %cst_59 = arith.constant 0.00999999977 : f32
    %130 = vector.broadcast %cst_59 : f32 to vector<8x4xf32>
    %131 = arith.mulf %130, %127 : vector<8x4xf32>
    %132 = arith.select %129, %127, %131 : vector<8x4xi1>, vector<8x4xf32>
    %133 = vector.shape_cast %132 : vector<8x4xf32> to vector<1x8x4xf32>
    %c0_60 = arith.constant 0 : index
    %c0_61 = arith.constant 0 : index
    %c0_62 = arith.constant 0 : index
    %134 = vector.load %arg19[%c0_60, %c0_61, %c0_62] : memref<1x8x4xf32, #tpu.memory_space<vmem>>, vector<1x8x4xf32>
    tpu.vector_store %arg19[%c0_60, %c0_61, %c0_62], %133 {strides = array<i32>} : memref<1x8x4xf32, #tpu.memory_space<vmem>>, vector<1x8x4xf32>,
    return
  }
  func.func @transform_0(%arg0: i32) -> (i32, i32, i32) {
    %c0_i32 = arith.constant 0 : i32
    %c0_i32_0 = arith.constant 0 : i32
    %c0_i32_1 = arith.constant 0 : i32
    return %arg0, %c0_i32, %c0_i32_0 : i32, i32, i32
  }
  func.func @transform_1(%arg0: i32) -> (i32, i32) {
    %c0_i32 = arith.constant 0 : i32
    %c0_i32_0 = arith.constant 0 : i32
    %c0_i32_1 = arith.constant 0 : i32
    return %c0_i32, %c0_i32_0 : i32, i32
  }
  func.func @transform_2(%arg0: i32) -> (i32, i32) {
    %c0_i32 = arith.constant 0 : i32
    %c0_i32_0 = arith.constant 0 : i32
    %c0_i32_1 = arith.constant 0 : i32
    return %c0_i32, %c0_i32_0 : i32, i32
  }
  func.func @transform_3(%arg0: i32) -> (i32, i32) {
    %c0_i32 = arith.constant 0 : i32
    %c0_i32_0 = arith.constant 0 : i32
    %c0_i32_1 = arith.constant 0 : i32
    return %c0_i32, %c0_i32_0 : i32, i32
  }
  func.func @transform_4(%arg0: i32) -> (i32, i32) {
    %c0_i32 = arith.constant 0 : i32
    %c0_i32_0 = arith.constant 0 : i32
    %c0_i32_1 = arith.constant 0 : i32
    return %c0_i32, %c0_i32_0 : i32, i32
  }
  func.func @transform_5(%arg0: i32) -> (i32, i32) {
    %c0_i32 = arith.constant 0 : i32
    %c0_i32_0 = arith.constant 0 : i32
    %c0_i32_1 = arith.constant 0 : i32
    return %c0_i32, %c0_i32_0 : i32, i32
  }
  func.func @transform_6(%arg0: i32) -> (i32, i32) {
    %c0_i32 = arith.constant 0 : i32
    %c0_i32_0 = arith.constant 0 : i32
    %c0_i32_1 = arith.constant 0 : i32
    return %c0_i32, %c0_i32_0 : i32, i32
  }
  func.func @transform_7(%arg0: i32) -> (i32, i32) {
    %c0_i32 = arith.constant 0 : i32
    %c0_i32_0 = arith.constant 0 : i32
    %c0_i32_1 = arith.constant 0 : i32
    return %c0_i32, %c0_i32_0 : i32, i32
  }
  func.func @transform_8(%arg0: i32) -> (i32, i32) {
    %c0_i32 = arith.constant 0 : i32
    %c0_i32_0 = arith.constant 0 : i32
    %c0_i32_1 = arith.constant 0 : i32
    return %c0_i32, %c0_i32_0 : i32, i32
  }
  func.func @transform_9(%arg0: i32) -> (i32, i32) {
    %c0_i32 = arith.constant 0 : i32
    %c0_i32_0 = arith.constant 0 : i32
    %c0_i32_1 = arith.constant 0 : i32
    return %c0_i32, %c0_i32_0 : i32, i32
  }
  func.func @transform_10(%arg0: i32) -> (i32, i32) {
    %c0_i32 = arith.constant 0 : i32
    %c0_i32_0 = arith.constant 0 : i32
    %c0_i32_1 = arith.constant 0 : i32
    return %c0_i32, %c0_i32_0 : i32, i32
  }
  func.func @transform_11(%arg0: i32) -> (i32, i32) {
    %c0_i32 = arith.constant 0 : i32
    %c0_i32_0 = arith.constant 0 : i32
    %c0_i32_1 = arith.constant 0 : i32
    return %c0_i32, %c0_i32_0 : i32, i32
  }
  func.func @transform_12(%arg0: i32) -> (i32, i32) {
    %c0_i32 = arith.constant 0 : i32
    %c0_i32_0 = arith.constant 0 : i32
    %c0_i32_1 = arith.constant 0 : i32
    return %c0_i32, %c0_i32_0 : i32, i32
  }
  func.func @transform_13(%arg0: i32) -> (i32, i32) {
    %c0_i32 = arith.constant 0 : i32
    %c0_i32_0 = arith.constant 0 : i32
    %c0_i32_1 = arith.constant 0 : i32
    return %c0_i32, %c0_i32_0 : i32, i32
  }
  func.func @transform_14(%arg0: i32) -> (i32, i32) {
    %c0_i32 = arith.constant 0 : i32
    %c0_i32_0 = arith.constant 0 : i32
    %c0_i32_1 = arith.constant 0 : i32
    return %c0_i32, %c0_i32_0 : i32, i32
  }
  func.func @transform_15(%arg0: i32) -> (i32, i32) {
    %c0_i32 = arith.constant 0 : i32
    %c0_i32_0 = arith.constant 0 : i32
    %c0_i32_1 = arith.constant 0 : i32
    return %c0_i32, %c0_i32_0 : i32, i32
  }
  func.func @transform_16(%arg0: i32) -> (i32, i32) {
    %c0_i32 = arith.constant 0 : i32
    %c0_i32_0 = arith.constant 0 : i32
    %c0_i32_1 = arith.constant 0 : i32
    return %c0_i32, %c0_i32_0 : i32, i32
  }
  func.func @transform_17(%arg0: i32) -> (i32, i32) {
    %c0_i32 = arith.constant 0 : i32
    %c0_i32_0 = arith.constant 0 : i32
    %c0_i32_1 = arith.constant 0 : i32
    return %c0_i32, %c0_i32_0 : i32, i32
  }
  func.func @transform_18(%arg0: i32) -> (i32, i32, i32) {
    %c0_i32 = arith.constant 0 : i32
    %c0_i32_0 = arith.constant 0 : i32
    %c0_i32_1 = arith.constant 0 : i32
    return %arg0, %c0_i32, %c0_i32_0 : i32, i32, i32
  }
}

module attributes {stable_mosaic.version = 11 : i64} {
  func.func @_fused_layer_kernel(%arg0: i32, %arg1: memref<1x8x12xf32, #tpu.memory_space<vmem>>, %arg2: memref<12x24xbf16, #tpu.memory_space<vmem>>, %arg3: memref<1x24xf32, #tpu.memory_space<vmem>>, %arg4: memref<1x24xf32, #tpu.memory_space<vmem>>, %arg5: memref<24x18xbf16, #tpu.memory_space<vmem>>, %arg6: memref<1x18xf32, #tpu.memory_space<vmem>>, %arg7: memref<1x18xf32, #tpu.memory_space<vmem>>, %arg8: memref<18x12xbf16, #tpu.memory_space<vmem>>, %arg9: memref<1x12xf32, #tpu.memory_space<vmem>>, %arg10: memref<1x12xf32, #tpu.memory_space<vmem>>, %arg11: memref<12x12xbf16, #tpu.memory_space<vmem>>, %arg12: memref<1x12xf32, #tpu.memory_space<vmem>>, %arg13: memref<1x12xf32, #tpu.memory_space<vmem>>, %arg14: memref<1x1xf32, #tpu.memory_space<vmem>>, %arg15: memref<1x12xf32, #tpu.memory_space<vmem>>, %arg16: memref<24x4xbf16, #tpu.memory_space<vmem>>, %arg17: memref<1x4xf32, #tpu.memory_space<vmem>>, %arg18: memref<1x4xf32, #tpu.memory_space<vmem>>, %arg19: memref<1x8x4xf32, #tpu.memory_space<vmem>>) attributes {dimension_semantics = [#tpu.dimension_semantics<parallel>], iteration_bounds = array<i64: 2>, scalar_prefetch = 0 : i64, scratch_operands = 0 : i64, tpu.core_type = #tpu.core_type<tc>, window_params = [{transform_indices = @transform_0, window_bounds = array<i64: 1, 8, 12>}, {pipeline_mode = #tpu.pipeline_mode<synchronous>, transform_indices = @transform_1, window_bounds = array<i64: 12, 24>}, {pipeline_mode = #tpu.pipeline_mode<synchronous>, transform_indices = @transform_2, window_bounds = array<i64: 1, 24>}, {pipeline_mode = #tpu.pipeline_mode<synchronous>, transform_indices = @transform_3, window_bounds = array<i64: 1, 24>}, {pipeline_mode = #tpu.pipeline_mode<synchronous>, transform_indices = @transform_4, window_bounds = array<i64: 24, 18>}, {pipeline_mode = #tpu.pipeline_mode<synchronous>, transform_indices = @transform_5, window_bounds = array<i64: 1, 18>}, {pipeline_mode = #tpu.pipeline_mode<synchronous>, transform_indices = @transform_6, window_bounds = array<i64: 1, 18>}, {pipeline_mode = #tpu.pipeline_mode<synchronous>, transform_indices = @transform_7, window_bounds = array<i64: 18, 12>}, {pipeline_mode = #tpu.pipeline_mode<synchronous>, transform_indices = @transform_8, window_bounds = array<i64: 1, 12>}, {pipeline_mode = #tpu.pipeline_mode<synchronous>, transform_indices = @transform_9, window_bounds = array<i64: 1, 12>}, {pipeline_mode = #tpu.pipeline_mode<synchronous>, transform_indices = @transform_10, window_bounds = array<i64: 12, 12>}, {pipeline_mode = #tpu.pipeline_mode<synchronous>, transform_indices = @transform_11, window_bounds = array<i64: 1, 12>}, {pipeline_mode = #tpu.pipeline_mode<synchronous>, transform_indices = @transform_12, window_bounds = array<i64: 1, 12>}, {pipeline_mode = #tpu.pipeline_mode<synchronous>, transform_indices = @transform_13, window_bounds = array<i64: 1, 1>}, {pipeline_mode = #tpu.pipeline_mode<synchronous>, transform_indices = @transform_14, window_bounds = array<i64: 1, 12>}, {pipeline_mode = #tpu.pipeline_mode<synchronous>, transform_indices = @transform_15, window_bounds = array<i64: 24, 4>}, {pipeline_mode = #tpu.pipeline_mode<synchronous>, transform_indices = @transform_16, window_bounds = array<i64: 1, 4>}, {pipeline_mode = #tpu.pipeline_mode<synchronous>, transform_indices = @transform_17, window_bounds = array<i64: 1, 4>}, {transform_indices = @transform_18, window_bounds = array<i64: 1, 8, 4>}]} {
    %c0 = arith.constant 0 : index
    %c0_0 = arith.constant 0 : index
    %c0_1 = arith.constant 0 : index
    %0 = vector.load %arg1[%c0, %c0_0, %c0_1] : memref<1x8x12xf32, #tpu.memory_space<vmem>>, vector<1x8x12xf32>
    %1 = arith.truncf %0 : vector<1x8x12xf32> to vector<1x8x12xbf16>
    %2 = vector.shape_cast %0 : vector<1x8x12xf32> to vector<1x8x1x12xf32>
    %3 = vector.shape_cast %0 : vector<1x8x12xf32> to vector<1x1x8x12xf32>
    %4 = vector.broadcast %2 : vector<1x8x1x12xf32> to vector<1x8x8x12xf32>
    %5 = vector.broadcast %3 : vector<1x1x8x12xf32> to vector<1x8x8x12xf32>
    %6 = arith.subf %4, %5 : vector<1x8x8x12xf32>
    %7 = math.absf %6 : vector<1x8x8x12xf32>
    %8 = vector.shape_cast %7 : vector<1x8x8x12xf32> to vector<64x12xf32>
    %9 = arith.truncf %8 : vector<64x12xf32> to vector<64x12xbf16>
    %c0_2 = arith.constant 0 : index
    %c0_3 = arith.constant 0 : index
    %10 = vector.load %arg2[%c0_2, %c0_3] : memref<12x24xbf16, #tpu.memory_space<vmem>>, vector<12x24xbf16>
    %cst = arith.constant dense<0.000000e+00> : vector<64x24xf32>
    %11 = tpu.matmul %9, %10, %cst {dimension_numbers = #tpu.dot_dimension_numbers<[1], [0], [0], [1], [0, 0, 1, 1], [], []>} : vector<64x12xbf16>, vector<12x24xbf16>, vector<64x24xf32> -> vector<64x24xf32>
    %c0_4 = arith.constant 0 : index
    %c0_5 = arith.constant 0 : index
    %12 = vector.load %arg3[%c0_4, %c0_5] : memref<1x24xf32, #tpu.memory_space<vmem>>, vector<1x24xf32>
    %13 = vector.broadcast %12 : vector<1x24xf32> to vector<64x24xf32>
    %14 = arith.mulf %11, %13 : vector<64x24xf32>
    %c0_6 = arith.constant 0 : index
    %c0_7 = arith.constant 0 : index
    %15 = vector.load %arg4[%c0_6, %c0_7] : memref<1x24xf32, #tpu.memory_space<vmem>>, vector<1x24xf32>
    %16 = vector.broadcast %15 : vector<1x24xf32> to vector<64x24xf32>
    %17 = arith.addf %14, %16 : vector<64x24xf32>
    %cst_8 = arith.constant 0.000000e+00 : f32
    %18 = vector.broadcast %cst_8 : f32 to vector<64x24xf32>
    %19 = arith.cmpf ogt, %17, %18 : vector<64x24xf32>
    %cst_9 = arith.constant 0.00999999977 : f32
    %20 = vector.broadcast %cst_9 : f32 to vector<64x24xf32>
    %21 = arith.mulf %20, %17 : vector<64x24xf32>
    %22 = arith.select %19, %17, %21 : vector<64x24xi1>, vector<64x24xf32>
    %23 = arith.truncf %22 : vector<64x24xf32> to vector<64x24xbf16>
    %c0_10 = arith.constant 0 : index
    %c0_11 = arith.constant 0 : index
    %24 = vector.load %arg5[%c0_10, %c0_11] : memref<24x18xbf16, #tpu.memory_space<vmem>>, vector<24x18xbf16>
    %cst_12 = arith.constant dense<0.000000e+00> : vector<64x18xf32>
    %25 = tpu.matmul %23, %24, %cst_12 {dimension_numbers = #tpu.dot_dimension_numbers<[1], [0], [0], [1], [0, 0, 1, 1], [], []>} : vector<64x24xbf16>, vector<24x18xbf16>, vector<64x18xf32> -> vector<64x18xf32>
    %c0_13 = arith.constant 0 : index
    %c0_14 = arith.constant 0 : index
    %26 = vector.load %arg6[%c0_13, %c0_14] : memref<1x18xf32, #tpu.memory_space<vmem>>, vector<1x18xf32>
    %27 = vector.broadcast %26 : vector<1x18xf32> to vector<64x18xf32>
    %28 = arith.mulf %25, %27 : vector<64x18xf32>
    %c0_15 = arith.constant 0 : index
    %c0_16 = arith.constant 0 : index
    %29 = vector.load %arg7[%c0_15, %c0_16] : memref<1x18xf32, #tpu.memory_space<vmem>>, vector<1x18xf32>
    %30 = vector.broadcast %29 : vector<1x18xf32> to vector<64x18xf32>
    %31 = arith.addf %28, %30 : vector<64x18xf32>
    %cst_17 = arith.constant 0.000000e+00 : f32
    %32 = vector.broadcast %cst_17 : f32 to vector<64x18xf32>
    %33 = arith.cmpf ogt, %31, %32 : vector<64x18xf32>
    %cst_18 = arith.constant 0.00999999977 : f32
    %34 = vector.broadcast %cst_18 : f32 to vector<64x18xf32>
    %35 = arith.mulf %34, %31 : vector<64x18xf32>
    %36 = arith.select %33, %31, %35 : vector<64x18xi1>, vector<64x18xf32>
    %37 = arith.truncf %36 : vector<64x18xf32> to vector<64x18xbf16>
    %c0_19 = arith.constant 0 : index
    %c0_20 = arith.constant 0 : index
    %38 = vector.load %arg8[%c0_19, %c0_20] : memref<18x12xbf16, #tpu.memory_space<vmem>>, vector<18x12xbf16>
    %cst_21 = arith.constant dense<0.000000e+00> : vector<64x12xf32>
    %39 = tpu.matmul %37, %38, %cst_21 {dimension_numbers = #tpu.dot_dimension_numbers<[1], [0], [0], [1], [0, 0, 1, 1], [], []>} : vector<64x18xbf16>, vector<18x12xbf16>, vector<64x12xf32> -> vector<64x12xf32>
    %c0_22 = arith.constant 0 : index
    %c0_23 = arith.constant 0 : index
    %40 = vector.load %arg9[%c0_22, %c0_23] : memref<1x12xf32, #tpu.memory_space<vmem>>, vector<1x12xf32>
    %41 = vector.broadcast %40 : vector<1x12xf32> to vector<64x12xf32>
    %42 = arith.mulf %39, %41 : vector<64x12xf32>
    %c0_24 = arith.constant 0 : index
    %c0_25 = arith.constant 0 : index
    %43 = vector.load %arg10[%c0_24, %c0_25] : memref<1x12xf32, #tpu.memory_space<vmem>>, vector<1x12xf32>
    %44 = vector.broadcast %43 : vector<1x12xf32> to vector<64x12xf32>
    %45 = arith.addf %42, %44 : vector<64x12xf32>
    %cst_26 = arith.constant 0.000000e+00 : f32
    %46 = vector.broadcast %cst_26 : f32 to vector<64x12xf32>
    %47 = arith.cmpf ogt, %45, %46 : vector<64x12xf32>
    %cst_27 = arith.constant 0.00999999977 : f32
    %48 = vector.broadcast %cst_27 : f32 to vector<64x12xf32>
    %49 = arith.mulf %48, %45 : vector<64x12xf32>
    %50 = arith.select %47, %45, %49 : vector<64x12xi1>, vector<64x12xf32>
    %51 = arith.truncf %50 : vector<64x12xf32> to vector<64x12xbf16>
    %c0_28 = arith.constant 0 : index
    %c0_29 = arith.constant 0 : index
    %52 = vector.load %arg11[%c0_28, %c0_29] : memref<12x12xbf16, #tpu.memory_space<vmem>>, vector<12x12xbf16>
    %cst_30 = arith.constant dense<0.000000e+00> : vector<64x12xf32>
    %53 = tpu.matmul %51, %52, %cst_30 {dimension_numbers = #tpu.dot_dimension_numbers<[1], [0], [0], [1], [0, 0, 1, 1], [], []>} : vector<64x12xbf16>, vector<12x12xbf16>, vector<64x12xf32> -> vector<64x12xf32>
    %c0_31 = arith.constant 0 : index
    %c0_32 = arith.constant 0 : index
    %54 = vector.load %arg12[%c0_31, %c0_32] : memref<1x12xf32, #tpu.memory_space<vmem>>, vector<1x12xf32>
    %55 = vector.broadcast %54 : vector<1x12xf32> to vector<64x12xf32>
    %56 = arith.mulf %53, %55 : vector<64x12xf32>
    %c0_33 = arith.constant 0 : index
    %c0_34 = arith.constant 0 : index
    %57 = vector.load %arg13[%c0_33, %c0_34] : memref<1x12xf32, #tpu.memory_space<vmem>>, vector<1x12xf32>
    %58 = vector.broadcast %57 : vector<1x12xf32> to vector<64x12xf32>
    %59 = arith.addf %56, %58 : vector<64x12xf32>
    %cst_35 = arith.constant 0.000000e+00 : f32
    %60 = vector.broadcast %cst_35 : f32 to vector<64x12xf32>
    %61 = arith.cmpf ogt, %59, %60 : vector<64x12xf32>
    %cst_36 = arith.constant 0.00999999977 : f32
    %62 = vector.broadcast %cst_36 : f32 to vector<64x12xf32>
    %63 = arith.mulf %62, %59 : vector<64x12xf32>
    %64 = arith.select %61, %59, %63 : vector<64x12xi1>, vector<64x12xf32>
    %65 = vector.shape_cast %64 : vector<64x12xf32> to vector<1x64x12xf32>
    %66 = vector.shape_cast %65 : vector<1x64x12xf32> to vector<1x64x12x1xf32>
    %67 = vector.shape_cast %65 : vector<1x64x12xf32> to vector<1x64x1x12xf32>
    %68 = vector.broadcast %66 : vector<1x64x12x1xf32> to vector<1x64x12x12xf32>
    %69 = vector.broadcast %67 : vector<1x64x1x12xf32> to vector<1x64x12x12xf32>
    %70 = arith.mulf %68, %69 : vector<1x64x12x12xf32>
    %cst_37 = arith.constant dense<0.000000e+00> : vector<1x12x12xf32>
    %71 = vector.multi_reduction <add>, %70, %cst_37 [1] : vector<1x64x12x12xf32> to vector<1x12x12xf32>
    %cst_38 = arith.constant dense<0xFF800000> : vector<1x12xf32>
    %72 = vector.multi_reduction <maximumf>, %71, %cst_38 [2] : vector<1x12x12xf32> to vector<1x12xf32>
    %73 = vector.shape_cast %72 : vector<1x12xf32> to vector<1x12x1xf32>
    %74 = vector.broadcast %73 : vector<1x12x1xf32> to vector<1x12x12xf32>
    %75 = arith.subf %74, %71 : vector<1x12x12xf32>
    %cst_39 = arith.constant dense<0xFF800000> : vector<1x12xf32>
    %76 = vector.multi_reduction <maximumf>, %75, %cst_39 [2] : vector<1x12x12xf32> to vector<1x12xf32>
    %77 = vector.shape_cast %76 : vector<1x12xf32> to vector<1x12x1xf32>
    %78 = vector.broadcast %77 : vector<1x12x1xf32> to vector<1x12x12xf32>
    %79 = arith.subf %75, %78 : vector<1x12x12xf32>
    %80 = math.exp %79 : vector<1x12x12xf32>
    %cst_40 = arith.constant dense<0.000000e+00> : vector<1x12xf32>
    %81 = vector.multi_reduction <add>, %80, %cst_40 [2] : vector<1x12x12xf32> to vector<1x12xf32>
    %82 = vector.shape_cast %81 : vector<1x12xf32> to vector<1x12x1xf32>
    %83 = tpu.reciprocal %82 {approx = true} : vector<1x12x1xf32> -> vector<1x12x1xf32>
    %84 = vector.broadcast %83 : vector<1x12x1xf32> to vector<1x12x12xf32>
    %85 = arith.mulf %80, %84 : vector<1x12x12xf32>
    %cst_41 = arith.constant dense<0.000000e+00> : vector<1x64x12xf32>
    %86 = tpu.matmul %65, %85, %cst_41 {dimension_numbers = #tpu.dot_dimension_numbers<[2], [2], [1], [1], [0, 0, 0, 1, 1, 1], [0], [0]>} : vector<1x64x12xf32>, vector<1x12x12xf32>, vector<1x64x12xf32> -> vector<1x64x12xf32>
    %c0_42 = arith.constant 0 : index
    %c0_43 = arith.constant 0 : index
    %87 = vector.load %arg14[%c0_42, %c0_43] : memref<1x1xf32, #tpu.memory_space<vmem>>, vector<1x1xf32>
    %88 = vector.shape_cast %87 : vector<1x1xf32> to vector<1x1x1xf32>
    %89 = vector.broadcast %88 : vector<1x1x1xf32> to vector<1x64x12xf32>
    %90 = arith.mulf %89, %86 : vector<1x64x12xf32>
    %91 = arith.addf %90, %65 : vector<1x64x12xf32>
    %92 = vector.shape_cast %91 : vector<1x64x12xf32> to vector<1x8x8x12xf32>
    %c0_44 = arith.constant 0 : index
    %c0_45 = arith.constant 0 : index
    %93 = vector.load %arg15[%c0_44, %c0_45] : memref<1x12xf32, #tpu.memory_space<vmem>>, vector<1x12xf32>
    %94 = vector.shape_cast %93 : vector<1x12xf32> to vector<1x1x1x12xf32>
    %95 = vector.broadcast %94 : vector<1x1x1x12xf32> to vector<1x8x8x12xf32>
    %96 = arith.mulf %92, %95 : vector<1x8x8x12xf32>
    %cst_46 = arith.constant dense<0.000000e+00> : vector<1x8x8xf32>
    %97 = vector.multi_reduction <add>, %96, %cst_46 [3] : vector<1x8x8x12xf32> to vector<1x8x8xf32>
    %98 = tpu.iota {dimensions = array<i32: 0>} : vector<8x8xi32>
    %99 = tpu.iota {dimensions = array<i32: 1>} : vector<8x8xi32>
    %100 = arith.cmpi eq, %98, %99 : vector<8x8xi32>
    %101 = vector.shape_cast %100 : vector<8x8xi1> to vector<1x8x8xi1>
    %cst_47 = arith.constant 1.000000e+08 : f32
    %102 = vector.broadcast %cst_47 : f32 to vector<1x8x8xf32>
    %103 = arith.subf %97, %102 : vector<1x8x8xf32>
    %104 = arith.select %101, %103, %97 : vector<1x8x8xi1>, vector<1x8x8xf32>
    %cst_48 = arith.constant dense<0xFF800000> : vector<1x8xf32>
    %105 = vector.multi_reduction <maximumf>, %104, %cst_48 [2] : vector<1x8x8xf32> to vector<1x8xf32>
    %106 = vector.shape_cast %105 : vector<1x8xf32> to vector<1x8x1xf32>
    %107 = vector.broadcast %106 : vector<1x8x1xf32> to vector<1x8x8xf32>
    %108 = arith.subf %104, %107 : vector<1x8x8xf32>
    %109 = math.exp %108 : vector<1x8x8xf32>
    %cst_49 = arith.constant dense<0.000000e+00> : vector<1x8xf32>
    %110 = vector.multi_reduction <add>, %109, %cst_49 [2] : vector<1x8x8xf32> to vector<1x8xf32>
    %111 = vector.shape_cast %110 : vector<1x8xf32> to vector<1x8x1xf32>
    %112 = tpu.reciprocal %111 {approx = true} : vector<1x8x1xf32> -> vector<1x8x1xf32>
    %113 = vector.broadcast %112 : vector<1x8x1xf32> to vector<1x8x8xf32>
    %114 = arith.mulf %109, %113 : vector<1x8x8xf32>
    %115 = arith.truncf %114 : vector<1x8x8xf32> to vector<1x8x8xbf16>
    %cst_50 = arith.constant dense<0.000000e+00> : vector<1x8x12xf32>
    %116 = tpu.matmul %115, %1, %cst_50 {dimension_numbers = #tpu.dot_dimension_numbers<[2], [1], [1], [2], [0, 0, 0, 1, 1, 2], [0], [0]>} : vector<1x8x8xbf16>, vector<1x8x12xbf16>, vector<1x8x12xf32> -> vector<1x8x12xf32>
    %117 = tpu.concatenate %0, %116 in 2 : vector<1x8x12xf32>, vector<1x8x12xf32> -> vector<1x8x24xf32>
    %118 = arith.truncf %117 : vector<1x8x24xf32> to vector<1x8x24xbf16>
    %119 = vector.shape_cast %118 : vector<1x8x24xbf16> to vector<8x24xbf16>
    %c0_51 = arith.constant 0 : index
    %c0_52 = arith.constant 0 : index
    %120 = vector.load %arg16[%c0_51, %c0_52] : memref<24x4xbf16, #tpu.memory_space<vmem>>, vector<24x4xbf16>
    %cst_53 = arith.constant dense<0.000000e+00> : vector<8x4xf32>
    %121 = tpu.matmul %119, %120, %cst_53 {dimension_numbers = #tpu.dot_dimension_numbers<[1], [0], [0], [1], [0, 0, 1, 1], [], []>} : vector<8x24xbf16>, vector<24x4xbf16>, vector<8x4xf32> -> vector<8x4xf32>
    %c0_54 = arith.constant 0 : index
    %c0_55 = arith.constant 0 : index
    %122 = vector.load %arg17[%c0_54, %c0_55] : memref<1x4xf32, #tpu.memory_space<vmem>>, vector<1x4xf32>
    %123 = vector.broadcast %122 : vector<1x4xf32> to vector<8x4xf32>
    %124 = arith.mulf %121, %123 : vector<8x4xf32>
    %c0_56 = arith.constant 0 : index
    %c0_57 = arith.constant 0 : index
    %125 = vector.load %arg18[%c0_56, %c0_57] : memref<1x4xf32, #tpu.memory_space<vmem>>, vector<1x4xf32>
    %126 = vector.broadcast %125 : vector<1x4xf32> to vector<8x4xf32>
    %127 = arith.addf %124, %126 : vector<8x4xf32>
    %cst_58 = arith.constant 0.000000e+00 : f32
    %128 = vector.broadcast %cst_58 : f32 to vector<8x4xf32>
    %129 = arith.cmpf ogt, %127, %128 : vector<8x4xf32>
    %cst_59 = arith.constant 0.00999999977 : f32
    %130 = vector.broadcast %cst_59 : f32 to vector<8x4xf32>
    %131 = arith.mulf %130, %127 : vector<8x4xf32>
    %132 = arith.select %129, %127, %131 : vector<8x4xi1>, vector<8x4xf32>
    %133 = vector.shape_cast %132 : vector<8x4xf32> to vector<1x8x4xf32>
    %c0_60 = arith.constant 0 : index
    %c0_61 = arith.constant 0 : index
    %c0_62 = arith.constant 0 : index
    %134 = vector.load %arg19[%c0_60, %c0_61, %c0_62] : memref<1x8x4xf32, #tpu.memory_space<vmem>>, vector<1x8x4xf32>
    tpu.vector_store %arg19[%c0_60, %c0_61, %c0_62], %133 {strides = array<i32>} : memref<1x8x4xf32, #tpu.memory_space<vmem>>, vector<1x8x4xf32>,
    return
  }
  func.func @transform_0(%arg0: i32) -> (i32, i32, i32) {
    %c0_i32 = arith.constant 0 : i32
    %c0_i32_0 = arith.constant 0 : i32
    %c0_i32_1 = arith.constant 0 : i32
    return %arg0, %c0_i32, %c0_i32_0 : i32, i32, i32
  }
  func.func @transform_1(%arg0: i32) -> (i32, i32) {
    %c0_i32 = arith.constant 0 : i32
    %c0_i32_0 = arith.constant 0 : i32
    %c0_i32_1 = arith.constant 0 : i32
    return %c0_i32, %c0_i32_0 : i32, i32
  }
  func.func @transform_2(%arg0: i32) -> (i32, i32) {
    %c0_i32 = arith.constant 0 : i32
    %c0_i32_0 = arith.constant 0 : i32
    %c0_i32_1 = arith.constant 0 : i32
    return %c0_i32, %c0_i32_0 : i32, i32
  }
  func.func @transform_3(%arg0: i32) -> (i32, i32) {
    %c0_i32 = arith.constant 0 : i32
    %c0_i32_0 = arith.constant 0 : i32
    %c0_i32_1 = arith.constant 0 : i32
    return %c0_i32, %c0_i32_0 : i32, i32
  }
  func.func @transform_4(%arg0: i32) -> (i32, i32) {
    %c0_i32 = arith.constant 0 : i32
    %c0_i32_0 = arith.constant 0 : i32
    %c0_i32_1 = arith.constant 0 : i32
    return %c0_i32, %c0_i32_0 : i32, i32
  }
  func.func @transform_5(%arg0: i32) -> (i32, i32) {
    %c0_i32 = arith.constant 0 : i32
    %c0_i32_0 = arith.constant 0 : i32
    %c0_i32_1 = arith.constant 0 : i32
    return %c0_i32, %c0_i32_0 : i32, i32
  }
  func.func @transform_6(%arg0: i32) -> (i32, i32) {
    %c0_i32 = arith.constant 0 : i32
    %c0_i32_0 = arith.constant 0 : i32
    %c0_i32_1 = arith.constant 0 : i32
    return %c0_i32, %c0_i32_0 : i32, i32
  }
  func.func @transform_7(%arg0: i32) -> (i32, i32) {
    %c0_i32 = arith.constant 0 : i32
    %c0_i32_0 = arith.constant 0 : i32
    %c0_i32_1 = arith.constant 0 : i32
    return %c0_i32, %c0_i32_0 : i32, i32
  }
  func.func @transform_8(%arg0: i32) -> (i32, i32) {
    %c0_i32 = arith.constant 0 : i32
    %c0_i32_0 = arith.constant 0 : i32
    %c0_i32_1 = arith.constant 0 : i32
    return %c0_i32, %c0_i32_0 : i32, i32
  }
  func.func @transform_9(%arg0: i32) -> (i32, i32) {
    %c0_i32 = arith.constant 0 : i32
    %c0_i32_0 = arith.constant 0 : i32
    %c0_i32_1 = arith.constant 0 : i32
    return %c0_i32, %c0_i32_0 : i32, i32
  }
  func.func @transform_10(%arg0: i32) -> (i32, i32) {
    %c0_i32 = arith.constant 0 : i32
    %c0_i32_0 = arith.constant 0 : i32
    %c0_i32_1 = arith.constant 0 : i32
    return %c0_i32, %c0_i32_0 : i32, i32
  }
  func.func @transform_11(%arg0: i32) -> (i32, i32) {
    %c0_i32 = arith.constant 0 : i32
    %c0_i32_0 = arith.constant 0 : i32
    %c0_i32_1 = arith.constant 0 : i32
    return %c0_i32, %c0_i32_0 : i32, i32
  }
  func.func @transform_12(%arg0: i32) -> (i32, i32) {
    %c0_i32 = arith.constant 0 : i32
    %c0_i32_0 = arith.constant 0 : i32
    %c0_i32_1 = arith.constant 0 : i32
    return %c0_i32, %c0_i32_0 : i32, i32
  }
  func.func @transform_13(%arg0: i32) -> (i32, i32) {
    %c0_i32 = arith.constant 0 : i32
    %c0_i32_0 = arith.constant 0 : i32
    %c0_i32_1 = arith.constant 0 : i32
    return %c0_i32, %c0_i32_0 : i32, i32
  }
  func.func @transform_14(%arg0: i32) -> (i32, i32) {
    %c0_i32 = arith.constant 0 : i32
    %c0_i32_0 = arith.constant 0 : i32
    %c0_i32_1 = arith.constant 0 : i32
    return %c0_i32, %c0_i32_0 : i32, i32
  }
  func.func @transform_15(%arg0: i32) -> (i32, i32) {
    %c0_i32 = arith.constant 0 : i32
    %c0_i32_0 = arith.constant 0 : i32
    %c0_i32_1 = arith.constant 0 : i32
    return %c0_i32, %c0_i32_0 : i32, i32
  }
  func.func @transform_16(%arg0: i32) -> (i32, i32) {
    %c0_i32 = arith.constant 0 : i32
    %c0_i32_0 = arith.constant 0 : i32
    %c0_i32_1 = arith.constant 0 : i32
    return %c0_i32, %c0_i32_0 : i32, i32
  }
  func.func @transform_17(%arg0: i32) -> (i32, i32) {
    %c0_i32 = arith.constant 0 : i32
    %c0_i32_0 = arith.constant 0 : i32
    %c0_i32_1 = arith.constant 0 : i32
    return %c0_i32, %c0_i32_0 : i32, i32
  }
  func.func @transform_18(%arg0: i32) -> (i32, i32, i32) {
    %c0_i32 = arith.constant 0 : i32
    %c0_i32_0 = arith.constant 0 : i32
    %c0_i32_1 = arith.constant 0 : i32
    return %arg0, %c0_i32, %c0_i32_0 : i32, i32, i32
  }
}

module attributes {stable_mosaic.version = 11 : i64} {
  func.func @_fused_layer_kernel(%arg0: i32, %arg1: memref<1x8x16xf32, #tpu.memory_space<vmem>>, %arg2: memref<16x24xbf16, #tpu.memory_space<vmem>>, %arg3: memref<1x24xf32, #tpu.memory_space<vmem>>, %arg4: memref<1x24xf32, #tpu.memory_space<vmem>>, %arg5: memref<24x18xbf16, #tpu.memory_space<vmem>>, %arg6: memref<1x18xf32, #tpu.memory_space<vmem>>, %arg7: memref<1x18xf32, #tpu.memory_space<vmem>>, %arg8: memref<18x12xbf16, #tpu.memory_space<vmem>>, %arg9: memref<1x12xf32, #tpu.memory_space<vmem>>, %arg10: memref<1x12xf32, #tpu.memory_space<vmem>>, %arg11: memref<12x12xbf16, #tpu.memory_space<vmem>>, %arg12: memref<1x12xf32, #tpu.memory_space<vmem>>, %arg13: memref<1x12xf32, #tpu.memory_space<vmem>>, %arg14: memref<1x1xf32, #tpu.memory_space<vmem>>, %arg15: memref<1x12xf32, #tpu.memory_space<vmem>>, %arg16: memref<32x4xbf16, #tpu.memory_space<vmem>>, %arg17: memref<1x4xf32, #tpu.memory_space<vmem>>, %arg18: memref<1x4xf32, #tpu.memory_space<vmem>>, %arg19: memref<1x8x4xf32, #tpu.memory_space<vmem>>) attributes {dimension_semantics = [#tpu.dimension_semantics<parallel>], iteration_bounds = array<i64: 2>, scalar_prefetch = 0 : i64, scratch_operands = 0 : i64, tpu.core_type = #tpu.core_type<tc>, window_params = [{transform_indices = @transform_0, window_bounds = array<i64: 1, 8, 16>}, {pipeline_mode = #tpu.pipeline_mode<synchronous>, transform_indices = @transform_1, window_bounds = array<i64: 16, 24>}, {pipeline_mode = #tpu.pipeline_mode<synchronous>, transform_indices = @transform_2, window_bounds = array<i64: 1, 24>}, {pipeline_mode = #tpu.pipeline_mode<synchronous>, transform_indices = @transform_3, window_bounds = array<i64: 1, 24>}, {pipeline_mode = #tpu.pipeline_mode<synchronous>, transform_indices = @transform_4, window_bounds = array<i64: 24, 18>}, {pipeline_mode = #tpu.pipeline_mode<synchronous>, transform_indices = @transform_5, window_bounds = array<i64: 1, 18>}, {pipeline_mode = #tpu.pipeline_mode<synchronous>, transform_indices = @transform_6, window_bounds = array<i64: 1, 18>}, {pipeline_mode = #tpu.pipeline_mode<synchronous>, transform_indices = @transform_7, window_bounds = array<i64: 18, 12>}, {pipeline_mode = #tpu.pipeline_mode<synchronous>, transform_indices = @transform_8, window_bounds = array<i64: 1, 12>}, {pipeline_mode = #tpu.pipeline_mode<synchronous>, transform_indices = @transform_9, window_bounds = array<i64: 1, 12>}, {pipeline_mode = #tpu.pipeline_mode<synchronous>, transform_indices = @transform_10, window_bounds = array<i64: 12, 12>}, {pipeline_mode = #tpu.pipeline_mode<synchronous>, transform_indices = @transform_11, window_bounds = array<i64: 1, 12>}, {pipeline_mode = #tpu.pipeline_mode<synchronous>, transform_indices = @transform_12, window_bounds = array<i64: 1, 12>}, {pipeline_mode = #tpu.pipeline_mode<synchronous>, transform_indices = @transform_13, window_bounds = array<i64: 1, 1>}, {pipeline_mode = #tpu.pipeline_mode<synchronous>, transform_indices = @transform_14, window_bounds = array<i64: 1, 12>}, {pipeline_mode = #tpu.pipeline_mode<synchronous>, transform_indices = @transform_15, window_bounds = array<i64: 32, 4>}, {pipeline_mode = #tpu.pipeline_mode<synchronous>, transform_indices = @transform_16, window_bounds = array<i64: 1, 4>}, {pipeline_mode = #tpu.pipeline_mode<synchronous>, transform_indices = @transform_17, window_bounds = array<i64: 1, 4>}, {transform_indices = @transform_18, window_bounds = array<i64: 1, 8, 4>}]} {
    %c0 = arith.constant 0 : index
    %c0_0 = arith.constant 0 : index
    %c0_1 = arith.constant 0 : index
    %0 = vector.load %arg1[%c0, %c0_0, %c0_1] : memref<1x8x16xf32, #tpu.memory_space<vmem>>, vector<1x8x16xf32>
    %1 = arith.truncf %0 : vector<1x8x16xf32> to vector<1x8x16xbf16>
    %2 = vector.shape_cast %0 : vector<1x8x16xf32> to vector<1x8x1x16xf32>
    %3 = vector.shape_cast %0 : vector<1x8x16xf32> to vector<1x1x8x16xf32>
    %4 = vector.broadcast %2 : vector<1x8x1x16xf32> to vector<1x8x8x16xf32>
    %5 = vector.broadcast %3 : vector<1x1x8x16xf32> to vector<1x8x8x16xf32>
    %6 = arith.subf %4, %5 : vector<1x8x8x16xf32>
    %7 = math.absf %6 : vector<1x8x8x16xf32>
    %8 = vector.shape_cast %7 : vector<1x8x8x16xf32> to vector<64x16xf32>
    %9 = arith.truncf %8 : vector<64x16xf32> to vector<64x16xbf16>
    %c0_2 = arith.constant 0 : index
    %c0_3 = arith.constant 0 : index
    %10 = vector.load %arg2[%c0_2, %c0_3] : memref<16x24xbf16, #tpu.memory_space<vmem>>, vector<16x24xbf16>
    %cst = arith.constant dense<0.000000e+00> : vector<64x24xf32>
    %11 = tpu.matmul %9, %10, %cst {dimension_numbers = #tpu.dot_dimension_numbers<[1], [0], [0], [1], [0, 0, 1, 1], [], []>} : vector<64x16xbf16>, vector<16x24xbf16>, vector<64x24xf32> -> vector<64x24xf32>
    %c0_4 = arith.constant 0 : index
    %c0_5 = arith.constant 0 : index
    %12 = vector.load %arg3[%c0_4, %c0_5] : memref<1x24xf32, #tpu.memory_space<vmem>>, vector<1x24xf32>
    %13 = vector.broadcast %12 : vector<1x24xf32> to vector<64x24xf32>
    %14 = arith.mulf %11, %13 : vector<64x24xf32>
    %c0_6 = arith.constant 0 : index
    %c0_7 = arith.constant 0 : index
    %15 = vector.load %arg4[%c0_6, %c0_7] : memref<1x24xf32, #tpu.memory_space<vmem>>, vector<1x24xf32>
    %16 = vector.broadcast %15 : vector<1x24xf32> to vector<64x24xf32>
    %17 = arith.addf %14, %16 : vector<64x24xf32>
    %cst_8 = arith.constant 0.000000e+00 : f32
    %18 = vector.broadcast %cst_8 : f32 to vector<64x24xf32>
    %19 = arith.cmpf ogt, %17, %18 : vector<64x24xf32>
    %cst_9 = arith.constant 0.00999999977 : f32
    %20 = vector.broadcast %cst_9 : f32 to vector<64x24xf32>
    %21 = arith.mulf %20, %17 : vector<64x24xf32>
    %22 = arith.select %19, %17, %21 : vector<64x24xi1>, vector<64x24xf32>
    %23 = arith.truncf %22 : vector<64x24xf32> to vector<64x24xbf16>
    %c0_10 = arith.constant 0 : index
    %c0_11 = arith.constant 0 : index
    %24 = vector.load %arg5[%c0_10, %c0_11] : memref<24x18xbf16, #tpu.memory_space<vmem>>, vector<24x18xbf16>
    %cst_12 = arith.constant dense<0.000000e+00> : vector<64x18xf32>
    %25 = tpu.matmul %23, %24, %cst_12 {dimension_numbers = #tpu.dot_dimension_numbers<[1], [0], [0], [1], [0, 0, 1, 1], [], []>} : vector<64x24xbf16>, vector<24x18xbf16>, vector<64x18xf32> -> vector<64x18xf32>
    %c0_13 = arith.constant 0 : index
    %c0_14 = arith.constant 0 : index
    %26 = vector.load %arg6[%c0_13, %c0_14] : memref<1x18xf32, #tpu.memory_space<vmem>>, vector<1x18xf32>
    %27 = vector.broadcast %26 : vector<1x18xf32> to vector<64x18xf32>
    %28 = arith.mulf %25, %27 : vector<64x18xf32>
    %c0_15 = arith.constant 0 : index
    %c0_16 = arith.constant 0 : index
    %29 = vector.load %arg7[%c0_15, %c0_16] : memref<1x18xf32, #tpu.memory_space<vmem>>, vector<1x18xf32>
    %30 = vector.broadcast %29 : vector<1x18xf32> to vector<64x18xf32>
    %31 = arith.addf %28, %30 : vector<64x18xf32>
    %cst_17 = arith.constant 0.000000e+00 : f32
    %32 = vector.broadcast %cst_17 : f32 to vector<64x18xf32>
    %33 = arith.cmpf ogt, %31, %32 : vector<64x18xf32>
    %cst_18 = arith.constant 0.00999999977 : f32
    %34 = vector.broadcast %cst_18 : f32 to vector<64x18xf32>
    %35 = arith.mulf %34, %31 : vector<64x18xf32>
    %36 = arith.select %33, %31, %35 : vector<64x18xi1>, vector<64x18xf32>
    %37 = arith.truncf %36 : vector<64x18xf32> to vector<64x18xbf16>
    %c0_19 = arith.constant 0 : index
    %c0_20 = arith.constant 0 : index
    %38 = vector.load %arg8[%c0_19, %c0_20] : memref<18x12xbf16, #tpu.memory_space<vmem>>, vector<18x12xbf16>
    %cst_21 = arith.constant dense<0.000000e+00> : vector<64x12xf32>
    %39 = tpu.matmul %37, %38, %cst_21 {dimension_numbers = #tpu.dot_dimension_numbers<[1], [0], [0], [1], [0, 0, 1, 1], [], []>} : vector<64x18xbf16>, vector<18x12xbf16>, vector<64x12xf32> -> vector<64x12xf32>
    %c0_22 = arith.constant 0 : index
    %c0_23 = arith.constant 0 : index
    %40 = vector.load %arg9[%c0_22, %c0_23] : memref<1x12xf32, #tpu.memory_space<vmem>>, vector<1x12xf32>
    %41 = vector.broadcast %40 : vector<1x12xf32> to vector<64x12xf32>
    %42 = arith.mulf %39, %41 : vector<64x12xf32>
    %c0_24 = arith.constant 0 : index
    %c0_25 = arith.constant 0 : index
    %43 = vector.load %arg10[%c0_24, %c0_25] : memref<1x12xf32, #tpu.memory_space<vmem>>, vector<1x12xf32>
    %44 = vector.broadcast %43 : vector<1x12xf32> to vector<64x12xf32>
    %45 = arith.addf %42, %44 : vector<64x12xf32>
    %cst_26 = arith.constant 0.000000e+00 : f32
    %46 = vector.broadcast %cst_26 : f32 to vector<64x12xf32>
    %47 = arith.cmpf ogt, %45, %46 : vector<64x12xf32>
    %cst_27 = arith.constant 0.00999999977 : f32
    %48 = vector.broadcast %cst_27 : f32 to vector<64x12xf32>
    %49 = arith.mulf %48, %45 : vector<64x12xf32>
    %50 = arith.select %47, %45, %49 : vector<64x12xi1>, vector<64x12xf32>
    %51 = arith.truncf %50 : vector<64x12xf32> to vector<64x12xbf16>
    %c0_28 = arith.constant 0 : index
    %c0_29 = arith.constant 0 : index
    %52 = vector.load %arg11[%c0_28, %c0_29] : memref<12x12xbf16, #tpu.memory_space<vmem>>, vector<12x12xbf16>
    %cst_30 = arith.constant dense<0.000000e+00> : vector<64x12xf32>
    %53 = tpu.matmul %51, %52, %cst_30 {dimension_numbers = #tpu.dot_dimension_numbers<[1], [0], [0], [1], [0, 0, 1, 1], [], []>} : vector<64x12xbf16>, vector<12x12xbf16>, vector<64x12xf32> -> vector<64x12xf32>
    %c0_31 = arith.constant 0 : index
    %c0_32 = arith.constant 0 : index
    %54 = vector.load %arg12[%c0_31, %c0_32] : memref<1x12xf32, #tpu.memory_space<vmem>>, vector<1x12xf32>
    %55 = vector.broadcast %54 : vector<1x12xf32> to vector<64x12xf32>
    %56 = arith.mulf %53, %55 : vector<64x12xf32>
    %c0_33 = arith.constant 0 : index
    %c0_34 = arith.constant 0 : index
    %57 = vector.load %arg13[%c0_33, %c0_34] : memref<1x12xf32, #tpu.memory_space<vmem>>, vector<1x12xf32>
    %58 = vector.broadcast %57 : vector<1x12xf32> to vector<64x12xf32>
    %59 = arith.addf %56, %58 : vector<64x12xf32>
    %cst_35 = arith.constant 0.000000e+00 : f32
    %60 = vector.broadcast %cst_35 : f32 to vector<64x12xf32>
    %61 = arith.cmpf ogt, %59, %60 : vector<64x12xf32>
    %cst_36 = arith.constant 0.00999999977 : f32
    %62 = vector.broadcast %cst_36 : f32 to vector<64x12xf32>
    %63 = arith.mulf %62, %59 : vector<64x12xf32>
    %64 = arith.select %61, %59, %63 : vector<64x12xi1>, vector<64x12xf32>
    %65 = vector.shape_cast %64 : vector<64x12xf32> to vector<1x64x12xf32>
    %66 = vector.shape_cast %65 : vector<1x64x12xf32> to vector<1x64x12x1xf32>
    %67 = vector.shape_cast %65 : vector<1x64x12xf32> to vector<1x64x1x12xf32>
    %68 = vector.broadcast %66 : vector<1x64x12x1xf32> to vector<1x64x12x12xf32>
    %69 = vector.broadcast %67 : vector<1x64x1x12xf32> to vector<1x64x12x12xf32>
    %70 = arith.mulf %68, %69 : vector<1x64x12x12xf32>
    %cst_37 = arith.constant dense<0.000000e+00> : vector<1x12x12xf32>
    %71 = vector.multi_reduction <add>, %70, %cst_37 [1] : vector<1x64x12x12xf32> to vector<1x12x12xf32>
    %cst_38 = arith.constant dense<0xFF800000> : vector<1x12xf32>
    %72 = vector.multi_reduction <maximumf>, %71, %cst_38 [2] : vector<1x12x12xf32> to vector<1x12xf32>
    %73 = vector.shape_cast %72 : vector<1x12xf32> to vector<1x12x1xf32>
    %74 = vector.broadcast %73 : vector<1x12x1xf32> to vector<1x12x12xf32>
    %75 = arith.subf %74, %71 : vector<1x12x12xf32>
    %cst_39 = arith.constant dense<0xFF800000> : vector<1x12xf32>
    %76 = vector.multi_reduction <maximumf>, %75, %cst_39 [2] : vector<1x12x12xf32> to vector<1x12xf32>
    %77 = vector.shape_cast %76 : vector<1x12xf32> to vector<1x12x1xf32>
    %78 = vector.broadcast %77 : vector<1x12x1xf32> to vector<1x12x12xf32>
    %79 = arith.subf %75, %78 : vector<1x12x12xf32>
    %80 = math.exp %79 : vector<1x12x12xf32>
    %cst_40 = arith.constant dense<0.000000e+00> : vector<1x12xf32>
    %81 = vector.multi_reduction <add>, %80, %cst_40 [2] : vector<1x12x12xf32> to vector<1x12xf32>
    %82 = vector.shape_cast %81 : vector<1x12xf32> to vector<1x12x1xf32>
    %83 = tpu.reciprocal %82 {approx = true} : vector<1x12x1xf32> -> vector<1x12x1xf32>
    %84 = vector.broadcast %83 : vector<1x12x1xf32> to vector<1x12x12xf32>
    %85 = arith.mulf %80, %84 : vector<1x12x12xf32>
    %cst_41 = arith.constant dense<0.000000e+00> : vector<1x64x12xf32>
    %86 = tpu.matmul %65, %85, %cst_41 {dimension_numbers = #tpu.dot_dimension_numbers<[2], [2], [1], [1], [0, 0, 0, 1, 1, 1], [0], [0]>} : vector<1x64x12xf32>, vector<1x12x12xf32>, vector<1x64x12xf32> -> vector<1x64x12xf32>
    %c0_42 = arith.constant 0 : index
    %c0_43 = arith.constant 0 : index
    %87 = vector.load %arg14[%c0_42, %c0_43] : memref<1x1xf32, #tpu.memory_space<vmem>>, vector<1x1xf32>
    %88 = vector.shape_cast %87 : vector<1x1xf32> to vector<1x1x1xf32>
    %89 = vector.broadcast %88 : vector<1x1x1xf32> to vector<1x64x12xf32>
    %90 = arith.mulf %89, %86 : vector<1x64x12xf32>
    %91 = arith.addf %90, %65 : vector<1x64x12xf32>
    %92 = vector.shape_cast %91 : vector<1x64x12xf32> to vector<1x8x8x12xf32>
    %c0_44 = arith.constant 0 : index
    %c0_45 = arith.constant 0 : index
    %93 = vector.load %arg15[%c0_44, %c0_45] : memref<1x12xf32, #tpu.memory_space<vmem>>, vector<1x12xf32>
    %94 = vector.shape_cast %93 : vector<1x12xf32> to vector<1x1x1x12xf32>
    %95 = vector.broadcast %94 : vector<1x1x1x12xf32> to vector<1x8x8x12xf32>
    %96 = arith.mulf %92, %95 : vector<1x8x8x12xf32>
    %cst_46 = arith.constant dense<0.000000e+00> : vector<1x8x8xf32>
    %97 = vector.multi_reduction <add>, %96, %cst_46 [3] : vector<1x8x8x12xf32> to vector<1x8x8xf32>
    %98 = tpu.iota {dimensions = array<i32: 0>} : vector<8x8xi32>
    %99 = tpu.iota {dimensions = array<i32: 1>} : vector<8x8xi32>
    %100 = arith.cmpi eq, %98, %99 : vector<8x8xi32>
    %101 = vector.shape_cast %100 : vector<8x8xi1> to vector<1x8x8xi1>
    %cst_47 = arith.constant 1.000000e+08 : f32
    %102 = vector.broadcast %cst_47 : f32 to vector<1x8x8xf32>
    %103 = arith.subf %97, %102 : vector<1x8x8xf32>
    %104 = arith.select %101, %103, %97 : vector<1x8x8xi1>, vector<1x8x8xf32>
    %cst_48 = arith.constant dense<0xFF800000> : vector<1x8xf32>
    %105 = vector.multi_reduction <maximumf>, %104, %cst_48 [2] : vector<1x8x8xf32> to vector<1x8xf32>
    %106 = vector.shape_cast %105 : vector<1x8xf32> to vector<1x8x1xf32>
    %107 = vector.broadcast %106 : vector<1x8x1xf32> to vector<1x8x8xf32>
    %108 = arith.subf %104, %107 : vector<1x8x8xf32>
    %109 = math.exp %108 : vector<1x8x8xf32>
    %cst_49 = arith.constant dense<0.000000e+00> : vector<1x8xf32>
    %110 = vector.multi_reduction <add>, %109, %cst_49 [2] : vector<1x8x8xf32> to vector<1x8xf32>
    %111 = vector.shape_cast %110 : vector<1x8xf32> to vector<1x8x1xf32>
    %112 = tpu.reciprocal %111 {approx = true} : vector<1x8x1xf32> -> vector<1x8x1xf32>
    %113 = vector.broadcast %112 : vector<1x8x1xf32> to vector<1x8x8xf32>
    %114 = arith.mulf %109, %113 : vector<1x8x8xf32>
    %115 = arith.truncf %114 : vector<1x8x8xf32> to vector<1x8x8xbf16>
    %cst_50 = arith.constant dense<0.000000e+00> : vector<1x8x16xf32>
    %116 = tpu.matmul %115, %1, %cst_50 {dimension_numbers = #tpu.dot_dimension_numbers<[2], [1], [1], [2], [0, 0, 0, 1, 1, 2], [0], [0]>} : vector<1x8x8xbf16>, vector<1x8x16xbf16>, vector<1x8x16xf32> -> vector<1x8x16xf32>
    %117 = tpu.concatenate %0, %116 in 2 : vector<1x8x16xf32>, vector<1x8x16xf32> -> vector<1x8x32xf32>
    %118 = arith.truncf %117 : vector<1x8x32xf32> to vector<1x8x32xbf16>
    %119 = vector.shape_cast %118 : vector<1x8x32xbf16> to vector<8x32xbf16>
    %c0_51 = arith.constant 0 : index
    %c0_52 = arith.constant 0 : index
    %120 = vector.load %arg16[%c0_51, %c0_52] : memref<32x4xbf16, #tpu.memory_space<vmem>>, vector<32x4xbf16>
    %cst_53 = arith.constant dense<0.000000e+00> : vector<8x4xf32>
    %121 = tpu.matmul %119, %120, %cst_53 {dimension_numbers = #tpu.dot_dimension_numbers<[1], [0], [0], [1], [0, 0, 1, 1], [], []>} : vector<8x32xbf16>, vector<32x4xbf16>, vector<8x4xf32> -> vector<8x4xf32>
    %c0_54 = arith.constant 0 : index
    %c0_55 = arith.constant 0 : index
    %122 = vector.load %arg17[%c0_54, %c0_55] : memref<1x4xf32, #tpu.memory_space<vmem>>, vector<1x4xf32>
    %123 = vector.broadcast %122 : vector<1x4xf32> to vector<8x4xf32>
    %124 = arith.mulf %121, %123 : vector<8x4xf32>
    %c0_56 = arith.constant 0 : index
    %c0_57 = arith.constant 0 : index
    %125 = vector.load %arg18[%c0_56, %c0_57] : memref<1x4xf32, #tpu.memory_space<vmem>>, vector<1x4xf32>
    %126 = vector.broadcast %125 : vector<1x4xf32> to vector<8x4xf32>
    %127 = arith.addf %124, %126 : vector<8x4xf32>
    %128 = vector.shape_cast %127 : vector<8x4xf32> to vector<1x8x4xf32>
    %c0_58 = arith.constant 0 : index
    %c0_59 = arith.constant 0 : index
    %c0_60 = arith.constant 0 : index
    %129 = vector.load %arg19[%c0_58, %c0_59, %c0_60] : memref<1x8x4xf32, #tpu.memory_space<vmem>>, vector<1x8x4xf32>
    tpu.vector_store %arg19[%c0_58, %c0_59, %c0_60], %128 {strides = array<i32>} : memref<1x8x4xf32, #tpu.memory_space<vmem>>, vector<1x8x4xf32>,
    return
  }
  func.func @transform_0(%arg0: i32) -> (i32, i32, i32) {
    %c0_i32 = arith.constant 0 : i32
    %c0_i32_0 = arith.constant 0 : i32
    %c0_i32_1 = arith.constant 0 : i32
    return %arg0, %c0_i32, %c0_i32_0 : i32, i32, i32
  }
  func.func @transform_1(%arg0: i32) -> (i32, i32) {
    %c0_i32 = arith.constant 0 : i32
    %c0_i32_0 = arith.constant 0 : i32
    %c0_i32_1 = arith.constant 0 : i32
    return %c0_i32, %c0_i32_0 : i32, i32
  }
  func.func @transform_2(%arg0: i32) -> (i32, i32) {
    %c0_i32 = arith.constant 0 : i32
    %c0_i32_0 = arith.constant 0 : i32
    %c0_i32_1 = arith.constant 0 : i32
    return %c0_i32, %c0_i32_0 : i32, i32
  }
  func.func @transform_3(%arg0: i32) -> (i32, i32) {
    %c0_i32 = arith.constant 0 : i32
    %c0_i32_0 = arith.constant 0 : i32
    %c0_i32_1 = arith.constant 0 : i32
    return %c0_i32, %c0_i32_0 : i32, i32
  }
  func.func @transform_4(%arg0: i32) -> (i32, i32) {
    %c0_i32 = arith.constant 0 : i32
    %c0_i32_0 = arith.constant 0 : i32
    %c0_i32_1 = arith.constant 0 : i32
    return %c0_i32, %c0_i32_0 : i32, i32
  }
  func.func @transform_5(%arg0: i32) -> (i32, i32) {
    %c0_i32 = arith.constant 0 : i32
    %c0_i32_0 = arith.constant 0 : i32
    %c0_i32_1 = arith.constant 0 : i32
    return %c0_i32, %c0_i32_0 : i32, i32
  }
  func.func @transform_6(%arg0: i32) -> (i32, i32) {
    %c0_i32 = arith.constant 0 : i32
    %c0_i32_0 = arith.constant 0 : i32
    %c0_i32_1 = arith.constant 0 : i32
    return %c0_i32, %c0_i32_0 : i32, i32
  }
  func.func @transform_7(%arg0: i32) -> (i32, i32) {
    %c0_i32 = arith.constant 0 : i32
    %c0_i32_0 = arith.constant 0 : i32
    %c0_i32_1 = arith.constant 0 : i32
    return %c0_i32, %c0_i32_0 : i32, i32
  }
  func.func @transform_8(%arg0: i32) -> (i32, i32) {
    %c0_i32 = arith.constant 0 : i32
    %c0_i32_0 = arith.constant 0 : i32
    %c0_i32_1 = arith.constant 0 : i32
    return %c0_i32, %c0_i32_0 : i32, i32
  }
  func.func @transform_9(%arg0: i32) -> (i32, i32) {
    %c0_i32 = arith.constant 0 : i32
    %c0_i32_0 = arith.constant 0 : i32
    %c0_i32_1 = arith.constant 0 : i32
    return %c0_i32, %c0_i32_0 : i32, i32
  }
  func.func @transform_10(%arg0: i32) -> (i32, i32) {
    %c0_i32 = arith.constant 0 : i32
    %c0_i32_0 = arith.constant 0 : i32
    %c0_i32_1 = arith.constant 0 : i32
    return %c0_i32, %c0_i32_0 : i32, i32
  }
  func.func @transform_11(%arg0: i32) -> (i32, i32) {
    %c0_i32 = arith.constant 0 : i32
    %c0_i32_0 = arith.constant 0 : i32
    %c0_i32_1 = arith.constant 0 : i32
    return %c0_i32, %c0_i32_0 : i32, i32
  }
  func.func @transform_12(%arg0: i32) -> (i32, i32) {
    %c0_i32 = arith.constant 0 : i32
    %c0_i32_0 = arith.constant 0 : i32
    %c0_i32_1 = arith.constant 0 : i32
    return %c0_i32, %c0_i32_0 : i32, i32
  }
  func.func @transform_13(%arg0: i32) -> (i32, i32) {
    %c0_i32 = arith.constant 0 : i32
    %c0_i32_0 = arith.constant 0 : i32
    %c0_i32_1 = arith.constant 0 : i32
    return %c0_i32, %c0_i32_0 : i32, i32
  }
  func.func @transform_14(%arg0: i32) -> (i32, i32) {
    %c0_i32 = arith.constant 0 : i32
    %c0_i32_0 = arith.constant 0 : i32
    %c0_i32_1 = arith.constant 0 : i32
    return %c0_i32, %c0_i32_0 : i32, i32
  }
  func.func @transform_15(%arg0: i32) -> (i32, i32) {
    %c0_i32 = arith.constant 0 : i32
    %c0_i32_0 = arith.constant 0 : i32
    %c0_i32_1 = arith.constant 0 : i32
    return %c0_i32, %c0_i32_0 : i32, i32
  }
  func.func @transform_16(%arg0: i32) -> (i32, i32) {
    %c0_i32 = arith.constant 0 : i32
    %c0_i32_0 = arith.constant 0 : i32
    %c0_i32_1 = arith.constant 0 : i32
    return %c0_i32, %c0_i32_0 : i32, i32
  }
  func.func @transform_17(%arg0: i32) -> (i32, i32) {
    %c0_i32 = arith.constant 0 : i32
    %c0_i32_0 = arith.constant 0 : i32
    %c0_i32_1 = arith.constant 0 : i32
    return %c0_i32, %c0_i32_0 : i32, i32
  }
  func.func @transform_18(%arg0: i32) -> (i32, i32, i32) {
    %c0_i32 = arith.constant 0 : i32
    %c0_i32_0 = arith.constant 0 : i32
    %c0_i32_1 = arith.constant 0 : i32
    return %arg0, %c0_i32, %c0_i32_0 : i32, i32, i32
  }
}

</mosaic_0001>

<bundles_post_ra>
// kernel: gnn_forward.4
= control target key start
LH: loop header
LB: loop body
LE: loop exit
PB: predicated region body
PF: predicated region fallthrough
CT: control target
= control target key end

     0   :  { %s3955_s29 = smov 0   ;;  %s4889_s0 = inlined_call_operand.vmem [shape: f32[2,8,12], index: 0, kind: input, shape index: {}]   ;;  %s4890_s1 = inlined_call_operand.vmem [shape: bf16[12,24], index: 1, kind: input, shape index: {}]   ;;  %s4891_s2 = inlined_call_operand.vmem [shape: f32[1,24], index: 2, kind: input, shape index: {}]   ;;  %s4892_s3 = inlined_call_operand.vmem [shape: f32[1,24], index: 3, kind: input, shape index: {}]   ;;  %s4893_s4 = inlined_call_operand.vmem [shape: bf16[24,18], index: 4, kind: input, shape index: {}]   ;;  %s4894_s5 = inlined_call_operand.vmem [shape: f32[1,18], index: 5, kind: input, shape index: {}]   ;;  %s4895_s6 = inlined_call_operand.vmem [shape: f32[1,18], index: 6, kind: input, shape index: {}]   ;;  %s4896_s7 = inlined_call_operand.vmem [shape: bf16[18,12], index: 7, kind: input, shape index: {}]   ;;  %s4897_s8 = inlined_call_operand.vmem [shape: f32[1,12], index: 8, kind: input, shape index: {}]   ;;  %s4898_s9 = inlined_call_operand.vmem [shape: f32[1,12], index: 9, kind: input, shape index: {}]   ;;  %s4899_s10 = inlined_call_operand.vmem [shape: bf16[12,12], index: 10, kind: input, shape index: {}]   ;;  %s4900_s11 = inlined_call_operand.vmem [shape: f32[1,12], index: 11, kind: input, shape index: {}]   ;;  %s4901_s12 = inlined_call_operand.vmem [shape: f32[1,12], index: 12, kind: input, shape index: {}]   ;;  %s4902_s13 = inlined_call_operand.<no memory space> [shape: f32[1,1], index: 13, kind: input, shape index: {}]   ;;  %s4903_s14 = inlined_call_operand.vmem [shape: f32[1,12], index: 14, kind: input, shape index: {}]   ;;  %s4904_s15 = inlined_call_operand.vmem [shape: bf16[24,4], index: 15, kind: input, shape index: {}]   ;;  %s4905_s16 = inlined_call_operand.vmem [shape: f32[1,4], index: 16, kind: input, shape index: {}]   ;;  %s4906_s17 = inlined_call_operand.vmem [shape: f32[1,4], index: 17, kind: input, shape index: {}]   ;;  %s4907_s18 = inlined_call_operand.vmem [shape: f32[2,8,4], index: 18, kind: output, shape index: {}]  }
   0x1   :  { %4924 = sst [smem:[#allocation36_spill]] %s4889_s0  ;;  %v23_v0 = vstv %s4902_s13 }
   0x2   :  { %4925 = sst [smem:[#allocation37_spill]] %s4890_s1  ;;  %24 = vst [vmem:[#allocation2] sm:$0x1] %v23_v0 }
   0x3   :  { %4926 = sst [smem:[#allocation38_spill]] %s4891_s2 }
   0x4 LB: > { %s3621_s30 = sadd.s32 4294967295, %s3850_s29   ;;  %p3625_p0 = scmp.ge.s32.totalorder %s3850_s29, 1  ;;  %s3850_s29 = sphi %s3955_s29, %s30_s29  }
   0x5   : > { %p513_p1 = scmp.lt.s32.totalorder %s3850_s29, 3 }
   0x7   : > { %p514_p2 = pnand %p3625_p0, %p513_p1 }
   0x9   : > { %517 = sbr.rel (%p514_p2) target bundleno = 3039 (0xbdf), region = 92 }
  0x10   : > { %s4927_s1 = sld [smem:[#allocation37_spill]]  ;;  %v4908_v2 = vlaneseq  ;;  %vm706_vm0 = vcmask 1045504   ;;  %p565_p3 = scmp.lt.s32.totalorder %s3621_s30, 1  ;;  %v3852_v4 = vmov 1966171168   ;;  %vm693_vm1 = vcmask 97280  }
  0x11   : > { %v579_v5 = vunpack.c.l.s4 %v3852_v4  ;;  %s4929_s22 = sld [smem:[#allocation36_spill]]  ;;  %v3824_v52 = vld [vmem:[%s4893_s4] sm:$0xff]   ;;  %v3825_v53 = vld [vmem:[%s4893_s4 + $0x8] ss:$0 sps:$4 sm:$0xff]   ;;  %vm858_vm2 = vcmask 1043456   ;;  %s4930_s0 = sld [smem:[#allocation38_spill]] }
  0x12   : > { %v3969_v6 = vshrl.u32 %v4908_v2, 7  ;;  %s5002_s30 = smov (!%p565_p3, %s3621_s30), 1  ;;  %3733 = vmatprep.subr.bf16.mxu1 %v3824_v52  ;;  %v860_v54 = vsel %vm858_vm2, %v3825_v53, 0  ;;  %v3634_v57 = vld [vmem:[%s4892_s3] ss:$0 sm:$0xff]  ;;  %vm845_vm7 = vcmask 195584  }
  0x13   : > { %v580_v7 = vunpack.c.0.s8 %v579_v5  ;;  %s3626_s13 = sshll.u32 %s5002_s30, 3  ;;  %3734 = vmatpush3.bf16.msra.mxu1 %v3824_v52  ;;  %vm1010_vm12 = vcmask 1040384  }
  0x14   : > { %4928 = vst [vmem:[#allocation3_spill] sm:$0xff] %v3969_v6  ;;  %v3987_v11 = vsub.s32 0, %v3969_v6  ;;  %3804 = vmatprep.subr.msk.bf16.mxu1 %vm858_vm2, %v3825_v53  ;;  %s572_s26 = scalar_lea.vmem %s4907_s18, %s3626_s13 }
  0x15   : > { %v3982_v8 = vsub.s32 %v580_v7, %v3969_v6 }
  0x16   : > { %v3822_v1 = vld [vmem:[%s4927_s1] sm:$0x3f]   ;;  %s3856_s1 = smov 12  }
  0x17   : > { %3803 = vmatprep.subr.msk.bf16.mxu0 %vm706_vm0, %v3822_v1  ;;  %v708_v3 = vsel %vm706_vm0, %v3822_v1, 0  ;;  %s3979_s2 = scalar_lea.vmem %s4929_s22, %s3626_s13  ;;  %3736 = vmatpush3.bf16.msra.mxu1 %v860_v54  ;;  %v3633_v55 = vld [vmem:[%s4930_s0] ss:$0 sm:$0xff] }
  0x18   : > { %3724 = vmatpush3.bf16.msra.mxu0 %v708_v3  ;;  %v574_v9 = vld [vmem:[%s3979_s2] sm:$0xff] }
  0x19   : > { %v584_v10 = vrot.slane %v574_v9, %v3982_v8  ;;  %v577_v12 = vcombine.high %v574_v9, %v574_v9 }
  0x1b   : > { %v592_v13 = vcombine.high %v584_v10, %v584_v10  ;;  %v600_v14 = vrot.slane %v584_v10, %v3982_v8  ;;  %v591_v15 = vrot.slane %v577_v12, %v3982_v8 }
  0x1d   : > { %v614_v16 = vrot.slane %v592_v13, %v3982_v8  ;;  %v622_v17 = vcombine.high %v600_v14, %v600_v14  ;;  %v629_v18 = vrot.slane %v600_v14, %v3987_v11  ;;  %v593_v19 = vcombine.high %v591_v15, %v591_v15 }
  0x1e   : > { %v607_v20 = vrot.slane %v591_v15, %v3982_v8 }
  0x1f   : > { %v624_v21 = vcombine.high %v614_v16, %v614_v16  ;;  %v633_v22 = vrot.slane %v614_v16, %v3987_v11  ;;  %v666_v23 = vsub.f32 %v629_v18, %v574_v9  ;;  %v637_v24 = vrot.slane %v622_v17, %v3987_v11 }
  0x20   : > { %v621_v25 = vrot.slane %v593_v19, %v3982_v8  ;;  %v645_v26 = vrot.slane %v607_v20, %v3987_v11  ;;  %v623_v27 = vcombine.high %v607_v20, %v607_v20 }
  0x21   : > { %v667_v28 = vsub.f32 %v633_v22, %v574_v9  ;;  %v674_v29 = vand.u32 2147483647, %v666_v23  ;;  %v641_v30 = vrot.slane %v624_v21, %v3987_v11  ;;  %v668_v31 = vsub.f32 %v637_v24, %v574_v9 }
  0x22   : > { %v649_v32 = vrot.slane %v621_v25, %v3987_v11  ;;  %v670_v33 = vsub.f32 %v645_v26, %v574_v9  ;;  %v625_v34 = vcombine.high %v621_v25, %v621_v25  ;;  %v653_v35 = vrot.slane %v623_v27, %v3987_v11 }
  0x23   : > { %v675_v36 = vand.u32 2147483647, %v667_v28  ;;  %v669_v37 = vsub.f32 %v641_v30, %v574_v9  ;;  %v676_v38 = vand.u32 2147483647, %v668_v31 }
  0x24   : > { %v671_v39 = vsub.f32 %v649_v32, %v574_v9  ;;  %v678_v40 = vand.u32 2147483647, %v670_v33  ;;  %v657_v41 = vrot.slane %v625_v34, %v3987_v11  ;;  %v672_v44 = vsub.f32 %v653_v35, %v574_v9 }
  0x25   : > { %v682_v42 = vpack.c.bf16 %v675_v36, %v674_v29  ;;  %v677_v43 = vand.u32 2147483647, %v669_v37 }
  0x26   : > { %v679_v45 = vand.u32 2147483647, %v671_v39  ;;  %v673_v46 = vsub.f32 %v657_v41, %v574_v9  ;;  %v680_v49 = vand.u32 2147483647, %v672_v44  ;;  %v3826_v41 = vld [vmem:[%s4896_s7] sm:$0xff]  }
  0x27   : > { %3725 = vmatprep.mubr.msk.bf16.mxu0 %vm693_vm1, %v682_v42  ;;  %v683_v47 = vpack.c.bf16 %v677_v43, %v676_v38  ;;  %3745 = vmatprep.subr.bf16.mxu0 %v3826_v41  ;;  %v3827_v42 = vld [vmem:[%s4896_s7 + $0x8] ss:$0 sps:$4 sm:$0x11]   ;;  %v3641_v44 = vld [vmem:[%s4894_s5] ss:$0 sm:$0xff] }
  0x28   : > { %v684_v48 = vpack.c.bf16 %v679_v45, %v678_v40  ;;  %v681_v50 = vand.u32 2147483647, %v673_v46  ;;  %v1012_v43 = vsel %vm1010_vm12, %v3827_v42, 0  ;;  %v3642_v46 = vld [vmem:[%s4895_s6] ss:$0 sm:$0xff] }
  0x29   : > { %3726 = vmatmul.mubr.msk.bf16.vlgmr.msra.gmra.mrb[0].mxu0 %vm693_vm1, %v683_v47 }
  0x2a   : > { %3729 = vmatprep.mubr.msk.bf16.mxu0 %vm693_vm1, %v684_v48  ;;  %v685_v51 = vpack.c.bf16 %v681_v50, %v680_v49  ;;  %3746 = vmatpush3.bf16.msra.mxu0 %v3826_v41 }
  0x2b   : > { %3805 = vmatprep.subr.msk.bf16.mxu0 %vm1010_vm12, %v3827_v42 }
  0x2e   : > { %3748 = vmatpush3.bf16.msra.mxu0 %v1012_v43 }
  0x31   : > { %3730 = vmatmul.mubr.msk.bf16.gmra.mrb[4].mxu0 %vm693_vm1, %v685_v51 }
  0xfc   : > { %v3727_v56 = vpop.f32.mrb[0].mxu0 }
  0xfd   : > { %v784_v58 = vmul.f32 %v3727_v56, %v3633_v55  ;;  %v744_v59 = vpop.f32.mrb[1].mxu0 }
  0xfe   : > { %v782_v60 = vmul.f32 %v3633_v55, %v744_v59  ;;  %v3728_v61 = vpop.f32.mrb[2].mxu0 }
  0xff   : > { %v799_v62 = vadd.f32 %v3634_v57, %v784_v58  ;;  %v785_v63 = vmul.f32 %v3728_v61, %v3633_v55  ;;  %v747_v0 = vpop.f32.mrb[3].mxu0 }
 0x100   : > { %v797_v1 = vadd.f32 %v3634_v57, %v782_v60  ;;  %v783_v3 = vmul.f32 %v3633_v55, %v747_v0 }
 0x101   : > { %v815_v4 = vmul.f32 0.01, %v799_v62  ;;  %v800_v5 = vadd.f32 %v3634_v57, %v785_v63  ;;  %vm807_vm3 = vcmp.gt.f32.partialorder %v799_v62, 0.0 }
 0x102   : > { %v798_v7 = vadd.f32 %v3634_v57, %v783_v3  ;;  %v813_v9 = vmul.f32 0.01, %v797_v1  ;;  %vm805_vm5 = vcmp.gt.f32.partialorder %v797_v1, 0.0 }
 0x103   : > { %vm808_vm4 = vcmp.gt.f32.partialorder %v800_v5, 0.0  ;;  %v816_v10 = vmul.f32 0.01, %v800_v5  ;;  %v823_v14 = vsel %vm807_vm3, %v799_v62, %v815_v4 }
 0x104   : > { %vm806_vm6 = vcmp.gt.f32.partialorder %v798_v7, 0.0  ;;  %v814_v12 = vmul.f32 0.01, %v798_v7  ;;  %v3731_v13 = vpop.f32.mrb[4].mxu0  ;;  %v821_v18 = vsel %vm805_vm5, %v797_v1, %v813_v9 }
 0x105   : > { %v824_v15 = vsel %vm808_vm4, %v800_v5, %v816_v10  ;;  %v788_v16 = vmul.f32 %v3731_v13, %v3633_v55  ;;  %v760_v17 = vpop.f32.mrb[5].mxu0  ;;  %vm997_vm4 = vcmask 146432  }
 0x106   : > { %v822_v19 = vsel %vm806_vm6, %v798_v7, %v814_v12  ;;  %v830_v20 = vpack.c.bf16 %v824_v15, %v823_v14  ;;  %v786_v21 = vmul.f32 %v3633_v55, %v760_v17  ;;  %v3732_v22 = vpop.f32.mrb[6].mxu0 }
 0x107   : > { %v829_v23 = vpack.c.bf16 %v822_v19, %v821_v18  ;;  %v803_v24 = vadd.f32 %v3634_v57, %v788_v16  ;;  %v789_v25 = vmul.f32 %v3732_v22, %v3633_v55  ;;  %v763_v26 = vpop.f32.mrb[7].mxu0 }
 0x108   : > { %v801_v27 = vadd.f32 %v3634_v57, %v786_v21  ;;  %v787_v28 = vmul.f32 %v3633_v55, %v763_v26 }
 0x109   : > { %3737 = vmatprep.mubr.msk.bf16.mxu1 %vm845_vm7, %v829_v23  ;;  %vm811_vm8 = vcmp.gt.f32.partialorder %v803_v24, 0.0  ;;  %v819_v29 = vmul.f32 0.01, %v803_v24  ;;  %v804_v30 = vadd.f32 %v3634_v57, %v789_v25 }
 0x10a   : > { %3738 = vmatmul.mubr.msk.bf16.vlgmr.msra.gmra.mrb[0].mxu1 %vm845_vm7, %v830_v20  ;;  %vm809_vm9 = vcmp.gt.f32.partialorder %v801_v27, 0.0  ;;  %v817_v31 = vmul.f32 0.01, %v801_v27  ;;  %v802_v32 = vadd.f32 %v3634_v57, %v787_v28 }
 0x10b   : > { %v827_v33 = vsel %vm811_vm8, %v803_v24, %v819_v29  ;;  %vm812_vm10 = vcmp.gt.f32.partialorder %v804_v30, 0.0  ;;  %v820_v34 = vmul.f32 0.01, %v804_v30 }
 0x10c   : > { %v825_v35 = vsel %vm809_vm9, %v801_v27, %v817_v31  ;;  %vm810_vm11 = vcmp.gt.f32.partialorder %v802_v32, 0.0  ;;  %v818_v36 = vmul.f32 0.01, %v802_v32 }
 0x10d   : > { %v828_v37 = vsel %vm812_vm10, %v804_v30, %v820_v34  ;;  %v3828_v30 = vld [vmem:[%s4899_s10] sm:$0x3f]  }
 0x10e   : > { %v826_v38 = vsel %vm810_vm11, %v802_v32, %v818_v36  ;;  %v832_v39 = vpack.c.bf16 %v828_v37, %v827_v33  ;;  %3806 = vmatprep.subr.msk.bf16.mxu1 %vm706_vm0, %v3828_v30  ;;  %v1157_v31 = vsel %vm706_vm0, %v3828_v30, 0  ;;  %v3649_v32 = vld [vmem:[%s4897_s8] ss:$0 sm:$0xff] }
 0x10f   : > { %v831_v40 = vpack.c.bf16 %v826_v38, %v825_v35  ;;  %3758 = vmatpush3.bf16.msra.mxu1 %v1157_v31  ;;  %v3650_v34 = vld [vmem:[%s4898_s9] ss:$0 sm:$0xff] }
 0x111   : > { %3741 = vmatprep.mubr.msk.bf16.mxu1 %vm845_vm7, %v831_v40 }
 0x112   : > { %3742 = vmatmul.mubr.msk.bf16.gmra.mrb[4].mxu1 %vm845_vm7, %v832_v39 }
 0x1dd   : > { %v3739_v45 = vpop.f32.mrb[0].mxu1 }
 0x1de   : > { %v936_v47 = vmul.f32 %v3739_v45, %v3641_v44  ;;  %v896_v48 = vpop.f32.mrb[1].mxu1 }
 0x1df   : > { %v934_v49 = vmul.f32 %v3641_v44, %v896_v48  ;;  %v3740_v50 = vpop.f32.mrb[2].mxu1 }
 0x1e0   : > { %v951_v51 = vadd.f32 %v3642_v46, %v936_v47  ;;  %v937_v52 = vmul.f32 %v3740_v50, %v3641_v44  ;;  %v899_v53 = vpop.f32.mrb[3].mxu1 }
 0x1e1   : > { %v949_v54 = vadd.f32 %v3642_v46, %v934_v49  ;;  %v935_v55 = vmul.f32 %v3641_v44, %v899_v53 }
 0x1e2   : > { %v967_v56 = vmul.f32 0.01, %v951_v51  ;;  %v952_v57 = vadd.f32 %v3642_v46, %v937_v52  ;;  %vm959_vm13 = vcmp.gt.f32.partialorder %v951_v51, 0.0 }
 0x1e3   : > { %v965_v58 = vmul.f32 0.01, %v949_v54  ;;  %v950_v59 = vadd.f32 %v3642_v46, %v935_v55  ;;  %vm957_vm14 = vcmp.gt.f32.partialorder %v949_v54, 0.0 }
 0x1e4   : > { %vm960_vm15 = vcmp.gt.f32.partialorder %v952_v57, 0.0  ;;  %v968_v60 = vmul.f32 0.01, %v952_v57  ;;  %v975_v63 = vsel %vm959_vm13, %v951_v51, %v967_v56 }
 0x1e5   : > { %vm958_vm3 = vcmp.gt.f32.partialorder %v950_v59, 0.0  ;;  %v966_v61 = vmul.f32 0.01, %v950_v59  ;;  %v3743_v62 = vpop.f32.mrb[4].mxu1  ;;  %v973_v4 = vsel %vm957_vm14, %v949_v54, %v965_v58 }
 0x1e6   : > { %v976_v0 = vsel %vm960_vm15, %v952_v57, %v968_v60  ;;  %v940_v1 = vmul.f32 %v3743_v62, %v3641_v44  ;;  %v912_v3 = vpop.f32.mrb[5].mxu1 }
 0x1e7   : > { %v982_v5 = vpack.c.bf16 %v976_v0, %v975_v63  ;;  %v974_v7 = vsel %vm958_vm3, %v950_v59, %v966_v61  ;;  %v938_v9 = vmul.f32 %v3641_v44, %v912_v3  ;;  %v3744_v10 = vpop.f32.mrb[6].mxu1 }
 0x1e8   : > { %v981_v12 = vpack.c.bf16 %v974_v7, %v973_v4  ;;  %v955_v13 = vadd.f32 %v3642_v46, %v940_v1  ;;  %v941_v14 = vmul.f32 %v3744_v10, %v3641_v44  ;;  %v915_v15 = vpop.f32.mrb[7].mxu1 }
 0x1e9   : > { %v953_v16 = vadd.f32 %v3642_v46, %v938_v9  ;;  %v939_v17 = vmul.f32 %v3641_v44, %v915_v15 }
 0x1ea   : > { %3749 = vmatprep.mubr.msk.bf16.mxu0 %vm997_vm4, %v981_v12  ;;  %vm963_vm5 = vcmp.gt.f32.partialorder %v955_v13, 0.0  ;;  %v971_v18 = vmul.f32 0.01, %v955_v13  ;;  %v956_v19 = vadd.f32 %v3642_v46, %v941_v14 }
 0x1eb   : > { %3750 = vmatmul.mubr.msk.bf16.vlgmr.msra.gmra.mrb[8].mxu0 %vm997_vm4, %v982_v5  ;;  %vm961_vm6 = vcmp.gt.f32.partialorder %v953_v16, 0.0  ;;  %v969_v20 = vmul.f32 0.01, %v953_v16  ;;  %v954_v21 = vadd.f32 %v3642_v46, %v939_v17 }
 0x1ec   : > { %v979_v22 = vsel %vm963_vm5, %v955_v13, %v971_v18  ;;  %vm964_vm8 = vcmp.gt.f32.partialorder %v956_v19, 0.0  ;;  %v972_v23 = vmul.f32 0.01, %v956_v19  ;;  %v3656_v18 = vld [vmem:[%s4900_s11] ss:$0 sm:$0xff] }
 0x1ed   : > { %v977_v24 = vsel %vm961_vm6, %v953_v16, %v969_v20  ;;  %vm962_vm9 = vcmp.gt.f32.partialorder %v954_v21, 0.0  ;;  %v970_v25 = vmul.f32 0.01, %v954_v21  ;;  %v3657_v20 = vld [vmem:[%s4901_s12] ss:$0 sm:$0xff] }
 0x1ee   : > { %v980_v26 = vsel %vm964_vm8, %v956_v19, %v972_v23 }
 0x1ef   : > { %v978_v27 = vsel %vm962_vm9, %v954_v21, %v970_v25  ;;  %v984_v28 = vpack.c.bf16 %v980_v26, %v979_v22 }
 0x1f0   : > { %v983_v29 = vpack.c.bf16 %v978_v27, %v977_v24 }
 0x1f2   : > { %3753 = vmatprep.mubr.msk.bf16.mxu0 %vm997_vm4, %v983_v29 }
 0x1f3   : > { %3754 = vmatmul.mubr.msk.bf16.gmra.mrb[12].mxu0 %vm997_vm4, %v984_v28 }
 0x2be   : > { %v3751_v33 = vpop.f32.mrb[8].mxu0 }
 0x2bf   : > { %v1088_v35 = vmul.f32 %v3751_v33, %v3649_v32  ;;  %v1048_v36 = vpop.f32.mrb[9].mxu0 }
 0x2c0   : > { %v1086_v37 = vmul.f32 %v3649_v32, %v1048_v36  ;;  %v3752_v38 = vpop.f32.mrb[10].mxu0 }
 0x2c1   : > { %v1103_v39 = vadd.f32 %v3650_v34, %v1088_v35  ;;  %v1089_v40 = vmul.f32 %v3752_v38, %v3649_v32  ;;  %v1051_v41 = vpop.f32.mrb[11].mxu0 }
 0x2c2   : > { %v1101_v42 = vadd.f32 %v3650_v34, %v1086_v37  ;;  %v1087_v43 = vmul.f32 %v3649_v32, %v1051_v41  ;;  %v4072_v37 = vsub.s32 1, %v3969_v6 }
 0x2c3   : > { %v1119_v44 = vmul.f32 0.01, %v1103_v39  ;;  %v1104_v45 = vadd.f32 %v3650_v34, %v1089_v40  ;;  %vm1111_vm0 = vcmp.gt.f32.partialorder %v1103_v39, 0.0 }
 0x2c4   : > { %v1117_v46 = vmul.f32 0.01, %v1101_v42  ;;  %v1102_v47 = vadd.f32 %v3650_v34, %v1087_v43  ;;  %vm1109_vm10 = vcmp.gt.f32.partialorder %v1101_v42, 0.0  ;;  %v4079_v43 = vsub.s32 2, %v3969_v6 }
 0x2c5   : > { %vm1112_vm11 = vcmp.gt.f32.partialorder %v1104_v45, 0.0  ;;  %v1120_v48 = vmul.f32 0.01, %v1104_v45  ;;  %v1127_v51 = vsel %vm1111_vm0, %v1103_v39, %v1119_v44  ;;  %v4082_v44 = vsub.s32 3, %v3969_v6 }
 0x2c6   : > { %vm1110_vm12 = vcmp.gt.f32.partialorder %v1102_v47, 0.0  ;;  %v1118_v49 = vmul.f32 0.01, %v1102_v47  ;;  %v3755_v50 = vpop.f32.mrb[12].mxu0  ;;  %v1125_v55 = vsel %vm1109_vm10, %v1101_v42, %v1117_v46 }
 0x2c7   : > { %v1128_v52 = vsel %vm1112_vm11, %v1104_v45, %v1120_v48  ;;  %v1092_v53 = vmul.f32 %v3755_v50, %v3649_v32  ;;  %v1064_v54 = vpop.f32.mrb[13].mxu0 }
 0x2c8   : > { %v1134_v56 = vpack.c.bf16 %v1128_v52, %v1127_v51  ;;  %v1126_v57 = vsel %vm1110_vm12, %v1102_v47, %v1118_v49  ;;  %v1090_v58 = vmul.f32 %v3649_v32, %v1064_v54  ;;  %v3756_v59 = vpop.f32.mrb[14].mxu0  ;;  %vm2957_vm12 = vcmask 93184  }
 0x2c9   : > { %v1133_v60 = vpack.c.bf16 %v1126_v57, %v1125_v55  ;;  %v1107_v61 = vadd.f32 %v3650_v34, %v1092_v53  ;;  %v1093_v62 = vmul.f32 %v3756_v59, %v3649_v32  ;;  %v1067_v63 = vpop.f32.mrb[15].mxu0  ;;  %v4097_v55 = vsub.s32 4, %v3969_v6 }
 0x2ca   : > { %v1105_v0 = vadd.f32 %v3650_v34, %v1090_v58  ;;  %v1091_v1 = vmul.f32 %v3649_v32, %v1067_v63  ;;  %v4102_v57 = vsub.s32 5, %v3969_v6  ;;  %v4107_v59 = vsub.s32 6, %v3969_v6 }
 0x2cb   : > { %3759 = vmatprep.mubr.msk.bf16.mxu1 %vm693_vm1, %v1133_v60  ;;  %vm1115_vm13 = vcmp.gt.f32.partialorder %v1107_v61, 0.0  ;;  %v1123_v3 = vmul.f32 0.01, %v1107_v61  ;;  %v1108_v4 = vadd.f32 %v3650_v34, %v1093_v62 }
 0x2cc   : > { %3760 = vmatmul.mubr.msk.bf16.vlgmr.msra.gmra.mrb[8].mxu1 %vm693_vm1, %v1134_v56  ;;  %vm1113_vm14 = vcmp.gt.f32.partialorder %v1105_v0, 0.0  ;;  %v1121_v5 = vmul.f32 0.01, %v1105_v0  ;;  %v1106_v7 = vadd.f32 %v3650_v34, %v1091_v1 }
 0x2cd   : > { %v1131_v9 = vsel %vm1115_vm13, %v1107_v61, %v1123_v3  ;;  %vm1116_vm15 = vcmp.gt.f32.partialorder %v1108_v4, 0.0  ;;  %v1124_v10 = vmul.f32 0.01, %v1108_v4  ;;  %v4112_v61 = vsub.s32 7, %v3969_v6  ;;  %vm3798_vm13 = vmpackc.low %vm693_vm1, %vm693_vm1 }
 0x2ce   : > { %v1129_v12 = vsel %vm1113_vm14, %v1105_v0, %v1121_v5  ;;  %vm1114_vm3 = vcmp.gt.f32.partialorder %v1106_v7, 0.0  ;;  %v1122_v13 = vmul.f32 0.01, %v1106_v7  ;;  %vm3360_vm14 = vcmask 1041409  }
 0x2cf   : > { %v1132_v14 = vsel %vm1116_vm15, %v1108_v4, %v1124_v10  ;;  %4932 = vst [vmem:[#allocation5_spill] sm:$0xff] %v4112_v61  ;;  %vm3362_vm15 = vcmask 1042434  }
 0x2d0   : > { %v1130_v15 = vsel %vm1114_vm3, %v1106_v7, %v1122_v13  ;;  %v1136_v16 = vpack.c.bf16 %v1132_v14, %v1131_v9  ;;  %vm3364_vm3 = vcmask 1043459  }
 0x2d1   : > { %v1135_v17 = vpack.c.bf16 %v1130_v15, %v1129_v12 }
 0x2d3   : > { %3763 = vmatprep.mubr.msk.bf16.mxu1 %vm693_vm1, %v1135_v17 }
 0x2d4   : > { %3764 = vmatmul.mubr.msk.bf16.gmra.mrb[12].mxu1 %vm693_vm1, %v1136_v16 }
 0x39f   : > { %v3761_v19 = vpop.f32.mrb[8].mxu1 }
 0x3a0   : > { %v1233_v21 = vmul.f32 %v3761_v19, %v3656_v18  ;;  %v1193_v22 = vpop.f32.mrb[9].mxu1 }
 0x3a1   : > { %v1231_v23 = vmul.f32 %v3656_v18, %v1193_v22  ;;  %v3762_v24 = vpop.f32.mrb[10].mxu1 }
 0x3a2   : > { %v1248_v25 = vadd.f32 %v3657_v20, %v1233_v21  ;;  %v1234_v26 = vmul.f32 %v3762_v24, %v3656_v18  ;;  %v1196_v27 = vpop.f32.mrb[11].mxu1 }
 0x3a3   : > { %v1246_v28 = vadd.f32 %v3657_v20, %v1231_v23  ;;  %v1232_v29 = vmul.f32 %v3656_v18, %v1196_v27 }
 0x3a4   : > { %vm1256_vm4 = vcmp.gt.f32.partialorder %v1248_v25, 0.0  ;;  %v1264_v30 = vmul.f32 0.01, %v1248_v25  ;;  %v4061_v31 = vadd.f32 %v3657_v20, %v1234_v26 }
 0x3a5   : > { %vm1254_vm5 = vcmp.gt.f32.partialorder %v1246_v28, 0.0  ;;  %v1262_v32 = vmul.f32 0.01, %v1246_v28  ;;  %v4063_v33 = vadd.f32 %v3657_v20, %v1232_v29 }
 0x3a6   : > { %v4065_v34 = vsel %vm1256_vm4, %v1248_v25, %v1264_v30  ;;  %v1265_v9 = vmul.f32 0.01, %v4061_v31  ;;  %vm1257_vm6 = vcmp.gt.f32.partialorder %v4061_v31, 0.0  ;;  %vm3366_vm4 = vcmask 1044484  }
 0x3a7   : > { %v4067_v35 = vsel %vm1254_vm5, %v1246_v28, %v1262_v32  ;;  %v1457_v36 = vrot.slane %v4065_v34, %v3987_v11  ;;  %v3765_v38 = vpop.f32.mrb[12].mxu1  ;;  %v1468_v42 = vrot.slane %v4065_v34, %v4072_v37  ;;  %v1479_v46 = vrot.slane %v4065_v34, %v4079_v43 }
 0x3a8   : > { %4931 = vst [vmem:[#allocation4_spill] sm:$0xff] %v4067_v35  ;;  %3771 = vmatprep.mubr.msk.f32.mxu0 %vm693_vm1, %v4067_v35  ;;  %v1209_v39 = vpop.f32.mrb[13].mxu1  ;;  %v1237_v45 = vmul.f32 %v3765_v38, %v3656_v18  ;;  %v1490_v54 = vrot.slane %v4065_v34, %v4082_v44  ;;  %v1501_v56 = vrot.slane %v4065_v34, %v4097_v55  ;;  %vm1255_vm8 = vcmp.gt.f32.partialorder %v4063_v33, 0.0 }
 0x3a9   : > { %1463 = vbcast.lane.b32.xlu1 %v1457_v36, 264  ;;  %1459 = vbcast.lane.b32.xlu0 %v1457_v36, 256  ;;  %v3766_v40 = vpop.f32.mrb[14].mxu1  ;;  %v1235_v47 = vmul.f32 %v3656_v18, %v1209_v39  ;;  %v1512_v58 = vrot.slane %v4065_v34, %v4102_v57  ;;  %v1523_v60 = vrot.slane %v4065_v34, %v4107_v59  ;;  %vm3368_vm5 = vcmask 1045509  }
 0x3aa   : > { %v1212_v41 = vpop.f32.mrb[15].mxu1  ;;  %v1238_v48 = vmul.f32 %v3766_v40, %v3656_v18  ;;  %v4086_v50 = vadd.f32 %v3657_v20, %v1237_v45  ;;  %v1534_v62 = vrot.slane %v4065_v34, %v4112_v61  ;;  %v1292_v63 = vrot.slane %v4067_v35, %v4072_v37 }
 0x3ab   : > { %v1236_v49 = vmul.f32 %v3656_v18, %v1212_v41  ;;  %v4088_v51 = vadd.f32 %v3657_v20, %v1235_v47  ;;  %v1281_v0 = vrot.slane %v4067_v35, %v3987_v11  ;;  %v1303_v1 = vrot.slane %v4067_v35, %v4079_v43 }
 0x3ac   : > { %v4090_v52 = vadd.f32 %v3657_v20, %v1238_v48  ;;  %v1314_v3 = vrot.slane %v4067_v35, %v4082_v44  ;;  %v1325_v4 = vrot.slane %v4067_v35, %v4097_v55  ;;  %v1336_v5 = vrot.slane %v4067_v35, %v4102_v57 }
 0x3ad   : > { %1474 = vbcast.lane.b32.xlu1 %v1468_v42, 264  ;;  %1470 = vbcast.lane.b32.xlu0 %v1468_v42, 256  ;;  %v4092_v53 = vadd.f32 %v3657_v20, %v1236_v49  ;;  %v1347_v7 = vrot.slane %v4067_v35, %v4107_v59  ;;  %v1358_v10 = vrot.slane %v4067_v35, %v4112_v61  ;;  %v1263_v20 = vmul.f32 0.01, %v4063_v33 }
 0x3ae   : > { %v4135_v12 = vsel %vm1257_vm6, %v4061_v31, %v1265_v9  ;;  %v1268_v36 = vmul.f32 0.01, %v4086_v50  ;;  %vm1260_vm9 = vcmp.gt.f32.partialorder %v4086_v50, 0.0  ;;  %vm1258_vm0 = vcmp.gt.f32.partialorder %v4088_v51, 0.0 }
 0x3af   : > { %4933 = vst [vmem:[#allocation6_spill] sm:$0xff] %v4135_v12  ;;  %v1545_v13 = vrot.slane %v4135_v12, %v3987_v11  ;;  %v1556_v14 = vrot.slane %v4135_v12, %v4072_v37  ;;  %v1567_v15 = vrot.slane %v4135_v12, %v4079_v43  ;;  %v1578_v16 = vrot.slane %v4135_v12, %v4082_v44 }
 0x3b0   : > { %v1589_v17 = vrot.slane %v4135_v12, %v4097_v55  ;;  %v1600_v18 = vrot.slane %v4135_v12, %v4102_v57  ;;  %v1611_v19 = vrot.slane %v4135_v12, %v4107_v59  ;;  %v1622_v21 = vrot.slane %v4135_v12, %v4112_v61 }
 0x3b1   : > { %1485 = vbcast.lane.b32.xlu1 %v1479_v46, 264  ;;  %1481 = vbcast.lane.b32.xlu0 %v1479_v46, 256  ;;  %v4156_v22 = vsel %vm1255_vm8, %v4063_v33, %v1263_v20  ;;  %v4189_v41 = vsel %vm1260_vm9, %v4086_v50, %v1268_v36  ;;  %vm1259_vm10 = vcmp.gt.f32.partialorder %v4092_v53, 0.0  ;;  %vm1261_vm11 = vcmp.gt.f32.partialorder %v4090_v52, 0.0 }
 0x3b2   : > { %4934 = vst [vmem:[#allocation7_spill] sm:$0xff] %v4156_v22  ;;  %v1369_v23 = vrot.slane %v4156_v22, %v3987_v11  ;;  %v1380_v24 = vrot.slane %v4156_v22, %v4072_v37  ;;  %v1391_v25 = vrot.slane %v4156_v22, %v4079_v43  ;;  %v1402_v26 = vrot.slane %v4156_v22, %v4082_v44 }
 0x3b3   : > { %v1413_v27 = vrot.slane %v4156_v22, %v4097_v55  ;;  %v1424_v30 = vrot.slane %v4156_v22, %v4102_v57  ;;  %v1435_v33 = vrot.slane %v4156_v22, %v4107_v59  ;;  %v1446_v40 = vrot.slane %v4156_v22, %v4112_v61  ;;  %4936 = vst [vmem:[#allocation9_spill] sm:$0xff] %v4189_v41 }
 0x3b4   : > { %v1809_v46 = vrot.slane %v4189_v41, %v3987_v11  ;;  %v1820_v49 = vrot.slane %v4189_v41, %v4072_v37  ;;  %vm3370_vm6 = vcmask 1046534   ;;  %vm3372_vm8 = vcmask 1047559  }
 0x3b5   : > { %1496 = vbcast.lane.b32.xlu1 %v1490_v54, 264  ;;  %1492 = vbcast.lane.b32.xlu0 %v1490_v54, 256 }
 0x3b9   : > { %1507 = vbcast.lane.b32.xlu1 %v1501_v56, 264  ;;  %1503 = vbcast.lane.b32.xlu0 %v1501_v56, 256  ;;  %v1831_v56 = vrot.slane %v4189_v41, %v4079_v43 }
 0x3bd   : > { %1518 = vbcast.lane.b32.xlu1 %v1512_v58, 264  ;;  %1514 = vbcast.lane.b32.xlu0 %v1512_v58, 256 }
 0x3c1   : > { %1529 = vbcast.lane.b32.xlu1 %v1523_v60, 264  ;;  %1525 = vbcast.lane.b32.xlu0 %v1523_v60, 256 }
 0x3c5   : > { %1540 = vbcast.lane.b32.xlu1 %v1534_v62, 264  ;;  %1536 = vbcast.lane.b32.xlu0 %v1534_v62, 256  ;;  %v1842_v62 = vrot.slane %v4189_v41, %v4082_v44 }
 0x3c9   : > { %1294 = vbcast.lane.b32.xlu1 %v1292_v63, 256  ;;  %1283 = vbcast.lane.b32.xlu0 %v1281_v0, 256 }
 0x3cd   : > { %1298 = vbcast.lane.b32.xlu1 %v1292_v63, 264  ;;  %1287 = vbcast.lane.b32.xlu0 %v1281_v0, 264 }
 0x3d1   : > { %1309 = vbcast.lane.b32.xlu1 %v1303_v1, 264  ;;  %1305 = vbcast.lane.b32.xlu0 %v1303_v1, 256  ;;  %v1853_v1 = vrot.slane %v4189_v41, %v4097_v55 }
 0x3d5   : > { %1320 = vbcast.lane.b32.xlu1 %v1314_v3, 264  ;;  %1316 = vbcast.lane.b32.xlu0 %v1314_v3, 256 }
 0x3d9   : > { %1331 = vbcast.lane.b32.xlu1 %v1325_v4, 264  ;;  %1327 = vbcast.lane.b32.xlu0 %v1325_v4, 256 }
 0x3dd   : > { %1342 = vbcast.lane.b32.xlu1 %v1336_v5, 264  ;;  %1338 = vbcast.lane.b32.xlu0 %v1336_v5, 256  ;;  %v1864_v5 = vrot.slane %v4189_v41, %v4102_v57 }
 0x3e1   : > { %1353 = vbcast.lane.b32.xlu1 %v1347_v7, 264  ;;  %1349 = vbcast.lane.b32.xlu0 %v1347_v7, 256 }
 0x3e5   : > { %1364 = vbcast.lane.b32.xlu1 %v1358_v10, 264  ;;  %1360 = vbcast.lane.b32.xlu0 %v1358_v10, 256  ;;  %v1875_v10 = vrot.slane %v4189_v41, %v4107_v59 }
 0x3e9   : > { %1551 = vbcast.lane.b32.xlu1 %v1545_v13, 264  ;;  %1547 = vbcast.lane.b32.xlu0 %v1545_v13, 256  ;;  %v1266_v13 = vmul.f32 0.01, %v4088_v51 }
 0x3ed   : > { %1562 = vbcast.lane.b32.xlu1 %v1556_v14, 264  ;;  %1558 = vbcast.lane.b32.xlu0 %v1556_v14, 256 }
 0x3f1   : > { %1573 = vbcast.lane.b32.xlu1 %v1567_v15, 264  ;;  %1569 = vbcast.lane.b32.xlu0 %v1567_v15, 256 }
 0x3f5   : > { %1584 = vbcast.lane.b32.xlu1 %v1578_v16, 264  ;;  %1580 = vbcast.lane.b32.xlu0 %v1578_v16, 256  ;;  %v1886_v16 = vrot.slane %v4189_v41, %v4112_v61 }
 0x3f9   : > { %1595 = vbcast.lane.b32.xlu1 %v1589_v17, 264  ;;  %1591 = vbcast.lane.b32.xlu0 %v1589_v17, 256  ;;  %v4242_v17 = vsel %vm1258_vm0, %v4088_v51, %v1266_v13  ;;  %v1267_v13 = vmul.f32 0.01, %v4092_v53  ;;  %vm3424_vm0 = vcmask 64512  }
 0x3fa   : > { %4945 = vst [vmem:[#allocation18_spill] sm:$0xff] %v4242_v17  ;;  %v1633_v20 = vrot.slane %v4242_v17, %v3987_v11 }
 0x3fd   : > { %1606 = vbcast.lane.b32.xlu1 %v1600_v18, 264  ;;  %1602 = vbcast.lane.b32.xlu0 %v1600_v18, 256 }
 0x401   : > { %1617 = vbcast.lane.b32.xlu1 %v1611_v19, 264  ;;  %1613 = vbcast.lane.b32.xlu0 %v1611_v19, 256 }
 0x405   : > { %1628 = vbcast.lane.b32.xlu1 %v1622_v21, 264  ;;  %1624 = vbcast.lane.b32.xlu0 %v1622_v21, 256 }
 0x409   : > { %1375 = vbcast.lane.b32.xlu1 %v1369_v23, 264  ;;  %1371 = vbcast.lane.b32.xlu0 %v1369_v23, 256 }
 0x40d   : > { %1386 = vbcast.lane.b32.xlu1 %v1380_v24, 264  ;;  %1382 = vbcast.lane.b32.xlu0 %v1380_v24, 256  ;;  %v1644_v24 = vrot.slane %v4242_v17, %v4072_v37 }
 0x411   : > { %1397 = vbcast.lane.b32.xlu1 %v1391_v25, 264  ;;  %1393 = vbcast.lane.b32.xlu0 %v1391_v25, 256 }
 0x415   : > { %1408 = vbcast.lane.b32.xlu1 %v1402_v26, 264  ;;  %1404 = vbcast.lane.b32.xlu0 %v1402_v26, 256  ;;  %v1655_v26 = vrot.slane %v4242_v17, %v4079_v43 }
 0x419   : > { %1419 = vbcast.lane.b32.xlu1 %v1413_v27, 264  ;;  %1415 = vbcast.lane.b32.xlu0 %v1413_v27, 256 }
 0x41b   : > { %v4168_v28 = vpop.permute.xlu1 %1463  ;;  %v4170_v29 = vpop.permute.xlu0 %1459 }
 0x41d   : > { %1430 = vbcast.lane.b32.xlu1 %v1424_v30, 264  ;;  %1426 = vbcast.lane.b32.xlu0 %v1424_v30, 256 }
 0x41f   : > { %v4174_v31 = vpop.permute.xlu1 %1474  ;;  %v4176_v32 = vpop.permute.xlu0 %1470 }
 0x421   : > { %1441 = vbcast.lane.b32.xlu1 %v1435_v33, 264  ;;  %1437 = vbcast.lane.b32.xlu0 %v1435_v33, 256  ;;  %v1666_v33 = vrot.slane %v4242_v17, %v4082_v44 }
 0x423   : > { %v4182_v38 = vpop.permute.xlu1 %1485  ;;  %v4184_v39 = vpop.permute.xlu0 %1481 }
 0x424   : > { %4935 = vst [vmem:[#allocation8_spill] sm:$0xff] %v4184_v39 }
 0x425   : > { %1452 = vbcast.lane.b32.xlu1 %v1446_v40, 264  ;;  %1448 = vbcast.lane.b32.xlu0 %v1446_v40, 256 }
 0x427   : > { %v4191_v42 = vpop.permute.xlu1 %1496  ;;  %v4193_v45 = vpop.permute.xlu0 %1492 }
 0x428   : > { %4937 = vst [vmem:[#allocation10_spill] sm:$0xff] %v4193_v45 }
 0x429   : > { %1815 = vbcast.lane.b32.xlu1 %v1809_v46, 264  ;;  %1811 = vbcast.lane.b32.xlu0 %v1809_v46, 256  ;;  %v1677_v46 = vrot.slane %v4242_v17, %v4097_v55 }
 0x42b   : > { %v4197_v47 = vpop.permute.xlu1 %1507  ;;  %v4199_v48 = vpop.permute.xlu0 %1503 }
 0x42c   : > { %4938 = vst [vmem:[#allocation11_spill] sm:$0xff] %v4199_v48 }
 0x42d   : > { %1826 = vbcast.lane.b32.xlu1 %v1820_v49, 264  ;;  %1822 = vbcast.lane.b32.xlu0 %v1820_v49, 256 }
 0x42f   : > { %v4203_v50 = vpop.permute.xlu1 %1518  ;;  %v4205_v54 = vpop.permute.xlu0 %1514 }
 0x430   : > { %4939 = vst [vmem:[#allocation12_spill] sm:$0xff] %v4203_v50  ;;  %4940 = vst [vmem:[#allocation13_spill] sm:$0xff] %v4205_v54 }
 0x431   : > { %1837 = vbcast.lane.b32.xlu1 %v1831_v56, 264  ;;  %1833 = vbcast.lane.b32.xlu0 %v1831_v56, 256 }
 0x433   : > { %v4209_v58 = vpop.permute.xlu1 %1529  ;;  %v4211_v60 = vpop.permute.xlu0 %1525 }
 0x434   : > { %4941 = vst [vmem:[#allocation14_spill] sm:$0xff] %v4209_v58  ;;  %4942 = vst [vmem:[#allocation15_spill] sm:$0xff] %v4211_v60 }
 0x435   : > { %1848 = vbcast.lane.b32.xlu1 %v1842_v62, 264  ;;  %1844 = vbcast.lane.b32.xlu0 %v1842_v62, 256  ;;  %v1688_v62 = vrot.slane %v4242_v17, %v4102_v57 }
 0x437   : > { %v4215_v63 = vpop.permute.xlu1 %1540  ;;  %v4217_v0 = vpop.permute.xlu0 %1536 }
 0x438   : > { %4943 = vst [vmem:[#allocation16_spill] sm:$0xff] %v4215_v63  ;;  %4944 = vst [vmem:[#allocation17_spill] sm:$0xff] %v4217_v0 }
 0x439   : > { %1859 = vbcast.lane.b32.xlu1 %v1853_v1, 264  ;;  %1855 = vbcast.lane.b32.xlu0 %v1853_v1, 256 }
 0x43b   : > { %v4221_v3 = vpop.permute.xlu1 %1294  ;;  %v4223_v4 = vpop.permute.xlu0 %1283 }
 0x43d   : > { %1870 = vbcast.lane.b32.xlu1 %v1864_v5, 264  ;;  %1866 = vbcast.lane.b32.xlu0 %v1864_v5, 256 }
 0x43f   : > { %v4227_v7 = vpop.permute.xlu1 %1298  ;;  %v4229_v9 = vpop.permute.xlu0 %1287 }
 0x441   : > { %1881 = vbcast.lane.b32.xlu1 %v1875_v10, 264  ;;  %1877 = vbcast.lane.b32.xlu0 %v1875_v10, 256  ;;  %v1699_v10 = vrot.slane %v4242_v17, %v4107_v59 }
 0x443   : > { %v4235_v14 = vpop.permute.xlu1 %1309  ;;  %v4237_v15 = vpop.permute.xlu0 %1305 }
 0x445   : > { %1892 = vbcast.lane.b32.xlu1 %v1886_v16, 264  ;;  %1888 = vbcast.lane.b32.xlu0 %v1886_v16, 256 }
 0x447   : > { %v4244_v18 = vpop.permute.xlu1 %1320  ;;  %v4246_v19 = vpop.permute.xlu0 %1316 }
 0x449   : > { %1639 = vbcast.lane.b32.xlu1 %v1633_v20, 264  ;;  %1635 = vbcast.lane.b32.xlu0 %v1633_v20, 256 }
 0x44b   : > { %v4250_v21 = vpop.permute.xlu1 %1331  ;;  %v4252_v23 = vpop.permute.xlu0 %1327 }
 0x44d   : > { %1650 = vbcast.lane.b32.xlu1 %v1644_v24, 264  ;;  %1646 = vbcast.lane.b32.xlu0 %v1644_v24, 256  ;;  %v1710_v24 = vrot.slane %v4242_v17, %v4112_v61 }
 0x44f   : > { %v4256_v51 = vpop.permute.xlu1 %1342  ;;  %v4258_v25 = vpop.permute.xlu0 %1338 }
 0x451   : > { %1661 = vbcast.lane.b32.xlu1 %v1655_v26, 264  ;;  %1657 = vbcast.lane.b32.xlu0 %v1655_v26, 256  ;;  %v4295_v26 = vsel %vm1259_vm10, %v4092_v53, %v1267_v13  ;;  %v4310_v13 = vrot.slane %v4065_v34, %v3982_v8  ;;  %vm3855_vm10 = vmmov 0  }
 0x452   : > { %4952 = vst [vmem:[#allocation25_spill] sm:$0xff] %v4295_v26  ;;  %v1721_v2 = vrot.slane %v4295_v26, %v3987_v11 }
 0x453   : > { %v4262_v27 = vpop.permute.xlu1 %1353  ;;  %v4264_v30 = vpop.permute.xlu0 %1349 }
 0x455   : > { %1672 = vbcast.lane.b32.xlu1 %v1666_v33, 264  ;;  %1668 = vbcast.lane.b32.xlu0 %v1666_v33, 256  ;;  %v1990_v33 = vcombine.high %v4067_v35, %v4067_v35 }
 0x457   : > { %v4268_v36 = vpop.permute.xlu1 %1364  ;;  %v4270_v40 = vpop.permute.xlu0 %1360  ;;  %v2004_v6 = vrot.slane %v1990_v33, %v3982_v8 }
 0x459   : > { %1683 = vbcast.lane.b32.xlu1 %v1677_v46, 264  ;;  %1679 = vbcast.lane.b32.xlu0 %v1677_v46, 256  ;;  %v1997_v46 = vrot.slane %v4067_v35, %v3982_v8  ;;  %v1732_v35 = vrot.slane %v4295_v26, %v4072_v37  ;;  %v2006_v17 = vcombine.high %v2004_v6, %v2004_v6 }
 0x45b   : > { %v4274_v49 = vpop.permute.xlu1 %1551  ;;  %v4276_v56 = vpop.permute.xlu0 %1547  ;;  %v2005_v53 = vcombine.high %v1997_v46, %v1997_v46  ;;  %v2013_v33 = vrot.slane %v1997_v46, %v3982_v8 }
 0x45c   : > { %4946 = vst [vmem:[#allocation19_spill] sm:$0xff] %v4274_v49  ;;  %4947 = vst [vmem:[#allocation20_spill] sm:$0xff] %v4276_v56  ;;  %v1765_v49 = vrot.slane %v4295_v26, %v4097_v55 }
 0x45d   : > { %1694 = vbcast.lane.b32.xlu1 %v1688_v62, 264  ;;  %1690 = vbcast.lane.b32.xlu0 %v1688_v62, 256  ;;  %v2035_v46 = vcombine.high %v2013_v33, %v2013_v33  ;;  %v2385_v54 = vrot.slane %v2013_v33, %v3987_v11 }
 0x45f   : > { %v4280_v1 = vpop.permute.xlu1 %1562  ;;  %v4282_v5 = vpop.permute.xlu0 %1558 }
 0x460   : > { %4948 = vst [vmem:[#allocation21_spill] sm:$0xff] %v4280_v1  ;;  %4949 = vst [vmem:[#allocation22_spill] sm:$0xff] %v4282_v5 }
 0x461   : > { %1705 = vbcast.lane.b32.xlu1 %v1699_v10, 264  ;;  %1701 = vbcast.lane.b32.xlu0 %v1699_v10, 256 }
 0x463   : > { %v4288_v16 = vpop.permute.xlu1 %1573  ;;  %v4290_v20 = vpop.permute.xlu0 %1569 }
 0x464   : > { %4950 = vst [vmem:[#allocation23_spill] sm:$0xff] %v4288_v16  ;;  %4951 = vst [vmem:[#allocation24_spill] sm:$0xff] %v4290_v20  ;;  %v4323_v20 = vrot.slane %v4310_v13, %v3982_v8  ;;  %v2393_v16 = vrot.slane %v2035_v46, %v3987_v11  ;;  %v2703_v46 = vmul.f32 %v2385_v54, %v4229_v9 }
 0x465   : > { %1716 = vbcast.lane.b32.xlu1 %v1710_v24, 264  ;;  %1712 = vbcast.lane.b32.xlu0 %v1710_v24, 256 }
 0x467   : > { %v4301_v62 = vpop.permute.xlu1 %1584  ;;  %v4303_v10 = vpop.permute.xlu0 %1580 }
 0x468   : > { %4953 = vst [vmem:[#allocation26_spill] sm:$0xff] %v4301_v62  ;;  %4954 = vst [vmem:[#allocation27_spill] sm:$0xff] %v4303_v10  ;;  %v2027_v10 = vrot.slane %v2005_v53, %v3982_v8  ;;  %v2034_v53 = vrot.slane %v2006_v17, %v3982_v8 }
 0x469   : > { %1727 = vbcast.lane.b32.xlu1 %v1721_v2, 264  ;;  %1723 = vbcast.lane.b32.xlu0 %v1721_v2, 256  ;;  %v1269_v2 = vmul.f32 0.01, %v4090_v52 }
 0x46a   : > { %v2037_v0 = vcombine.high %v2027_v10, %v2027_v10  ;;  %v2405_v33 = vrot.slane %v2034_v53, %v3987_v11 }
 0x46b   : > { %v4312_v24 = vpop.permute.xlu1 %1595  ;;  %v4314_v41 = vpop.permute.xlu0 %1591  ;;  %v4335_v60 = vsel %vm1261_vm11, %v4090_v52, %v1269_v2  ;;  %v2038_v52 = vcombine.high %v2034_v53, %v2034_v53  ;;  %v2389_v2 = vrot.slane %v2027_v10, %v3987_v11  ;;  %v2702_v10 = vmul.f32 %v2385_v54, %v4223_v4 }
 0x46c   : > { %4955 = vst [vmem:[#allocation28_spill] sm:$0xff] %v4312_v24  ;;  %4956 = vst [vmem:[#allocation29_spill] sm:$0xff] %v4314_v41  ;;  %v1743_v41 = vrot.slane %v4295_v26, %v4079_v43  ;;  %v2397_v17 = vrot.slane %v2037_v0, %v3987_v11  ;;  %v1776_v4 = vrot.slane %v4295_v26, %v4102_v57 }
 0x46d   : > { %1738 = vbcast.lane.b32.xlu1 %v1732_v35, 264  ;;  %1734 = vbcast.lane.b32.xlu0 %v1732_v35, 256  ;;  %v2020_v35 = vrot.slane %v2004_v6, %v3982_v8  ;;  %v1754_v6 = vrot.slane %v4295_v26, %v4082_v44  ;;  %v2704_v1 = vmul.f32 %v2389_v2, %v4221_v3 }
 0x46e   : > { %v1787_v54 = vrot.slane %v4295_v26, %v4107_v59  ;;  %v4398_v63 = vrot.slane %v4335_v60, %v4072_v37  ;;  %v2713_v50 = vmul.f32 %v2405_v33, %v4256_v51 }
 0x46f   : > { %v4325_v5 = vpop.permute.xlu1 %1606  ;;  %v4327_v56 = vpop.permute.xlu0 %1602  ;;  %v2036_v62 = vcombine.high %v2020_v35, %v2020_v35  ;;  %v2831_v9 = vsel %vm693_vm1, %v2704_v1, 0.0 }
 0x470   : > { %4957 = vst [vmem:[#allocation30_spill] sm:$0xff] %v4325_v5  ;;  %4958 = vst [vmem:[#allocation31_spill] sm:$0xff] %v4327_v56  ;;  %v4339_v5 = vrot.slane %v4323_v20, %v3987_v11 }
 0x471   : > { %1749 = vbcast.lane.b32.xlu1 %v1743_v41, 264  ;;  %1745 = vbcast.lane.b32.xlu0 %v1743_v41, 256  ;;  %v2401_v41 = vrot.slane %v2020_v35, %v3987_v11  ;;  %v2409_v0 = vrot.slane %v2036_v62, %v3987_v11  ;;  %v2413_v35 = vrot.slane %v2038_v52, %v3987_v11 }
 0x473   : > { %v4341_v56 = vpop.permute.xlu1 %1617  ;;  %v4343_v24 = vpop.permute.xlu0 %1613 }
 0x474   : > { %4959 = vst [vmem:[#allocation32_spill] sm:$0xff] %v4341_v56  ;;  %4960 = vst [vmem:[#allocation33_spill] sm:$0xff] %v4343_v24  ;;  %v2046_v24 = vrot.slane %v4156_v22, %v3982_v8  ;;  %v2705_v56 = vmul.f32 %v2389_v2, %v4227_v7  ;;  %v1798_v7 = vrot.slane %v4295_v26, %v4112_v61 }
 0x475   : > { %1760 = vbcast.lane.b32.xlu1 %v1754_v6, 264  ;;  %1756 = vbcast.lane.b32.xlu0 %v1754_v6, 256  ;;  %v4386_v2 = vrot.slane %v4335_v60, %v3987_v11  ;;  %v2708_v26 = vmul.f32 %v2397_v17, %v4246_v19 }
 0x476   : > { %v2062_v3 = vrot.slane %v2046_v24, %v3982_v8  ;;  %v2054_v53 = vcombine.high %v2046_v24, %v2046_v24  ;;  %v2709_v24 = vmul.f32 %v2397_v17, %v4244_v18  ;;  %v2710_v18 = vmul.f32 %v2401_v41, %v4252_v23 }
 0x477   : > { %v4363_v48 = vpop.permute.xlu1 %1628  ;;  %v4365_v6 = vpop.permute.xlu0 %1624  ;;  %v2835_v37 = vsel %vm693_vm1, %v2708_v26, 0.0 }
 0x478   : > { %4961 = vst [vmem:[#allocation34_spill] sm:$0xff] %v4363_v48  ;;  %4962 = vst [vmem:[#allocation35_spill] sm:$0xff] %v4365_v6  ;;  %v2707_v6 = vmul.f32 %v2393_v16, %v4235_v14  ;;  %v2706_v48 = vmul.f32 %v2393_v16, %v4237_v15  ;;  %v2039_v14 = vcombine.high %v4156_v22, %v4156_v22  ;;  %v2959_v15 = vsel %vm2957_vm12, %v2705_v56, 0.0 }
 0x479   : > { %1771 = vbcast.lane.b32.xlu1 %v1765_v49, 264  ;;  %1767 = vbcast.lane.b32.xlu0 %v1765_v49, 256  ;;  %v2830_v49 = vsel %vm693_vm1, %v2702_v10, 0.0  ;;  %v2958_v16 = vsel %vm2957_vm12, %v2703_v46, 0.0  ;;  %v2417_v1 = vrot.slane %v2062_v3, %v3987_v11  ;;  %v2076_v10 = vrot.slane %v2054_v53, %v3982_v8 }
 0x47a   : > { %v2961_v22 = vsel %vm2957_vm12, %v2707_v6, 0.0  ;;  %v2833_v56 = vsel %vm693_vm1, %v2706_v48, 0.0  ;;  %v2711_v46 = vmul.f32 %v2401_v41, %v4250_v21  ;;  %v2832_v45 = vadd.f32 %v2831_v9, %v2830_v49 }
 0x47b   : > { %v1376_v62 = vpop.permute.xlu1 %1375  ;;  %v1372_v52 = vpop.permute.xlu0 %1371  ;;  %v2960_v19 = vadd.f32 %v2959_v15, %v2958_v16  ;;  %v2084_v61 = vcombine.high %v2062_v3, %v2062_v3  ;;  %v2963_v53 = vsel %vm2957_vm12, %v2709_v24, 0.0  ;;  %v2712_v6 = vmul.f32 %v2405_v33, %v4258_v25 }
 0x47c   : > { %v2834_v39 = vadd.f32 %v2833_v56, %v2832_v45  ;;  %v2421_v21 = vrot.slane %v2076_v10, %v3987_v11  ;;  %v2965_v23 = vsel %vm2957_vm12, %v2711_v46, 0.0  ;;  %v2837_v41 = vsel %vm693_vm1, %v2710_v18, 0.0 }
 0x47d   : > { %1782 = vbcast.lane.b32.xlu1 %v1776_v4, 264  ;;  %1778 = vbcast.lane.b32.xlu0 %v1776_v4, 256  ;;  %v2053_v4 = vrot.slane %v2039_v14, %v3982_v8  ;;  %v2962_v48 = vadd.f32 %v2961_v22, %v2960_v19  ;;  %v2715_v3 = vmul.f32 %v2409_v0, %v4262_v27  ;;  %v2967_v45 = vsel %vm2957_vm12, %v2713_v50, 0.0 }
 0x47e   : > { %v2714_v9 = vmul.f32 %v2409_v0, %v4264_v30  ;;  %v2836_v26 = vadd.f32 %v2835_v37, %v2834_v39  ;;  %v2425_v51 = vrot.slane %v2084_v61, %v3987_v11  ;;  %v2086_v22 = vcombine.high %v2076_v10, %v2076_v10 }
 0x47f   : > { %v1387_v17 = vpop.permute.xlu1 %1386  ;;  %v1383_v58 = vpop.permute.xlu0 %1382  ;;  %v2964_v49 = vadd.f32 %v2963_v53, %v2962_v48  ;;  %v2839_v33 = vsel %vm693_vm1, %v2712_v6, 0.0  ;;  %v2716_v15 = vmul.f32 %v2413_v35, %v4270_v40  ;;  %v2055_v27 = vcombine.high %v2053_v4, %v2053_v4 }
 0x480   : > { %v2838_v24 = vadd.f32 %v2837_v41, %v2836_v26  ;;  %v2969_v39 = vsel %vm2957_vm12, %v2715_v3, 0.0  ;;  %v2841_v61 = vsel %vm693_vm1, %v2714_v9, 0.0  ;;  %v2719_v30 = vmul.f32 %v2417_v1, %v1376_v62 }
 0x481   : > { %1793 = vbcast.lane.b32.xlu1 %v1787_v54, 264  ;;  %1789 = vbcast.lane.b32.xlu0 %v1787_v54, 256  ;;  %v2717_v54 = vmul.f32 %v2413_v35, %v4268_v36  ;;  %v2966_v16 = vadd.f32 %v2965_v23, %v2964_v49  ;;  %v2718_v0 = vmul.f32 %v2417_v1, %v1372_v52  ;;  %v2843_v35 = vsel %vm693_vm1, %v2716_v15, 0.0 }
 0x482   : > { %v2840_v56 = vadd.f32 %v2839_v33, %v2838_v24  ;;  %v2429_v50 = vrot.slane %v2086_v22, %v3987_v11  ;;  %v2069_v36 = vrot.slane %v2053_v4, %v3982_v8  ;;  %v2720_v19 = vmul.f32 %v2421_v21, %v1383_v58 }
 0x483   : > { %v1398_v14 = vpop.permute.xlu1 %1397  ;;  %v1394_v25 = vpop.permute.xlu0 %1393  ;;  %v2968_v10 = vadd.f32 %v2967_v45, %v2966_v16  ;;  %v2971_v40 = vsel %vm2957_vm12, %v2717_v54, 0.0  ;;  %v2083_v62 = vrot.slane %v2055_v27, %v3982_v8  ;;  %v2973_v52 = vsel %vm2957_vm12, %v2719_v30, 0.0 }
 0x484   : > { %v2842_v37 = vadd.f32 %v2841_v61, %v2840_v56  ;;  %v2845_v1 = vsel %vm693_vm1, %v2718_v0, 0.0  ;;  %v2723_v6 = vmul.f32 %v2425_v51, %v1398_v14  ;;  %v2722_v4 = vmul.f32 %v2425_v51, %v1394_v25 }
 0x485   : > { %1804 = vbcast.lane.b32.xlu1 %v1798_v7, 264  ;;  %1800 = vbcast.lane.b32.xlu0 %v1798_v7, 256  ;;  %v2721_v7 = vmul.f32 %v2421_v21, %v1387_v17  ;;  %v2970_v53 = vadd.f32 %v2969_v39, %v2968_v10  ;;  %v2433_v41 = vrot.slane %v2069_v36, %v3987_v11  ;;  %v2847_v9 = vsel %vm693_vm1, %v2720_v19, 0.0 }
 0x486   : > { %v2844_v23 = vadd.f32 %v2843_v35, %v2842_v37  ;;  %v2085_v21 = vcombine.high %v2069_v36, %v2069_v36  ;;  %v2437_v51 = vrot.slane %v2083_v62, %v3987_v11  ;;  %v2977_v14 = vsel %vm2957_vm12, %v2723_v6, 0.0 }
 0x487   : > { %v1409_v46 = vpop.permute.xlu1 %1408  ;;  %v1405_v18 = vpop.permute.xlu0 %1404  ;;  %v2972_v48 = vadd.f32 %v2971_v40, %v2970_v53  ;;  %v2975_v3 = vsel %vm2957_vm12, %v2721_v7, 0.0  ;;  %v2849_v25 = vsel %vm693_vm1, %v2722_v4, 0.0  ;;  %v4963_v54 = vcombine.high %v4310_v13, %v4310_v13 }
 0x488   : > { %v2724_v49 = vmul.f32 %v2429_v50, %v1405_v18  ;;  %v2846_v22 = vadd.f32 %v2845_v1, %v2844_v23  ;;  %v4964_v56 = vcombine.high %v4065_v34, %v4065_v34  ;;  %v2087_v40 = vcombine.high %v2083_v62, %v2083_v62 }
 0x489   : > { %1903 = vbcast.lane.b32.xlu1 %v4386_v2, 264  ;;  %1899 = vbcast.lane.b32.xlu0 %v4386_v2, 256  ;;  %v2725_v2 = vmul.f32 %v2429_v50, %v1409_v46  ;;  %v2974_v26 = vadd.f32 %v2973_v52, %v2972_v48  ;;  %v4442_v15 = vrot.slane %v4963_v54, %v3982_v8 }
 0x48a   : > { %v2848_v24 = vadd.f32 %v2847_v9, %v2846_v22  ;;  %v2851_v30 = vsel %vm693_vm1, %v2724_v49, 0.0  ;;  %v2102_v13 = vrot.slane %v4964_v56, %v3982_v8  ;;  %v4965_v35 = vcombine.high %v4323_v20, %v4323_v20 }
 0x48b   : > { %v1420_v17 = vpop.permute.xlu1 %1419  ;;  %v1416_v58 = vpop.permute.xlu0 %1415  ;;  %v2976_v16 = vadd.f32 %v2975_v3, %v2974_v26  ;;  %v2979_v61 = vsel %vm2957_vm12, %v2725_v2, 0.0  ;;  %v1930_v1 = vrot.slane %v4335_v60, %v4082_v44  ;;  %v2453_v20 = vrot.slane %v4442_v15, %v3987_v11 }
 0x48c   : > { %v2727_v45 = vmul.f32 %v2433_v41, %v1420_v17  ;;  %v2726_v33 = vmul.f32 %v2433_v41, %v1416_v58  ;;  %v2850_v46 = vadd.f32 %v2849_v25, %v2848_v24  ;;  %v4459_v7 = vrot.slane %v4965_v35, %v3987_v11 }
 0x48d   : > { %1914 = vbcast.lane.b32.xlu1 %v4398_v63, 264  ;;  %1910 = vbcast.lane.b32.xlu0 %v4398_v63, 256  ;;  %v1919_v63 = vrot.slane %v4335_v60, %v4079_v43  ;;  %v2978_v50 = vadd.f32 %v2977_v14, %v2976_v16  ;;  %v2441_v43 = vrot.slane %v2085_v21, %v3987_v11 }
 0x48e   : > { %v2981_v18 = vsel %vm2957_vm12, %v2727_v45, 0.0  ;;  %v2853_v36 = vsel %vm693_vm1, %v2726_v33, 0.0  ;;  %v2852_v53 = vadd.f32 %v2851_v30, %v2850_v46  ;;  %v2104_v62 = vcombine.high %v2102_v13, %v2102_v13 }
 0x48f   : > { %v1431_v27 = vpop.permute.xlu1 %1430  ;;  %v1427_v39 = vpop.permute.xlu0 %1426  ;;  %v2980_v19 = vadd.f32 %v2979_v61, %v2978_v50  ;;  %v2445_v44 = vrot.slane %v2087_v40, %v3987_v11  ;;  %v2135_v3 = vcombine.high %v4442_v15, %v4442_v15  ;;  %v1941_v22 = vrot.slane %v4335_v60, %v4097_v55 }
 0x490   : > { %v2729_v0 = vmul.f32 %v2437_v51, %v1431_v27  ;;  %v2728_v10 = vmul.f32 %v2437_v51, %v1427_v39  ;;  %v2854_v17 = vadd.f32 %v2853_v36, %v2852_v53  ;;  %v2735_v51 = vmul.f32 %v4339_v5, %v4168_v28 }
 0x491   : > { %1925 = vbcast.lane.b32.xlu1 %v1919_v63, 264  ;;  %1921 = vbcast.lane.b32.xlu0 %v1919_v63, 256  ;;  %v2982_v41 = vadd.f32 %v2981_v18, %v2980_v19  ;;  %v2118_v14 = vrot.slane %v2102_v13, %v3982_v8  ;;  %v2132_v33 = vrot.slane %v2104_v62, %v3982_v8 }
 0x492   : > { %v2983_v6 = vsel %vm2957_vm12, %v2729_v0, 0.0  ;;  %v2855_v4 = vsel %vm693_vm1, %v2728_v10, 0.0  ;;  %v2734_v15 = vmul.f32 %v4339_v5, %v4170_v29  ;;  %v2737_v24 = vmul.f32 %v2453_v20, %v4174_v31 }
 0x493   : > { %v1442_v37 = vpop.permute.xlu1 %1441  ;;  %v1438_v52 = vpop.permute.xlu0 %1437  ;;  %v2984_v9 = vadd.f32 %v2983_v6, %v2982_v41  ;;  %v2856_v2 = vadd.f32 %v2855_v4, %v2854_v17  ;;  %v2144_v28 = vrot.slane %v4135_v12, %v3982_v8  ;;  %v1952_v0 = vrot.slane %v4335_v60, %v4102_v57 }
 0x494   : > { %v2731_v48 = vmul.f32 %v2441_v43, %v1442_v37  ;;  %v2730_v23 = vmul.f32 %v2441_v43, %v1438_v52  ;;  %v2989_v29 = vsel %vm2957_vm12, %v2735_v51, 0.0  ;;  %v2739_v31 = vmul.f32 %v4459_v7, %v4182_v38 }
 0x495   : > { %1936 = vbcast.lane.b32.xlu1 %v1930_v1, 264  ;;  %1932 = vbcast.lane.b32.xlu0 %v1930_v1, 256  ;;  %v2461_v5 = vrot.slane %v2135_v3, %v3987_v11  ;;  %v2465_v10 = vrot.slane %v2118_v14, %v3987_v11  ;;  %v4497_v56 = vrot.slane %v2132_v33, %v3987_v11  ;;  %v2861_v46 = vsel %vm693_vm1, %v2734_v15, 0.0  ;;  %v4968_v3 = vld [vmem:[#allocation5_spill] sm:$0xff]  ;;  %v4971_v15 = vld [vmem:[#allocation16_spill] sm:$0xff] }
 0x496   : > { %v2985_v58 = vsel %vm2957_vm12, %v2731_v48, 0.0  ;;  %v2857_v21 = vsel %vm693_vm1, %v2730_v23, 0.0  ;;  %v2134_v13 = vcombine.high %v2118_v14, %v2118_v14  ;;  %v2991_v57 = vsel %vm2957_vm12, %v2737_v24, 0.0  ;;  %v4966_v23 = vld [vmem:[#allocation8_spill] sm:$0xff] }
 0x497   : > { %v1453_v49 = vpop.permute.xlu1 %1452  ;;  %v1449_v26 = vpop.permute.xlu0 %1448  ;;  %v2986_v54 = vadd.f32 %v2985_v58, %v2984_v9  ;;  %v2858_v16 = vadd.f32 %v2857_v21, %v2856_v2  ;;  %v2736_v18 = vmul.f32 %v2453_v20, %v4176_v32  ;;  %v2741_v36 = vmul.f32 %v2461_v5, %v4191_v42 }
 0x498   : > { %v2733_v25 = vmul.f32 %v2445_v44, %v1453_v49  ;;  %v2732_v45 = vmul.f32 %v2445_v44, %v1449_v26  ;;  %v2152_v38 = vcombine.high %v2144_v28, %v2144_v28  ;;  %v1963_v53 = vrot.slane %v4335_v60, %v4107_v59  ;;  %v4969_v49 = vld [vmem:[#allocation14_spill] sm:$0xff] }
 0x499   : > { %1947 = vbcast.lane.b32.xlu1 %v1941_v22, 264  ;;  %1943 = vbcast.lane.b32.xlu0 %v1941_v22, 256  ;;  %v2993_v37 = vsel %vm2957_vm12, %v2739_v31, 0.0  ;;  %v2743_v52 = vmul.f32 %v2465_v10, %v4197_v47  ;;  %v2136_v1 = vcombine.high %v2132_v33, %v2132_v33  ;;  %v2137_v32 = vcombine.high %v4135_v12, %v4135_v12  ;;  %v4967_v47 = vld [vmem:[#allocation12_spill] sm:$0xff]  ;;  %v4970_v33 = vld [vmem:[#allocation10_spill] sm:$0xff] }
 0x49a   : > { %v2987_v55 = vsel %vm2957_vm12, %v2733_v25, 0.0  ;;  %v2859_v27 = vsel %vm693_vm1, %v2732_v45, 0.0  ;;  %v4514_v42 = vrot.slane %v2134_v13, %v3987_v11  ;;  %v2160_v6 = vrot.slane %v2144_v28, %v3982_v8 }
 0x49b   : > { %v2988_v39 = vadd.f32 %v2987_v55, %v2986_v54  ;;  %v2860_v63 = vadd.f32 %v2859_v27, %v2858_v16  ;;  %v4485_v61 = vpop.permute.xlu1 %1815  ;;  %v4487_v30 = vpop.permute.xlu0 %1811  ;;  %v2863_v48 = vsel %vm693_vm1, %v2736_v18, 0.0  ;;  %v2738_v59 = vmul.f32 %v4459_v7, %v4966_v23 }
 0x49c   : > { %v2995_v62 = vsel %vm2957_vm12, %v2741_v36, 0.0  ;;  %v2745_v41 = vmul.f32 %v4497_v56, %v4967_v47  ;;  %v2174_v17 = vrot.slane %v2152_v38, %v3982_v8  ;;  %v1974_v9 = vrot.slane %v4335_v60, %v4968_v3  ;;  %v4973_v36 = vld [vmem:[#allocation11_spill] sm:$0xff]  ;;  %v4977_v3 = vld [vmem:[#allocation26_spill] sm:$0xff] }
 0x49d   : > { %v2990_v50 = vadd.f32 %v2989_v29, %v2988_v39  ;;  %1958 = vbcast.lane.b32.xlu1 %v1952_v0, 264  ;;  %1954 = vbcast.lane.b32.xlu0 %v1952_v0, 256  ;;  %v2862_v40 = vadd.f32 %v2861_v46, %v2860_v63  ;;  %v2997_v2 = vsel %vm2957_vm12, %v2743_v52, 0.0  ;;  %v2747_v7 = vmul.f32 %v4514_v42, %v4969_v49  ;;  %v4972_v29 = vld [vmem:[#allocation19_spill] sm:$0xff] }
 0x49e   : > { %v4534_v26 = vrot.slane %v2136_v1, %v3987_v11  ;;  %v2151_v22 = vrot.slane %v2137_v32, %v3982_v8  ;;  %v4538_v51 = vrot.slane %v2160_v6, %v3987_v11  ;;  %v2182_v14 = vcombine.high %v2160_v6, %v2160_v6 }
 0x49f   : > { %v2992_v43 = vadd.f32 %v2991_v57, %v2990_v50  ;;  %v4503_v35 = vpop.permute.xlu1 %1826  ;;  %v4505_v19 = vpop.permute.xlu0 %1822  ;;  %v2864_v58 = vadd.f32 %v2863_v48, %v2862_v40  ;;  %v2865_v45 = vsel %vm693_vm1, %v2738_v59, 0.0  ;;  %v2740_v54 = vmul.f32 %v2461_v5, %v4970_v33  ;;  %v4974_v40 = vld [vmem:[#allocation21_spill] sm:$0xff] }
 0x4a0   : > { %v2999_v16 = vsel %vm2957_vm12, %v2745_v41, 0.0  ;;  %v2749_v24 = vmul.f32 %v4534_v26, %v4971_v15  ;;  %v4546_v55 = vrot.slane %v2174_v17, %v3987_v11  ;;  %v3001_v0 = vsel %vm2957_vm12, %v2747_v7, 0.0 }
 0x4a1   : > { %v2994_v4 = vadd.f32 %v2993_v37, %v2992_v43  ;;  %1969 = vbcast.lane.b32.xlu1 %v1963_v53, 264  ;;  %1965 = vbcast.lane.b32.xlu0 %v1963_v53, 256  ;;  %v2866_v28 = vadd.f32 %v2865_v45, %v2864_v58  ;;  %v2751_v31 = vmul.f32 %v4538_v51, %v4972_v29  ;;  %v2867_v18 = vsel %vm693_vm1, %v2740_v54, 0.0 }
 0x4a2   : > { %v2184_v5 = vcombine.high %v2174_v17, %v2174_v17  ;;  %v2153_v13 = vcombine.high %v2151_v22, %v2151_v22  ;;  %v4556_v50 = vrot.slane %v2182_v14, %v3987_v11  ;;  %v2167_v46 = vrot.slane %v2151_v22, %v3982_v8  ;;  %v4976_v17 = vld [vmem:[#allocation13_spill] sm:$0xff] }
 0x4a3   : > { %v2996_v20 = vadd.f32 %v2995_v62, %v2994_v4  ;;  %v4524_v21 = vpop.permute.xlu1 %1837  ;;  %v4526_v44 = vpop.permute.xlu0 %1833  ;;  %v2742_v38 = vmul.f32 %v2465_v10, %v4973_v36  ;;  %v3003_v43 = vsel %vm2957_vm12, %v2749_v24, 0.0  ;;  %v2753_v53 = vmul.f32 %v4546_v55, %v4974_v40  ;;  %v4975_v4 = vld [vmem:[#allocation23_spill] sm:$0xff]  ;;  %v4982_v40 = vld [vmem:[#allocation17_spill] sm:$0xff] }
 0x4a4   : > { %v2868_v52 = vadd.f32 %v2867_v18, %v2866_v28  ;;  %v3005_v6 = vsel %vm2957_vm12, %v2751_v31, 0.0  ;;  %v2755_v48 = vmul.f32 %v4556_v50, %v4975_v4  ;;  %v2493_v23 = vrot.slane %v2184_v5, %v3987_v11  ;;  %v4979_v24 = vld [vmem:[#allocation15_spill] sm:$0xff]  ;;  %v4981_v18 = vld [vmem:[#allocation32_spill] sm:$0xff] }
 0x4a5   : > { %v2998_v25 = vadd.f32 %v2997_v2, %v2996_v20  ;;  %1980 = vbcast.lane.b32.xlu1 %v1974_v9, 264  ;;  %1976 = vbcast.lane.b32.xlu0 %v1974_v9, 256  ;;  %v2181_v10 = vrot.slane %v2153_v13, %v3982_v8  ;;  %v4574_v59 = vrot.slane %v2167_v46, %v3987_v11  ;;  %v2869_v41 = vsel %vm693_vm1, %v2742_v38, 0.0 }
 0x4a6   : > { %v2183_v62 = vcombine.high %v2167_v46, %v2167_v46  ;;  %v2744_v20 = vmul.f32 %v4497_v56, %v4976_v17  ;;  %v3007_v58 = vsel %vm2957_vm12, %v2753_v53, 0.0  ;;  %v2757_v9 = vmul.f32 %v2493_v23, %v4977_v3 }
 0x4a7   : > { %v3000_v27 = vadd.f32 %v2999_v16, %v2998_v25  ;;  %v4548_v39 = vpop.permute.xlu1 %1848  ;;  %v4550_v63 = vpop.permute.xlu0 %1844  ;;  %v2870_v2 = vadd.f32 %v2869_v41, %v2868_v52  ;;  %v3009_v14 = vsel %vm2957_vm12, %v2755_v48, 0.0  ;;  %v4978_v25 = vld [vmem:[#allocation28_spill] sm:$0xff]  ;;  %v2501_v33 = vrot.slane %v2181_v10, %v3987_v11  ;;  %v4983_v52 = vld [vmem:[#allocation34_spill] sm:$0xff] }
 0x4a8   : > { %v2759_v45 = vmul.f32 %v4574_v59, %v4978_v25  ;;  %v2185_v54 = vcombine.high %v2181_v10, %v2181_v10  ;;  %v4590_v56 = vrot.slane %v2183_v62, %v3987_v11  ;;  %v2871_v15 = vsel %vm693_vm1, %v2744_v20, 0.0  ;;  %v4984_v20 = vld [vmem:[#allocation20_spill] sm:$0xff]  ;;  %v4985_v25 = vld [vmem:[#allocation22_spill] sm:$0xff] }
 0x4a9   : > { %v3002_v57 = vadd.f32 %v3001_v0, %v3000_v27  ;;  %v2746_v27 = vmul.f32 %v4514_v42, %v4979_v24  ;;  %v3011_v28 = vsel %vm2957_vm12, %v2757_v9, 0.0  ;;  %v4980_v0 = vld [vmem:[#allocation30_spill] sm:$0xff]  ;;  %v2872_v31 = vadd.f32 %v2871_v15, %v2870_v2 }
 0x4aa   : > { %v2761_v29 = vmul.f32 %v2501_v33, %v4980_v0  ;;  %v2763_v36 = vmul.f32 %v4590_v56, %v4981_v18  ;;  %v2509_v38 = vrot.slane %v2185_v54, %v3987_v11  ;;  %v2748_v53 = vmul.f32 %v4534_v26, %v4982_v40 }
 0x4ab   : > { %v3004_v37 = vadd.f32 %v3003_v43, %v3002_v57  ;;  %v4564_v1 = vpop.permute.xlu1 %1859  ;;  %v4566_v32 = vpop.permute.xlu0 %1855  ;;  %v3013_v57 = vsel %vm2957_vm12, %v2759_v45, 0.0  ;;  %v2873_v42 = vsel %vm693_vm1, %v2746_v27, 0.0  ;;  %v2752_v45 = vmul.f32 %v4546_v55, %v4985_v25  ;;  %v4986_v27 = vld [vmem:[#allocation24_spill] sm:$0xff]  ;;  %v4988_v55 = vld [vmem:[#allocation18_spill] sm:$0xff] }
 0x4ac   : > { %v2874_v4 = vadd.f32 %v2873_v42, %v2872_v31  ;;  %v2875_v17 = vsel %vm693_vm1, %v2748_v53, 0.0  ;;  %v2193_v42 = vrot.slane %v4988_v55, %v3982_v8  ;;  %v4989_v53 = vld [vmem:[#allocation29_spill] sm:$0xff] }
 0x4ad   : > { %v3006_v47 = vadd.f32 %v3005_v6, %v3004_v37  ;;  %v3015_v37 = vsel %vm2957_vm12, %v2761_v29, 0.0  ;;  %v2765_v6 = vmul.f32 %v2509_v38, %v4983_v52  ;;  %v2879_v24 = vsel %vm693_vm1, %v2752_v45, 0.0 }
 0x4ae   : > { %v2876_v3 = vadd.f32 %v2875_v17, %v2874_v4  ;;  %v4991_v17 = vld [vmem:[#allocation9_spill] sm:$0xff] }
 0x4af   : > { %v4581_v49 = vpop.permute.xlu1 %1870  ;;  %v4583_v7 = vpop.permute.xlu0 %1866  ;;  %v3008_v22 = vadd.f32 %v3007_v58, %v3006_v47  ;;  %v3017_v47 = vsel %vm2957_vm12, %v2763_v36, 0.0  ;;  %v2750_v58 = vmul.f32 %v4538_v51, %v4984_v20  ;;  %v3019_v26 = vsel %vm2957_vm12, %v2765_v6, 0.0 }
 0x4b0   : > { %v2754_v51 = vmul.f32 %v4556_v50, %v4986_v27  ;;  %v2186_v50 = vcombine.high %v4988_v55, %v4988_v55  ;;  %v2291_v20 = vrot.slane %v4991_v17, %v3982_v8 }
 0x4b1   : > { %v3010_v16 = vadd.f32 %v3009_v14, %v3008_v22  ;;  %v2877_v14 = vsel %vm693_vm1, %v2750_v58, 0.0 }
 0x4b2   : > { %v2878_v54 = vadd.f32 %v2877_v14, %v2876_v3  ;;  %v2881_v31 = vsel %vm693_vm1, %v2754_v51, 0.0  ;;  %v2209_v14 = vrot.slane %v2193_v42, %v3982_v8 }
 0x4b3   : > { %v4597_v5 = vpop.permute.xlu1 %1881  ;;  %v4599_v13 = vpop.permute.xlu0 %1877  ;;  %v3012_v46 = vadd.f32 %v3011_v28, %v3010_v16 }
 0x4b4   : > { %v2880_v28 = vadd.f32 %v2879_v24, %v2878_v54  ;;  %v4992_v54 = vld [vmem:[#allocation33_spill] sm:$0xff] }
 0x4b5   : > { %v3014_v43 = vadd.f32 %v3013_v57, %v3012_v46  ;;  %v4987_v46 = vld [vmem:[#allocation27_spill] sm:$0xff]  ;;  %v2762_v24 = vmul.f32 %v4590_v56, %v4992_v54 }
 0x4b6   : > { %v2756_v57 = vmul.f32 %v2493_v23, %v4987_v46  ;;  %v2882_v18 = vadd.f32 %v2881_v31, %v2880_v28  ;;  %v2201_v23 = vcombine.high %v2193_v42, %v2193_v42  ;;  %v2513_v46 = vrot.slane %v2209_v14, %v3987_v11  ;;  %v4993_v42 = vld [vmem:[#allocation35_spill] sm:$0xff] }
 0x4b7   : > { %v4610_v48 = vpop.permute.xlu1 %1892  ;;  %v4612_v10 = vpop.permute.xlu0 %1888  ;;  %v3016_v62 = vadd.f32 %v3015_v37, %v3014_v43  ;;  %v2758_v37 = vmul.f32 %v4574_v59, %v4989_v53  ;;  %v2889_v56 = vsel %vm693_vm1, %v2762_v24, 0.0 }
 0x4b8   : > { %v2883_v40 = vsel %vm693_vm1, %v2756_v57, 0.0  ;;  %v2223_v25 = vrot.slane %v2201_v23, %v3982_v8  ;;  %v2231_v57 = vcombine.high %v2209_v14, %v2209_v14 }
 0x4b9   : > { %v3018_v41 = vadd.f32 %v3017_v47, %v3016_v62  ;;  %v2884_v52 = vadd.f32 %v2883_v40, %v2882_v18  ;;  %v2885_v62 = vsel %vm693_vm1, %v2758_v37, 0.0  ;;  %v4990_v47 = vld [vmem:[#allocation31_spill] sm:$0xff]  ;;  %v2764_v40 = vmul.f32 %v2509_v38, %v4993_v42  ;;  %v4994_v37 = vld [vmem:[#allocation25_spill] sm:$0xff] }
 0x4ba   : > { %v2233_v18 = vcombine.high %v2223_v25, %v2223_v25  ;;  %v2521_v42 = vrot.slane %v2231_v57, %v3987_v11 }
 0x4bb   : > { %v4619_v9 = vadd.f32 %v3019_v26, %v3018_v41  ;;  %v1640_v2 = vpop.permute.xlu1 %1639  ;;  %v1636_v22 = vpop.permute.xlu0 %1635  ;;  %v2760_v41 = vmul.f32 %v2501_v33, %v4990_v47  ;;  %v2886_v58 = vadd.f32 %v2885_v62, %v2884_v52  ;;  %v2200_v26 = vrot.slane %v2186_v50, %v3982_v8 }
 0x4bc   : > { %v2299_v33 = vcombine.high %v2291_v20, %v2291_v20  ;;  %v2242_v52 = vrot.slane %v4994_v37, %v3982_v8  ;;  %v2767_v50 = vmul.f32 %v2513_v46, %v1640_v2  ;;  %v2766_v23 = vmul.f32 %v2513_v46, %v1636_v22 }
 0x4bd   : > { %v2887_v45 = vsel %vm693_vm1, %v2760_v41, 0.0  ;;  %v2216_v51 = vrot.slane %v2200_v26, %v3982_v8  ;;  %v2202_v53 = vcombine.high %v2200_v26, %v2200_v26  ;;  %v2517_v62 = vrot.slane %v2223_v25, %v3987_v11 }
 0x4be   : > { %v2888_v27 = vadd.f32 %v2887_v45, %v2886_v58  ;;  %v4666_v47 = vrot.slane %v2291_v20, %v3982_v8  ;;  %v4669_v41 = vrot.slane %v2299_v33, %v3982_v8  ;;  %v2525_v24 = vrot.slane %v2233_v18, %v3987_v11 }
 0x4bf   : > { %v1651_v16 = vpop.permute.xlu1 %1650  ;;  %v1647_v15 = vpop.permute.xlu0 %1646  ;;  %v2232_v14 = vcombine.high %v2216_v51, %v2216_v51  ;;  %v2891_v2 = vsel %vm693_vm1, %v2764_v40, 0.0  ;;  %v2529_v22 = vrot.slane %v2216_v51, %v3987_v11  ;;  %v2230_v20 = vrot.slane %v2202_v53, %v3982_v8 }
 0x4c0   : > { %v2890_v58 = vadd.f32 %v2889_v56, %v2888_v27  ;;  %v2769_v26 = vmul.f32 %v2517_v62, %v1651_v16  ;;  %v2768_v54 = vmul.f32 %v2517_v62, %v1647_v15  ;;  %v2258_v25 = vrot.slane %v2242_v52, %v3982_v8 }
 0x4c1   : > { %v3021_v33 = vsel %vm2957_vm12, %v2767_v50, 0.0  ;;  %v2893_v27 = vsel %vm693_vm1, %v2766_v23, 0.0  ;;  %v2537_v15 = vrot.slane %v2232_v14, %v3987_v11  ;;  %v2250_v18 = vcombine.high %v2242_v52, %v2242_v52 }
 0x4c2   : > { %v2892_v16 = vadd.f32 %v2891_v2, %v2890_v58  ;;  %v2235_v40 = vcombine.high %v4994_v37, %v4994_v37  ;;  %v3023_v51 = vsel %vm2957_vm12, %v2769_v26, 0.0  ;;  %v2895_v53 = vsel %vm693_vm1, %v2768_v54, 0.0 }
 0x4c3   : > { %v1662_v0 = vpop.permute.xlu1 %1661  ;;  %v1658_v29 = vpop.permute.xlu0 %1657  ;;  %v3022_v50 = vadd.f32 %v3021_v33, %v4619_v9  ;;  %v2545_v54 = vrot.slane %v2258_v25, %v3987_v11 }
 0x4c4   : > { %v2771_v46 = vmul.f32 %v2521_v42, %v1662_v0  ;;  %v2770_v56 = vmul.f32 %v2521_v42, %v1658_v29  ;;  %v2894_v23 = vadd.f32 %v2893_v27, %v2892_v16  ;;  %v2533_v0 = vrot.slane %v2230_v20, %v3987_v11 }
 0x4c5   : > { %v2234_v29 = vcombine.high %v2230_v20, %v2230_v20  ;;  %v3024_v2 = vadd.f32 %v3023_v51, %v3022_v50 }
 0x4c6   : > { %v3025_v58 = vsel %vm2957_vm12, %v2771_v46, 0.0  ;;  %v2897_v14 = vsel %vm693_vm1, %v2770_v56, 0.0  ;;  %v2896_v26 = vadd.f32 %v2895_v53, %v2894_v23  ;;  %v2280_v53 = vcombine.high %v2258_v25, %v2258_v25 }
 0x4c7   : > { %v1673_v36 = vpop.permute.xlu1 %1672  ;;  %v1669_v43 = vpop.permute.xlu0 %1668  ;;  %v3026_v46 = vadd.f32 %v3025_v58, %v3024_v2 }
 0x4c8   : > { %v2773_v55 = vmul.f32 %v2525_v24, %v1673_v36  ;;  %v2772_v12 = vmul.f32 %v2525_v24, %v1669_v43  ;;  %v2272_v36 = vrot.slane %v2250_v18, %v3982_v8 }
 0x4ca   : > { %v3027_v24 = vsel %vm2957_vm12, %v2773_v55, 0.0  ;;  %v2899_v20 = vsel %vm693_vm1, %v2772_v12, 0.0 }
 0x4cb   : > { %v4636_v6 = vpop.permute.xlu1 %1683  ;;  %v4638_v4 = vpop.permute.xlu0 %1679  ;;  %v3028_v51 = vadd.f32 %v3027_v24, %v3026_v46  ;;  %v2553_v24 = vrot.slane %v2280_v53, %v3987_v11 }
 0x4cc   : > { %v2775_v52 = vmul.f32 %v2529_v22, %v4636_v6  ;;  %v2774_v42 = vmul.f32 %v2529_v22, %v4638_v4  ;;  %v2898_v6 = vadd.f32 %v2897_v14, %v2896_v26  ;;  %v2541_v4 = vrot.slane %v2234_v29, %v3987_v11 }
 0x4cd   : > { %v2249_v22 = vrot.slane %v2235_v40, %v3982_v8 }
 0x4ce   : > { %v3029_v56 = vsel %vm2957_vm12, %v2775_v52, 0.0  ;;  %v2901_v16 = vsel %vm693_vm1, %v2774_v42, 0.0  ;;  %v2900_v12 = vadd.f32 %v2899_v20, %v2898_v6  ;;  %v2282_v52 = vcombine.high %v2272_v36, %v2272_v36 }
 0x4cf   : > { %v4645_v59 = vpop.permute.xlu1 %1694  ;;  %v4647_v3 = vpop.permute.xlu0 %1690  ;;  %v3030_v58 = vadd.f32 %v3029_v56, %v3028_v51  ;;  %v2251_v42 = vcombine.high %v2249_v22, %v2249_v22 }
 0x4d0   : > { %v2777_v33 = vmul.f32 %v2533_v0, %v4645_v59  ;;  %v2776_v27 = vmul.f32 %v2533_v0, %v4647_v3  ;;  %v2549_v59 = vrot.slane %v2272_v36, %v3987_v11  ;;  %v2902_v14 = vadd.f32 %v2901_v16, %v2900_v12 }
 0x4d1   : > { %v2557_v56 = vrot.slane %v2282_v52, %v3987_v11 }
 0x4d2   : > { %v3031_v23 = vsel %vm2957_vm12, %v2777_v33, 0.0  ;;  %v2903_v0 = vsel %vm693_vm1, %v2776_v27, 0.0  ;;  %v2265_v27 = vrot.slane %v2249_v22, %v3982_v8  ;;  %v2284_v22 = vcombine.high %v4991_v17, %v4991_v17 }
 0x4d3   : > { %v4655_v28 = vpop.permute.xlu1 %1705  ;;  %v4657_v31 = vpop.permute.xlu0 %1701  ;;  %v3032_v26 = vadd.f32 %v3031_v23, %v3030_v58  ;;  %v2904_v25 = vadd.f32 %v2903_v0, %v2902_v14 }
 0x4d4   : > { %v2779_v18 = vmul.f32 %v2537_v15, %v4655_v28  ;;  %v2778_v55 = vmul.f32 %v2537_v15, %v4657_v31 }
 0x4d6   : > { %v3033_v28 = vsel %vm2957_vm12, %v2779_v18, 0.0  ;;  %v2905_v31 = vsel %vm693_vm1, %v2778_v55, 0.0 }
 0x4d7   : > { %v1717_v45 = vpop.permute.xlu1 %1716  ;;  %v1713_v38 = vpop.permute.xlu0 %1712  ;;  %v3034_v6 = vadd.f32 %v3033_v28, %v3032_v26  ;;  %v2577_v28 = vrot.slane %v4666_v47, %v3987_v11 }
 0x4d8   : > { %v2781_v40 = vmul.f32 %v2541_v4, %v1717_v45  ;;  %v2780_v29 = vmul.f32 %v2541_v4, %v1713_v38  ;;  %v2906_v4 = vadd.f32 %v2905_v31, %v2904_v25  ;;  %v2298_v31 = vrot.slane %v2284_v22, %v3982_v8 }
 0x4da   : > { %v3035_v45 = vsel %vm2957_vm12, %v2781_v40, 0.0  ;;  %v2907_v38 = vsel %vm693_vm1, %v2780_v29, 0.0 }
 0x4db   : > { %v1728_v57 = vpop.permute.xlu1 %1727  ;;  %v1724_v62 = vpop.permute.xlu0 %1723  ;;  %v3036_v55 = vadd.f32 %v3035_v45, %v3034_v6  ;;  %v2908_v51 = vadd.f32 %v2907_v38, %v2906_v4  ;;  %v2329_v45 = vcombine.high %v4666_v47, %v4666_v47  ;;  %v2331_v38 = vcombine.high %v4669_v41, %v4669_v41 }
 0x4dc   : > { %v2783_v15 = vmul.f32 %v2545_v54, %v1728_v57  ;;  %v2782_v2 = vmul.f32 %v2545_v54, %v1724_v62  ;;  %v2279_v57 = vrot.slane %v2251_v42, %v3982_v8 }
 0x4de   : > { %v3037_v62 = vsel %vm2957_vm12, %v2783_v15, 0.0  ;;  %v2909_v54 = vsel %vm693_vm1, %v2782_v2, 0.0 }
 0x4df   : > { %v1739_v43 = vpop.permute.xlu1 %1738  ;;  %v1735_v9 = vpop.permute.xlu0 %1734  ;;  %v3038_v40 = vadd.f32 %v3037_v62, %v3036_v55  ;;  %v2910_v29 = vadd.f32 %v2909_v54, %v2908_v51  ;;  %v2283_v62 = vcombine.high %v2279_v57, %v2279_v57  ;;  %v2314_v54 = vrot.slane %v2298_v31, %v3982_v8 }
 0x4e0   : > { %v2785_v36 = vmul.f32 %v2549_v59, %v1739_v43  ;;  %v2784_v46 = vmul.f32 %v2549_v59, %v1735_v9  ;;  %v2561_v43 = vrot.slane %v2265_v27, %v3987_v11 }
 0x4e2   : > { %v3039_v59 = vsel %vm2957_vm12, %v2785_v36, 0.0  ;;  %v2911_v53 = vsel %vm693_vm1, %v2784_v46, 0.0 }
 0x4e3   : > { %v1750_v3 = vpop.permute.xlu1 %1749  ;;  %v1746_v50 = vpop.permute.xlu0 %1745  ;;  %v3040_v15 = vadd.f32 %v3039_v59, %v3038_v40  ;;  %v2912_v2 = vadd.f32 %v2911_v53, %v2910_v29  ;;  %v2581_v59 = vrot.slane %v4669_v41, %v3987_v11  ;;  %v2585_v53 = vrot.slane %v2329_v45, %v3987_v11 }
 0x4e4   : > { %v2787_v16 = vmul.f32 %v2553_v24, %v1750_v3  ;;  %v2786_v18 = vmul.f32 %v2553_v24, %v1746_v50  ;;  %v2565_v3 = vrot.slane %v2279_v57, %v3987_v11  ;;  %v2281_v50 = vcombine.high %v2265_v27, %v2265_v27 }
 0x4e5   : > { %v2799_v41 = vmul.f32 %v2577_v28, %v4485_v61  ;;  %v2800_v45 = vmul.f32 %v2581_v59, %v4505_v19  ;;  %v2802_v19 = vmul.f32 %v2585_v53, %v4526_v44  ;;  %v2333_v44 = vcombine.high %v4335_v60, %v4335_v60 }
 0x4e6   : > { %v3041_v58 = vsel %vm2957_vm12, %v2787_v16, 0.0  ;;  %v2913_v14 = vsel %vm693_vm1, %v2786_v18, 0.0  ;;  %v2300_v16 = vcombine.high %v2298_v31, %v2298_v31 }
 0x4e7   : > { %v1761_v20 = vpop.permute.xlu1 %1760  ;;  %v1757_v33 = vpop.permute.xlu0 %1756  ;;  %v3042_v36 = vadd.f32 %v3041_v58, %v3040_v15  ;;  %v2914_v46 = vadd.f32 %v2913_v14, %v2912_v2  ;;  %v2330_v58 = vcombine.high %v2314_v54, %v2314_v54  ;;  %v2798_v15 = vmul.f32 %v2577_v28, %v4487_v30 }
 0x4e8   : > { %v2789_v23 = vmul.f32 %v2557_v56, %v1761_v20  ;;  %v2788_v0 = vmul.f32 %v2557_v56, %v1757_v33  ;;  %v2569_v56 = vrot.slane %v2281_v50, %v3987_v11  ;;  %v2328_v50 = vrot.slane %v2300_v16, %v3982_v8 }
 0x4e9   : > { %v2601_v30 = vrot.slane %v2330_v58, %v3987_v11 }
 0x4ea   : > { %v3043_v24 = vsel %vm2957_vm12, %v2789_v23, 0.0  ;;  %v2915_v20 = vsel %vm693_vm1, %v2788_v0, 0.0  ;;  %v2589_v0 = vrot.slane %v2331_v38, %v3987_v11  ;;  %v2597_v61 = vrot.slane %v2328_v50, %v3987_v11 }
 0x4eb   : > { %v1772_v9 = vpop.permute.xlu1 %1771  ;;  %v1768_v12 = vpop.permute.xlu0 %1767  ;;  %v3044_v18 = vadd.f32 %v3043_v24, %v3042_v36  ;;  %v2916_v22 = vadd.f32 %v2915_v20, %v2914_v46 }
 0x4ec   : > { %v2791_v52 = vmul.f32 %v2561_v43, %v1772_v9  ;;  %v2790_v42 = vmul.f32 %v2561_v43, %v1768_v12 }
 0x4ee   : > { %v3045_v6 = vsel %vm2957_vm12, %v2791_v52, 0.0  ;;  %v2917_v4 = vsel %vm693_vm1, %v2790_v42, 0.0 }
 0x4ef   : > { %v1783_v26 = vpop.permute.xlu1 %1782  ;;  %v1779_v25 = vpop.permute.xlu0 %1778  ;;  %v3046_v23 = vadd.f32 %v3045_v6, %v3044_v18  ;;  %v2918_v57 = vadd.f32 %v2917_v4, %v2916_v22 }
 0x4f0   : > { %v2793_v33 = vmul.f32 %v2565_v3, %v1783_v26  ;;  %v2792_v27 = vmul.f32 %v2565_v3, %v1779_v25  ;;  %v2573_v3 = vrot.slane %v2283_v62, %v3987_v11  ;;  %v2593_v25 = vrot.slane %v2314_v54, %v3987_v11 }
 0x4f1   : > { %v2925_v62 = vsel %vm693_vm1, %v2798_v15, 0.0  ;;  %v2332_v54 = vcombine.high %v2328_v50, %v2328_v50  ;;  %v2347_v15 = vrot.slane %v2333_v44, %v3982_v8 }
 0x4f2   : > { %v3047_v47 = vsel %vm2957_vm12, %v2793_v33, 0.0  ;;  %v2919_v43 = vsel %vm693_vm1, %v2792_v27, 0.0  ;;  %v2340_v33 = vrot.slane %v4335_v60, %v3982_v8  ;;  %v2801_v27 = vmul.f32 %v2581_v59, %v4503_v35 }
 0x4f3   : > { %v1794_v55 = vpop.permute.xlu1 %1793  ;;  %v1790_v51 = vpop.permute.xlu0 %1789  ;;  %v3048_v14 = vadd.f32 %v3047_v47, %v3046_v23  ;;  %v2920_v52 = vadd.f32 %v2919_v43, %v2918_v57  ;;  %v2803_v35 = vmul.f32 %v2585_v53, %v4524_v21  ;;  %v2805_v47 = vmul.f32 %v2589_v0, %v4548_v39 }
 0x4f4   : > { %v2795_v9 = vmul.f32 %v2569_v56, %v1794_v55  ;;  %v2794_v12 = vmul.f32 %v2569_v56, %v1790_v51  ;;  %v3053_v56 = vsel %vm2957_vm12, %v2799_v41, 0.0  ;;  %v2348_v22 = vcombine.high %v2340_v33, %v2340_v33 }
 0x4f5   : > { %v3055_v55 = vsel %vm2957_vm12, %v2801_v27, 0.0  ;;  %v2927_v51 = vsel %vm693_vm1, %v2800_v45, 0.0  ;;  %v2804_v43 = vmul.f32 %v2589_v0, %v4550_v63  ;;  %v2356_v59 = vrot.slane %v2340_v33, %v3982_v8 }
 0x4f6   : > { %v3049_v40 = vsel %vm2957_vm12, %v2795_v9, 0.0  ;;  %v2921_v29 = vsel %vm693_vm1, %v2794_v12, 0.0  ;;  %v3057_v53 = vsel %vm2957_vm12, %v2803_v35, 0.0  ;;  %v2929_v57 = vsel %vm693_vm1, %v2802_v19, 0.0 }
 0x4f7   : > { %v1805_v42 = vpop.permute.xlu1 %1804  ;;  %v1801_v31 = vpop.permute.xlu0 %1800  ;;  %v3050_v24 = vadd.f32 %v3049_v40, %v3048_v14  ;;  %v2922_v20 = vadd.f32 %v2921_v29, %v2920_v52  ;;  %v2807_v40 = vmul.f32 %v2593_v25, %v4564_v1  ;;  %v2806_v29 = vmul.f32 %v2593_v25, %v4566_v32 }
 0x4f8   : > { %v2797_v2 = vmul.f32 %v2573_v3, %v1805_v42  ;;  %v2796_v26 = vmul.f32 %v2573_v3, %v1801_v31  ;;  %v2605_v39 = vrot.slane %v2332_v54, %v3987_v11  ;;  %v2370_v3 = vrot.slane %v2348_v22, %v3982_v8 }
 0x4f9   : > { %v3059_v50 = vsel %vm2957_vm12, %v2805_v47, 0.0  ;;  %v2931_v58 = vsel %vm693_vm1, %v2804_v43, 0.0  ;;  %v2809_v14 = vmul.f32 %v2597_v61, %v4581_v49  ;;  %v2808_v52 = vmul.f32 %v2597_v61, %v4583_v7 }
 0x4fa   : > { %v3051_v38 = vsel %vm2957_vm12, %v2797_v2, 0.0  ;;  %v2923_v36 = vsel %vm693_vm1, %v2796_v26, 0.0  ;;  %v2609_v1 = vrot.slane %v2356_v59, %v3987_v11  ;;  %v3061_v2 = vsel %vm2957_vm12, %v2807_v40, 0.0 }
 0x4fb   : > { %v3052_v28 = vadd.f32 %v3051_v38, %v3050_v24  ;;  %v2924_v46 = vadd.f32 %v2923_v36, %v2922_v20  ;;  %v1904_v6 = vpop.permute.xlu1 %1903  ;;  %v1900_v4 = vpop.permute.xlu0 %1899  ;;  %v2933_v26 = vsel %vm693_vm1, %v2806_v29, 0.0  ;;  %v2811_v25 = vmul.f32 %v2601_v30, %v4597_v5 }
 0x4fc   : > { %v2810_v24 = vmul.f32 %v2601_v30, %v4599_v13  ;;  %v2613_v7 = vrot.slane %v2370_v3, %v3987_v11  ;;  %v2378_v33 = vcombine.high %v2356_v59, %v2356_v59  ;;  %v3063_v27 = vsel %vm2957_vm12, %v2809_v14, 0.0 }
 0x4fd   : > { %v3054_v16 = vadd.f32 %v3053_v56, %v3052_v28  ;;  %v2926_v18 = vadd.f32 %v2925_v62, %v2924_v46  ;;  %v2935_v45 = vsel %vm693_vm1, %v2808_v52, 0.0  ;;  %v2813_v38 = vmul.f32 %v2605_v39, %v4610_v48 }
 0x4fe   : > { %v2812_v36 = vmul.f32 %v2605_v39, %v4612_v10  ;;  %v2380_v46 = vcombine.high %v2370_v3, %v2370_v3  ;;  %v2349_v62 = vcombine.high %v2347_v15, %v2347_v15  ;;  %v3065_v13 = vsel %vm2957_vm12, %v2811_v25, 0.0 }
 0x4ff   : > { %v3056_v9 = vadd.f32 %v3055_v55, %v3054_v16  ;;  %v2928_v12 = vadd.f32 %v2927_v51, %v2926_v18  ;;  %v1915_v23 = vpop.permute.xlu1 %1914  ;;  %v1911_v21 = vpop.permute.xlu0 %1910  ;;  %v2937_v30 = vsel %vm693_vm1, %v2810_v24, 0.0  ;;  %v2815_v35 = vmul.f32 %v2609_v1, %v1904_v6 }
 0x500   : > { %v2814_v19 = vmul.f32 %v2609_v1, %v1900_v4  ;;  %v2617_v18 = vrot.slane %v2378_v33, %v3987_v11  ;;  %v2363_v48 = vrot.slane %v2347_v15, %v3982_v8  ;;  %v3067_v10 = vsel %vm2957_vm12, %v2813_v38, 0.0 }
 0x501   : > { %v3058_v63 = vadd.f32 %v3057_v53, %v3056_v9  ;;  %v2930_v0 = vadd.f32 %v2929_v57, %v2928_v12  ;;  %v2939_v22 = vsel %vm693_vm1, %v2812_v36, 0.0  ;;  %v2817_v55 = vmul.f32 %v2613_v7, %v1915_v23 }
 0x502   : > { %v2816_v51 = vmul.f32 %v2613_v7, %v1911_v21  ;;  %v2621_v9 = vrot.slane %v2380_v46, %v3987_v11  ;;  %v2377_v6 = vrot.slane %v2349_v62, %v3982_v8  ;;  %v3069_v4 = vsel %vm2957_vm12, %v2815_v35, 0.0 }
 0x503   : > { %v3060_v42 = vadd.f32 %v3059_v50, %v3058_v63  ;;  %v2932_v31 = vadd.f32 %v2931_v58, %v2930_v0  ;;  %v1926_v41 = vpop.permute.xlu1 %1925  ;;  %v1922_v32 = vpop.permute.xlu0 %1921  ;;  %v2941_v44 = vsel %vm693_vm1, %v2814_v19, 0.0  ;;  %v2625_v39 = vrot.slane %v2363_v48, %v3987_v11 }
 0x504   : > { %v2819_v53 = vmul.f32 %v2617_v18, %v1926_v41  ;;  %v2818_v57 = vmul.f32 %v2617_v18, %v1922_v32  ;;  %v2379_v23 = vcombine.high %v2363_v48, %v2363_v48  ;;  %v3071_v21 = vsel %vm2957_vm12, %v2817_v55, 0.0 }
 0x505   : > { %v3062_v20 = vadd.f32 %v3061_v2, %v3060_v42  ;;  %v2934_v49 = vadd.f32 %v2933_v26, %v2932_v31  ;;  %v2943_v63 = vsel %vm693_vm1, %v2816_v51, 0.0  ;;  %v2629_v8 = vrot.slane %v2377_v6, %v3987_v11 }
 0x506   : > { %v3073_v42 = vsel %vm2957_vm12, %v2819_v53, 0.0  ;;  %v2945_v31 = vsel %vm693_vm1, %v2818_v57, 0.0  ;;  %v2633_v2 = vrot.slane %v2379_v23, %v3987_v11  ;;  %v2381_v26 = vcombine.high %v2377_v6, %v2377_v6 }
 0x507   : > { %v3064_v61 = vadd.f32 %v3063_v27, %v3062_v20  ;;  %v2936_v28 = vadd.f32 %v2935_v45, %v2934_v49  ;;  %v1937_v56 = vpop.permute.xlu1 %1936  ;;  %v1933_v5 = vpop.permute.xlu0 %1932 }
 0x508   : > { %v2821_v0 = vmul.f32 %v2621_v9, %v1937_v56  ;;  %v2820_v3 = vmul.f32 %v2621_v9, %v1933_v5 }
 0x509   : > { %v3066_v54 = vadd.f32 %v3065_v13, %v3064_v61  ;;  %v2938_v16 = vadd.f32 %v2937_v30, %v2936_v28  ;;  %v2637_v13 = vrot.slane %v2381_v26, %v3987_v11  ;;  %v4996_v26 = vld [vmem:[#allocation6_spill] sm:$0xff] }
 0x50a   : > { %v3075_v25 = vsel %vm2957_vm12, %v2821_v0, 0.0  ;;  %v2947_v24 = vsel %vm693_vm1, %v2820_v3, 0.0 }
 0x50b   : > { %v3068_v47 = vadd.f32 %v3067_v10, %v3066_v54  ;;  %v2940_v43 = vadd.f32 %v2939_v22, %v2938_v16  ;;  %v1948_v12 = vpop.permute.xlu1 %1947  ;;  %v1944_v59 = vpop.permute.xlu0 %1943 }
 0x50c   : > { %v2823_v1 = vmul.f32 %v2625_v39, %v1948_v12  ;;  %v2822_v41 = vmul.f32 %v2625_v39, %v1944_v59 }
 0x50d   : > { %v3070_v40 = vadd.f32 %v3069_v4, %v3068_v47  ;;  %v2942_v29 = vadd.f32 %v2941_v44, %v2940_v43 }
 0x50e   : > { %v3077_v38 = vsel %vm2957_vm12, %v2823_v1, 0.0  ;;  %v2949_v36 = vsel %vm693_vm1, %v2822_v41, 0.0 }
 0x50f   : > { %v3072_v50 = vadd.f32 %v3071_v21, %v3070_v40  ;;  %v2944_v58 = vadd.f32 %v2943_v63, %v2942_v29  ;;  %v1959_v14 = vpop.permute.xlu1 %1958  ;;  %v1955_v52 = vpop.permute.xlu0 %1954 }
 0x510   : > { %v2825_v20 = vmul.f32 %v2629_v8, %v1959_v14  ;;  %v2824_v49 = vmul.f32 %v2629_v8, %v1955_v52  ;;  %v3668_v8 = vld [vmem:[#allocation2] ss:$0 sm:$0xff]  ;;  %v3853_v14 = vmov 0  }
 0x511   : > { %v3074_v32 = vadd.f32 %v3073_v42, %v3072_v50  ;;  %v2946_v15 = vadd.f32 %v2945_v31, %v2944_v58  ;;  %3820 = vset.pattern.permute.xlu1 %v3853_v14  ;;  %3821 = vset.pattern.permute.xlu0 %v3853_v14 }
 0x512   : > { %v3079_v5 = vsel %vm2957_vm12, %v2825_v20, 0.0  ;;  %v2951_v62 = vsel %vm693_vm1, %v2824_v49, 0.0 }
 0x513   : > { %v3076_v7 = vadd.f32 %v3075_v25, %v3074_v32  ;;  %v2948_v33 = vadd.f32 %v2947_v24, %v2946_v15  ;;  %v1970_v27 = vpop.permute.xlu1 %1969  ;;  %v1966_v45 = vpop.permute.xlu0 %1965  ;;  %v4997_v25 = vld [vmem:[#allocation18_spill] sm:$0xff] }
 0x514   : > { %v2827_v61 = vmul.f32 %v2633_v2, %v1970_v27  ;;  %v2826_v28 = vmul.f32 %v2633_v2, %v1966_v45  ;;  %v4995_v2 = vld [vmem:[#allocation7_spill] sm:$0xff]  ;;  %v3669_v27 = vld [vmem:[%s4903_s14] ss:$0 sm:$0xff] }
 0x515   : > { %v3078_v46 = vadd.f32 %v3077_v38, %v3076_v7  ;;  %v2950_v56 = vadd.f32 %v2949_v36, %v2948_v33  ;;  %v4998_v38 = vld [vmem:[#allocation4_spill] sm:$0xff] }
 0x516   : > { %v3081_v16 = vsel %vm2957_vm12, %v2827_v61, 0.0  ;;  %v2953_v18 = vsel %vm693_vm1, %v2826_v28, 0.0 }
 0x517   : > { %v3080_v30 = vadd.f32 %v3079_v5, %v3078_v46  ;;  %v2952_v35 = vadd.f32 %v2951_v62, %v2950_v56  ;;  %v1981_v19 = vpop.permute.xlu1 %1980  ;;  %v1977_v54 = vpop.permute.xlu0 %1976 }
 0x518   : > { %v2829_v48 = vmul.f32 %v2637_v13, %v1981_v19  ;;  %v2828_v10 = vmul.f32 %v2637_v13, %v1977_v54 }
 0x519   : > { %v3082_v22 = vadd.f32 %v3081_v16, %v3080_v30  ;;  %v2954_v55 = vadd.f32 %v2953_v18, %v2952_v35 }
 0x51a   : > { %v3083_v51 = vsel %vm2957_vm12, %v2829_v48, 0.0  ;;  %v2955_v47 = vsel %vm693_vm1, %v2828_v10, 0.0 }
 0x51b   : > { %v3084_v43 = vadd.f32 %v3083_v51, %v3082_v22  ;;  %v2956_v9 = vadd.f32 %v2955_v47, %v2954_v55 }
 0x51d   : > { %v3088_v11 = vsel %vm2957_vm12, %v3084_v43, -inf  ;;  %v3085_v12 = vsel %vm693_vm1, %v2956_v9, -inf }
 0x51e   : > { %3089 = vmax.xlane.f32.xlu1 %v3088_v11  ;;  %3086 = vmax.xlane.f32.xlu0 %v3085_v12 }
 0x5ab   : > { %v3090_v59 = vpop.xlane.xlu1 %3089  ;;  %v3087_v6 = vpop.xlane.xlu0 %3086 }
 0x5ac   : > { %v3091_v4 = vsub.f32 %v3087_v6, %v2956_v9  ;;  %v3092_v44 = vsub.f32 %v3090_v59, %v3084_v43 }
 0x5ae   : > { %v3093_v53 = vsel %vm693_vm1, %v3091_v4, -inf  ;;  %v3096_v57 = vsel %vm2957_vm12, %v3092_v44, -inf }
 0x5af   : > { %3094 = vmax.xlane.f32.xlu0 %v3093_v53 }
 0x5b3   : > { %3097 = vmax.xlane.f32.xlu0 %v3096_v57 }
 0x63c   : > { %v3095_v40 = vpop.xlane.xlu0 %3094 }
 0x63d   : > { %v3099_v29 = vsub.f32 %v3091_v4, %v3095_v40 }
 0x63f   : > { %v3101_v39 = vmul.f32 1.442695, %v3099_v29 }
 0x640   : > { %v3098_v23 = vpop.xlane.xlu0 %3097 }
 0x641   : > { %3831 = vpow2.f32 %v3101_v39  ;;  %v3100_v21 = vsub.f32 %v3092_v44, %v3098_v23 }
 0x643   : > { %v3103_v63 = vmul.f32 1.442695, %v3100_v21 }
 0x645   : > { %3833 = vpow2.f32 %v3103_v63 }
 0x64b   : > { %v3832_v0 = vpop.eup %3831 }
 0x64c   : > { %v3105_v3 = vsel %vm693_vm1, %v3832_v0, 0.0 }
 0x64d   : > { %3106 = vadd.xlane.f32.xlu1 %v3105_v3 }
 0x64f   : > { %v3834_v50 = vpop.eup %3833 }
 0x650   : > { %v3108_v58 = vsel %vm2957_vm12, %v3834_v50, 0.0 }
 0x651   : > { %3109 = vadd.xlane.f32.xlu0 %v3108_v58 }
 0x65e   : > { %3249 = vperm.xlu1 %3820, %v3668_v8  }
 0x6da   : > { %v3107_v52 = vpop.xlane.xlu1 %3106 }
 0x6db   : > { %3835 = vrcp.f32 %v3107_v52 }
 0x6de   : > { %v3110_v42 = vpop.xlane.xlu0 %3109  ;;  %v3250_v24 = vpop.permute.xlu1 %3249 }
 0x6df   : > { %3837 = vrcp.f32 %v3110_v42 }
 0x6e5   : > { %v3836_v31 = vpop.eup %3835 }
 0x6e6   : > { %v3113_v41 = vmul.f32 %v3836_v31, %v3832_v0 }
 0x6e9   : > { %v3838_v1 = vpop.eup %3837 }
 0x6ea   : > { %v3114_v32 = vmul.f32 %v3838_v1, %v3834_v50  ;;  %v5000_v50 = vld [vmem:[#allocation3_spill] sm:$0xff] }
 0x6ec   : > { %v3797_v15 = vpack.c.bf16 %v3114_v32, %v3113_v41 }
 0x6ee   : > { %3799 = vmatprep.subr.msk.bf16.mxu0 %vm3798_vm13, %v3797_v15 }
 0x6ef   : > { %3802 = vmatpush3.bf16.xpose.msk.msra.mxu0 %vm3798_vm13, %v3797_v15 }
 0x6f6   : > { %3772 = vmatmul.mubr.msk.f32.vlgmr.msra.gmra.mrb[16].mxu0 %vm693_vm1, %v4995_v2 }
 0x6f7   : > { %3774 = vmatprep.mubr.msk.f32.mxu0 %vm693_vm1, %v4065_v34 }
 0x6fa   : > { %3775 = vmatmul.mubr.msk.f32.gmra.mrb[18].mxu0 %vm693_vm1, %v4996_v26 }
 0x6fb   : > { %3777 = vmatprep.mubr.msk.f32.mxu0 %vm693_vm1, %v4997_v25 }
 0x6fe   : > { %3778 = vmatmul.mubr.msk.f32.gmra.mrb[20].mxu0 %vm693_vm1, %v4994_v37 }
 0x6ff   : > { %3780 = vmatprep.mubr.msk.f32.mxu0 %vm693_vm1, %v4991_v17 }
 0x702   : > { %3781 = vmatmul.mubr.msk.f32.gmra.mrb[22].mxu0 %vm693_vm1, %v4335_v60 }
 0x7c9   : > { %v3773_v20 = vpop.f32.mrb[16].mxu0 }
 0x7ca   : > { %v3253_v49 = vmul.f32 %v3773_v20, %v3250_v24  ;;  %v3203_v7 = vpop.f32.mrb[17].mxu0 }
 0x7cb   : > { %v3252_v33 = vmul.f32 %v3250_v24, %v3203_v7 }
 0x7cc   : > { %v3261_v45 = vadd.f32 %v3253_v49, %v4995_v2 }
 0x7cd   : > { %v3260_v36 = vadd.f32 %v3252_v33, %v4998_v38  ;;  %v3776_v61 = vpop.f32.mrb[18].mxu0 }
 0x7ce   : > { %v3255_v28 = vmul.f32 %v3776_v61, %v3250_v24  ;;  %v3213_v46 = vpop.f32.mrb[19].mxu0  ;;  %v3276_v56 = vmul.f32 %v3669_v27, %v3261_v45 }
 0x7cf   : > { %v3254_v62 = vmul.f32 %v3250_v24, %v3213_v46  ;;  %v3275_v30 = vmul.f32 %v3669_v27, %v3260_v36 }
 0x7d0   : > { %v3263_v5 = vadd.f32 %v3255_v28, %v4996_v26  ;;  %v3286_v13 = vsel %vm693_vm1, %v3276_v56, 0.0 }
 0x7d1   : > { %3287 = vadd.xlane.f32.xlu0 %v3286_v13  ;;  %v3779_v35 = vpop.f32.mrb[20].mxu0  ;;  %v3262_v16 = vadd.f32 %v3254_v62, %v4065_v34  ;;  %v3283_v48 = vsel %vm693_vm1, %v3275_v30, 0.0 }
 0x7d2   : > { %v3223_v19 = vpop.f32.mrb[21].mxu0  ;;  %v3257_v18 = vmul.f32 %v3779_v35, %v3250_v24  ;;  %v3278_v10 = vmul.f32 %v3669_v27, %v3263_v5 }
 0x7d3   : > { %v3256_v54 = vmul.f32 %v3250_v24, %v3223_v19  ;;  %v3277_v12 = vmul.f32 %v3669_v27, %v3262_v16 }
 0x7d4   : > { %v3265_v43 = vadd.f32 %v3257_v18, %v4994_v37  ;;  %v3292_v11 = vsel %vm693_vm1, %v3278_v10, 0.0 }
 0x7d5   : > { %v3264_v22 = vadd.f32 %v3256_v54, %v4997_v25  ;;  %3284 = vadd.xlane.f32.xlu0 %v3283_v48  ;;  %v3782_v55 = vpop.f32.mrb[22].mxu0  ;;  %v3289_v4 = vsel %vm693_vm1, %v3277_v12, 0.0 }
 0x7d6   : > { %v3233_v51 = vpop.f32.mrb[23].mxu0  ;;  %v3259_v34 = vmul.f32 %v3782_v55, %v3250_v24  ;;  %v3280_v44 = vmul.f32 %v3669_v27, %v3265_v43 }
 0x7d7   : > { %v3279_v47 = vmul.f32 %v3669_v27, %v3264_v22  ;;  %v3258_v9 = vmul.f32 %v3250_v24, %v3233_v51 }
 0x7d8   : > { %v3267_v53 = vadd.f32 %v3259_v34, %v4335_v60  ;;  %v3298_v57 = vsel %vm693_vm1, %v3280_v44, 0.0  ;;  %v3843_v44 = vld [vmem:[%s3979_s2] sm:$0xff] }
 0x7d9   : > { %3293 = vadd.xlane.f32.xlu0 %v3292_v11  ;;  %v3295_v59 = vsel %vm693_vm1, %v3279_v47, 0.0  ;;  %v3266_v6 = vadd.f32 %v3258_v9, %v4991_v17  ;;  %v4999_v17 = vlaneseq }
 0x7da   : > { %3296 = vadd.xlane.f32.xlu1 %v3295_v59  ;;  %v3282_v29 = vmul.f32 %v3669_v27, %v3267_v53  ;;  %v575_v53 = vpack.c.bf16 %v3843_v44, %v3843_v44 }
 0x7db   : > { %v3281_v37 = vmul.f32 %v3669_v27, %v3266_v6  ;;  %v3310_v63 = vand.u32 127, %v4999_v17  ;;  %v3830_v17 = vld [vmem:[%s4904_s15 + $0x8] ss:$0 sps:$4 sm:$0xff]  }
 0x7dc   : > { %v3304_v39 = vsel %vm693_vm1, %v3282_v29, 0.0 }
 0x7dd   : > { %3290 = vadd.xlane.f32.xlu0 %v3289_v4  ;;  %v3301_v40 = vsel %vm693_vm1, %v3281_v37, 0.0  ;;  %v3330_v58 = vsub.s32 %v3310_v63, %v5000_v50  ;;  %vm3311_vm9 = vcmp.eq.s32.totalorder %v5000_v50, %v3310_v63  ;;  %v3441_v37 = vsel %vm858_vm2, %v575_v53, 0 }
 0x7de   : > { %v3505_v63 = vsel %vm858_vm2, %v3830_v17, 0  ;;  %vm3566_vm2 = vcmask 31744  }
 0x7e1   : > { %3299 = vadd.xlane.f32.xlu0 %v3298_v57  ;;  %v3854_v57 = vmov 0.0  }
 0x7e2   : > { %3783 = vmatprep.subr.bf16.mxu1 %v3854_v57  ;;  %3785 = vmatprep.mubr.msk.bf16.mxu1 %vm3855_vm10, %v3854_v57 }
 0x7e3   : > { %3784 = vmatpush3.bf16.msra.mxu1 %v3441_v37 }
 0x7e4   : > { %3789 = vmatprep.subr.bf16.mxu1 %v3854_v57 }
 0x7e5   : > { %3302 = vadd.xlane.f32.xlu0 %v3301_v40 }
 0x7e9   : > { %3305 = vadd.xlane.f32.xlu0 %v3304_v39 }
 0x85e   : > { %v3288_v23 = vpop.xlane.xlu0 %3287 }
 0x85f   : > { %v3671_v60 = vadd.f32 -1e+08, %v3288_v23  ;;  %v3390_v41 = vrot.slane %v3288_v23, %v3330_v58 }
 0x861   : > { %v3335_v1 = vrot.slane %v3671_v60, %v3330_v58 }
 0x862   : > { %v3285_v21 = vpop.xlane.xlu0 %3284 }
 0x863   : > { %v3670_v3 = vadd.f32 -1e+08, %v3285_v21  ;;  %v3386_v52 = vrot.slane %v3285_v21, %v3330_v58  ;;  %v3829_v21 = vld [vmem:[%s4904_s15] sm:$0xff]  }
 0x865   : > { %v3331_v14 = vrot.slane %v3670_v3, %v3330_v58  ;;  %v3415_v24 = vsel %vm3360_vm14, %v3390_v41, %v3386_v52  ;;  %v3682_v52 = vld [vmem:[%s4905_s16] ss:$0 sm:$0xff] }
 0x866   : > { %v3294_v0 = vpop.xlane.xlu0 %3293 }
 0x867   : > { %v3673_v32 = vadd.f32 -1e+08, %v3294_v0  ;;  %v3297_v15 = vpop.xlane.xlu1 %3296  ;;  %v3361_v25 = vsel %vm3360_vm14, %v3335_v1, %v3331_v14  ;;  %v3398_v27 = vrot.slane %v3294_v0, %v3330_v58 }
 0x868   : > { %v3674_v20 = vadd.f32 -1e+08, %v3297_v15  ;;  %v3402_v56 = vrot.slane %v3297_v15, %v3330_v58 }
 0x869   : > { %v3343_v33 = vrot.slane %v3673_v32, %v3330_v58 }
 0x86a   : > { %v3291_v8 = vpop.xlane.xlu0 %3290  ;;  %v3347_v46 = vrot.slane %v3674_v20, %v3330_v58 }
 0x86b   : > { %v3672_v42 = vadd.f32 -1e+08, %v3291_v8  ;;  %v3394_v31 = vrot.slane %v3291_v8, %v3330_v58 }
 0x86d   : > { %v3339_v2 = vrot.slane %v3672_v42, %v3330_v58  ;;  %v3416_v7 = vsel %vm3362_vm15, %v3394_v31, %v3415_v24  ;;  %v3683_v31 = vld [vmem:[%s4906_s17] ss:$0 sm:$0xff] }
 0x86e   : > { %v3300_v26 = vpop.xlane.xlu0 %3299  ;;  %v3417_v61 = vsel %vm3364_vm3, %v3398_v27, %v3416_v7 }
 0x86f   : > { %v3363_v49 = vsel %vm3362_vm15, %v3339_v2, %v3361_v25  ;;  %v3675_v45 = vadd.f32 -1e+08, %v3300_v26  ;;  %v3406_v62 = vrot.slane %v3300_v26, %v3330_v58  ;;  %v3418_v30 = vsel %vm3366_vm4, %v3402_v56, %v3417_v61 }
 0x870   : > { %v3365_v36 = vsel %vm3364_vm3, %v3343_v33, %v3363_v49 }
 0x871   : > { %v3351_v5 = vrot.slane %v3675_v45, %v3330_v58  ;;  %v3367_v13 = vsel %vm3366_vm4, %v3347_v46, %v3365_v36  ;;  %v3419_v10 = vsel %vm3368_vm5, %v3406_v62, %v3418_v30 }
 0x872   : > { %v3303_v38 = vpop.xlane.xlu0 %3302 }
 0x873   : > { %v3676_v28 = vadd.f32 -1e+08, %v3303_v38  ;;  %v3410_v19 = vrot.slane %v3303_v38, %v3330_v58  ;;  %v3369_v48 = vsel %vm3368_vm5, %v3351_v5, %v3367_v13 }
 0x875   : > { %v3355_v35 = vrot.slane %v3676_v28, %v3330_v58  ;;  %v3420_v55 = vsel %vm3370_vm6, %v3410_v19, %v3419_v10 }
 0x876   : > { %v3306_v54 = vpop.xlane.xlu0 %3305 }
 0x877   : > { %v3677_v16 = vadd.f32 -1e+08, %v3306_v54  ;;  %v3414_v18 = vrot.slane %v3306_v54, %v3330_v58  ;;  %v3371_v51 = vsel %vm3370_vm6, %v3355_v35, %v3369_v48 }
 0x879   : > { %v3359_v22 = vrot.slane %v3677_v16, %v3330_v58  ;;  %v3421_v43 = vsel %vm3372_vm8, %v3414_v18, %v3420_v55 }
 0x87b   : > { %v3373_v47 = vsel %vm3372_vm8, %v3359_v22, %v3371_v51 }
 0x87c   : > { %v3423_v9 = vsel %vm3311_vm9, %v3373_v47, %v3421_v43 }
 0x87d   : > { %v3425_v11 = vsel %vm3424_vm0, %v3423_v9, -inf }
 0x87e   : > { %3426 = vmax.xlane.f32.xlu0 %v3425_v11 }
 0x90b   : > { %v3427_v12 = vpop.xlane.xlu0 %3426 }
 0x90c   : > { %v3428_v59 = vsub.f32 %v3423_v9, %v3427_v12 }
 0x90e   : > { %v3429_v34 = vmul.f32 1.442695, %v3428_v59 }
 0x910   : > { %3839 = vpow2.f32 %v3429_v34 }
 0x91a   : > { %v3840_v6 = vpop.eup %3839 }
 0x91b   : > { %v3431_v4 = vsel %vm3424_vm0, %v3840_v6, 0.0 }
 0x91c   : > { %3432 = vadd.xlane.f32.xlu0 %v3431_v4 }
 0x9a9   : > { %v3433_v40 = vpop.xlane.xlu0 %3432 }
 0x9aa   : > { %3841 = vrcp.f32 %v3433_v40 }
 0x9b4   : > { %v3842_v29 = vpop.eup %3841 }
 0x9b5   : > { %v3435_v39 = vmul.f32 %v3842_v29, %v3840_v6 }
 0x9b7   : > { %v3436_v23 = vpack.c.bf16 %v3435_v39, %v3435_v39 }
 0x9b9   : > { %3786 = vmatmul.mubr.msk.bf16.vlgmr.msra.gmra.mrb[16].mxu1 %vm3424_vm0, %v3436_v23 }
 0x9ba   : > { %3793 = vmatprep.mubr.msk.bf16.mxu1 %vm3855_vm10, %v3854_v57  ;;  %3790 = vmatpush3.bf16.msra.mxu1 %v3829_v21 }
 0x9bb   : > { %3791 = vmatprep.subr.bf16.mxu1 %v3854_v57 }
 0x9be   : > { %3792 = vmatpush3.bf16.msra.mxu1 %v3505_v63 }
 0xa8c   : > { %v3477_v0 = vpop.f32.mrb[16].mxu1 }
 0xa8d   : > { %3484 = vrot.lane.b32.xlu0 %v3477_v0, %s3856_s1  ;;  %v3787_v3 = vpop.f32.mrb[17].mxu1 }
 0xa8e   : > { %v3480_v50 = vpop.f32.mrb[18].mxu1 }
 0xa8f   : > { %v3788_v58 = vpop.f32.mrb[19].mxu1 }
 0xaff   : > { %v3485_v60 = vpop.permute.xlu0 %3484 }
 0xb00   : > { %v3487_v8 = vsel %vm693_vm1, %v3843_v44, %v3485_v60 }
 0xb01   : > { %v3488_v14 = vpack.c.bf16 %v3487_v8, %v3487_v8 }
 0xb03   : > { %3794 = vmatmul.mubr.msk.bf16.vlgmr.msra.gmra.mrb[20].mxu1 %vm845_vm7, %v3488_v14 }
 0xbd6   : > { %v3541_v42 = vpop.f32.mrb[20].mxu1 }
 0xbd7   : > { %v3554_v1 = vmul.f32 %v3682_v52, %v3541_v42  ;;  %v3795_v41 = vpop.f32.mrb[21].mxu1 }
 0xbd8   : > { %v3544_v32 = vpop.f32.mrb[22].mxu1 }
 0xbd9   : > { %v3562_v15 = vadd.f32 %v3683_v31, %v3554_v1  ;;  %v3796_v2 = vpop.f32.mrb[23].mxu1 }
 0xbdb   : > { %vm3563_vm1 = vcmp.gt.f32.partialorder %v3562_v15, 0.0  ;;  %v3564_v26 = vmul.f32 0.01, %v3562_v15 }
 0xbdd   : > { %v3565_v25 = vsel %vm3563_vm1, %v3562_v15, %v3564_v26 }
 0xbde   : > { %3567 = vst.msk [vmem:[%s572_s26] sm:$0xff] %vm3566_vm2, %v3565_v25 }
 0xbdf PF: > { %s30_s29 = sadd.s32 1, %s3850_s29  }
 0xbe0   : > { %p27_p4 = scmp.ge.s32.totalorder %s30_s29, 4  }
 0xbe2   :  { %29 = sbr.rel (!%p27_p4) target bundleno = 4 (0x4), region = 122 }

// kernel: gnn_forward.3
= control target key start
LH: loop header
LB: loop body
LE: loop exit
PB: predicated region body
PF: predicated region fallthrough
CT: control target
= control target key end

     0   :  { %s3421_s29 = smov 0   ;;  %s3996_s0 = inlined_call_operand.vmem [shape: f32[2,8,8], index: 0, kind: input, shape index: {}]   ;;  %s3997_s1 = inlined_call_operand.vmem [shape: bf16[8,16], index: 1, kind: input, shape index: {}]   ;;  %s3998_s2 = inlined_call_operand.vmem [shape: f32[1,16], index: 2, kind: input, shape index: {}]   ;;  %s3999_s3 = inlined_call_operand.vmem [shape: f32[1,16], index: 3, kind: input, shape index: {}]   ;;  %s4000_s4 = inlined_call_operand.vmem [shape: bf16[16,12], index: 4, kind: input, shape index: {}]   ;;  %s4001_s5 = inlined_call_operand.vmem [shape: f32[1,12], index: 5, kind: input, shape index: {}]   ;;  %s4002_s6 = inlined_call_operand.vmem [shape: f32[1,12], index: 6, kind: input, shape index: {}]   ;;  %s4003_s7 = inlined_call_operand.vmem [shape: bf16[12,8], index: 7, kind: input, shape index: {}]   ;;  %s4004_s8 = inlined_call_operand.vmem [shape: f32[1,8], index: 8, kind: input, shape index: {}]   ;;  %s4005_s9 = inlined_call_operand.vmem [shape: f32[1,8], index: 9, kind: input, shape index: {}]   ;;  %s4006_s10 = inlined_call_operand.vmem [shape: bf16[8,8], index: 10, kind: input, shape index: {}]   ;;  %s4007_s11 = inlined_call_operand.vmem [shape: f32[1,8], index: 11, kind: input, shape index: {}]   ;;  %s4008_s12 = inlined_call_operand.vmem [shape: f32[1,8], index: 12, kind: input, shape index: {}]   ;;  %s4009_s13 = inlined_call_operand.<no memory space> [shape: f32[1,1], index: 13, kind: input, shape index: {}]   ;;  %s4010_s14 = inlined_call_operand.vmem [shape: f32[1,8], index: 14, kind: input, shape index: {}]   ;;  %s4011_s15 = inlined_call_operand.vmem [shape: bf16[16,4], index: 15, kind: input, shape index: {}]   ;;  %s4012_s16 = inlined_call_operand.vmem [shape: f32[1,4], index: 16, kind: input, shape index: {}]   ;;  %s4013_s17 = inlined_call_operand.vmem [shape: f32[1,4], index: 17, kind: input, shape index: {}]   ;;  %s4014_s18 = inlined_call_operand.vmem [shape: f32[2,8,4], index: 18, kind: output, shape index: {}]  }
   0x1   :  { %4015 = sst [smem:[#allocation3_spill]] %s3996_s0  ;;  %v23_v0 = vstv %s4009_s13 }
   0x2   :  { %4016 = sst [smem:[#allocation4_spill]] %s3997_s1  ;;  %24 = vst [vmem:[#allocation2] sm:$0x1] %v23_v0 }
   0x3   :  { %4017 = sst [smem:[#allocation5_spill]] %s3998_s2 }
   0x4 LB: > { %s3122_s30 = sadd.s32 4294967295, %s3316_s29   ;;  %p3126_p0 = scmp.ge.s32.totalorder %s3316_s29, 1  ;;  %s3316_s29 = sphi %s3421_s29, %s30_s29  }
   0x5   : > { %p513_p1 = scmp.lt.s32.totalorder %s3316_s29, 3 }
   0x7   : > { %p514_p2 = pnand %p3126_p0, %p513_p1 }
   0x8   : > { %s4018_s1 = sld [smem:[#allocation4_spill]] (!%p514_p2)  ;;  %vm700_vm0 = vcmask (!%p514_p2), 1043456   ;;  %p565_p3 = scmp.lt.s32.totalorder (!%p514_p2), %s3122_s30, 1  ;;  %v581_v2 = vlaneseq (!%p514_p2)  ;;  %v3318_v4 = vmov (!%p514_p2), 1966171168   ;;  %vm687_vm1 = vcmask (!%p514_p2), 64512  }
   0x9   : > { %517 = sbr.rel (%p514_p2) target bundleno = 2905 (0xb59), region = 92  ;;  %v579_v5 = vunpack.c.l.s4 (!%p514_p2), %v3318_v4  ;;  %s4019_s22 = sld [smem:[#allocation3_spill]] (!%p514_p2)  ;;  %v3298_v52 = vld [vmem:[%s4000_s4] sm:$0xff] (!%p514_p2)   ;;  %vm835_vm6 = vcmask (!%p514_p2), 130048   ;;  %vm991_vm11 = vcmask (!%p514_p2), 1045504  }
   0xa   : > { %v3437_v6 = vshrl.u32 (!%p514_p2), %v581_v2, 7  ;;  %3224 = vmatprep.subr.bf16.mxu1 (!%p514_p2), %v3298_v52  ;;  %s4020_s27 = sld [smem:[#allocation5_spill]] (!%p514_p2)  ;;  %v3134_v55 = vld [vmem:[%s3999_s3] ss:$0 sm:$0xff] (!%p514_p2) }
   0xb   : > { %v580_v7 = vunpack.c.0.s8 (!%p514_p2), %v579_v5  ;;  %3225 = vmatpush3.bf16.msra.mxu1 (!%p514_p2), %v3298_v52 }
   0xc   : > { %v3453_v11 = vsub.s32 (!%p514_p2), 0, %v3437_v6 }
   0xd   : > { %v3448_v8 = vsub.s32 (!%p514_p2), %v580_v7, %v3437_v6 }
   0xe   : > { %v686_v1 = vld [vmem:[%s4018_s1] sm:$0xf] (!%p514_p2) }
   0xf   : > { %3280 = vmatprep.subr.msk.bf16.mxu0 (!%p514_p2), %vm700_vm0, %v686_v1  ;;  %v702_v3 = vsel (!%p514_p2), %vm700_vm0, %v686_v1, 0 }
  0x10   : > { %3215 = vmatpush3.bf16.msra.mxu0 %v702_v3  ;;  %s4022_s30 = smov (!%p565_p3, %s3122_s30), 1  ;;  %v3133_v53 = vld [vmem:[%s4020_s27] ss:$0 sm:$0xff] }
  0x11   : > { %s3127_s13 = sshll.u32 %s4022_s30, 3 }
  0x12   : > { %s3445_s2 = scalar_lea.vmem %s4019_s22, %s3127_s13  ;;  %s572_s20 = scalar_lea.vmem %s4014_s18, %s3127_s13 }
  0x13   : > { %v574_v9 = vld [vmem:[%s3445_s2] sm:$0xff] }
  0x14   : > { %v584_v10 = vrot.slane %v574_v9, %v3448_v8  ;;  %v577_v12 = vcombine.high %v574_v9, %v574_v9 }
  0x16   : > { %v592_v13 = vcombine.high %v584_v10, %v584_v10  ;;  %v600_v14 = vrot.slane %v584_v10, %v3448_v8  ;;  %v591_v15 = vrot.slane %v577_v12, %v3448_v8 }
  0x18   : > { %v614_v16 = vrot.slane %v592_v13, %v3448_v8  ;;  %v622_v17 = vcombine.high %v600_v14, %v600_v14  ;;  %v629_v18 = vrot.slane %v600_v14, %v3453_v11  ;;  %v593_v19 = vcombine.high %v591_v15, %v591_v15 }
  0x19   : > { %v607_v20 = vrot.slane %v591_v15, %v3448_v8 }
  0x1a   : > { %v624_v21 = vcombine.high %v614_v16, %v614_v16  ;;  %v633_v22 = vrot.slane %v614_v16, %v3453_v11  ;;  %v666_v23 = vsub.f32 %v629_v18, %v574_v9  ;;  %v637_v24 = vrot.slane %v622_v17, %v3453_v11 }
  0x1b   : > { %v621_v25 = vrot.slane %v593_v19, %v3448_v8  ;;  %v645_v26 = vrot.slane %v607_v20, %v3453_v11  ;;  %v623_v27 = vcombine.high %v607_v20, %v607_v20 }
  0x1c   : > { %v667_v28 = vsub.f32 %v633_v22, %v574_v9  ;;  %v674_v29 = vand.u32 2147483647, %v666_v23  ;;  %v641_v30 = vrot.slane %v624_v21, %v3453_v11  ;;  %v668_v31 = vsub.f32 %v637_v24, %v574_v9 }
  0x1d   : > { %v649_v32 = vrot.slane %v621_v25, %v3453_v11  ;;  %v670_v33 = vsub.f32 %v645_v26, %v574_v9  ;;  %v625_v34 = vcombine.high %v621_v25, %v621_v25  ;;  %v653_v35 = vrot.slane %v623_v27, %v3453_v11 }
  0x1e   : > { %v675_v36 = vand.u32 2147483647, %v667_v28  ;;  %v669_v37 = vsub.f32 %v641_v30, %v574_v9  ;;  %v676_v38 = vand.u32 2147483647, %v668_v31 }
  0x1f   : > { %v671_v39 = vsub.f32 %v649_v32, %v574_v9  ;;  %v678_v40 = vand.u32 2147483647, %v670_v33  ;;  %v657_v41 = vrot.slane %v625_v34, %v3453_v11  ;;  %v672_v44 = vsub.f32 %v653_v35, %v574_v9 }
  0x20   : > { %v682_v42 = vpack.c.bf16 %v675_v36, %v674_v29  ;;  %v677_v43 = vand.u32 2147483647, %v669_v37 }
  0x21   : > { %v679_v45 = vand.u32 2147483647, %v671_v39  ;;  %v673_v46 = vsub.f32 %v657_v41, %v574_v9  ;;  %v680_v49 = vand.u32 2147483647, %v672_v44  ;;  %v3299_v39 = vld [vmem:[%s4003_s7] sm:$0x3f]  }
  0x22   : > { %3216 = vmatprep.mubr.msk.bf16.mxu0 %vm687_vm1, %v682_v42  ;;  %v683_v47 = vpack.c.bf16 %v677_v43, %v676_v38  ;;  %3281 = vmatprep.subr.msk.bf16.mxu0 %vm991_vm11, %v3299_v39  ;;  %v3140_v41 = vld [vmem:[%s4001_s5] ss:$0 sm:$0xff] }
  0x23   : > { %v684_v48 = vpack.c.bf16 %v679_v45, %v678_v40  ;;  %v681_v50 = vand.u32 2147483647, %v673_v46  ;;  %v993_v40 = vsel %vm991_vm11, %v3299_v39, 0  ;;  %v3141_v43 = vld [vmem:[%s4002_s6] ss:$0 sm:$0xff] }
  0x24   : > { %3217 = vmatmul.mubr.msk.bf16.vlgmr.msra.gmra.mrb[0].mxu0 %vm687_vm1, %v683_v47 }
  0x25   : > { %3220 = vmatprep.mubr.msk.bf16.mxu0 %vm687_vm1, %v684_v48  ;;  %v685_v51 = vpack.c.bf16 %v681_v50, %v680_v49  ;;  %3235 = vmatpush3.bf16.msra.mxu0 %v993_v40 }
  0x2c   : > { %3221 = vmatmul.mubr.msk.bf16.gmra.mrb[4].mxu0 %vm687_vm1, %v685_v51 }
  0xf7   : > { %v3218_v54 = vpop.f32.mrb[0].mxu0 }
  0xf8   : > { %v778_v56 = vmul.f32 %v3218_v54, %v3133_v53  ;;  %v738_v57 = vpop.f32.mrb[1].mxu0 }
  0xf9   : > { %v776_v58 = vmul.f32 %v3133_v53, %v738_v57  ;;  %v3219_v59 = vpop.f32.mrb[2].mxu0 }
  0xfa   : > { %v793_v60 = vadd.f32 %v3134_v55, %v778_v56  ;;  %v779_v61 = vmul.f32 %v3219_v59, %v3133_v53  ;;  %v741_v62 = vpop.f32.mrb[3].mxu0 }
  0xfb   : > { %v791_v63 = vadd.f32 %v3134_v55, %v776_v58  ;;  %v777_v0 = vmul.f32 %v3133_v53, %v741_v62 }
  0xfc   : > { %v809_v1 = vmul.f32 0.01, %v793_v60  ;;  %v794_v3 = vadd.f32 %v3134_v55, %v779_v61  ;;  %vm801_vm2 = vcmp.gt.f32.partialorder %v793_v60, 0.0 }
  0xfd   : > { %v792_v4 = vadd.f32 %v3134_v55, %v777_v0  ;;  %v807_v5 = vmul.f32 0.01, %v791_v63  ;;  %vm799_vm4 = vcmp.gt.f32.partialorder %v791_v63, 0.0 }
  0xfe   : > { %vm802_vm3 = vcmp.gt.f32.partialorder %v794_v3, 0.0  ;;  %v810_v7 = vmul.f32 0.01, %v794_v3  ;;  %v817_v12 = vsel %vm801_vm2, %v793_v60, %v809_v1  ;;  %vm978_vm2 = vcmask 97280  }
  0xff   : > { %vm800_vm5 = vcmp.gt.f32.partialorder %v792_v4, 0.0  ;;  %v808_v9 = vmul.f32 0.01, %v792_v4  ;;  %v3222_v10 = vpop.f32.mrb[4].mxu0  ;;  %v815_v16 = vsel %vm799_vm4, %v791_v63, %v807_v5 }
 0x100   : > { %v818_v13 = vsel %vm802_vm3, %v794_v3, %v810_v7  ;;  %v782_v14 = vmul.f32 %v3222_v10, %v3133_v53  ;;  %v754_v15 = vpop.f32.mrb[5].mxu0 }
 0x101   : > { %v816_v17 = vsel %vm800_vm5, %v792_v4, %v808_v9  ;;  %v824_v18 = vpack.c.bf16 %v818_v13, %v817_v12  ;;  %v780_v19 = vmul.f32 %v3133_v53, %v754_v15  ;;  %v3223_v20 = vpop.f32.mrb[6].mxu0 }
 0x102   : > { %v823_v21 = vpack.c.bf16 %v816_v17, %v815_v16  ;;  %v797_v22 = vadd.f32 %v3134_v55, %v782_v14  ;;  %v783_v23 = vmul.f32 %v3223_v20, %v3133_v53  ;;  %v757_v24 = vpop.f32.mrb[7].mxu0 }
 0x103   : > { %v795_v25 = vadd.f32 %v3134_v55, %v780_v19  ;;  %v781_v26 = vmul.f32 %v3133_v53, %v757_v24 }
 0x104   : > { %3226 = vmatprep.mubr.msk.bf16.mxu1 %vm835_vm6, %v823_v21  ;;  %vm805_vm7 = vcmp.gt.f32.partialorder %v797_v22, 0.0  ;;  %v813_v27 = vmul.f32 0.01, %v797_v22  ;;  %v798_v28 = vadd.f32 %v3134_v55, %v783_v23 }
 0x105   : > { %3227 = vmatmul.mubr.msk.bf16.vlgmr.msra.gmra.mrb[0].mxu1 %vm835_vm6, %v824_v18  ;;  %vm803_vm8 = vcmp.gt.f32.partialorder %v795_v25, 0.0  ;;  %v811_v29 = vmul.f32 0.01, %v795_v25  ;;  %v796_v30 = vadd.f32 %v3134_v55, %v781_v26 }
 0x106   : > { %v821_v31 = vsel %vm805_vm7, %v797_v22, %v813_v27  ;;  %vm806_vm9 = vcmp.gt.f32.partialorder %v798_v28, 0.0  ;;  %v814_v32 = vmul.f32 0.01, %v798_v28  ;;  %v1118_v27 = vld [vmem:[%s4006_s10] sm:$0xf] }
 0x107   : > { %v819_v33 = vsel %vm803_vm8, %v795_v25, %v811_v29  ;;  %vm804_vm10 = vcmp.gt.f32.partialorder %v796_v30, 0.0  ;;  %v812_v34 = vmul.f32 0.01, %v796_v30  ;;  %3282 = vmatprep.subr.msk.bf16.mxu1 %vm700_vm0, %v1118_v27  ;;  %v3147_v29 = vld [vmem:[%s4004_s8] ss:$0 sm:$0xff] }
 0x108   : > { %v822_v35 = vsel %vm806_vm9, %v798_v28, %v814_v32  ;;  %v1132_v28 = vsel %vm700_vm0, %v1118_v27, 0 }
 0x109   : > { %v820_v36 = vsel %vm804_vm10, %v796_v30, %v812_v34  ;;  %v826_v37 = vpack.c.bf16 %v822_v35, %v821_v31  ;;  %3245 = vmatpush3.bf16.msra.mxu1 %v1132_v28  ;;  %v3148_v31 = vld [vmem:[%s4005_s9] ss:$0 sm:$0xff] }
 0x10a   : > { %v825_v38 = vpack.c.bf16 %v820_v36, %v819_v33 }
 0x10c   : > { %3230 = vmatprep.mubr.msk.bf16.mxu1 %vm835_vm6, %v825_v38 }
 0x10d   : > { %3231 = vmatmul.mubr.msk.bf16.gmra.mrb[4].mxu1 %vm835_vm6, %v826_v37 }
 0x1d8   : > { %v3228_v42 = vpop.f32.mrb[0].mxu1 }
 0x1d9   : > { %v922_v44 = vmul.f32 %v3228_v42, %v3140_v41  ;;  %v882_v45 = vpop.f32.mrb[1].mxu1 }
 0x1da   : > { %v920_v46 = vmul.f32 %v3140_v41, %v882_v45  ;;  %v3229_v47 = vpop.f32.mrb[2].mxu1 }
 0x1db   : > { %v937_v48 = vadd.f32 %v3141_v43, %v922_v44  ;;  %v923_v49 = vmul.f32 %v3229_v47, %v3140_v41  ;;  %v885_v50 = vpop.f32.mrb[3].mxu1 }
 0x1dc   : > { %v935_v51 = vadd.f32 %v3141_v43, %v920_v46  ;;  %v921_v52 = vmul.f32 %v3140_v41, %v885_v50 }
 0x1dd   : > { %v953_v53 = vmul.f32 0.01, %v937_v48  ;;  %v938_v54 = vadd.f32 %v3141_v43, %v923_v49  ;;  %vm945_vm12 = vcmp.gt.f32.partialorder %v937_v48, 0.0 }
 0x1de   : > { %v951_v55 = vmul.f32 0.01, %v935_v51  ;;  %v936_v56 = vadd.f32 %v3141_v43, %v921_v52  ;;  %vm943_vm13 = vcmp.gt.f32.partialorder %v935_v51, 0.0 }
 0x1df   : > { %vm946_vm14 = vcmp.gt.f32.partialorder %v938_v54, 0.0  ;;  %v954_v57 = vmul.f32 0.01, %v938_v54  ;;  %v961_v60 = vsel %vm945_vm12, %v937_v48, %v953_v53 }
 0x1e0   : > { %vm944_vm15 = vcmp.gt.f32.partialorder %v936_v56, 0.0  ;;  %v952_v58 = vmul.f32 0.01, %v936_v56  ;;  %v3232_v59 = vpop.f32.mrb[4].mxu1  ;;  %v959_v0 = vsel %vm943_vm13, %v935_v51, %v951_v55 }
 0x1e1   : > { %v962_v61 = vsel %vm946_vm14, %v938_v54, %v954_v57  ;;  %v926_v62 = vmul.f32 %v3232_v59, %v3140_v41  ;;  %v898_v63 = vpop.f32.mrb[5].mxu1 }
 0x1e2   : > { %v968_v1 = vpack.c.bf16 %v962_v61, %v961_v60  ;;  %v960_v3 = vsel %vm944_vm15, %v936_v56, %v952_v58  ;;  %v924_v4 = vmul.f32 %v3140_v41, %v898_v63  ;;  %v3233_v5 = vpop.f32.mrb[6].mxu1 }
 0x1e3   : > { %v967_v7 = vpack.c.bf16 %v960_v3, %v959_v0  ;;  %v941_v9 = vadd.f32 %v3141_v43, %v926_v62  ;;  %v927_v10 = vmul.f32 %v3233_v5, %v3140_v41  ;;  %v901_v12 = vpop.f32.mrb[7].mxu1 }
 0x1e4   : > { %v939_v13 = vadd.f32 %v3141_v43, %v924_v4  ;;  %v925_v14 = vmul.f32 %v3140_v41, %v901_v12 }
 0x1e5   : > { %3236 = vmatprep.mubr.msk.bf16.mxu0 %vm978_vm2, %v967_v7  ;;  %vm949_vm3 = vcmp.gt.f32.partialorder %v941_v9, 0.0  ;;  %v957_v15 = vmul.f32 0.01, %v941_v9  ;;  %v942_v16 = vadd.f32 %v3141_v43, %v927_v10 }
 0x1e6   : > { %3237 = vmatmul.mubr.msk.bf16.vlgmr.msra.gmra.mrb[8].mxu0 %vm978_vm2, %v968_v1  ;;  %vm947_vm4 = vcmp.gt.f32.partialorder %v939_v13, 0.0  ;;  %v955_v17 = vmul.f32 0.01, %v939_v13  ;;  %v940_v18 = vadd.f32 %v3141_v43, %v925_v14 }
 0x1e7   : > { %v965_v19 = vsel %vm949_vm3, %v941_v9, %v957_v15  ;;  %vm950_vm5 = vcmp.gt.f32.partialorder %v942_v16, 0.0  ;;  %v958_v20 = vmul.f32 0.01, %v942_v16  ;;  %v3516_v15 = vld [vmem:[%s4007_s11] ss:$0 sm:$0xff] }
 0x1e8   : > { %v963_v21 = vsel %vm947_vm4, %v939_v13, %v955_v17  ;;  %vm948_vm7 = vcmp.gt.f32.partialorder %v940_v18, 0.0  ;;  %v956_v22 = vmul.f32 0.01, %v940_v18  ;;  %v3521_v17 = vld [vmem:[%s4008_s12] ss:$0 sm:$0xff] }
 0x1e9   : > { %v966_v23 = vsel %vm950_vm5, %v942_v16, %v958_v20 }
 0x1ea   : > { %v964_v24 = vsel %vm948_vm7, %v940_v18, %v956_v22  ;;  %v970_v25 = vpack.c.bf16 %v966_v23, %v965_v19  ;;  %v3528_v23 = vsub.s32 2, %v3437_v6 }
 0x1eb   : > { %v969_v26 = vpack.c.bf16 %v964_v24, %v963_v21 }
 0x1ed   : > { %3240 = vmatprep.mubr.msk.bf16.mxu0 %vm978_vm2, %v969_v26  ;;  %v3533_v26 = vsub.s32 3, %v3437_v6 }
 0x1ee   : > { %3241 = vmatmul.mubr.msk.bf16.gmra.mrb[12].mxu0 %vm978_vm2, %v970_v25 }
 0x2b9   : > { %v3238_v30 = vpop.f32.mrb[8].mxu0 }
 0x2ba   : > { %v1069_v32 = vmul.f32 %v3238_v30, %v3147_v29  ;;  %v1029_v33 = vpop.f32.mrb[9].mxu0 }
 0x2bb   : > { %v1067_v34 = vmul.f32 %v3147_v29, %v1029_v33  ;;  %v3239_v35 = vpop.f32.mrb[10].mxu0 }
 0x2bc   : > { %v1084_v36 = vadd.f32 %v3148_v31, %v1069_v32  ;;  %v1070_v37 = vmul.f32 %v3239_v35, %v3147_v29  ;;  %v1032_v38 = vpop.f32.mrb[11].mxu0  ;;  %v3546_v35 = vsub.s32 5, %v3437_v6 }
 0x2bd   : > { %v1082_v39 = vadd.f32 %v3148_v31, %v1067_v34  ;;  %v1068_v40 = vmul.f32 %v3147_v29, %v1032_v38 }
 0x2be   : > { %v1100_v41 = vmul.f32 0.01, %v1084_v36  ;;  %v1085_v42 = vadd.f32 %v3148_v31, %v1070_v37  ;;  %vm1092_vm8 = vcmp.gt.f32.partialorder %v1084_v36, 0.0 }
 0x2bf   : > { %v1098_v43 = vmul.f32 0.01, %v1082_v39  ;;  %v1083_v44 = vadd.f32 %v3148_v31, %v1068_v40  ;;  %vm1090_vm9 = vcmp.gt.f32.partialorder %v1082_v39, 0.0 }
 0x2c0   : > { %vm1093_vm10 = vcmp.gt.f32.partialorder %v1085_v42, 0.0  ;;  %v1101_v45 = vmul.f32 0.01, %v1085_v42  ;;  %v1108_v48 = vsel %vm1092_vm8, %v1084_v36, %v1100_v41 }
 0x2c1   : > { %vm1091_vm11 = vcmp.gt.f32.partialorder %v1083_v44, 0.0  ;;  %v1099_v46 = vmul.f32 0.01, %v1083_v44  ;;  %v3242_v47 = vpop.f32.mrb[12].mxu0  ;;  %v1106_v52 = vsel %vm1090_vm9, %v1082_v39, %v1098_v43  ;;  %v3554_v39 = vsub.s32 4, %v3437_v6 }
 0x2c2   : > { %v1109_v49 = vsel %vm1093_vm10, %v1085_v42, %v1101_v45  ;;  %v1073_v50 = vmul.f32 %v3242_v47, %v3147_v29  ;;  %v1045_v51 = vpop.f32.mrb[13].mxu0 }
 0x2c3   : > { %v1115_v53 = vpack.c.bf16 %v1109_v49, %v1108_v48  ;;  %v1107_v54 = vsel %vm1091_vm11, %v1083_v44, %v1099_v46  ;;  %v1071_v55 = vmul.f32 %v3147_v29, %v1045_v51  ;;  %v3243_v56 = vpop.f32.mrb[14].mxu0  ;;  %v3580_v51 = vsub.s32 6, %v3437_v6 }
 0x2c4   : > { %v1114_v57 = vpack.c.bf16 %v1107_v54, %v1106_v52  ;;  %v1088_v58 = vadd.f32 %v3148_v31, %v1073_v50  ;;  %v1074_v59 = vmul.f32 %v3243_v56, %v3147_v29  ;;  %v1048_v60 = vpop.f32.mrb[15].mxu0  ;;  %v3577_v50 = vsub.s32 7, %v3437_v6 }
 0x2c5   : > { %v1086_v61 = vadd.f32 %v3148_v31, %v1071_v55  ;;  %v1072_v62 = vmul.f32 %v3147_v29, %v1048_v60  ;;  %vm2869_vm11 = vcmask 1041409  }
 0x2c6   : > { %3246 = vmatprep.mubr.msk.bf16.mxu1 %vm687_vm1, %v1114_v57  ;;  %vm1096_vm12 = vcmp.gt.f32.partialorder %v1088_v58, 0.0  ;;  %v1104_v63 = vmul.f32 0.01, %v1088_v58  ;;  %v1089_v0 = vadd.f32 %v3148_v31, %v1074_v59 }
 0x2c7   : > { %3247 = vmatmul.mubr.msk.bf16.vlgmr.msra.gmra.mrb[8].mxu1 %vm687_vm1, %v1115_v53  ;;  %vm1094_vm13 = vcmp.gt.f32.partialorder %v1086_v61, 0.0  ;;  %v1102_v1 = vmul.f32 0.01, %v1086_v61  ;;  %v1087_v3 = vadd.f32 %v3148_v31, %v1072_v62  ;;  %v3543_v31 = vsub.s32 1, %v3437_v6 }
 0x2c8   : > { %v1112_v4 = vsel %vm1096_vm12, %v1088_v58, %v1104_v63  ;;  %vm1097_vm14 = vcmp.gt.f32.partialorder %v1089_v0, 0.0  ;;  %v1105_v5 = vmul.f32 0.01, %v1089_v0  ;;  %vm2871_vm12 = vcmask 1042434  }
 0x2c9   : > { %v1110_v7 = vsel %vm1094_vm13, %v1086_v61, %v1102_v1  ;;  %vm1095_vm15 = vcmp.gt.f32.partialorder %v1087_v3, 0.0  ;;  %v1103_v9 = vmul.f32 0.01, %v1087_v3  ;;  %vm2873_vm13 = vcmask 1043459  }
 0x2ca   : > { %v1113_v10 = vsel %vm1097_vm14, %v1089_v0, %v1105_v5  ;;  %vm2875_vm14 = vcmask 1044484  }
 0x2cb   : > { %v1111_v12 = vsel %vm1095_vm15, %v1087_v3, %v1103_v9  ;;  %v1117_v13 = vpack.c.bf16 %v1113_v10, %v1112_v4  ;;  %vm2877_vm15 = vcmask 1045509  }
 0x2cc   : > { %v1116_v14 = vpack.c.bf16 %v1111_v12, %v1110_v7 }
 0x2ce   : > { %3250 = vmatprep.mubr.msk.bf16.mxu1 %vm687_vm1, %v1116_v14 }
 0x2cf   : > { %3251 = vmatmul.mubr.msk.bf16.gmra.mrb[12].mxu1 %vm687_vm1, %v1117_v13 }
 0x39a   : > { %v3248_v16 = vpop.f32.mrb[8].mxu1 }
 0x39b   : > { %v1168_v18 = vpop.f32.mrb[9].mxu1  ;;  %v1208_v58 = vmul.f32 %v3248_v16, %v3516_v15 }
 0x39c   : > { %v1206_v19 = vmul.f32 %v3516_v15, %v1168_v18  ;;  %v3524_v20 = vpop.f32.mrb[10].mxu1 }
 0x39d   : > { %v1171_v21 = vpop.f32.mrb[11].mxu1  ;;  %v1223_v61 = vadd.f32 %v3521_v17, %v1208_v58  ;;  %v1209_v9 = vmul.f32 %v3524_v20, %v3516_v15 }
 0x39e   : > { %v1221_v22 = vadd.f32 %v3521_v17, %v1206_v19  ;;  %v1207_v28 = vmul.f32 %v3516_v15, %v1171_v21 }
 0x39f   : > { %v1239_v0 = vmul.f32 0.01, %v1223_v61  ;;  %vm1231_vm4 = vcmp.gt.f32.partialorder %v1223_v61, 0.0  ;;  %v1224_v13 = vadd.f32 %v3521_v17, %v1209_v9 }
 0x3a0   : > { %vm1229_vm2 = vcmp.gt.f32.partialorder %v1221_v22, 0.0  ;;  %v1237_v24 = vmul.f32 0.01, %v1221_v22  ;;  %v1222_v36 = vadd.f32 %v3521_v17, %v1207_v28 }
 0x3a1   : > { %v3606_v4 = vsel %vm1231_vm4, %v1223_v61, %v1239_v0  ;;  %v1240_v18 = vmul.f32 0.01, %v1224_v13  ;;  %vm1232_vm5 = vcmp.gt.f32.partialorder %v1224_v13, 0.0 }
 0x3a2   : > { %v3530_v25 = vsel %vm1229_vm2, %v1221_v22, %v1237_v24  ;;  %v3252_v27 = vpop.f32.mrb[12].mxu1  ;;  %v1238_v52 = vmul.f32 0.01, %v1222_v36  ;;  %vm1230_vm3 = vcmp.gt.f32.partialorder %v1222_v36, 0.0  ;;  %v1375_v5 = vrot.slane %v3606_v4, %v3543_v31 }
 0x3a3   : > { %3256 = vmatprep.mubr.msk.f32.mxu0 %vm687_vm1, %v3530_v25  ;;  %v1270_v29 = vrot.slane %v3530_v25, %v3528_v23  ;;  %v1256_v30 = vrot.slane %v3530_v25, %v3453_v11  ;;  %v1184_v32 = vpop.f32.mrb[13].mxu1  ;;  %v1277_v37 = vrot.slane %v3530_v25, %v3533_v26  ;;  %v1263_v38 = vrot.slane %v3530_v25, %v3543_v31 }
 0x3a4   : > { %v3253_v33 = vpop.f32.mrb[14].mxu1  ;;  %v1212_v40 = vmul.f32 %v3252_v27, %v3516_v15  ;;  %v1210_v41 = vmul.f32 %v3516_v15, %v1184_v32  ;;  %v1291_v48 = vrot.slane %v3530_v25, %v3546_v35  ;;  %v1284_v49 = vrot.slane %v3530_v25, %v3554_v39 }
 0x3a5   : > { %1272 = vbcast.lane.b32.xlu1 %v1270_v29, 256  ;;  %1258 = vbcast.lane.b32.xlu0 %v1256_v30, 256  ;;  %v1187_v34 = vpop.f32.mrb[15].mxu1  ;;  %v1213_v42 = vmul.f32 %v3253_v33, %v3516_v15  ;;  %v1305_v53 = vrot.slane %v3530_v25, %v3577_v50  ;;  %v1298_v54 = vrot.slane %v3530_v25, %v3580_v51  ;;  %vm2879_vm2 = vcmask 1046534  }
 0x3a6   : > { %v1211_v43 = vmul.f32 %v3516_v15, %v1187_v34  ;;  %v3561_v44 = vadd.f32 %v3521_v17, %v1212_v40  ;;  %v3564_v45 = vadd.f32 %v3521_v17, %v1210_v41  ;;  %v3586_v55 = vsel %vm1230_vm3, %v1222_v36, %v1238_v52 }
 0x3a7   : > { %v3567_v46 = vadd.f32 %v3521_v17, %v1213_v42  ;;  %v1319_v56 = vrot.slane %v3586_v55, %v3543_v31  ;;  %v1312_v57 = vrot.slane %v3586_v55, %v3453_v11  ;;  %v1333_v59 = vrot.slane %v3586_v55, %v3533_v26 }
 0x3a8   : > { %v3570_v47 = vadd.f32 %v3521_v17, %v1211_v43  ;;  %v1326_v60 = vrot.slane %v3586_v55, %v3528_v23  ;;  %v1347_v62 = vrot.slane %v3586_v55, %v3546_v35  ;;  %v1340_v63 = vrot.slane %v3586_v55, %v3554_v39 }
 0x3a9   : > { %1279 = vbcast.lane.b32.xlu1 %v1277_v37, 256  ;;  %1265 = vbcast.lane.b32.xlu0 %v1263_v38, 256  ;;  %v1361_v1 = vrot.slane %v3586_v55, %v3577_v50  ;;  %v1354_v3 = vrot.slane %v3586_v55, %v3580_v51  ;;  %v1368_v7 = vrot.slane %v3606_v4, %v3453_v11  ;;  %v1241_v29 = vmul.f32 0.01, %v3564_v45 }
 0x3aa   : > { %v1389_v10 = vrot.slane %v3606_v4, %v3533_v26  ;;  %v1382_v12 = vrot.slane %v3606_v4, %v3528_v23  ;;  %v1403_v14 = vrot.slane %v3606_v4, %v3546_v35  ;;  %v1396_v16 = vrot.slane %v3606_v4, %v3554_v39 }
 0x3ab   : > { %v1417_v15 = vrot.slane %v3606_v4, %v3577_v50  ;;  %v1410_v19 = vrot.slane %v3606_v4, %v3580_v51  ;;  %v3627_v20 = vsel %vm1232_vm5, %v1224_v13, %v1240_v18  ;;  %vm1233_vm7 = vcmp.gt.f32.partialorder %v3564_v45, 0.0 }
 0x3ac   : > { %v1431_v17 = vrot.slane %v3627_v20, %v3543_v31  ;;  %v1424_v21 = vrot.slane %v3627_v20, %v3453_v11  ;;  %v1445_v22 = vrot.slane %v3627_v20, %v3533_v26  ;;  %v1438_v24 = vrot.slane %v3627_v20, %v3528_v23 }
 0x3ad   : > { %1293 = vbcast.lane.b32.xlu1 %v1291_v48, 256  ;;  %1286 = vbcast.lane.b32.xlu0 %v1284_v49, 256  ;;  %v1459_v27 = vrot.slane %v3627_v20, %v3546_v35  ;;  %v1452_v28 = vrot.slane %v3627_v20, %v3554_v39  ;;  %v1473_v30 = vrot.slane %v3627_v20, %v3577_v50  ;;  %v1242_v42 = vmul.f32 0.01, %v3570_v47 }
 0x3ae   : > { %v1466_v32 = vrot.slane %v3627_v20, %v3580_v51  ;;  %v3648_v33 = vsel %vm1233_vm7, %v3564_v45, %v1241_v29  ;;  %vm1234_vm8 = vcmp.gt.f32.partialorder %v3570_v47, 0.0  ;;  %vm1235_vm9 = vcmp.gt.f32.partialorder %v3561_v44, 0.0 }
 0x3af   : > { %v1487_v34 = vrot.slane %v3648_v33, %v3543_v31  ;;  %v1480_v36 = vrot.slane %v3648_v33, %v3453_v11  ;;  %v1501_v37 = vrot.slane %v3648_v33, %v3533_v26  ;;  %v1494_v38 = vrot.slane %v3648_v33, %v3528_v23 }
 0x3b0   : > { %v1515_v40 = vrot.slane %v3648_v33, %v3546_v35  ;;  %v1508_v41 = vrot.slane %v3648_v33, %v3554_v39  ;;  %v1529_v43 = vrot.slane %v3648_v33, %v3577_v50  ;;  %v1522_v45 = vrot.slane %v3648_v33, %v3580_v51 }
 0x3b1   : > { %1307 = vbcast.lane.b32.xlu1 %v1305_v53, 256  ;;  %1300 = vbcast.lane.b32.xlu0 %v1298_v54, 256  ;;  %v3669_v48 = vsel %vm1234_vm8, %v3570_v47, %v1242_v42  ;;  %vm1236_vm10 = vcmp.gt.f32.partialorder %v3567_v46, 0.0  ;;  %v1709_v13 = vcombine.high %v3530_v25, %v3530_v25  ;;  %vm2881_vm3 = vcmask 1047559  }
 0x3b2   : > { %v1543_v49 = vrot.slane %v3669_v48, %v3543_v31  ;;  %v1536_v52 = vrot.slane %v3669_v48, %v3453_v11  ;;  %v1557_v53 = vrot.slane %v3669_v48, %v3533_v26  ;;  %v1550_v54 = vrot.slane %v3669_v48, %v3528_v23 }
 0x3b3   : > { %v1571_v47 = vrot.slane %v3669_v48, %v3546_v35  ;;  %v1585_v58 = vrot.slane %v3669_v48, %v3577_v50  ;;  %vm3321_vm5 = vmmov 0  }
 0x3b5   : > { %1321 = vbcast.lane.b32.xlu1 %v1319_v56, 256  ;;  %1314 = vbcast.lane.b32.xlu0 %v1312_v57, 256  ;;  %v1564_v56 = vrot.slane %v3669_v48, %v3554_v39  ;;  %v1243_v57 = vmul.f32 0.01, %v3561_v44 }
 0x3b9   : > { %1335 = vbcast.lane.b32.xlu1 %v1333_v59, 256  ;;  %1328 = vbcast.lane.b32.xlu0 %v1326_v60, 256  ;;  %v1578_v59 = vrot.slane %v3669_v48, %v3580_v51  ;;  %v3690_v60 = vsel %vm1235_vm9, %v3561_v44, %v1243_v57 }
 0x3ba   : > { %v1599_v61 = vrot.slane %v3690_v60, %v3543_v31  ;;  %v1606_v0 = vrot.slane %v3690_v60, %v3528_v23  ;;  %v1627_v44 = vrot.slane %v3690_v60, %v3546_v35  ;;  %v1634_v9 = vrot.slane %v3690_v60, %v3580_v51 }
 0x3bd   : > { %1349 = vbcast.lane.b32.xlu1 %v1347_v62, 256  ;;  %1342 = vbcast.lane.b32.xlu0 %v1340_v63, 256  ;;  %v1592_v62 = vrot.slane %v3690_v60, %v3453_v11  ;;  %v1613_v63 = vrot.slane %v3690_v60, %v3533_v26 }
 0x3c1   : > { %1363 = vbcast.lane.b32.xlu1 %v1361_v1, 256  ;;  %1356 = vbcast.lane.b32.xlu0 %v1354_v3, 256  ;;  %v1620_v1 = vrot.slane %v3690_v60, %v3554_v39  ;;  %v1244_v3 = vmul.f32 0.01, %v3567_v46 }
 0x3c5   : > { %1377 = vbcast.lane.b32.xlu1 %v1375_v5, 256  ;;  %1370 = vbcast.lane.b32.xlu0 %v1368_v7, 256  ;;  %v1716_v5 = vrot.slane %v3530_v25, %v3448_v8  ;;  %v1641_v7 = vrot.slane %v3690_v60, %v3577_v50 }
 0x3c9   : > { %1391 = vbcast.lane.b32.xlu1 %v1389_v10, 256  ;;  %1384 = vbcast.lane.b32.xlu0 %v1382_v12, 256  ;;  %v3713_v10 = vsel %vm1236_vm10, %v3567_v46, %v1244_v3  ;;  %v1724_v12 = vcombine.high %v1716_v5, %v1716_v5 }
 0x3ca   : > { %v1648_v18 = vrot.slane %v3713_v10, %v3453_v11  ;;  %v1690_v57 = vrot.slane %v3713_v10, %v3580_v51 }
 0x3cd   : > { %1405 = vbcast.lane.b32.xlu1 %v1403_v14, 256  ;;  %1398 = vbcast.lane.b32.xlu0 %v1396_v16, 256  ;;  %v1732_v14 = vrot.slane %v1716_v5, %v3448_v8  ;;  %v1655_v16 = vrot.slane %v3713_v10, %v3543_v31 }
 0x3cf   : > { %v1754_v46 = vcombine.high %v1732_v14, %v1732_v14  ;;  %v2104_v31 = vrot.slane %v1732_v14, %v3453_v11 }
 0x3d1   : > { %1419 = vbcast.lane.b32.xlu1 %v1417_v15, 256  ;;  %1412 = vbcast.lane.b32.xlu0 %v1410_v19, 256  ;;  %v1746_v15 = vrot.slane %v1724_v12, %v3448_v8  ;;  %v1723_v19 = vrot.slane %v1709_v13, %v3448_v8 }
 0x3d3   : > { %v1739_v29 = vrot.slane %v1723_v19, %v3448_v8 }
 0x3d5   : > { %1433 = vbcast.lane.b32.xlu1 %v1431_v17, 256  ;;  %1426 = vbcast.lane.b32.xlu0 %v1424_v21, 256 }
 0x3d9   : > { %1447 = vbcast.lane.b32.xlu1 %v1445_v22, 256  ;;  %1440 = vbcast.lane.b32.xlu0 %v1438_v24, 256  ;;  %v1669_v22 = vrot.slane %v3713_v10, %v3533_v26  ;;  %v1662_v24 = vrot.slane %v3713_v10, %v3528_v23  ;;  %v1683_v26 = vrot.slane %v3713_v10, %v3546_v35 }
 0x3da   : > { %v1676_v23 = vrot.slane %v3713_v10, %v3554_v39 }
 0x3dd   : > { %1461 = vbcast.lane.b32.xlu1 %v1459_v27, 256  ;;  %1454 = vbcast.lane.b32.xlu0 %v1452_v28, 256  ;;  %v1756_v27 = vcombine.high %v1746_v15, %v1746_v15  ;;  %v1725_v28 = vcombine.high %v1723_v19, %v1723_v19 }
 0x3e1   : > { %1475 = vbcast.lane.b32.xlu1 %v1473_v30, 256  ;;  %1468 = vbcast.lane.b32.xlu0 %v1466_v32, 256  ;;  %v2112_v30 = vrot.slane %v1754_v46, %v3453_v11 }
 0x3e5   : > { %1489 = vbcast.lane.b32.xlu1 %v1487_v34, 256  ;;  %1482 = vbcast.lane.b32.xlu0 %v1480_v36, 256  ;;  %v2108_v34 = vrot.slane %v1746_v15, %v3453_v11 }
 0x3e9   : > { %1503 = vbcast.lane.b32.xlu1 %v1501_v37, 256  ;;  %1496 = vbcast.lane.b32.xlu0 %v1494_v38, 256  ;;  %v1765_v38 = vrot.slane %v3586_v55, %v3448_v8 }
 0x3eb   : > { %v1781_v51 = vrot.slane %v1765_v38, %v3448_v8 }
 0x3ed   : > { %1517 = vbcast.lane.b32.xlu1 %v1515_v40, 256  ;;  %1510 = vbcast.lane.b32.xlu0 %v1508_v41, 256  ;;  %v2116_v41 = vrot.slane %v1756_v27, %v3453_v11 }
 0x3f1   : > { %1531 = vbcast.lane.b32.xlu1 %v1529_v43, 256  ;;  %1524 = vbcast.lane.b32.xlu0 %v1522_v45, 256  ;;  %v1753_v43 = vrot.slane %v1725_v28, %v3448_v8  ;;  %v2120_v45 = vrot.slane %v1739_v29, %v3453_v11 }
 0x3f5   : > { %1545 = vbcast.lane.b32.xlu1 %v1543_v49, 256  ;;  %1538 = vbcast.lane.b32.xlu0 %v1536_v52, 256  ;;  %v1697_v49 = vrot.slane %v3713_v10, %v3577_v50  ;;  %v2124_v50 = vrot.slane %v1753_v43, %v3453_v11 }
 0x3f9   : > { %1559 = vbcast.lane.b32.xlu1 %v1557_v53, 256  ;;  %1552 = vbcast.lane.b32.xlu0 %v1550_v54, 256  ;;  %v1755_v53 = vcombine.high %v1739_v29, %v1739_v29 }
 0x3fb   : > { %v2128_v3 = vrot.slane %v1755_v53, %v3453_v11 }
 0x3fd   : > { %1573 = vbcast.lane.b32.xlu1 %v1571_v47, 256  ;;  %1566 = vbcast.lane.b32.xlu0 %v1564_v56, 256 }
 0x401   : > { %1587 = vbcast.lane.b32.xlu1 %v1585_v58, 256  ;;  %1580 = vbcast.lane.b32.xlu0 %v1578_v59, 256  ;;  %v1773_v58 = vcombine.high %v1765_v38, %v1765_v38  ;;  %v1758_v59 = vcombine.high %v3586_v55, %v3586_v55 }
 0x403   : > { %v1772_v12 = vrot.slane %v1758_v59, %v3448_v8 }
 0x405   : > { %1601 = vbcast.lane.b32.xlu1 %v1599_v61, 256  ;;  %1594 = vbcast.lane.b32.xlu0 %v1592_v62, 256  ;;  %v1774_v27 = vcombine.high %v1772_v12, %v1772_v12 }
 0x409   : > { %1615 = vbcast.lane.b32.xlu1 %v1613_v63, 256  ;;  %1608 = vbcast.lane.b32.xlu0 %v1606_v0, 256  ;;  %v1757_v63 = vcombine.high %v1753_v43, %v1753_v43  ;;  %v1814_v43 = vrot.slane %v3606_v4, %v3448_v8 }
 0x40b   : > { %v2132_v14 = vrot.slane %v1757_v63, %v3453_v11 }
 0x40d   : > { %1629 = vbcast.lane.b32.xlu1 %v1627_v44, 256  ;;  %1622 = vbcast.lane.b32.xlu0 %v1620_v1, 256 }
 0x411   : > { %1643 = vbcast.lane.b32.xlu1 %v1641_v7, 256  ;;  %1636 = vbcast.lane.b32.xlu0 %v1634_v9, 256 }
 0x415   : > { %1657 = vbcast.lane.b32.xlu1 %v1655_v16, 256  ;;  %1650 = vbcast.lane.b32.xlu0 %v1648_v18, 256  ;;  %v1795_v18 = vrot.slane %v1773_v58, %v3448_v8 }
 0x417   : > { %v1273_v17 = vpop.permute.xlu1 %1272  ;;  %v1259_v21 = vpop.permute.xlu0 %1258  ;;  %v2140_v29 = vrot.slane %v1795_v18, %v3453_v11 }
 0x418   : > { %v2421_v32 = vmul.f32 %v2104_v31, %v1259_v21  ;;  %v2423_v40 = vmul.f32 %v2112_v30, %v1273_v17  ;;  %v2136_v17 = vrot.slane %v1781_v51, %v3453_v11  ;;  %v1803_v21 = vcombine.high %v1781_v51, %v1781_v51 }
 0x419   : > { %1671 = vbcast.lane.b32.xlu1 %v1669_v22, 256  ;;  %1664 = vbcast.lane.b32.xlu0 %v1662_v24, 256 }
 0x41a   : > { %v2485_v35 = vsel %vm687_vm1, %v2421_v32, 0.0  ;;  %v2488_v61 = vsel %vm687_vm1, %v2423_v40, 0.0  ;;  %v1805_v32 = vcombine.high %v1795_v18, %v1795_v18 }
 0x41b   : > { %v1280_v36 = vpop.permute.xlu1 %1279  ;;  %v1266_v37 = vpop.permute.xlu0 %1265 }
 0x41c   : > { %v2422_v42 = vmul.f32 %v2108_v34, %v1266_v37  ;;  %v2424_v52 = vmul.f32 %v2116_v41, %v1280_v36 }
 0x41d   : > { %1685 = vbcast.lane.b32.xlu1 %v1683_v26, 256  ;;  %1678 = vbcast.lane.b32.xlu0 %v1676_v23, 256  ;;  %v2144_v26 = vrot.slane %v1803_v21, %v3453_v11  ;;  %v1788_v23 = vrot.slane %v1772_v12, %v3448_v8 }
 0x41e   : > { %v2486_v39 = vsel %vm687_vm1, %v2422_v42, 0.0  ;;  %v2490_v44 = vsel %vm687_vm1, %v2424_v52, 0.0  ;;  %v1802_v42 = vrot.slane %v1774_v27, %v3448_v8 }
 0x41f   : > { %v2487_v54 = vadd.f32 %v2486_v39, %v2485_v35  ;;  %v1294_v47 = vpop.permute.xlu1 %1293  ;;  %v1287_v56 = vpop.permute.xlu0 %1286 }
 0x420   : > { %v2425_v62 = vmul.f32 %v2120_v45, %v1287_v56  ;;  %v2426_v1 = vmul.f32 %v2124_v50, %v1294_v47  ;;  %v1804_v47 = vcombine.high %v1788_v23, %v1788_v23  ;;  %v1806_v63 = vcombine.high %v1802_v42, %v1802_v42 }
 0x421   : > { %v2489_v0 = vadd.f32 %v2488_v61, %v2487_v54  ;;  %1699 = vbcast.lane.b32.xlu1 %v1697_v49, 256  ;;  %1692 = vbcast.lane.b32.xlu0 %v1690_v57, 256  ;;  %v2148_v49 = vrot.slane %v1805_v32, %v3453_v11  ;;  %v2152_v54 = vrot.slane %v1788_v23, %v3453_v11 }
 0x422   : > { %v2492_v13 = vsel %vm687_vm1, %v2425_v62, 0.0  ;;  %v2494_v19 = vsel %vm687_vm1, %v2426_v1, 0.0  ;;  %v2156_v57 = vrot.slane %v1802_v42, %v3453_v11  ;;  %v1822_v61 = vcombine.high %v1814_v43, %v1814_v43 }
 0x423   : > { %v2491_v5 = vadd.f32 %v2490_v44, %v2489_v0  ;;  %v1308_v7 = vpop.permute.xlu1 %1307  ;;  %v1301_v9 = vpop.permute.xlu0 %1300  ;;  %v1807_v0 = vcombine.high %v3606_v4, %v3606_v4  ;;  %v2160_v51 = vrot.slane %v1804_v47, %v3453_v11 }
 0x424   : > { %v2427_v16 = vmul.f32 %v2128_v3, %v1301_v9  ;;  %v2428_v46 = vmul.f32 %v2132_v14, %v1308_v7 }
 0x425   : > { %v2493_v15 = vadd.f32 %v2492_v13, %v2491_v5  ;;  %v1830_v5 = vrot.slane %v1814_v43, %v3448_v8  ;;  %v1844_v13 = vrot.slane %v1822_v61, %v3448_v8  ;;  %v1863_v43 = vrot.slane %v3627_v20, %v3448_v8 }
 0x426   : > { %v2496_v28 = vsel %vm687_vm1, %v2427_v16, 0.0  ;;  %v2498_v36 = vsel %vm687_vm1, %v2428_v46, 0.0  ;;  %v2164_v16 = vrot.slane %v1806_v63, %v3453_v11 }
 0x427   : > { %v2495_v22 = vadd.f32 %v2494_v19, %v2493_v15  ;;  %v1322_v24 = vpop.permute.xlu1 %1321  ;;  %v1315_v31 = vpop.permute.xlu0 %1314  ;;  %v1821_v15 = vrot.slane %v1807_v0, %v3448_v8  ;;  %v2168_v21 = vrot.slane %v1830_v5, %v3453_v11  ;;  %v1854_v32 = vcombine.high %v1844_v13, %v1844_v13 }
 0x428   : > { %v2429_v30 = vmul.f32 %v2136_v17, %v1315_v31  ;;  %v2430_v37 = vmul.f32 %v2140_v29, %v1322_v24  ;;  %v2172_v31 = vrot.slane %v1844_v13, %v3453_v11  ;;  %v1871_v61 = vcombine.high %v1863_v43, %v1863_v43 }
 0x429   : > { %v2497_v34 = vadd.f32 %v2496_v28, %v2495_v22  ;;  %v1852_v22 = vcombine.high %v1830_v5, %v1830_v5 }
 0x42a   : > { %v2500_v45 = vsel %vm687_vm1, %v2429_v30, 0.0  ;;  %v2502_v39 = vsel %vm687_vm1, %v2430_v37, 0.0 }
 0x42b   : > { %v2499_v38 = vadd.f32 %v2498_v36, %v2497_v34  ;;  %v1336_v40 = vpop.permute.xlu1 %1335  ;;  %v1329_v41 = vpop.permute.xlu0 %1328  ;;  %v1823_v34 = vcombine.high %v1821_v15, %v1821_v15  ;;  %v2176_v23 = vrot.slane %v1852_v22, %v3453_v11 }
 0x42c   : > { %v2431_v35 = vmul.f32 %v2144_v26, %v1329_v41  ;;  %v2432_v53 = vmul.f32 %v2148_v49, %v1336_v40  ;;  %v2180_v49 = vrot.slane %v1854_v32, %v3453_v11 }
 0x42d   : > { %v2501_v52 = vadd.f32 %v2500_v45, %v2499_v38  ;;  %v1837_v38 = vrot.slane %v1821_v15, %v3448_v8 }
 0x42e   : > { %v2504_v50 = vsel %vm687_vm1, %v2431_v35, 0.0  ;;  %v2506_v1 = vsel %vm687_vm1, %v2432_v53, 0.0 }
 0x42f   : > { %v2503_v56 = vadd.f32 %v2502_v39, %v2501_v52  ;;  %v1350_v58 = vpop.permute.xlu1 %1349  ;;  %v1343_v59 = vpop.permute.xlu0 %1342  ;;  %v1851_v52 = vrot.slane %v1823_v34, %v3448_v8  ;;  %v2184_v47 = vrot.slane %v1837_v38, %v3453_v11 }
 0x430   : > { %v2433_v62 = vmul.f32 %v2152_v54, %v1343_v59  ;;  %v2434_v3 = vmul.f32 %v2156_v57, %v1350_v58 }
 0x431   : > { %v2505_v44 = vadd.f32 %v2504_v50, %v2503_v56  ;;  %v1853_v56 = vcombine.high %v1837_v38, %v1837_v38  ;;  %v1856_v50 = vcombine.high %v3627_v20, %v3627_v20  ;;  %v2188_v63 = vrot.slane %v1851_v52, %v3453_v11 }
 0x432   : > { %v2508_v14 = vsel %vm687_vm1, %v2433_v62, 0.0  ;;  %v2510_v46 = vsel %vm687_vm1, %v2434_v3, 0.0 }
 0x433   : > { %v2507_v7 = vadd.f32 %v2506_v1, %v2505_v44  ;;  %v1364_v9 = vpop.permute.xlu1 %1363  ;;  %v1357_v12 = vpop.permute.xlu0 %1356  ;;  %v1855_v44 = vcombine.high %v1851_v52, %v1851_v52  ;;  %v2192_v5 = vrot.slane %v1853_v56, %v3453_v11 }
 0x434   : > { %v2435_v18 = vmul.f32 %v2160_v51, %v1357_v12  ;;  %v2436_v17 = vmul.f32 %v2164_v16, %v1364_v9 }
 0x435   : > { %v2509_v19 = vadd.f32 %v2508_v14, %v2507_v7  ;;  %v1879_v7 = vrot.slane %v1863_v43, %v3448_v8  ;;  %v1893_v14 = vrot.slane %v1871_v61, %v3448_v8 }
 0x436   : > { %v2512_v29 = vsel %vm687_vm1, %v2435_v18, 0.0  ;;  %v2514_v37 = vsel %vm687_vm1, %v2436_v17, 0.0  ;;  %v2196_v18 = vrot.slane %v1855_v44, %v3453_v11 }
 0x437   : > { %v2511_v24 = vadd.f32 %v2510_v46, %v2509_v19  ;;  %v1378_v27 = vpop.permute.xlu1 %1377  ;;  %v1371_v28 = vpop.permute.xlu0 %1370  ;;  %v1870_v19 = vrot.slane %v1856_v50, %v3448_v8  ;;  %v2200_v22 = vrot.slane %v1879_v7, %v3453_v11  ;;  %v1903_v34 = vcombine.high %v1893_v14, %v1893_v14 }
 0x438   : > { %v2437_v30 = vmul.f32 %v2168_v21, %v1371_v28  ;;  %v2438_v26 = vmul.f32 %v2172_v31, %v1378_v27  ;;  %v2204_v27 = vrot.slane %v1893_v14, %v3453_v11 }
 0x439   : > { %v2513_v36 = vadd.f32 %v2512_v29, %v2511_v24  ;;  %v1901_v24 = vcombine.high %v1879_v7, %v1879_v7 }
 0x43a   : > { %v2516_v45 = vsel %vm687_vm1, %v2437_v30, 0.0  ;;  %v2518_v53 = vsel %vm687_vm1, %v2438_v26, 0.0 }
 0x43b   : > { %v2515_v40 = vadd.f32 %v2514_v37, %v2513_v36  ;;  %v1392_v41 = vpop.permute.xlu1 %1391  ;;  %v1385_v42 = vpop.permute.xlu0 %1384  ;;  %v1872_v36 = vcombine.high %v1870_v19, %v1870_v19  ;;  %v2208_v38 = vrot.slane %v1901_v24, %v3453_v11 }
 0x43c   : > { %v2439_v35 = vmul.f32 %v2176_v23, %v1385_v42  ;;  %v2440_v54 = vmul.f32 %v2180_v49, %v1392_v41 }
 0x43d   : > { %v2517_v39 = vadd.f32 %v2516_v45, %v2515_v40  ;;  %v1886_v40 = vrot.slane %v1870_v19, %v3448_v8  ;;  %v1912_v45 = vrot.slane %v3648_v33, %v3448_v8 }
 0x43e   : > { %v2520_v62 = vsel %vm687_vm1, %v2439_v35, 0.0  ;;  %v2522_v3 = vsel %vm687_vm1, %v2440_v54, 0.0  ;;  %v2212_v35 = vrot.slane %v1903_v34, %v3453_v11 }
 0x43f   : > { %v2519_v57 = vadd.f32 %v2518_v53, %v2517_v39  ;;  %v1406_v58 = vpop.permute.xlu1 %1405  ;;  %v1399_v59 = vpop.permute.xlu0 %1398  ;;  %v1900_v39 = vrot.slane %v1872_v36, %v3448_v8  ;;  %v2216_v56 = vrot.slane %v1886_v40, %v3453_v11  ;;  %v1920_v50 = vcombine.high %v1912_v45, %v1912_v45 }
 0x440   : > { %v2441_v0 = vmul.f32 %v2184_v47, %v1399_v59  ;;  %v2442_v51 = vmul.f32 %v2188_v63, %v1406_v58 }
 0x441   : > { %v2521_v1 = vadd.f32 %v2520_v62, %v2519_v57  ;;  %v1902_v57 = vcombine.high %v1886_v40, %v1886_v40  ;;  %v1905_v62 = vcombine.high %v3648_v33, %v3648_v33 }
 0x442   : > { %v2524_v16 = vsel %vm687_vm1, %v2441_v0, 0.0  ;;  %v2526_v17 = vsel %vm687_vm1, %v2442_v51, 0.0  ;;  %v2220_v0 = vrot.slane %v1900_v39, %v3453_v11 }
 0x443   : > { %v2523_v9 = vadd.f32 %v2522_v3, %v2521_v1  ;;  %v1420_v12 = vpop.permute.xlu1 %1419  ;;  %v1413_v13 = vpop.permute.xlu0 %1412  ;;  %v1904_v1 = vcombine.high %v1900_v39, %v1900_v39  ;;  %v2224_v7 = vrot.slane %v1902_v57, %v3453_v11 }
 0x444   : > { %v2443_v15 = vmul.f32 %v2192_v5, %v1413_v13  ;;  %v2444_v21 = vmul.f32 %v2196_v18, %v1420_v12 }
 0x445   : > { %v2525_v46 = vadd.f32 %v2524_v16, %v2523_v9  ;;  %v1928_v9 = vrot.slane %v1912_v45, %v3448_v8  ;;  %v1942_v16 = vrot.slane %v1920_v50, %v3448_v8 }
 0x446   : > { %v2528_v30 = vsel %vm687_vm1, %v2443_v15, 0.0  ;;  %v2530_v26 = vsel %vm687_vm1, %v2444_v21, 0.0  ;;  %v2228_v15 = vrot.slane %v1904_v1, %v3453_v11 }
 0x447   : > { %v2527_v31 = vadd.f32 %v2526_v17, %v2525_v46  ;;  %v1434_v28 = vpop.permute.xlu1 %1433  ;;  %v1427_v29 = vpop.permute.xlu0 %1426  ;;  %v1919_v46 = vrot.slane %v1905_v62, %v3448_v8  ;;  %v2232_v24 = vrot.slane %v1928_v9, %v3453_v11  ;;  %v1952_v36 = vcombine.high %v1942_v16, %v1942_v16 }
 0x448   : > { %v2445_v32 = vmul.f32 %v2200_v22, %v1427_v29  ;;  %v2446_v23 = vmul.f32 %v2204_v27, %v1434_v28  ;;  %v2236_v28 = vrot.slane %v1942_v16, %v3453_v11 }
 0x449   : > { %v2529_v37 = vadd.f32 %v2528_v30, %v2527_v31  ;;  %v1950_v31 = vcombine.high %v1928_v9, %v1928_v9 }
 0x44a   : > { %v2532_v49 = vsel %vm687_vm1, %v2445_v32, 0.0  ;;  %v2534_v54 = vsel %vm687_vm1, %v2446_v23, 0.0 }
 0x44b   : > { %v2531_v41 = vadd.f32 %v2530_v26, %v2529_v37  ;;  %v1448_v42 = vpop.permute.xlu1 %1447  ;;  %v1441_v43 = vpop.permute.xlu0 %1440  ;;  %v1921_v37 = vcombine.high %v1919_v46, %v1919_v46  ;;  %v2240_v40 = vrot.slane %v1950_v31, %v3453_v11 }
 0x44c   : > { %v2447_v52 = vmul.f32 %v2208_v38, %v1441_v43  ;;  %v2448_v47 = vmul.f32 %v2212_v35, %v1448_v42 }
 0x44d   : > { %v2533_v53 = vadd.f32 %v2532_v49, %v2531_v41  ;;  %v1935_v41 = vrot.slane %v1919_v46, %v3448_v8  ;;  %v1961_v49 = vrot.slane %v3669_v48, %v3448_v8 }
 0x44e   : > { %v2536_v63 = vsel %vm687_vm1, %v2447_v52, 0.0  ;;  %v2538_v51 = vsel %vm687_vm1, %v2448_v47, 0.0  ;;  %v2244_v52 = vrot.slane %v1952_v36, %v3453_v11 }
 0x44f   : > { %v2535_v58 = vadd.f32 %v2534_v54, %v2533_v53  ;;  %v1462_v59 = vpop.permute.xlu1 %1461  ;;  %v1455_v61 = vpop.permute.xlu0 %1454  ;;  %v1949_v53 = vrot.slane %v1921_v37, %v3448_v8  ;;  %v2248_v57 = vrot.slane %v1935_v41, %v3453_v11  ;;  %v1969_v62 = vcombine.high %v1961_v49, %v1961_v49 }
 0x450   : > { %v2449_v44 = vmul.f32 %v2216_v56, %v1455_v61  ;;  %v2450_v5 = vmul.f32 %v2220_v0, %v1462_v59 }
 0x451   : > { %v2537_v3 = vadd.f32 %v2536_v63, %v2535_v58  ;;  %v1951_v58 = vcombine.high %v1935_v41, %v1935_v41  ;;  %v1954_v63 = vcombine.high %v3669_v48, %v3669_v48 }
 0x452   : > { %v2540_v18 = vsel %vm687_vm1, %v2449_v44, 0.0  ;;  %v2542_v21 = vsel %vm687_vm1, %v2450_v5, 0.0  ;;  %v2252_v44 = vrot.slane %v1949_v53, %v3453_v11 }
 0x453   : > { %v2539_v12 = vadd.f32 %v2538_v51, %v2537_v3  ;;  %v1476_v13 = vpop.permute.xlu1 %1475  ;;  %v1469_v14 = vpop.permute.xlu0 %1468  ;;  %v1953_v3 = vcombine.high %v1949_v53, %v1949_v53  ;;  %v2256_v9 = vrot.slane %v1951_v58, %v3453_v11 }
 0x454   : > { %v2451_v19 = vmul.f32 %v2224_v7, %v1469_v14  ;;  %v2452_v22 = vmul.f32 %v2228_v15, %v1476_v13 }
 0x455   : > { %v2541_v17 = vadd.f32 %v2540_v18, %v2539_v12  ;;  %v1977_v12 = vrot.slane %v1961_v49, %v3448_v8  ;;  %v1991_v18 = vrot.slane %v1969_v62, %v3448_v8 }
 0x456   : > { %v2544_v32 = vsel %vm687_vm1, %v2451_v19, 0.0  ;;  %v2546_v23 = vsel %vm687_vm1, %v2452_v22, 0.0  ;;  %v2260_v19 = vrot.slane %v1953_v3, %v3453_v11 }
 0x457   : > { %v2543_v27 = vadd.f32 %v2542_v21, %v2541_v17  ;;  %v1490_v29 = vpop.permute.xlu1 %1489  ;;  %v1483_v30 = vpop.permute.xlu0 %1482  ;;  %v1968_v17 = vrot.slane %v1954_v63, %v3448_v8  ;;  %v2264_v31 = vrot.slane %v1977_v12, %v3453_v11  ;;  %v2001_v37 = vcombine.high %v1991_v18, %v1991_v18 }
 0x458   : > { %v2453_v34 = vmul.f32 %v2232_v24, %v1483_v30  ;;  %v2454_v38 = vmul.f32 %v2236_v28, %v1490_v29  ;;  %v2268_v29 = vrot.slane %v1991_v18, %v3453_v11 }
 0x459   : > { %v2545_v26 = vadd.f32 %v2544_v32, %v2543_v27  ;;  %v1999_v27 = vcombine.high %v1977_v12, %v1977_v12 }
 0x45a   : > { %v2548_v35 = vsel %vm687_vm1, %v2453_v34, 0.0  ;;  %v2550_v47 = vsel %vm687_vm1, %v2454_v38, 0.0 }
 0x45b   : > { %v2547_v42 = vadd.f32 %v2546_v23, %v2545_v26  ;;  %v1504_v43 = vpop.permute.xlu1 %1503  ;;  %v1497_v45 = vpop.permute.xlu0 %1496  ;;  %v1970_v26 = vcombine.high %v1968_v17, %v1968_v17  ;;  %v2272_v41 = vrot.slane %v1999_v27, %v3453_v11 }
 0x45c   : > { %v2455_v39 = vmul.f32 %v2240_v40, %v1497_v45  ;;  %v2456_v56 = vmul.f32 %v2244_v52, %v1504_v43 }
 0x45d   : > { %v2549_v54 = vadd.f32 %v2548_v35, %v2547_v42  ;;  %v1984_v42 = vrot.slane %v1968_v17, %v3448_v8  ;;  %v2010_v35 = vrot.slane %v3690_v60, %v3448_v8 }
 0x45e   : > { %v2552_v0 = vsel %vm687_vm1, %v2455_v39, 0.0  ;;  %v2554_v5 = vsel %vm687_vm1, %v2456_v56, 0.0  ;;  %v2276_v39 = vrot.slane %v2001_v37, %v3453_v11 }
 0x45f   : > { %v2551_v59 = vadd.f32 %v2550_v47, %v2549_v54  ;;  %v1518_v61 = vpop.permute.xlu1 %1517  ;;  %v1511_v50 = vpop.permute.xlu0 %1510  ;;  %v1998_v54 = vrot.slane %v1970_v26, %v3448_v8  ;;  %v2280_v58 = vrot.slane %v1984_v42, %v3453_v11  ;;  %v2018_v63 = vcombine.high %v2010_v35, %v2010_v35 }
 0x460   : > { %v2457_v1 = vmul.f32 %v2248_v57, %v1511_v50  ;;  %v2458_v7 = vmul.f32 %v2252_v44, %v1518_v61 }
 0x461   : > { %v2553_v51 = vadd.f32 %v2552_v0, %v2551_v59  ;;  %v2000_v59 = vcombine.high %v1984_v42, %v1984_v42  ;;  %v2003_v0 = vcombine.high %v3690_v60, %v3690_v60 }
 0x462   : > { %v2556_v15 = vsel %vm687_vm1, %v2457_v1, 0.0  ;;  %v2558_v22 = vsel %vm687_vm1, %v2458_v7, 0.0  ;;  %v2284_v1 = vrot.slane %v1998_v54, %v3453_v11 }
 0x463   : > { %v2555_v13 = vadd.f32 %v2554_v5, %v2553_v51  ;;  %v1532_v14 = vpop.permute.xlu1 %1531  ;;  %v1525_v16 = vpop.permute.xlu0 %1524  ;;  %v2002_v51 = vcombine.high %v1998_v54, %v1998_v54  ;;  %v2288_v12 = vrot.slane %v2000_v59, %v3453_v11 }
 0x464   : > { %v2459_v46 = vmul.f32 %v2256_v9, %v1525_v16  ;;  %v2460_v24 = vmul.f32 %v2260_v19, %v1532_v14 }
 0x465   : > { %v2557_v21 = vadd.f32 %v2556_v15, %v2555_v13  ;;  %v2026_v13 = vrot.slane %v2010_v35, %v3448_v8  ;;  %v2040_v15 = vrot.slane %v2018_v63, %v3448_v8 }
 0x466   : > { %v2560_v34 = vsel %vm687_vm1, %v2459_v46, 0.0  ;;  %v2562_v38 = vsel %vm687_vm1, %v2460_v24, 0.0  ;;  %v2292_v46 = vrot.slane %v2002_v51, %v3453_v11 }
 0x467   : > { %v2559_v28 = vadd.f32 %v2558_v22, %v2557_v21  ;;  %v1546_v30 = vpop.permute.xlu1 %1545  ;;  %v1539_v32 = vpop.permute.xlu0 %1538  ;;  %v2017_v21 = vrot.slane %v2003_v0, %v3448_v8  ;;  %v2296_v27 = vrot.slane %v2026_v13, %v3453_v11  ;;  %v2050_v26 = vcombine.high %v2040_v15, %v2040_v15 }
 0x468   : > { %v2461_v36 = vmul.f32 %v2264_v31, %v1539_v32  ;;  %v2462_v40 = vmul.f32 %v2268_v29, %v1546_v30  ;;  %v2300_v30 = vrot.slane %v2040_v15, %v3453_v11 }
 0x469   : > { %v2561_v23 = vadd.f32 %v2560_v34, %v2559_v28  ;;  %v2048_v28 = vcombine.high %v2026_v13, %v2026_v13 }
 0x46a   : > { %v2564_v52 = vsel %vm687_vm1, %v2461_v36, 0.0  ;;  %v2566_v56 = vsel %vm687_vm1, %v2462_v40, 0.0 }
 0x46b   : > { %v2563_v43 = vadd.f32 %v2562_v38, %v2561_v23  ;;  %v1560_v45 = vpop.permute.xlu1 %1559  ;;  %v1553_v49 = vpop.permute.xlu0 %1552  ;;  %v2019_v23 = vcombine.high %v2017_v21, %v2017_v21  ;;  %v2304_v42 = vrot.slane %v2048_v28, %v3453_v11 }
 0x46c   : > { %v2463_v53 = vmul.f32 %v2272_v41, %v1553_v49  ;;  %v2464_v57 = vmul.f32 %v2276_v39, %v1560_v45 }
 0x46d   : > { %v2565_v47 = vadd.f32 %v2564_v52, %v2563_v43  ;;  %v2033_v43 = vrot.slane %v2017_v21, %v3448_v8  ;;  %v2059_v52 = vrot.slane %v3713_v10, %v3448_v8 }
 0x46e   : > { %v2568_v44 = vsel %vm687_vm1, %v2463_v53, 0.0  ;;  %v2570_v7 = vsel %vm687_vm1, %v2464_v57, 0.0  ;;  %v2308_v53 = vrot.slane %v2050_v26, %v3453_v11 }
 0x46f   : > { %v2567_v61 = vadd.f32 %v2566_v56, %v2565_v47  ;;  %v1574_v50 = vpop.permute.xlu1 %1573  ;;  %v1567_v62 = vpop.permute.xlu0 %1566  ;;  %v2047_v47 = vrot.slane %v2019_v23, %v3448_v8  ;;  %v2312_v59 = vrot.slane %v2033_v43, %v3453_v11  ;;  %v2067_v0 = vcombine.high %v2059_v52, %v2059_v52 }
 0x470   : > { %v2465_v3 = vmul.f32 %v2280_v58, %v1567_v62  ;;  %v2466_v9 = vmul.f32 %v2284_v1, %v1574_v50 }
 0x471   : > { %v2569_v5 = vadd.f32 %v2568_v44, %v2567_v61  ;;  %v2049_v61 = vcombine.high %v2033_v43, %v2033_v43  ;;  %v2052_v44 = vcombine.high %v3713_v10, %v3713_v10 }
 0x472   : > { %v2572_v19 = vsel %vm687_vm1, %v2465_v3, 0.0  ;;  %v2574_v24 = vsel %vm687_vm1, %v2466_v9, 0.0  ;;  %v2316_v3 = vrot.slane %v2047_v47, %v3453_v11 }
 0x473   : > { %v2571_v14 = vadd.f32 %v2570_v7, %v2569_v5  ;;  %v1588_v16 = vpop.permute.xlu1 %1587  ;;  %v1581_v18 = vpop.permute.xlu0 %1580  ;;  %v2051_v5 = vcombine.high %v2047_v47, %v2047_v47  ;;  %v2320_v13 = vrot.slane %v2049_v61, %v3453_v11 }
 0x474   : > { %v2467_v17 = vmul.f32 %v2288_v12, %v1581_v18  ;;  %v2468_v31 = vmul.f32 %v2292_v46, %v1588_v16 }
 0x475   : > { %v2573_v22 = vadd.f32 %v2572_v19, %v2571_v14  ;;  %v2075_v14 = vrot.slane %v2059_v52, %v3448_v8  ;;  %v2089_v19 = vrot.slane %v2067_v0, %v3448_v8 }
 0x476   : > { %v2576_v36 = vsel %vm687_vm1, %v2467_v17, 0.0  ;;  %v2578_v40 = vsel %vm687_vm1, %v2468_v31, 0.0  ;;  %v2324_v17 = vrot.slane %v2051_v5, %v3453_v11 }
 0x477   : > { %v2575_v29 = vadd.f32 %v2574_v24, %v2573_v22  ;;  %v1602_v32 = vpop.permute.xlu1 %1601  ;;  %v1595_v34 = vpop.permute.xlu0 %1594  ;;  %v2066_v22 = vrot.slane %v2052_v44, %v3448_v8  ;;  %v2328_v28 = vrot.slane %v2075_v14, %v3453_v11  ;;  %v2099_v23 = vcombine.high %v2089_v19, %v2089_v19 }
 0x478   : > { %v2469_v37 = vmul.f32 %v2296_v27, %v1595_v34  ;;  %v2470_v41 = vmul.f32 %v2300_v30, %v1602_v32  ;;  %v2332_v32 = vrot.slane %v2089_v19, %v3453_v11 }
 0x479   : > { %v2577_v38 = vadd.f32 %v2576_v36, %v2575_v29  ;;  %v2097_v29 = vcombine.high %v2075_v14, %v2075_v14 }
 0x47a   : > { %v2580_v39 = vsel %vm687_vm1, %v2469_v37, 0.0  ;;  %v2582_v57 = vsel %vm687_vm1, %v2470_v41, 0.0 }
 0x47b   : > { %v2579_v45 = vadd.f32 %v2578_v40, %v2577_v38  ;;  %v1616_v49 = vpop.permute.xlu1 %1615  ;;  %v1609_v35 = vpop.permute.xlu0 %1608  ;;  %v2068_v38 = vcombine.high %v2066_v22, %v2066_v22  ;;  %v2336_v43 = vrot.slane %v2097_v29, %v3453_v11 }
 0x47c   : > { %v2471_v54 = vmul.f32 %v2304_v42, %v1609_v35  ;;  %v2472_v58 = vmul.f32 %v2308_v53, %v1616_v49  ;;  %v2340_v53 = vrot.slane %v2099_v23, %v3453_v11  ;;  %v3319_v23 = vmov 0  }
 0x47d   : > { %v2581_v56 = vadd.f32 %v2580_v39, %v2579_v45  ;;  %v2082_v45 = vrot.slane %v2066_v22, %v3448_v8  ;;  %v2096_v47 = vrot.slane %v2068_v38, %v3448_v8  ;;  %3296 = vset.pattern.permute.xlu0 %v3319_v23 }
 0x47e   : > { %v2584_v1 = vsel %vm687_vm1, %v2471_v54, 0.0  ;;  %v2586_v9 = vsel %vm687_vm1, %v2472_v58, 0.0 }
 0x47f   : > { %v2583_v50 = vadd.f32 %v2582_v57, %v2581_v56  ;;  %v1630_v62 = vpop.permute.xlu1 %1629  ;;  %v1623_v63 = vpop.permute.xlu0 %1622  ;;  %v2098_v61 = vcombine.high %v2082_v45, %v2082_v45  ;;  %v2348_v44 = vrot.slane %v2096_v47, %v3453_v11 }
 0x480   : > { %v2473_v51 = vmul.f32 %v2312_v59, %v1623_v63  ;;  %v2474_v12 = vmul.f32 %v2316_v3, %v1630_v62  ;;  %v2344_v59 = vrot.slane %v2082_v45, %v3453_v11  ;;  %v2100_v3 = vcombine.high %v2096_v47, %v2096_v47 }
 0x481   : > { %v2585_v7 = vadd.f32 %v2584_v1, %v2583_v50 }
 0x482   : > { %v2588_v46 = vsel %vm687_vm1, %v2473_v51, 0.0  ;;  %v2590_v31 = vsel %vm687_vm1, %v2474_v12, 0.0 }
 0x483   : > { %v2587_v16 = vadd.f32 %v2586_v9, %v2585_v7  ;;  %v1644_v18 = vpop.permute.xlu1 %1643  ;;  %v1637_v15 = vpop.permute.xlu0 %1636  ;;  %v2352_v7 = vrot.slane %v2098_v61, %v3453_v11 }
 0x484   : > { %v2475_v21 = vmul.f32 %v2320_v13, %v1637_v15  ;;  %v2476_v27 = vmul.f32 %v2324_v17, %v1644_v18 }
 0x485   : > { %v2589_v24 = vadd.f32 %v2588_v46, %v2587_v16  ;;  %v2356_v16 = vrot.slane %v2100_v3, %v3453_v11 }
 0x486   : > { %v2592_v37 = vsel %vm687_vm1, %v2475_v21, 0.0  ;;  %v2594_v41 = vsel %vm687_vm1, %v2476_v27, 0.0 }
 0x487   : > { %v2591_v30 = vadd.f32 %v2590_v31, %v2589_v24  ;;  %v1658_v34 = vpop.permute.xlu1 %1657  ;;  %v1651_v36 = vpop.permute.xlu0 %1650 }
 0x488   : > { %v2477_v26 = vmul.f32 %v2328_v28, %v1651_v36  ;;  %v2478_v42 = vmul.f32 %v2332_v32, %v1658_v34 }
 0x489   : > { %v2593_v40 = vadd.f32 %v2592_v37, %v2591_v30 }
 0x48a   : > { %v2596_v39 = vsel %vm687_vm1, %v2477_v26, 0.0  ;;  %v2598_v57 = vsel %vm687_vm1, %v2478_v42, 0.0  ;;  %v3164_v26 = vld [vmem:[#allocation2] ss:$0 sm:$0xff] }
 0x48b   : > { %v2595_v49 = vadd.f32 %v2594_v41, %v2593_v40  ;;  %v1672_v35 = vpop.permute.xlu1 %1671  ;;  %v1665_v52 = vpop.permute.xlu0 %1664 }
 0x48c   : > { %v2479_v54 = vmul.f32 %v2336_v43, %v1665_v52  ;;  %v2480_v58 = vmul.f32 %v2340_v53, %v1672_v35  ;;  %v3165_v52 = vld [vmem:[%s4010_s14] ss:$0 sm:$0xff] }
 0x48d   : > { %v2597_v56 = vadd.f32 %v2596_v39, %v2595_v49 }
 0x48e   : > { %v2600_v0 = vsel %vm687_vm1, %v2479_v54, 0.0  ;;  %v2602_v5 = vsel %vm687_vm1, %v2480_v58, 0.0 }
 0x48f   : > { %v2599_v50 = vadd.f32 %v2598_v57, %v2597_v56  ;;  %v1686_v62 = vpop.permute.xlu1 %1685  ;;  %v1679_v63 = vpop.permute.xlu0 %1678 }
 0x490   : > { %v2481_v1 = vmul.f32 %v2344_v59, %v1679_v63  ;;  %v2482_v8 = vmul.f32 %v2348_v44, %v1686_v62 }
 0x491   : > { %v2601_v51 = vadd.f32 %v2600_v0, %v2599_v50 }
 0x492   : > { %v2604_v14 = vsel %vm687_vm1, %v2481_v1, 0.0  ;;  %v2606_v19 = vsel %vm687_vm1, %v2482_v8, 0.0 }
 0x493   : > { %v2603_v9 = vadd.f32 %v2602_v5, %v2601_v51  ;;  %v1700_v12 = vpop.permute.xlu1 %1699  ;;  %v1693_v13 = vpop.permute.xlu0 %1692 }
 0x494   : > { %v2483_v18 = vmul.f32 %v2352_v7, %v1693_v13  ;;  %v2484_v46 = vmul.f32 %v2356_v16, %v1700_v12 }
 0x495   : > { %v2605_v15 = vadd.f32 %v2604_v14, %v2603_v9 }
 0x496   : > { %v2608_v21 = vsel %vm687_vm1, %v2483_v18, 0.0  ;;  %v2610_v24 = vsel %vm687_vm1, %v2484_v46, 0.0 }
 0x497   : > { %v2607_v17 = vadd.f32 %v2606_v19, %v2605_v15 }
 0x499   : > { %v2609_v22 = vadd.f32 %v2608_v21, %v2607_v17 }
 0x49b   : > { %v2611_v31 = vadd.f32 %v2610_v24, %v2609_v22 }
 0x49d   : > { %v2612_v27 = vsel %vm687_vm1, %v2611_v31, -inf }
 0x49e   : > { %2613 = vmax.xlane.f32.xlu0 %v2612_v27 }
 0x52b   : > { %v2614_v28 = vpop.xlane.xlu0 %2613 }
 0x52c   : > { %v2615_v29 = vsub.f32 %v2614_v28, %v2611_v31  ;;  %v2819_v31 = vand.u32 127, %v581_v2 }
 0x52e   : > { %v2616_v30 = vsel %vm687_vm1, %v2615_v29, -inf  ;;  %vm2820_vm4 = vcmp.eq.s32.totalorder %v3437_v6, %v2819_v31 }
 0x52f   : > { %2617 = vmax.xlane.f32.xlu1 %v2616_v30 }
 0x5bc   : > { %v2618_v11 = vpop.xlane.xlu1 %2617 }
 0x5bd   : > { %v2619_v32 = vsub.f32 %v2615_v29, %v2618_v11  ;;  %v2839_v29 = vsub.s32 %v2819_v31, %v3437_v6 }
 0x5bf   : > { %v2620_v34 = vmul.f32 1.442695, %v2619_v32 }
 0x5c1   : > { %3301 = vpow2.f32 %v2620_v34 }
 0x5cb   : > { %v3302_v36 = vpop.eup %3301 }
 0x5cc   : > { %v2622_v37 = vsel %vm687_vm1, %v3302_v36, 0.0 }
 0x5cd   : > { %2623 = vadd.xlane.f32.xlu0 %v2622_v37 }
 0x5e3   : > { %2758 = vperm.xlu0 %3296, %v3164_v26  }
 0x65a   : > { %v2624_v38 = vpop.xlane.xlu0 %2623 }
 0x65b   : > { %3303 = vrcp.f32 %v2624_v38 }
 0x662   : > { %v2759_v42 = vpop.permute.xlu0 %2758 }
 0x665   : > { %v3304_v40 = vpop.eup %3303 }
 0x666   : > { %v2626_v41 = vmul.f32 %v3304_v40, %v3302_v36 }
 0x668   : > { %3254 = vmatprep.subr.msk.mxu0 %vm687_vm1, %v2626_v41 }
 0x669   : > { %3255 = vmatpush3.xpose.msk.msra.mxu0 %vm687_vm1, %v2626_v41 }
 0x66c   : > { %3257 = vmatmul.mubr.msk.f32.vlgmr.msra.gmra.mrb[16].mxu0 %vm687_vm1, %v3586_v55 }
 0x66d   : > { %3259 = vmatprep.mubr.msk.f32.mxu0 %vm687_vm1, %v3606_v4 }
 0x670   : > { %3260 = vmatmul.mubr.msk.f32.gmra.mrb[18].mxu0 %vm687_vm1, %v3627_v20 }
 0x671   : > { %3262 = vmatprep.mubr.msk.f32.mxu0 %vm687_vm1, %v3648_v33 }
 0x674   : > { %3263 = vmatmul.mubr.msk.f32.gmra.mrb[20].mxu0 %vm687_vm1, %v3669_v48 }
 0x675   : > { %3265 = vmatprep.mubr.msk.f32.mxu0 %vm687_vm1, %v3690_v60 }
 0x678   : > { %3266 = vmatmul.mubr.msk.f32.gmra.mrb[22].mxu0 %vm687_vm1, %v3713_v10 }
 0x73f   : > { %v3258_v43 = vpop.f32.mrb[16].mxu0 }
 0x740   : > { %v2712_v45 = vpop.f32.mrb[17].mxu0  ;;  %v2762_v49 = vmul.f32 %v3258_v43, %v2759_v42 }
 0x741   : > { %v2761_v35 = vmul.f32 %v2759_v42, %v2712_v45 }
 0x742   : > { %v2770_v39 = vadd.f32 %v2762_v49, %v3586_v55 }
 0x743   : > { %v2769_v53 = vadd.f32 %v2761_v35, %v3530_v25  ;;  %v3261_v54 = vpop.f32.mrb[18].mxu0 }
 0x744   : > { %v2764_v47 = vmul.f32 %v3261_v54, %v2759_v42  ;;  %v2722_v56 = vpop.f32.mrb[19].mxu0  ;;  %v2785_v57 = vmul.f32 %v3165_v52, %v2770_v39 }
 0x745   : > { %v2763_v59 = vmul.f32 %v2759_v42, %v2722_v56  ;;  %v2784_v50 = vmul.f32 %v3165_v52, %v2769_v53 }
 0x746   : > { %v2772_v58 = vadd.f32 %v2764_v47, %v3627_v20  ;;  %v2795_v61 = vsel %vm687_vm1, %v2785_v57, 0.0 }
 0x747   : > { %v3264_v62 = vpop.f32.mrb[20].mxu0  ;;  %2796 = vadd.xlane.f32.xlu1 %v2795_v61  ;;  %v2771_v0 = vadd.f32 %v2763_v59, %v3606_v4  ;;  %v2792_v55 = vsel %vm687_vm1, %v2784_v50, 0.0 }
 0x748   : > { %v2732_v63 = vpop.f32.mrb[21].mxu0  ;;  %v2766_v44 = vmul.f32 %v3264_v62, %v2759_v42  ;;  %v2787_v1 = vmul.f32 %v3165_v52, %v2772_v58 }
 0x749   : > { %v2765_v5 = vmul.f32 %v2759_v42, %v2732_v63  ;;  %v2786_v8 = vmul.f32 %v3165_v52, %v2771_v0 }
 0x74a   : > { %v2774_v51 = vadd.f32 %v2766_v44, %v3669_v48  ;;  %v2801_v20 = vsel %vm687_vm1, %v2787_v1, 0.0 }
 0x74b   : > { %v3267_v25 = vpop.f32.mrb[22].mxu0  ;;  %2793 = vadd.xlane.f32.xlu1 %v2792_v55  ;;  %v2773_v7 = vadd.f32 %v2765_v5, %v3648_v33  ;;  %v2798_v12 = vsel %vm687_vm1, %v2786_v8, 0.0 }
 0x74c   : > { %v2742_v3 = vpop.f32.mrb[23].mxu0  ;;  %v2789_v4 = vmul.f32 %v3165_v52, %v2774_v51  ;;  %v2768_v13 = vmul.f32 %v3267_v25, %v2759_v42 }
 0x74d   : > { %v2767_v9 = vmul.f32 %v2759_v42, %v2742_v3  ;;  %v2788_v18 = vmul.f32 %v3165_v52, %v2773_v7 }
 0x74e   : > { %v2807_v16 = vsel %vm687_vm1, %v2789_v4, 0.0  ;;  %v2776_v48 = vadd.f32 %v2768_v13, %v3713_v10 }
 0x74f   : > { %2802 = vadd.xlane.f32.xlu1 %v2801_v20  ;;  %v2775_v14 = vadd.f32 %v2767_v9, %v3690_v60  ;;  %v2804_v15 = vsel %vm687_vm1, %v2788_v18, 0.0  ;;  %v3320_v18 = vmov 0.0  }
 0x750   : > { %v2791_v46 = vmul.f32 %v3165_v52, %v2776_v48  ;;  %3268 = vmatprep.subr.bf16.mxu1 %v3320_v18  ;;  %3270 = vmatprep.mubr.msk.bf16.mxu1 %vm3321_vm5, %v3320_v18 }
 0x751   : > { %v2790_v19 = vmul.f32 %v3165_v52, %v2775_v14  ;;  %v3309_v14 = vld [vmem:[%s3445_s2] sm:$0xff]  ;;  %s3322_s2 = smov 8  }
 0x752   : > { %v2813_v17 = vsel %vm687_vm1, %v2791_v46, 0.0 }
 0x753   : > { %2799 = vadd.xlane.f32.xlu1 %v2798_v12  ;;  %v2810_v33 = vsel %vm687_vm1, %v2790_v19, 0.0 }
 0x757   : > { %2808 = vadd.xlane.f32.xlu1 %v2807_v16  ;;  %v575_v16 = vpack.c.bf16 %v3309_v14, %v3309_v14 }
 0x759   : > { %v2949_v48 = vsel %vm700_vm0, %v575_v16, 0 }
 0x75a   : > { %3269 = vmatpush3.bf16.msra.mxu1 %v2949_v48 }
 0x75b   : > { %2805 = vadd.xlane.f32.xlu1 %v2804_v15  ;;  %3274 = vmatprep.subr.bf16.mxu1 %v3320_v18 }
 0x75f   : > { %2811 = vadd.xlane.f32.xlu1 %v2810_v33 }
 0x763   : > { %2814 = vadd.xlane.f32.xlu1 %v2813_v17  ;;  %v3300_v17 = vld [vmem:[%s4011_s15] sm:$0xff]  }
 0x7d4   : > { %v2797_v21 = vpop.xlane.xlu1 %2796 }
 0x7d5   : > { %v3167_v30 = vadd.f32 -1e+08, %v2797_v21  ;;  %v2899_v23 = vrot.slane %v2797_v21, %v2839_v29 }
 0x7d7   : > { %v2844_v26 = vrot.slane %v3167_v30, %v2839_v29  ;;  %v3178_v30 = vld [vmem:[%s4013_s17] ss:$0 sm:$0xff] }
 0x7d8   : > { %v2794_v22 = vpop.xlane.xlu1 %2793 }
 0x7d9   : > { %v3166_v27 = vadd.f32 -1e+08, %v2794_v22  ;;  %v2895_v32 = vrot.slane %v2794_v22, %v2839_v29 }
 0x7db   : > { %v2840_v11 = vrot.slane %v3166_v27, %v2839_v29  ;;  %v2924_v42 = vsel %vm2869_vm11, %v2899_v23, %v2895_v32 }
 0x7dc   : > { %v2803_v60 = vpop.xlane.xlu1 %2802 }
 0x7dd   : > { %v3169_v38 = vadd.f32 -1e+08, %v2803_v60  ;;  %v2870_v41 = vsel %vm2869_vm11, %v2844_v26, %v2840_v11  ;;  %v2907_v39 = vrot.slane %v2803_v60, %v2839_v29 }
 0x7df   : > { %v2852_v52 = vrot.slane %v3169_v38, %v2839_v29 }
 0x7e0   : > { %v2800_v24 = vpop.xlane.xlu1 %2799 }
 0x7e1   : > { %v3168_v28 = vadd.f32 -1e+08, %v2800_v24  ;;  %v2903_v36 = vrot.slane %v2800_v24, %v2839_v29 }
 0x7e3   : > { %v2848_v34 = vrot.slane %v3168_v28, %v2839_v29  ;;  %v2925_v43 = vsel %vm2871_vm12, %v2903_v36, %v2924_v42 }
 0x7e4   : > { %v2809_v10 = vpop.xlane.xlu1 %2808  ;;  %v2926_v56 = vsel %vm2873_vm13, %v2907_v39, %v2925_v43 }
 0x7e5   : > { %v2872_v2 = vsel %vm2871_vm12, %v2848_v34, %v2870_v41  ;;  %v3171_v53 = vadd.f32 -1e+08, %v2809_v10  ;;  %v2915_v63 = vrot.slane %v2809_v10, %v2839_v29  ;;  %v3177_v10 = vld [vmem:[%s4012_s16] ss:$0 sm:$0xff] }
 0x7e6   : > { %v2874_v47 = vsel %vm2873_vm13, %v2852_v52, %v2872_v2 }
 0x7e7   : > { %v2860_v62 = vrot.slane %v3171_v53, %v2839_v29 }
 0x7e8   : > { %v2806_v37 = vpop.xlane.xlu1 %2805 }
 0x7e9   : > { %v3170_v40 = vadd.f32 -1e+08, %v2806_v37  ;;  %v2911_v49 = vrot.slane %v2806_v37, %v2839_v29 }
 0x7eb   : > { %v2856_v45 = vrot.slane %v3170_v40, %v2839_v29  ;;  %v2927_v58 = vsel %vm2875_vm14, %v2911_v49, %v2926_v56 }
 0x7ec   : > { %v2812_v35 = vpop.xlane.xlu1 %2811  ;;  %v2928_v25 = vsel %vm2877_vm15, %v2915_v63, %v2927_v58 }
 0x7ed   : > { %v3172_v54 = vadd.f32 -1e+08, %v2812_v35  ;;  %v2876_v57 = vsel %vm2875_vm14, %v2856_v45, %v2874_v47  ;;  %v2919_v61 = vrot.slane %v2812_v35, %v2839_v29 }
 0x7ee   : > { %v2878_v1 = vsel %vm2877_vm15, %v2860_v62, %v2876_v57 }
 0x7ef   : > { %v2864_v59 = vrot.slane %v3172_v54, %v2839_v29  ;;  %v2929_v51 = vsel %vm2879_vm2, %v2919_v61, %v2928_v25 }
 0x7f0   : > { %v2815_v50 = vpop.xlane.xlu1 %2814 }
 0x7f1   : > { %v3173_v0 = vadd.f32 -1e+08, %v2815_v50  ;;  %v2923_v44 = vrot.slane %v2815_v50, %v2839_v29  ;;  %v2880_v3 = vsel %vm2879_vm2, %v2864_v59, %v2878_v1 }
 0x7f3   : > { %v2868_v55 = vrot.slane %v3173_v0, %v2839_v29  ;;  %v2930_v20 = vsel %vm2881_vm3, %v2923_v44, %v2929_v51 }
 0x7f5   : > { %v2882_v5 = vsel %vm2881_vm3, %v2868_v55, %v2880_v3 }
 0x7f6   : > { %v2932_v8 = vsel %vm2820_vm4, %v2882_v5, %v2930_v20 }
 0x7f7   : > { %v2933_v7 = vsel %vm687_vm1, %v2932_v8, -inf }
 0x7f8   : > { %2934 = vmax.xlane.f32.xlu1 %v2933_v7 }
 0x885   : > { %v2935_v9 = vpop.xlane.xlu1 %2934 }
 0x886   : > { %v2936_v12 = vsub.f32 %v2932_v8, %v2935_v9 }
 0x888   : > { %v2937_v4 = vmul.f32 1.442695, %v2936_v12 }
 0x88a   : > { %3305 = vpow2.f32 %v2937_v4 }
 0x894   : > { %v3306_v13 = vpop.eup %3305 }
 0x895   : > { %v2939_v6 = vsel %vm687_vm1, %v3306_v13, 0.0 }
 0x896   : > { %2940 = vadd.xlane.f32.xlu1 %v2939_v6 }
 0x923   : > { %v2941_v15 = vpop.xlane.xlu1 %2940 }
 0x924   : > { %3307 = vrcp.f32 %v2941_v15 }
 0x92e   : > { %v3308_v19 = vpop.eup %3307 }
 0x92f   : > { %v2943_v33 = vmul.f32 %v3308_v19, %v3306_v13 }
 0x931   : > { %v2944_v46 = vpack.c.bf16 %v2943_v33, %v2943_v33 }
 0x933   : > { %3271 = vmatmul.mubr.msk.bf16.vlgmr.msra.gmra.mrb[16].mxu1 %vm687_vm1, %v2944_v46 }
 0x934   : > { %3276 = vmatprep.mubr.msk.bf16.mxu1 %vm3321_vm5, %v3320_v18  ;;  %3275 = vmatpush3.bf16.msra.mxu1 %v3300_v17 }
 0xa06   : > { %v2985_v21 = vpop.f32.mrb[16].mxu1 }
 0xa07   : > { %2992 = vrot.lane.b32.xlu1 %v2985_v21, %s3322_s2  ;;  %v3272_v22 = vpop.f32.mrb[17].mxu1 }
 0xa08   : > { %v2988_v60 = vpop.f32.mrb[18].mxu1 }
 0xa09   : > { %v3273_v24 = vpop.f32.mrb[19].mxu1 }
 0xa79   : > { %v2993_v31 = vpop.permute.xlu1 %2992 }
 0xa7a   : > { %v2995_v27 = vsel %vm687_vm1, %v3309_v14, %v2993_v31  ;;  %vm3067_vm1 = vcmask 31744  }
 0xa7b   : > { %v2996_v28 = vpack.c.bf16 %v2995_v27, %v2995_v27 }
 0xa7d   : > { %3277 = vmatmul.mubr.msk.bf16.vlgmr.msra.gmra.mrb[20].mxu1 %vm835_vm6, %v2996_v28 }
 0xb50   : > { %v3042_v29 = vpop.f32.mrb[20].mxu1 }
 0xb51   : > { %v3055_v11 = vmul.f32 %v3177_v10, %v3042_v29  ;;  %v3278_v32 = vpop.f32.mrb[21].mxu1 }
 0xb52   : > { %v3045_v34 = vpop.f32.mrb[22].mxu1 }
 0xb53   : > { %v3063_v36 = vadd.f32 %v3178_v30, %v3055_v11  ;;  %v3279_v37 = vpop.f32.mrb[23].mxu1 }
 0xb55   : > { %vm3064_vm0 = vcmp.gt.f32.partialorder %v3063_v36, 0.0  ;;  %v3065_v26 = vmul.f32 0.01, %v3063_v36 }
 0xb57   : > { %v3066_v23 = vsel %vm3064_vm0, %v3063_v36, %v3065_v26 }
 0xb58   : > { %3068 = vst.msk [vmem:[%s572_s20] sm:$0xff] %vm3067_vm1, %v3066_v23 }
 0xb59 PF: > { %s30_s29 = sadd.s32 1, %s3316_s29  }
 0xb5a   : > { %p27_p4 = scmp.ge.s32.totalorder %s30_s29, 4  }
 0xb5c   :  { %29 = sbr.rel (!%p27_p4) target bundleno = 4 (0x4), region = 122 }

// kernel: gnn_forward.5
= control target key start
LH: loop header
LB: loop body
LE: loop exit
PB: predicated region body
PF: predicated region fallthrough
CT: control target
= control target key end

     0   :  { %s3952_s29 = smov 0   ;;  %s4880_s0 = inlined_call_operand.vmem [shape: f32[2,8,16], index: 0, kind: input, shape index: {}]   ;;  %s4881_s1 = inlined_call_operand.vmem [shape: bf16[16,24], index: 1, kind: input, shape index: {}]   ;;  %s4882_s2 = inlined_call_operand.vmem [shape: f32[1,24], index: 2, kind: input, shape index: {}]   ;;  %s4883_s3 = inlined_call_operand.vmem [shape: f32[1,24], index: 3, kind: input, shape index: {}]   ;;  %s4884_s4 = inlined_call_operand.vmem [shape: bf16[24,18], index: 4, kind: input, shape index: {}]   ;;  %s4885_s5 = inlined_call_operand.vmem [shape: f32[1,18], index: 5, kind: input, shape index: {}]   ;;  %s4886_s6 = inlined_call_operand.vmem [shape: f32[1,18], index: 6, kind: input, shape index: {}]   ;;  %s4887_s7 = inlined_call_operand.vmem [shape: bf16[18,12], index: 7, kind: input, shape index: {}]   ;;  %s4888_s8 = inlined_call_operand.vmem [shape: f32[1,12], index: 8, kind: input, shape index: {}]   ;;  %s4889_s9 = inlined_call_operand.vmem [shape: f32[1,12], index: 9, kind: input, shape index: {}]   ;;  %s4890_s10 = inlined_call_operand.vmem [shape: bf16[12,12], index: 10, kind: input, shape index: {}]   ;;  %s4891_s11 = inlined_call_operand.vmem [shape: f32[1,12], index: 11, kind: input, shape index: {}]   ;;  %s4892_s12 = inlined_call_operand.vmem [shape: f32[1,12], index: 12, kind: input, shape index: {}]   ;;  %s4893_s13 = inlined_call_operand.<no memory space> [shape: f32[1,1], index: 13, kind: input, shape index: {}]   ;;  %s4894_s14 = inlined_call_operand.vmem [shape: f32[1,12], index: 14, kind: input, shape index: {}]   ;;  %s4895_s15 = inlined_call_operand.vmem [shape: bf16[32,4], index: 15, kind: input, shape index: {}]   ;;  %s4896_s16 = inlined_call_operand.vmem [shape: f32[1,4], index: 16, kind: input, shape index: {}]   ;;  %s4897_s17 = inlined_call_operand.vmem [shape: f32[1,4], index: 17, kind: input, shape index: {}]   ;;  %s4898_s18 = inlined_call_operand.vmem [shape: f32[2,8,4], index: 18, kind: output, shape index: {}]  }
   0x1   :  { %4915 = sst [smem:[#allocation36_spill]] %s4880_s0  ;;  %v23_v0 = vstv %s4893_s13 }
   0x2   :  { %4916 = sst [smem:[#allocation37_spill]] %s4881_s1  ;;  %24 = vst [vmem:[#allocation2] sm:$0x1] %v23_v0 }
   0x3   :  { %4917 = sst [smem:[#allocation38_spill]] %s4882_s2 }
   0x4 LB: > { %s3619_s30 = sadd.s32 4294967295, %s3847_s29   ;;  %p3623_p0 = scmp.ge.s32.totalorder %s3847_s29, 1  ;;  %s3847_s29 = sphi %s3952_s29, %s30_s29  }
   0x5   : > { %p513_p1 = scmp.lt.s32.totalorder %s3847_s29, 3 }
   0x7   : > { %p514_p2 = pnand %p3623_p0, %p513_p1 }
   0x9   : > { %517 = sbr.rel (%p514_p2) target bundleno = 3037 (0xbdd), region = 92 }
  0x10   : > { %s4918_s1 = sld [smem:[#allocation37_spill]]  ;;  %p565_p3 = scmp.lt.s32.totalorder %s3619_s30, 1  ;;  %v4899_v2 = vlaneseq  ;;  %v3849_v3 = vmov 1966171168   ;;  %vm694_vm0 = vcmask 130048   ;;  %v3821_v51 = vld [vmem:[%s4884_s4] sm:$0xff]  }
  0x11   : > { %v579_v4 = vunpack.c.l.s4 %v3849_v3  ;;  %s4920_s22 = sld [smem:[#allocation36_spill]]  ;;  %3731 = vmatprep.subr.bf16.mxu1 %v3821_v51  ;;  %v3822_v52 = vld [vmem:[%s4884_s4 + $0x8] ss:$0 sps:$4 sm:$0xff]   ;;  %vm855_vm1 = vcmask 1043456   ;;  %s4921_s0 = sld [smem:[#allocation38_spill]]  ;;  %vm842_vm6 = vcmask 195584  }
  0x12   : > { %s4993_s30 = smov (!%p565_p3, %s3619_s30), 1  ;;  %v3966_v5 = vshrl.u32 %v4899_v2, 7  ;;  %3732 = vmatpush3.bf16.msra.mxu1 %v3821_v51  ;;  %v857_v53 = vsel %vm855_vm1, %v3822_v52, 0  ;;  %v3632_v56 = vld [vmem:[%s4883_s3] ss:$0 sm:$0xff]  ;;  %vm1007_vm11 = vcmask 1040384  }
  0x13   : > { %s3624_s13 = sshll.u32 %s4993_s30, 3  ;;  %v580_v6 = vunpack.c.0.s8 %v579_v4  ;;  %3801 = vmatprep.subr.msk.bf16.mxu1 %vm855_vm1, %v3822_v52 }
  0x14   : > { %4919 = vst [vmem:[#allocation3_spill] sm:$0xff] %v3966_v5  ;;  %v3982_v11 = vsub.s32 0, %v3966_v5  ;;  %s572_s26 = scalar_lea.vmem %s4898_s18, %s3624_s13 }
  0x15   : > { %v3978_v8 = vsub.s32 %v580_v6, %v3966_v5 }
  0x16   : > { %v3819_v1 = vld [vmem:[%s4918_s1] sm:$0xff]   ;;  %3734 = vmatpush3.bf16.msra.mxu1 %v857_v53  ;;  %s3853_s1 = smov 16  }
  0x17   : > { %3721 = vmatprep.subr.bf16.mxu0 %v3819_v1  ;;  %s3974_s2 = scalar_lea.vmem %s4920_s22, %s3624_s13  ;;  %v3631_v54 = vld [vmem:[%s4921_s0] ss:$0 sm:$0xff] }
  0x18   : > { %3722 = vmatpush3.bf16.msra.mxu0 %v3819_v1  ;;  %v574_v7 = vld [vmem:[%s3974_s2] sm:$0xff] }
  0x19   : > { %v577_v9 = vcombine.high %v574_v7, %v574_v7  ;;  %v584_v10 = vrot.slane %v574_v7, %v3978_v8 }
  0x1b   : > { %v591_v12 = vrot.slane %v577_v9, %v3978_v8  ;;  %v592_v13 = vcombine.high %v584_v10, %v584_v10  ;;  %v600_v14 = vrot.slane %v584_v10, %v3978_v8 }
  0x1d   : > { %v593_v15 = vcombine.high %v591_v12, %v591_v12  ;;  %v607_v16 = vrot.slane %v591_v12, %v3978_v8  ;;  %v614_v17 = vrot.slane %v592_v13, %v3978_v8  ;;  %v622_v18 = vcombine.high %v600_v14, %v600_v14 }
  0x1e   : > { %v629_v19 = vrot.slane %v600_v14, %v3982_v11 }
  0x1f   : > { %v621_v20 = vrot.slane %v593_v15, %v3978_v8  ;;  %v645_v21 = vrot.slane %v607_v16, %v3982_v11  ;;  %v623_v22 = vcombine.high %v607_v16, %v607_v16  ;;  %v624_v23 = vcombine.high %v614_v17, %v614_v17 }
  0x20   : > { %v633_v24 = vrot.slane %v614_v17, %v3982_v11  ;;  %v666_v25 = vsub.f32 %v629_v19, %v574_v7  ;;  %v637_v26 = vrot.slane %v622_v18, %v3982_v11 }
  0x21   : > { %v649_v27 = vrot.slane %v621_v20, %v3982_v11  ;;  %v670_v28 = vsub.f32 %v645_v21, %v574_v7  ;;  %v625_v29 = vcombine.high %v621_v20, %v621_v20  ;;  %v653_v30 = vrot.slane %v623_v22, %v3982_v11 }
  0x22   : > { %v667_v31 = vsub.f32 %v633_v24, %v574_v7  ;;  %v674_v32 = vand.u32 2147483647, %v666_v25  ;;  %v641_v33 = vrot.slane %v624_v23, %v3982_v11  ;;  %v668_v34 = vsub.f32 %v637_v26, %v574_v7 }
  0x23   : > { %v671_v35 = vsub.f32 %v649_v27, %v574_v7  ;;  %v678_v36 = vand.u32 2147483647, %v670_v28  ;;  %v657_v37 = vrot.slane %v625_v29, %v3982_v11  ;;  %v672_v44 = vsub.f32 %v653_v30, %v574_v7 }
  0x24   : > { %v675_v38 = vand.u32 2147483647, %v667_v31  ;;  %v669_v39 = vsub.f32 %v641_v33, %v574_v7  ;;  %v676_v40 = vand.u32 2147483647, %v668_v34 }
  0x25   : > { %v679_v41 = vand.u32 2147483647, %v671_v35  ;;  %v673_v45 = vsub.f32 %v657_v37, %v574_v7  ;;  %v680_v48 = vand.u32 2147483647, %v672_v44 }
  0x26   : > { %v682_v42 = vpack.c.bf16 %v675_v38, %v674_v32  ;;  %v677_v43 = vand.u32 2147483647, %v669_v39 }
  0x27   : > { %v684_v46 = vpack.c.bf16 %v679_v41, %v678_v36  ;;  %v681_v49 = vand.u32 2147483647, %v673_v45  ;;  %v3824_v41 = vld [vmem:[%s4887_s7 + $0x8] ss:$0 sps:$4 sm:$0x11]  }
  0x28   : > { %3723 = vmatprep.mubr.msk.bf16.mxu0 %vm694_vm0, %v682_v42  ;;  %v683_v47 = vpack.c.bf16 %v677_v43, %v676_v40  ;;  %v3823_v40 = vld [vmem:[%s4887_s7] sm:$0xff]   ;;  %v1009_v42 = vsel %vm1007_vm11, %v3824_v41, 0 }
  0x29   : > { %v685_v50 = vpack.c.bf16 %v681_v49, %v680_v48  ;;  %3743 = vmatprep.subr.bf16.mxu0 %v3823_v40  ;;  %v3639_v43 = vld [vmem:[%s4885_s5] ss:$0 sm:$0xff] }
  0x2a   : > { %3724 = vmatmul.mubr.msk.bf16.vlgmr.msra.gmra.mrb[0].mxu0 %vm694_vm0, %v683_v47  ;;  %v3640_v45 = vld [vmem:[%s4886_s6] ss:$0 sm:$0xff] }
  0x2b   : > { %3727 = vmatprep.mubr.msk.bf16.mxu0 %vm694_vm0, %v684_v46  ;;  %3744 = vmatpush3.bf16.msra.mxu0 %v3823_v40 }
  0x2c   : > { %3802 = vmatprep.subr.msk.bf16.mxu0 %vm1007_vm11, %v3824_v41 }
  0x2f   : > { %3746 = vmatpush3.bf16.msra.mxu0 %v1009_v42 }
  0x32   : > { %3728 = vmatmul.mubr.msk.bf16.gmra.mrb[4].mxu0 %vm694_vm0, %v685_v50 }
  0xfd   : > { %v3725_v55 = vpop.f32.mrb[0].mxu0 }
  0xfe   : > { %v781_v57 = vmul.f32 %v3725_v55, %v3631_v54  ;;  %v741_v58 = vpop.f32.mrb[1].mxu0 }
  0xff   : > { %v779_v59 = vmul.f32 %v3631_v54, %v741_v58  ;;  %v3726_v60 = vpop.f32.mrb[2].mxu0 }
 0x100   : > { %v796_v61 = vadd.f32 %v3632_v56, %v781_v57  ;;  %v782_v62 = vmul.f32 %v3726_v60, %v3631_v54  ;;  %v744_v63 = vpop.f32.mrb[3].mxu0 }
 0x101   : > { %v794_v0 = vadd.f32 %v3632_v56, %v779_v59  ;;  %v780_v1 = vmul.f32 %v3631_v54, %v744_v63 }
 0x102   : > { %v812_v3 = vmul.f32 0.01, %v796_v61  ;;  %v797_v4 = vadd.f32 %v3632_v56, %v782_v62  ;;  %vm804_vm2 = vcmp.gt.f32.partialorder %v796_v61, 0.0 }
 0x103   : > { %v795_v6 = vadd.f32 %v3632_v56, %v780_v1  ;;  %v810_v7 = vmul.f32 0.01, %v794_v0  ;;  %vm802_vm4 = vcmp.gt.f32.partialorder %v794_v0, 0.0 }
 0x104   : > { %vm805_vm3 = vcmp.gt.f32.partialorder %v797_v4, 0.0  ;;  %v813_v9 = vmul.f32 0.01, %v797_v4  ;;  %v820_v13 = vsel %vm804_vm2, %v796_v61, %v812_v3  ;;  %vm994_vm2 = vcmask 146432  }
 0x105   : > { %vm803_vm5 = vcmp.gt.f32.partialorder %v795_v6, 0.0  ;;  %v811_v10 = vmul.f32 0.01, %v795_v6  ;;  %v3729_v12 = vpop.f32.mrb[4].mxu0  ;;  %v818_v17 = vsel %vm802_vm4, %v794_v0, %v810_v7 }
 0x106   : > { %v821_v14 = vsel %vm805_vm3, %v797_v4, %v813_v9  ;;  %v785_v15 = vmul.f32 %v3729_v12, %v3631_v54  ;;  %v757_v16 = vpop.f32.mrb[5].mxu0 }
 0x107   : > { %v819_v18 = vsel %vm803_vm5, %v795_v6, %v811_v10  ;;  %v827_v19 = vpack.c.bf16 %v821_v14, %v820_v13  ;;  %v783_v20 = vmul.f32 %v3631_v54, %v757_v16  ;;  %v3730_v21 = vpop.f32.mrb[6].mxu0 }
 0x108   : > { %v826_v22 = vpack.c.bf16 %v819_v18, %v818_v17  ;;  %v800_v23 = vadd.f32 %v3632_v56, %v785_v15  ;;  %v786_v24 = vmul.f32 %v3730_v21, %v3631_v54  ;;  %v760_v25 = vpop.f32.mrb[7].mxu0 }
 0x109   : > { %v798_v26 = vadd.f32 %v3632_v56, %v783_v20  ;;  %v784_v27 = vmul.f32 %v3631_v54, %v760_v25 }
 0x10a   : > { %3735 = vmatprep.mubr.msk.bf16.mxu1 %vm842_vm6, %v826_v22  ;;  %vm808_vm7 = vcmp.gt.f32.partialorder %v800_v23, 0.0  ;;  %v816_v28 = vmul.f32 0.01, %v800_v23  ;;  %v801_v29 = vadd.f32 %v3632_v56, %v786_v24 }
 0x10b   : > { %3736 = vmatmul.mubr.msk.bf16.vlgmr.msra.gmra.mrb[0].mxu1 %vm842_vm6, %v827_v19  ;;  %vm806_vm8 = vcmp.gt.f32.partialorder %v798_v26, 0.0  ;;  %v814_v30 = vmul.f32 0.01, %v798_v26  ;;  %v799_v31 = vadd.f32 %v3632_v56, %v784_v27 }
 0x10c   : > { %v824_v32 = vsel %vm808_vm7, %v800_v23, %v816_v28  ;;  %vm809_vm9 = vcmp.gt.f32.partialorder %v801_v29, 0.0  ;;  %v817_v33 = vmul.f32 0.01, %v801_v29  ;;  %vm1154_vm7 = vcmask 1045504  }
 0x10d   : > { %v822_v34 = vsel %vm806_vm8, %v798_v26, %v814_v30  ;;  %vm807_vm10 = vcmp.gt.f32.partialorder %v799_v31, 0.0  ;;  %v815_v35 = vmul.f32 0.01, %v799_v31 }
 0x10e   : > { %v825_v36 = vsel %vm809_vm9, %v801_v29, %v817_v33  ;;  %v3825_v29 = vld [vmem:[%s4890_s10] sm:$0x3f]  }
 0x10f   : > { %v823_v37 = vsel %vm807_vm10, %v799_v31, %v815_v35  ;;  %v829_v38 = vpack.c.bf16 %v825_v36, %v824_v32  ;;  %3803 = vmatprep.subr.msk.bf16.mxu1 %vm1154_vm7, %v3825_v29  ;;  %v1156_v30 = vsel %vm1154_vm7, %v3825_v29, 0  ;;  %v3647_v31 = vld [vmem:[%s4888_s8] ss:$0 sm:$0xff] }
 0x110   : > { %v828_v39 = vpack.c.bf16 %v823_v37, %v822_v34  ;;  %3756 = vmatpush3.bf16.msra.mxu1 %v1156_v30  ;;  %v3648_v33 = vld [vmem:[%s4889_s9] ss:$0 sm:$0xff] }
 0x112   : > { %3739 = vmatprep.mubr.msk.bf16.mxu1 %vm842_vm6, %v828_v39 }
 0x113   : > { %3740 = vmatmul.mubr.msk.bf16.gmra.mrb[4].mxu1 %vm842_vm6, %v829_v38 }
 0x1de   : > { %v3737_v44 = vpop.f32.mrb[0].mxu1 }
 0x1df   : > { %v933_v46 = vmul.f32 %v3737_v44, %v3639_v43  ;;  %v893_v47 = vpop.f32.mrb[1].mxu1 }
 0x1e0   : > { %v931_v48 = vmul.f32 %v3639_v43, %v893_v47  ;;  %v3738_v49 = vpop.f32.mrb[2].mxu1 }
 0x1e1   : > { %v948_v50 = vadd.f32 %v3640_v45, %v933_v46  ;;  %v934_v51 = vmul.f32 %v3738_v49, %v3639_v43  ;;  %v896_v52 = vpop.f32.mrb[3].mxu1 }
 0x1e2   : > { %v946_v53 = vadd.f32 %v3640_v45, %v931_v48  ;;  %v932_v54 = vmul.f32 %v3639_v43, %v896_v52 }
 0x1e3   : > { %v964_v55 = vmul.f32 0.01, %v948_v50  ;;  %v949_v56 = vadd.f32 %v3640_v45, %v934_v51  ;;  %vm956_vm12 = vcmp.gt.f32.partialorder %v948_v50, 0.0 }
 0x1e4   : > { %v962_v57 = vmul.f32 0.01, %v946_v53  ;;  %v947_v58 = vadd.f32 %v3640_v45, %v932_v54  ;;  %vm954_vm13 = vcmp.gt.f32.partialorder %v946_v53, 0.0 }
 0x1e5   : > { %vm957_vm14 = vcmp.gt.f32.partialorder %v949_v56, 0.0  ;;  %v965_v59 = vmul.f32 0.01, %v949_v56  ;;  %v972_v62 = vsel %vm956_vm12, %v948_v50, %v964_v55  ;;  %vm1141_vm12 = vcmask 97280  }
 0x1e6   : > { %vm955_vm15 = vcmp.gt.f32.partialorder %v947_v58, 0.0  ;;  %v963_v60 = vmul.f32 0.01, %v947_v58  ;;  %v3741_v61 = vpop.f32.mrb[4].mxu1  ;;  %v970_v3 = vsel %vm954_vm13, %v946_v53, %v962_v57 }
 0x1e7   : > { %v973_v63 = vsel %vm957_vm14, %v949_v56, %v965_v59  ;;  %v937_v0 = vmul.f32 %v3741_v61, %v3639_v43  ;;  %v909_v1 = vpop.f32.mrb[5].mxu1 }
 0x1e8   : > { %v979_v4 = vpack.c.bf16 %v973_v63, %v972_v62  ;;  %v971_v6 = vsel %vm955_vm15, %v947_v58, %v963_v60  ;;  %v935_v7 = vmul.f32 %v3639_v43, %v909_v1  ;;  %v3742_v9 = vpop.f32.mrb[6].mxu1 }
 0x1e9   : > { %v978_v10 = vpack.c.bf16 %v971_v6, %v970_v3  ;;  %v952_v12 = vadd.f32 %v3640_v45, %v937_v0  ;;  %v938_v13 = vmul.f32 %v3742_v9, %v3639_v43  ;;  %v912_v14 = vpop.f32.mrb[7].mxu1 }
 0x1ea   : > { %v950_v15 = vadd.f32 %v3640_v45, %v935_v7  ;;  %v936_v16 = vmul.f32 %v3639_v43, %v912_v14 }
 0x1eb   : > { %3747 = vmatprep.mubr.msk.bf16.mxu0 %vm994_vm2, %v978_v10  ;;  %vm960_vm3 = vcmp.gt.f32.partialorder %v952_v12, 0.0  ;;  %v968_v17 = vmul.f32 0.01, %v952_v12  ;;  %v953_v18 = vadd.f32 %v3640_v45, %v938_v13 }
 0x1ec   : > { %3748 = vmatmul.mubr.msk.bf16.vlgmr.msra.gmra.mrb[8].mxu0 %vm994_vm2, %v979_v4  ;;  %vm958_vm4 = vcmp.gt.f32.partialorder %v950_v15, 0.0  ;;  %v966_v19 = vmul.f32 0.01, %v950_v15  ;;  %v951_v20 = vadd.f32 %v3640_v45, %v936_v16 }
 0x1ed   : > { %v976_v21 = vsel %vm960_vm3, %v952_v12, %v968_v17  ;;  %vm961_vm5 = vcmp.gt.f32.partialorder %v953_v18, 0.0  ;;  %v969_v22 = vmul.f32 0.01, %v953_v18  ;;  %v3654_v17 = vld [vmem:[%s4891_s11] ss:$0 sm:$0xff] }
 0x1ee   : > { %v974_v23 = vsel %vm958_vm4, %v950_v15, %v966_v19  ;;  %vm959_vm6 = vcmp.gt.f32.partialorder %v951_v20, 0.0  ;;  %v967_v24 = vmul.f32 0.01, %v951_v20  ;;  %v3655_v19 = vld [vmem:[%s4892_s12] ss:$0 sm:$0xff] }
 0x1ef   : > { %v977_v25 = vsel %vm961_vm5, %v953_v18, %v969_v22 }
 0x1f0   : > { %v975_v26 = vsel %vm959_vm6, %v951_v20, %v967_v24  ;;  %v981_v27 = vpack.c.bf16 %v977_v25, %v976_v21 }
 0x1f1   : > { %v980_v28 = vpack.c.bf16 %v975_v26, %v974_v23 }
 0x1f3   : > { %3751 = vmatprep.mubr.msk.bf16.mxu0 %vm994_vm2, %v980_v28 }
 0x1f4   : > { %3752 = vmatmul.mubr.msk.bf16.gmra.mrb[12].mxu0 %vm994_vm2, %v981_v27 }
 0x2bf   : > { %v3749_v32 = vpop.f32.mrb[8].mxu0 }
 0x2c0   : > { %v1085_v34 = vmul.f32 %v3749_v32, %v3647_v31  ;;  %v1045_v35 = vpop.f32.mrb[9].mxu0 }
 0x2c1   : > { %v1083_v36 = vmul.f32 %v3647_v31, %v1045_v35  ;;  %v3750_v37 = vpop.f32.mrb[10].mxu0 }
 0x2c2   : > { %v1100_v38 = vadd.f32 %v3648_v33, %v1085_v34  ;;  %v1086_v39 = vmul.f32 %v3750_v37, %v3647_v31  ;;  %v1048_v40 = vpop.f32.mrb[11].mxu0 }
 0x2c3   : > { %v1098_v41 = vadd.f32 %v3648_v33, %v1083_v36  ;;  %v1084_v42 = vmul.f32 %v3647_v31, %v1048_v40  ;;  %v4065_v36 = vsub.s32 1, %v3966_v5 }
 0x2c4   : > { %v1116_v43 = vmul.f32 0.01, %v1100_v38  ;;  %v1101_v44 = vadd.f32 %v3648_v33, %v1086_v39  ;;  %vm1108_vm8 = vcmp.gt.f32.partialorder %v1100_v38, 0.0 }
 0x2c5   : > { %v1114_v45 = vmul.f32 0.01, %v1098_v41  ;;  %v1099_v46 = vadd.f32 %v3648_v33, %v1084_v42  ;;  %vm1106_vm9 = vcmp.gt.f32.partialorder %v1098_v41, 0.0  ;;  %v4072_v42 = vsub.s32 2, %v3966_v5 }
 0x2c6   : > { %vm1109_vm10 = vcmp.gt.f32.partialorder %v1101_v44, 0.0  ;;  %v1117_v47 = vmul.f32 0.01, %v1101_v44  ;;  %v1124_v50 = vsel %vm1108_vm8, %v1100_v38, %v1116_v43  ;;  %v4075_v43 = vsub.s32 3, %v3966_v5 }
 0x2c7   : > { %vm1107_vm11 = vcmp.gt.f32.partialorder %v1099_v46, 0.0  ;;  %v1115_v48 = vmul.f32 0.01, %v1099_v46  ;;  %v3753_v49 = vpop.f32.mrb[12].mxu0  ;;  %v1122_v54 = vsel %vm1106_vm9, %v1098_v41, %v1114_v45 }
 0x2c8   : > { %v1125_v51 = vsel %vm1109_vm10, %v1101_v44, %v1117_v47  ;;  %v1089_v52 = vmul.f32 %v3753_v49, %v3647_v31  ;;  %v1061_v53 = vpop.f32.mrb[13].mxu0 }
 0x2c9   : > { %v1131_v55 = vpack.c.bf16 %v1125_v51, %v1124_v50  ;;  %v1123_v56 = vsel %vm1107_vm11, %v1099_v46, %v1115_v48  ;;  %v1087_v57 = vmul.f32 %v3647_v31, %v1061_v53  ;;  %v3754_v58 = vpop.f32.mrb[14].mxu0  ;;  %vm2956_vm11 = vcmask 93184  }
 0x2ca   : > { %v1130_v59 = vpack.c.bf16 %v1123_v56, %v1122_v54  ;;  %v1104_v60 = vadd.f32 %v3648_v33, %v1089_v52  ;;  %v1090_v61 = vmul.f32 %v3754_v58, %v3647_v31  ;;  %v1064_v62 = vpop.f32.mrb[15].mxu0  ;;  %v4090_v54 = vsub.s32 4, %v3966_v5 }
 0x2cb   : > { %v1102_v63 = vadd.f32 %v3648_v33, %v1087_v57  ;;  %v1088_v0 = vmul.f32 %v3647_v31, %v1064_v62  ;;  %v4095_v56 = vsub.s32 5, %v3966_v5  ;;  %v4100_v58 = vsub.s32 6, %v3966_v5 }
 0x2cc   : > { %3757 = vmatprep.mubr.msk.bf16.mxu1 %vm1141_vm12, %v1130_v59  ;;  %vm1112_vm13 = vcmp.gt.f32.partialorder %v1104_v60, 0.0  ;;  %v1120_v1 = vmul.f32 0.01, %v1104_v60  ;;  %v1105_v3 = vadd.f32 %v3648_v33, %v1090_v61 }
 0x2cd   : > { %3758 = vmatmul.mubr.msk.bf16.vlgmr.msra.gmra.mrb[8].mxu1 %vm1141_vm12, %v1131_v55  ;;  %vm1110_vm14 = vcmp.gt.f32.partialorder %v1102_v63, 0.0  ;;  %v1118_v4 = vmul.f32 0.01, %v1102_v63  ;;  %v1103_v6 = vadd.f32 %v3648_v33, %v1088_v0 }
 0x2ce   : > { %v1128_v7 = vsel %vm1112_vm13, %v1104_v60, %v1120_v1  ;;  %vm1113_vm15 = vcmp.gt.f32.partialorder %v1105_v3, 0.0  ;;  %v1121_v9 = vmul.f32 0.01, %v1105_v3  ;;  %v4105_v60 = vsub.s32 7, %v3966_v5  ;;  %vm3796_vm13 = vmpackc.low %vm1141_vm12, %vm1141_vm12 }
 0x2cf   : > { %v1126_v10 = vsel %vm1110_vm14, %v1102_v63, %v1118_v4  ;;  %vm1111_vm2 = vcmp.gt.f32.partialorder %v1103_v6, 0.0  ;;  %v1119_v12 = vmul.f32 0.01, %v1103_v6  ;;  %vm3359_vm14 = vcmask 1041409  }
 0x2d0   : > { %v1129_v13 = vsel %vm1113_vm15, %v1105_v3, %v1121_v9  ;;  %4923 = vst [vmem:[#allocation5_spill] sm:$0xff] %v4105_v60  ;;  %vm3361_vm15 = vcmask 1042434  }
 0x2d1   : > { %v1127_v14 = vsel %vm1111_vm2, %v1103_v6, %v1119_v12  ;;  %v1133_v15 = vpack.c.bf16 %v1129_v13, %v1128_v7  ;;  %vm3365_vm2 = vcmask 1044484  }
 0x2d2   : > { %v1132_v16 = vpack.c.bf16 %v1127_v14, %v1126_v10 }
 0x2d4   : > { %3761 = vmatprep.mubr.msk.bf16.mxu1 %vm1141_vm12, %v1132_v16 }
 0x2d5   : > { %3762 = vmatmul.mubr.msk.bf16.gmra.mrb[12].mxu1 %vm1141_vm12, %v1133_v15 }
 0x3a0   : > { %v3759_v18 = vpop.f32.mrb[8].mxu1 }
 0x3a1   : > { %v1232_v20 = vmul.f32 %v3759_v18, %v3654_v17  ;;  %v1192_v21 = vpop.f32.mrb[9].mxu1 }
 0x3a2   : > { %v1230_v22 = vmul.f32 %v3654_v17, %v1192_v21  ;;  %v3760_v23 = vpop.f32.mrb[10].mxu1 }
 0x3a3   : > { %v1247_v24 = vadd.f32 %v3655_v19, %v1232_v20  ;;  %v1233_v25 = vmul.f32 %v3760_v23, %v3654_v17  ;;  %v1195_v26 = vpop.f32.mrb[11].mxu1 }
 0x3a4   : > { %v1245_v27 = vadd.f32 %v3655_v19, %v1230_v22  ;;  %v1231_v28 = vmul.f32 %v3654_v17, %v1195_v26 }
 0x3a5   : > { %vm1255_vm3 = vcmp.gt.f32.partialorder %v1247_v24, 0.0  ;;  %v1263_v29 = vmul.f32 0.01, %v1247_v24  ;;  %v4054_v30 = vadd.f32 %v3655_v19, %v1233_v25 }
 0x3a6   : > { %vm1253_vm4 = vcmp.gt.f32.partialorder %v1245_v27, 0.0  ;;  %v1261_v31 = vmul.f32 0.01, %v1245_v27  ;;  %v4056_v32 = vadd.f32 %v3655_v19, %v1231_v28 }
 0x3a7   : > { %v4058_v33 = vsel %vm1255_vm3, %v1247_v24, %v1263_v29  ;;  %v1264_v7 = vmul.f32 0.01, %v4054_v30  ;;  %vm1256_vm5 = vcmp.gt.f32.partialorder %v4054_v30, 0.0  ;;  %vm3367_vm3 = vcmask 1045509  }
 0x3a8   : > { %v4060_v34 = vsel %vm1253_vm4, %v1245_v27, %v1261_v31  ;;  %v1456_v35 = vrot.slane %v4058_v33, %v3982_v11  ;;  %v3763_v37 = vpop.f32.mrb[12].mxu1  ;;  %v1467_v41 = vrot.slane %v4058_v33, %v4065_v36  ;;  %v1478_v45 = vrot.slane %v4058_v33, %v4072_v42 }
 0x3a9   : > { %4922 = vst [vmem:[#allocation4_spill] sm:$0xff] %v4060_v34  ;;  %3769 = vmatprep.mubr.msk.f32.mxu0 %vm1141_vm12, %v4060_v34  ;;  %v1208_v38 = vpop.f32.mrb[13].mxu1  ;;  %v1236_v44 = vmul.f32 %v3763_v37, %v3654_v17  ;;  %v1489_v53 = vrot.slane %v4058_v33, %v4075_v43  ;;  %v1500_v55 = vrot.slane %v4058_v33, %v4090_v54  ;;  %vm1254_vm6 = vcmp.gt.f32.partialorder %v4056_v32, 0.0 }
 0x3aa   : > { %1462 = vbcast.lane.b32.xlu1 %v1456_v35, 264  ;;  %1458 = vbcast.lane.b32.xlu0 %v1456_v35, 256  ;;  %v3764_v39 = vpop.f32.mrb[14].mxu1  ;;  %v1234_v46 = vmul.f32 %v3654_v17, %v1208_v38  ;;  %v1511_v57 = vrot.slane %v4058_v33, %v4095_v56  ;;  %v1522_v59 = vrot.slane %v4058_v33, %v4100_v58  ;;  %vm3369_vm4 = vcmask 1046534  }
 0x3ab   : > { %v1211_v40 = vpop.f32.mrb[15].mxu1  ;;  %v1237_v47 = vmul.f32 %v3764_v39, %v3654_v17  ;;  %v4079_v49 = vadd.f32 %v3655_v19, %v1236_v44  ;;  %v1533_v61 = vrot.slane %v4058_v33, %v4105_v60  ;;  %v1291_v62 = vrot.slane %v4060_v34, %v4065_v36 }
 0x3ac   : > { %v1235_v48 = vmul.f32 %v3654_v17, %v1211_v40  ;;  %v4081_v50 = vadd.f32 %v3655_v19, %v1234_v46  ;;  %v1280_v63 = vrot.slane %v4060_v34, %v3982_v11  ;;  %v1302_v0 = vrot.slane %v4060_v34, %v4072_v42 }
 0x3ad   : > { %v4083_v51 = vadd.f32 %v3655_v19, %v1237_v47  ;;  %v1313_v1 = vrot.slane %v4060_v34, %v4075_v43  ;;  %v1324_v3 = vrot.slane %v4060_v34, %v4090_v54  ;;  %v1335_v4 = vrot.slane %v4060_v34, %v4095_v56 }
 0x3ae   : > { %1473 = vbcast.lane.b32.xlu1 %v1467_v41, 264  ;;  %1469 = vbcast.lane.b32.xlu0 %v1467_v41, 256  ;;  %v4085_v52 = vadd.f32 %v3655_v19, %v1235_v48  ;;  %v1346_v6 = vrot.slane %v4060_v34, %v4100_v58  ;;  %v1357_v9 = vrot.slane %v4060_v34, %v4105_v60  ;;  %v1262_v19 = vmul.f32 0.01, %v4056_v32 }
 0x3af   : > { %v4128_v10 = vsel %vm1256_vm5, %v4054_v30, %v1264_v7  ;;  %v1267_v35 = vmul.f32 0.01, %v4079_v49  ;;  %vm1259_vm7 = vcmp.gt.f32.partialorder %v4079_v49, 0.0  ;;  %vm1257_vm8 = vcmp.gt.f32.partialorder %v4081_v50, 0.0 }
 0x3b0   : > { %4924 = vst [vmem:[#allocation6_spill] sm:$0xff] %v4128_v10  ;;  %v1544_v12 = vrot.slane %v4128_v10, %v3982_v11  ;;  %v1555_v13 = vrot.slane %v4128_v10, %v4065_v36  ;;  %v1566_v14 = vrot.slane %v4128_v10, %v4072_v42  ;;  %v1577_v15 = vrot.slane %v4128_v10, %v4075_v43 }
 0x3b1   : > { %v1588_v16 = vrot.slane %v4128_v10, %v4090_v54  ;;  %v1599_v17 = vrot.slane %v4128_v10, %v4095_v56  ;;  %v1610_v18 = vrot.slane %v4128_v10, %v4100_v58  ;;  %v1621_v20 = vrot.slane %v4128_v10, %v4105_v60 }
 0x3b2   : > { %1484 = vbcast.lane.b32.xlu1 %v1478_v45, 264  ;;  %1480 = vbcast.lane.b32.xlu0 %v1478_v45, 256  ;;  %v4149_v21 = vsel %vm1254_vm6, %v4056_v32, %v1262_v19  ;;  %v4182_v40 = vsel %vm1259_vm7, %v4079_v49, %v1267_v35  ;;  %vm1258_vm9 = vcmp.gt.f32.partialorder %v4085_v52, 0.0  ;;  %vm1260_vm10 = vcmp.gt.f32.partialorder %v4083_v51, 0.0 }
 0x3b3   : > { %4925 = vst [vmem:[#allocation7_spill] sm:$0xff] %v4149_v21  ;;  %v1368_v22 = vrot.slane %v4149_v21, %v3982_v11  ;;  %v1379_v23 = vrot.slane %v4149_v21, %v4065_v36  ;;  %v1390_v24 = vrot.slane %v4149_v21, %v4072_v42  ;;  %v1401_v25 = vrot.slane %v4149_v21, %v4075_v43 }
 0x3b4   : > { %v1412_v26 = vrot.slane %v4149_v21, %v4090_v54  ;;  %v1423_v29 = vrot.slane %v4149_v21, %v4095_v56  ;;  %v1434_v32 = vrot.slane %v4149_v21, %v4100_v58  ;;  %v1445_v39 = vrot.slane %v4149_v21, %v4105_v60  ;;  %4927 = vst [vmem:[#allocation9_spill] sm:$0xff] %v4182_v40 }
 0x3b5   : > { %v1808_v45 = vrot.slane %v4182_v40, %v3982_v11  ;;  %v1819_v48 = vrot.slane %v4182_v40, %v4065_v36  ;;  %vm3371_vm5 = vcmask 1047559   ;;  %vm3423_vm7 = vcmask 64512  }
 0x3b6   : > { %1495 = vbcast.lane.b32.xlu1 %v1489_v53, 264  ;;  %1491 = vbcast.lane.b32.xlu0 %v1489_v53, 256 }
 0x3ba   : > { %1506 = vbcast.lane.b32.xlu1 %v1500_v55, 264  ;;  %1502 = vbcast.lane.b32.xlu0 %v1500_v55, 256  ;;  %v1830_v55 = vrot.slane %v4182_v40, %v4072_v42 }
 0x3be   : > { %1517 = vbcast.lane.b32.xlu1 %v1511_v57, 264  ;;  %1513 = vbcast.lane.b32.xlu0 %v1511_v57, 256 }
 0x3c2   : > { %1528 = vbcast.lane.b32.xlu1 %v1522_v59, 264  ;;  %1524 = vbcast.lane.b32.xlu0 %v1522_v59, 256 }
 0x3c6   : > { %1539 = vbcast.lane.b32.xlu1 %v1533_v61, 264  ;;  %1535 = vbcast.lane.b32.xlu0 %v1533_v61, 256  ;;  %v1841_v61 = vrot.slane %v4182_v40, %v4075_v43 }
 0x3ca   : > { %1293 = vbcast.lane.b32.xlu1 %v1291_v62, 256  ;;  %1282 = vbcast.lane.b32.xlu0 %v1280_v63, 256 }
 0x3ce   : > { %1297 = vbcast.lane.b32.xlu1 %v1291_v62, 264  ;;  %1286 = vbcast.lane.b32.xlu0 %v1280_v63, 264 }
 0x3d2   : > { %1308 = vbcast.lane.b32.xlu1 %v1302_v0, 264  ;;  %1304 = vbcast.lane.b32.xlu0 %v1302_v0, 256  ;;  %v1852_v0 = vrot.slane %v4182_v40, %v4090_v54 }
 0x3d6   : > { %1319 = vbcast.lane.b32.xlu1 %v1313_v1, 264  ;;  %1315 = vbcast.lane.b32.xlu0 %v1313_v1, 256 }
 0x3da   : > { %1330 = vbcast.lane.b32.xlu1 %v1324_v3, 264  ;;  %1326 = vbcast.lane.b32.xlu0 %v1324_v3, 256 }
 0x3de   : > { %1341 = vbcast.lane.b32.xlu1 %v1335_v4, 264  ;;  %1337 = vbcast.lane.b32.xlu0 %v1335_v4, 256  ;;  %v1863_v4 = vrot.slane %v4182_v40, %v4095_v56 }
 0x3e2   : > { %1352 = vbcast.lane.b32.xlu1 %v1346_v6, 264  ;;  %1348 = vbcast.lane.b32.xlu0 %v1346_v6, 256 }
 0x3e6   : > { %1363 = vbcast.lane.b32.xlu1 %v1357_v9, 264  ;;  %1359 = vbcast.lane.b32.xlu0 %v1357_v9, 256  ;;  %v1874_v9 = vrot.slane %v4182_v40, %v4100_v58 }
 0x3ea   : > { %1550 = vbcast.lane.b32.xlu1 %v1544_v12, 264  ;;  %1546 = vbcast.lane.b32.xlu0 %v1544_v12, 256  ;;  %v1265_v12 = vmul.f32 0.01, %v4081_v50 }
 0x3ee   : > { %1561 = vbcast.lane.b32.xlu1 %v1555_v13, 264  ;;  %1557 = vbcast.lane.b32.xlu0 %v1555_v13, 256 }
 0x3f2   : > { %1572 = vbcast.lane.b32.xlu1 %v1566_v14, 264  ;;  %1568 = vbcast.lane.b32.xlu0 %v1566_v14, 256 }
 0x3f6   : > { %1583 = vbcast.lane.b32.xlu1 %v1577_v15, 264  ;;  %1579 = vbcast.lane.b32.xlu0 %v1577_v15, 256  ;;  %v1885_v15 = vrot.slane %v4182_v40, %v4105_v60 }
 0x3fa   : > { %1594 = vbcast.lane.b32.xlu1 %v1588_v16, 264  ;;  %1590 = vbcast.lane.b32.xlu0 %v1588_v16, 256  ;;  %v4235_v16 = vsel %vm1257_vm8, %v4081_v50, %v1265_v12  ;;  %v1266_v12 = vmul.f32 0.01, %v4085_v52  ;;  %vm3852_vm8 = vmmov 0  }
 0x3fb   : > { %4936 = vst [vmem:[#allocation18_spill] sm:$0xff] %v4235_v16  ;;  %v1632_v19 = vrot.slane %v4235_v16, %v3982_v11 }
 0x3fe   : > { %1605 = vbcast.lane.b32.xlu1 %v1599_v17, 264  ;;  %1601 = vbcast.lane.b32.xlu0 %v1599_v17, 256 }
 0x402   : > { %1616 = vbcast.lane.b32.xlu1 %v1610_v18, 264  ;;  %1612 = vbcast.lane.b32.xlu0 %v1610_v18, 256 }
 0x406   : > { %1627 = vbcast.lane.b32.xlu1 %v1621_v20, 264  ;;  %1623 = vbcast.lane.b32.xlu0 %v1621_v20, 256 }
 0x40a   : > { %1374 = vbcast.lane.b32.xlu1 %v1368_v22, 264  ;;  %1370 = vbcast.lane.b32.xlu0 %v1368_v22, 256 }
 0x40e   : > { %1385 = vbcast.lane.b32.xlu1 %v1379_v23, 264  ;;  %1381 = vbcast.lane.b32.xlu0 %v1379_v23, 256  ;;  %v1643_v23 = vrot.slane %v4235_v16, %v4065_v36 }
 0x412   : > { %1396 = vbcast.lane.b32.xlu1 %v1390_v24, 264  ;;  %1392 = vbcast.lane.b32.xlu0 %v1390_v24, 256 }
 0x416   : > { %1407 = vbcast.lane.b32.xlu1 %v1401_v25, 264  ;;  %1403 = vbcast.lane.b32.xlu0 %v1401_v25, 256  ;;  %v1654_v25 = vrot.slane %v4235_v16, %v4072_v42 }
 0x41a   : > { %1418 = vbcast.lane.b32.xlu1 %v1412_v26, 264  ;;  %1414 = vbcast.lane.b32.xlu0 %v1412_v26, 256 }
 0x41c   : > { %v4161_v27 = vpop.permute.xlu1 %1462  ;;  %v4163_v28 = vpop.permute.xlu0 %1458 }
 0x41e   : > { %1429 = vbcast.lane.b32.xlu1 %v1423_v29, 264  ;;  %1425 = vbcast.lane.b32.xlu0 %v1423_v29, 256 }
 0x420   : > { %v4167_v30 = vpop.permute.xlu1 %1473  ;;  %v4169_v31 = vpop.permute.xlu0 %1469 }
 0x422   : > { %1440 = vbcast.lane.b32.xlu1 %v1434_v32, 264  ;;  %1436 = vbcast.lane.b32.xlu0 %v1434_v32, 256  ;;  %v1665_v32 = vrot.slane %v4235_v16, %v4075_v43 }
 0x424   : > { %v4175_v37 = vpop.permute.xlu1 %1484  ;;  %v4177_v38 = vpop.permute.xlu0 %1480 }
 0x425   : > { %4926 = vst [vmem:[#allocation8_spill] sm:$0xff] %v4177_v38 }
 0x426   : > { %1451 = vbcast.lane.b32.xlu1 %v1445_v39, 264  ;;  %1447 = vbcast.lane.b32.xlu0 %v1445_v39, 256 }
 0x428   : > { %v4184_v41 = vpop.permute.xlu1 %1495  ;;  %v4186_v44 = vpop.permute.xlu0 %1491 }
 0x429   : > { %4928 = vst [vmem:[#allocation10_spill] sm:$0xff] %v4186_v44 }
 0x42a   : > { %1814 = vbcast.lane.b32.xlu1 %v1808_v45, 264  ;;  %1810 = vbcast.lane.b32.xlu0 %v1808_v45, 256  ;;  %v1676_v45 = vrot.slane %v4235_v16, %v4090_v54 }
 0x42c   : > { %v4190_v46 = vpop.permute.xlu1 %1506  ;;  %v4192_v47 = vpop.permute.xlu0 %1502 }
 0x42d   : > { %4929 = vst [vmem:[#allocation11_spill] sm:$0xff] %v4192_v47 }
 0x42e   : > { %1825 = vbcast.lane.b32.xlu1 %v1819_v48, 264  ;;  %1821 = vbcast.lane.b32.xlu0 %v1819_v48, 256 }
 0x430   : > { %v4196_v49 = vpop.permute.xlu1 %1517  ;;  %v4198_v53 = vpop.permute.xlu0 %1513 }
 0x431   : > { %4930 = vst [vmem:[#allocation12_spill] sm:$0xff] %v4196_v49  ;;  %4931 = vst [vmem:[#allocation13_spill] sm:$0xff] %v4198_v53 }
 0x432   : > { %1836 = vbcast.lane.b32.xlu1 %v1830_v55, 264  ;;  %1832 = vbcast.lane.b32.xlu0 %v1830_v55, 256 }
 0x434   : > { %v4202_v57 = vpop.permute.xlu1 %1528  ;;  %v4204_v59 = vpop.permute.xlu0 %1524 }
 0x435   : > { %4932 = vst [vmem:[#allocation14_spill] sm:$0xff] %v4202_v57  ;;  %4933 = vst [vmem:[#allocation15_spill] sm:$0xff] %v4204_v59 }
 0x436   : > { %1847 = vbcast.lane.b32.xlu1 %v1841_v61, 264  ;;  %1843 = vbcast.lane.b32.xlu0 %v1841_v61, 256  ;;  %v1687_v61 = vrot.slane %v4235_v16, %v4095_v56 }
 0x438   : > { %v4208_v62 = vpop.permute.xlu1 %1539  ;;  %v4210_v63 = vpop.permute.xlu0 %1535 }
 0x439   : > { %4934 = vst [vmem:[#allocation16_spill] sm:$0xff] %v4208_v62  ;;  %4935 = vst [vmem:[#allocation17_spill] sm:$0xff] %v4210_v63 }
 0x43a   : > { %1858 = vbcast.lane.b32.xlu1 %v1852_v0, 264  ;;  %1854 = vbcast.lane.b32.xlu0 %v1852_v0, 256 }
 0x43c   : > { %v4214_v1 = vpop.permute.xlu1 %1293  ;;  %v4216_v3 = vpop.permute.xlu0 %1282 }
 0x43e   : > { %1869 = vbcast.lane.b32.xlu1 %v1863_v4, 264  ;;  %1865 = vbcast.lane.b32.xlu0 %v1863_v4, 256 }
 0x440   : > { %v4220_v6 = vpop.permute.xlu1 %1297  ;;  %v4222_v7 = vpop.permute.xlu0 %1286 }
 0x442   : > { %1880 = vbcast.lane.b32.xlu1 %v1874_v9, 264  ;;  %1876 = vbcast.lane.b32.xlu0 %v1874_v9, 256  ;;  %v1698_v9 = vrot.slane %v4235_v16, %v4100_v58 }
 0x444   : > { %v4228_v13 = vpop.permute.xlu1 %1308  ;;  %v4230_v14 = vpop.permute.xlu0 %1304 }
 0x446   : > { %1891 = vbcast.lane.b32.xlu1 %v1885_v15, 264  ;;  %1887 = vbcast.lane.b32.xlu0 %v1885_v15, 256 }
 0x448   : > { %v4237_v17 = vpop.permute.xlu1 %1319  ;;  %v4239_v18 = vpop.permute.xlu0 %1315 }
 0x44a   : > { %1638 = vbcast.lane.b32.xlu1 %v1632_v19, 264  ;;  %1634 = vbcast.lane.b32.xlu0 %v1632_v19, 256 }
 0x44c   : > { %v4243_v20 = vpop.permute.xlu1 %1330  ;;  %v4245_v22 = vpop.permute.xlu0 %1326 }
 0x44e   : > { %1649 = vbcast.lane.b32.xlu1 %v1643_v23, 264  ;;  %1645 = vbcast.lane.b32.xlu0 %v1643_v23, 256  ;;  %v1709_v23 = vrot.slane %v4235_v16, %v4105_v60 }
 0x450   : > { %v4249_v50 = vpop.permute.xlu1 %1341  ;;  %v4251_v24 = vpop.permute.xlu0 %1337 }
 0x452   : > { %1660 = vbcast.lane.b32.xlu1 %v1654_v25, 264  ;;  %1656 = vbcast.lane.b32.xlu0 %v1654_v25, 256  ;;  %v4288_v25 = vsel %vm1258_vm9, %v4085_v52, %v1266_v12  ;;  %v4303_v12 = vrot.slane %v4058_v33, %v3978_v8 }
 0x453   : > { %4943 = vst [vmem:[#allocation25_spill] sm:$0xff] %v4288_v25  ;;  %v1720_v2 = vrot.slane %v4288_v25, %v3982_v11 }
 0x454   : > { %v4255_v26 = vpop.permute.xlu1 %1352  ;;  %v4257_v29 = vpop.permute.xlu0 %1348 }
 0x456   : > { %1671 = vbcast.lane.b32.xlu1 %v1665_v32, 264  ;;  %1667 = vbcast.lane.b32.xlu0 %v1665_v32, 256  ;;  %v1989_v32 = vcombine.high %v4060_v34, %v4060_v34 }
 0x458   : > { %v4261_v35 = vpop.permute.xlu1 %1363  ;;  %v4263_v39 = vpop.permute.xlu0 %1359  ;;  %v2003_v5 = vrot.slane %v1989_v32, %v3978_v8 }
 0x45a   : > { %1682 = vbcast.lane.b32.xlu1 %v1676_v45, 264  ;;  %1678 = vbcast.lane.b32.xlu0 %v1676_v45, 256  ;;  %v1996_v45 = vrot.slane %v4060_v34, %v3978_v8  ;;  %v1731_v34 = vrot.slane %v4288_v25, %v4065_v36  ;;  %v2005_v16 = vcombine.high %v2003_v5, %v2003_v5 }
 0x45c   : > { %v4267_v48 = vpop.permute.xlu1 %1550  ;;  %v4269_v55 = vpop.permute.xlu0 %1546  ;;  %v2004_v52 = vcombine.high %v1996_v45, %v1996_v45  ;;  %v2012_v32 = vrot.slane %v1996_v45, %v3978_v8 }
 0x45d   : > { %4937 = vst [vmem:[#allocation19_spill] sm:$0xff] %v4267_v48  ;;  %4938 = vst [vmem:[#allocation20_spill] sm:$0xff] %v4269_v55  ;;  %v1764_v48 = vrot.slane %v4288_v25, %v4090_v54 }
 0x45e   : > { %1693 = vbcast.lane.b32.xlu1 %v1687_v61, 264  ;;  %1689 = vbcast.lane.b32.xlu0 %v1687_v61, 256  ;;  %v2034_v45 = vcombine.high %v2012_v32, %v2012_v32  ;;  %v2384_v53 = vrot.slane %v2012_v32, %v3982_v11 }
 0x460   : > { %v4273_v0 = vpop.permute.xlu1 %1561  ;;  %v4275_v4 = vpop.permute.xlu0 %1557 }
 0x461   : > { %4939 = vst [vmem:[#allocation21_spill] sm:$0xff] %v4273_v0  ;;  %4940 = vst [vmem:[#allocation22_spill] sm:$0xff] %v4275_v4 }
 0x462   : > { %1704 = vbcast.lane.b32.xlu1 %v1698_v9, 264  ;;  %1700 = vbcast.lane.b32.xlu0 %v1698_v9, 256 }
 0x464   : > { %v4281_v15 = vpop.permute.xlu1 %1572  ;;  %v4283_v19 = vpop.permute.xlu0 %1568 }
 0x465   : > { %4941 = vst [vmem:[#allocation23_spill] sm:$0xff] %v4281_v15  ;;  %4942 = vst [vmem:[#allocation24_spill] sm:$0xff] %v4283_v19  ;;  %v4316_v19 = vrot.slane %v4303_v12, %v3978_v8  ;;  %v2392_v15 = vrot.slane %v2034_v45, %v3982_v11  ;;  %v2702_v45 = vmul.f32 %v2384_v53, %v4222_v7 }
 0x466   : > { %1715 = vbcast.lane.b32.xlu1 %v1709_v23, 264  ;;  %1711 = vbcast.lane.b32.xlu0 %v1709_v23, 256 }
 0x468   : > { %v4294_v61 = vpop.permute.xlu1 %1583  ;;  %v4296_v9 = vpop.permute.xlu0 %1579 }
 0x469   : > { %4944 = vst [vmem:[#allocation26_spill] sm:$0xff] %v4294_v61  ;;  %4945 = vst [vmem:[#allocation27_spill] sm:$0xff] %v4296_v9  ;;  %v2026_v9 = vrot.slane %v2004_v52, %v3978_v8  ;;  %v2033_v52 = vrot.slane %v2005_v16, %v3978_v8 }
 0x46a   : > { %1726 = vbcast.lane.b32.xlu1 %v1720_v2, 264  ;;  %1722 = vbcast.lane.b32.xlu0 %v1720_v2, 256  ;;  %v1268_v2 = vmul.f32 0.01, %v4083_v51 }
 0x46b   : > { %v2036_v63 = vcombine.high %v2026_v9, %v2026_v9  ;;  %v2404_v32 = vrot.slane %v2033_v52, %v3982_v11 }
 0x46c   : > { %v4305_v23 = vpop.permute.xlu1 %1594  ;;  %v4307_v40 = vpop.permute.xlu0 %1590  ;;  %v4328_v59 = vsel %vm1260_vm10, %v4083_v51, %v1268_v2  ;;  %v2037_v51 = vcombine.high %v2033_v52, %v2033_v52  ;;  %v2388_v2 = vrot.slane %v2026_v9, %v3982_v11  ;;  %v2701_v9 = vmul.f32 %v2384_v53, %v4216_v3 }
 0x46d   : > { %4946 = vst [vmem:[#allocation28_spill] sm:$0xff] %v4305_v23  ;;  %4947 = vst [vmem:[#allocation29_spill] sm:$0xff] %v4307_v40  ;;  %v1742_v40 = vrot.slane %v4288_v25, %v4072_v42  ;;  %v2396_v16 = vrot.slane %v2036_v63, %v3982_v11  ;;  %v1775_v3 = vrot.slane %v4288_v25, %v4095_v56 }
 0x46e   : > { %1737 = vbcast.lane.b32.xlu1 %v1731_v34, 264  ;;  %1733 = vbcast.lane.b32.xlu0 %v1731_v34, 256  ;;  %v2019_v34 = vrot.slane %v2003_v5, %v3978_v8  ;;  %v1753_v5 = vrot.slane %v4288_v25, %v4075_v43  ;;  %v2703_v0 = vmul.f32 %v2388_v2, %v4214_v1 }
 0x46f   : > { %v1786_v53 = vrot.slane %v4288_v25, %v4100_v58  ;;  %v4391_v62 = vrot.slane %v4328_v59, %v4065_v36  ;;  %v2712_v49 = vmul.f32 %v2404_v32, %v4249_v50 }
 0x470   : > { %v4318_v4 = vpop.permute.xlu1 %1605  ;;  %v4320_v55 = vpop.permute.xlu0 %1601  ;;  %v2035_v61 = vcombine.high %v2019_v34, %v2019_v34  ;;  %v2830_v7 = vsel %vm1141_vm12, %v2703_v0, 0.0 }
 0x471   : > { %4948 = vst [vmem:[#allocation30_spill] sm:$0xff] %v4318_v4  ;;  %4949 = vst [vmem:[#allocation31_spill] sm:$0xff] %v4320_v55  ;;  %v4332_v4 = vrot.slane %v4316_v19, %v3982_v11 }
 0x472   : > { %1748 = vbcast.lane.b32.xlu1 %v1742_v40, 264  ;;  %1744 = vbcast.lane.b32.xlu0 %v1742_v40, 256  ;;  %v2400_v40 = vrot.slane %v2019_v34, %v3982_v11  ;;  %v2408_v63 = vrot.slane %v2035_v61, %v3982_v11  ;;  %v2412_v34 = vrot.slane %v2037_v51, %v3982_v11 }
 0x474   : > { %v4334_v55 = vpop.permute.xlu1 %1616  ;;  %v4336_v23 = vpop.permute.xlu0 %1612 }
 0x475   : > { %4950 = vst [vmem:[#allocation32_spill] sm:$0xff] %v4334_v55  ;;  %4951 = vst [vmem:[#allocation33_spill] sm:$0xff] %v4336_v23  ;;  %v2045_v23 = vrot.slane %v4149_v21, %v3978_v8  ;;  %v2704_v55 = vmul.f32 %v2388_v2, %v4220_v6  ;;  %v1797_v6 = vrot.slane %v4288_v25, %v4105_v60 }
 0x476   : > { %1759 = vbcast.lane.b32.xlu1 %v1753_v5, 264  ;;  %1755 = vbcast.lane.b32.xlu0 %v1753_v5, 256  ;;  %v4379_v2 = vrot.slane %v4328_v59, %v3982_v11  ;;  %v2707_v25 = vmul.f32 %v2396_v16, %v4239_v18 }
 0x477   : > { %v2061_v1 = vrot.slane %v2045_v23, %v3978_v8  ;;  %v2053_v52 = vcombine.high %v2045_v23, %v2045_v23  ;;  %v2708_v23 = vmul.f32 %v2396_v16, %v4237_v17  ;;  %v2709_v17 = vmul.f32 %v2400_v40, %v4245_v22 }
 0x478   : > { %v4356_v47 = vpop.permute.xlu1 %1627  ;;  %v4358_v5 = vpop.permute.xlu0 %1623  ;;  %v2834_v36 = vsel %vm1141_vm12, %v2707_v25, 0.0 }
 0x479   : > { %4952 = vst [vmem:[#allocation34_spill] sm:$0xff] %v4356_v47  ;;  %4953 = vst [vmem:[#allocation35_spill] sm:$0xff] %v4358_v5  ;;  %v2706_v5 = vmul.f32 %v2392_v15, %v4228_v13  ;;  %v2705_v47 = vmul.f32 %v2392_v15, %v4230_v14  ;;  %v2038_v13 = vcombine.high %v4149_v21, %v4149_v21  ;;  %v2958_v14 = vsel %vm2956_vm11, %v2704_v55, 0.0 }
 0x47a   : > { %1770 = vbcast.lane.b32.xlu1 %v1764_v48, 264  ;;  %1766 = vbcast.lane.b32.xlu0 %v1764_v48, 256  ;;  %v2829_v48 = vsel %vm1141_vm12, %v2701_v9, 0.0  ;;  %v2957_v15 = vsel %vm2956_vm11, %v2702_v45, 0.0  ;;  %v2416_v0 = vrot.slane %v2061_v1, %v3982_v11  ;;  %v2075_v9 = vrot.slane %v2053_v52, %v3978_v8 }
 0x47b   : > { %v2960_v21 = vsel %vm2956_vm11, %v2706_v5, 0.0  ;;  %v2832_v55 = vsel %vm1141_vm12, %v2705_v47, 0.0  ;;  %v2710_v45 = vmul.f32 %v2400_v40, %v4243_v20  ;;  %v2831_v44 = vadd.f32 %v2830_v7, %v2829_v48 }
 0x47c   : > { %v1375_v61 = vpop.permute.xlu1 %1374  ;;  %v1371_v51 = vpop.permute.xlu0 %1370  ;;  %v2959_v18 = vadd.f32 %v2958_v14, %v2957_v15  ;;  %v2083_v60 = vcombine.high %v2061_v1, %v2061_v1  ;;  %v2962_v52 = vsel %vm2956_vm11, %v2708_v23, 0.0  ;;  %v2711_v5 = vmul.f32 %v2404_v32, %v4251_v24 }
 0x47d   : > { %v2833_v38 = vadd.f32 %v2832_v55, %v2831_v44  ;;  %v2420_v20 = vrot.slane %v2075_v9, %v3982_v11  ;;  %v2964_v22 = vsel %vm2956_vm11, %v2710_v45, 0.0  ;;  %v2836_v40 = vsel %vm1141_vm12, %v2709_v17, 0.0 }
 0x47e   : > { %1781 = vbcast.lane.b32.xlu1 %v1775_v3, 264  ;;  %1777 = vbcast.lane.b32.xlu0 %v1775_v3, 256  ;;  %v2052_v3 = vrot.slane %v2038_v13, %v3978_v8  ;;  %v2961_v47 = vadd.f32 %v2960_v21, %v2959_v18  ;;  %v2714_v1 = vmul.f32 %v2408_v63, %v4255_v26  ;;  %v2966_v44 = vsel %vm2956_vm11, %v2712_v49, 0.0 }
 0x47f   : > { %v2713_v7 = vmul.f32 %v2408_v63, %v4257_v29  ;;  %v2835_v25 = vadd.f32 %v2834_v36, %v2833_v38  ;;  %v2424_v50 = vrot.slane %v2083_v60, %v3982_v11  ;;  %v2085_v21 = vcombine.high %v2075_v9, %v2075_v9 }
 0x480   : > { %v1386_v16 = vpop.permute.xlu1 %1385  ;;  %v1382_v57 = vpop.permute.xlu0 %1381  ;;  %v2963_v48 = vadd.f32 %v2962_v52, %v2961_v47  ;;  %v2838_v32 = vsel %vm1141_vm12, %v2711_v5, 0.0  ;;  %v2715_v14 = vmul.f32 %v2412_v34, %v4263_v39  ;;  %v2054_v26 = vcombine.high %v2052_v3, %v2052_v3 }
 0x481   : > { %v2837_v23 = vadd.f32 %v2836_v40, %v2835_v25  ;;  %v2968_v38 = vsel %vm2956_vm11, %v2714_v1, 0.0  ;;  %v2840_v60 = vsel %vm1141_vm12, %v2713_v7, 0.0  ;;  %v2718_v29 = vmul.f32 %v2416_v0, %v1375_v61 }
 0x482   : > { %1792 = vbcast.lane.b32.xlu1 %v1786_v53, 264  ;;  %1788 = vbcast.lane.b32.xlu0 %v1786_v53, 256  ;;  %v2716_v53 = vmul.f32 %v2412_v34, %v4261_v35  ;;  %v2965_v15 = vadd.f32 %v2964_v22, %v2963_v48  ;;  %v2717_v63 = vmul.f32 %v2416_v0, %v1371_v51  ;;  %v2842_v34 = vsel %vm1141_vm12, %v2715_v14, 0.0 }
 0x483   : > { %v2839_v55 = vadd.f32 %v2838_v32, %v2837_v23  ;;  %v2428_v49 = vrot.slane %v2085_v21, %v3982_v11  ;;  %v2068_v35 = vrot.slane %v2052_v3, %v3978_v8  ;;  %v2719_v18 = vmul.f32 %v2420_v20, %v1382_v57 }
 0x484   : > { %v1397_v13 = vpop.permute.xlu1 %1396  ;;  %v1393_v24 = vpop.permute.xlu0 %1392  ;;  %v2967_v9 = vadd.f32 %v2966_v44, %v2965_v15  ;;  %v2970_v39 = vsel %vm2956_vm11, %v2716_v53, 0.0  ;;  %v2082_v61 = vrot.slane %v2054_v26, %v3978_v8  ;;  %v2972_v51 = vsel %vm2956_vm11, %v2718_v29, 0.0 }
 0x485   : > { %v2841_v36 = vadd.f32 %v2840_v60, %v2839_v55  ;;  %v2844_v0 = vsel %vm1141_vm12, %v2717_v63, 0.0  ;;  %v2722_v5 = vmul.f32 %v2424_v50, %v1397_v13  ;;  %v2721_v3 = vmul.f32 %v2424_v50, %v1393_v24 }
 0x486   : > { %1803 = vbcast.lane.b32.xlu1 %v1797_v6, 264  ;;  %1799 = vbcast.lane.b32.xlu0 %v1797_v6, 256  ;;  %v2720_v6 = vmul.f32 %v2420_v20, %v1386_v16  ;;  %v2969_v52 = vadd.f32 %v2968_v38, %v2967_v9  ;;  %v2432_v40 = vrot.slane %v2068_v35, %v3982_v11  ;;  %v2846_v7 = vsel %vm1141_vm12, %v2719_v18, 0.0 }
 0x487   : > { %v2843_v22 = vadd.f32 %v2842_v34, %v2841_v36  ;;  %v2084_v20 = vcombine.high %v2068_v35, %v2068_v35  ;;  %v2436_v50 = vrot.slane %v2082_v61, %v3982_v11  ;;  %v2976_v13 = vsel %vm2956_vm11, %v2722_v5, 0.0 }
 0x488   : > { %v1408_v45 = vpop.permute.xlu1 %1407  ;;  %v1404_v17 = vpop.permute.xlu0 %1403  ;;  %v2971_v47 = vadd.f32 %v2970_v39, %v2969_v52  ;;  %v2974_v1 = vsel %vm2956_vm11, %v2720_v6, 0.0  ;;  %v2848_v24 = vsel %vm1141_vm12, %v2721_v3, 0.0  ;;  %v4954_v53 = vcombine.high %v4303_v12, %v4303_v12 }
 0x489   : > { %v2723_v48 = vmul.f32 %v2428_v49, %v1404_v17  ;;  %v2845_v21 = vadd.f32 %v2844_v0, %v2843_v22  ;;  %v4955_v55 = vcombine.high %v4058_v33, %v4058_v33  ;;  %v2086_v39 = vcombine.high %v2082_v61, %v2082_v61 }
 0x48a   : > { %1902 = vbcast.lane.b32.xlu1 %v4379_v2, 264  ;;  %1898 = vbcast.lane.b32.xlu0 %v4379_v2, 256  ;;  %v2724_v2 = vmul.f32 %v2428_v49, %v1408_v45  ;;  %v2973_v25 = vadd.f32 %v2972_v51, %v2971_v47  ;;  %v4435_v14 = vrot.slane %v4954_v53, %v3978_v8 }
 0x48b   : > { %v2847_v23 = vadd.f32 %v2846_v7, %v2845_v21  ;;  %v2850_v29 = vsel %vm1141_vm12, %v2723_v48, 0.0  ;;  %v2101_v12 = vrot.slane %v4955_v55, %v3978_v8  ;;  %v4956_v34 = vcombine.high %v4316_v19, %v4316_v19 }
 0x48c   : > { %v1419_v16 = vpop.permute.xlu1 %1418  ;;  %v1415_v57 = vpop.permute.xlu0 %1414  ;;  %v2975_v15 = vadd.f32 %v2974_v1, %v2973_v25  ;;  %v2978_v60 = vsel %vm2956_vm11, %v2724_v2, 0.0  ;;  %v1929_v0 = vrot.slane %v4328_v59, %v4075_v43  ;;  %v2452_v19 = vrot.slane %v4435_v14, %v3982_v11 }
 0x48d   : > { %v2726_v44 = vmul.f32 %v2432_v40, %v1419_v16  ;;  %v2725_v32 = vmul.f32 %v2432_v40, %v1415_v57  ;;  %v2849_v45 = vadd.f32 %v2848_v24, %v2847_v23  ;;  %v4452_v6 = vrot.slane %v4956_v34, %v3982_v11 }
 0x48e   : > { %1913 = vbcast.lane.b32.xlu1 %v4391_v62, 264  ;;  %1909 = vbcast.lane.b32.xlu0 %v4391_v62, 256  ;;  %v1918_v62 = vrot.slane %v4328_v59, %v4072_v42  ;;  %v2977_v49 = vadd.f32 %v2976_v13, %v2975_v15  ;;  %v2440_v42 = vrot.slane %v2084_v20, %v3982_v11 }
 0x48f   : > { %v2980_v17 = vsel %vm2956_vm11, %v2726_v44, 0.0  ;;  %v2852_v35 = vsel %vm1141_vm12, %v2725_v32, 0.0  ;;  %v2851_v52 = vadd.f32 %v2850_v29, %v2849_v45  ;;  %v2103_v61 = vcombine.high %v2101_v12, %v2101_v12 }
 0x490   : > { %v1430_v26 = vpop.permute.xlu1 %1429  ;;  %v1426_v38 = vpop.permute.xlu0 %1425  ;;  %v2979_v18 = vadd.f32 %v2978_v60, %v2977_v49  ;;  %v2444_v43 = vrot.slane %v2086_v39, %v3982_v11  ;;  %v2134_v1 = vcombine.high %v4435_v14, %v4435_v14  ;;  %v1940_v21 = vrot.slane %v4328_v59, %v4090_v54 }
 0x491   : > { %v2728_v63 = vmul.f32 %v2436_v50, %v1430_v26  ;;  %v2727_v9 = vmul.f32 %v2436_v50, %v1426_v38  ;;  %v2853_v16 = vadd.f32 %v2852_v35, %v2851_v52  ;;  %v2734_v50 = vmul.f32 %v4332_v4, %v4161_v27 }
 0x492   : > { %1924 = vbcast.lane.b32.xlu1 %v1918_v62, 264  ;;  %1920 = vbcast.lane.b32.xlu0 %v1918_v62, 256  ;;  %v2981_v40 = vadd.f32 %v2980_v17, %v2979_v18  ;;  %v2117_v13 = vrot.slane %v2101_v12, %v3978_v8  ;;  %v2131_v32 = vrot.slane %v2103_v61, %v3978_v8 }
 0x493   : > { %v2982_v5 = vsel %vm2956_vm11, %v2728_v63, 0.0  ;;  %v2854_v3 = vsel %vm1141_vm12, %v2727_v9, 0.0  ;;  %v2733_v14 = vmul.f32 %v4332_v4, %v4163_v28  ;;  %v2736_v23 = vmul.f32 %v2452_v19, %v4167_v30 }
 0x494   : > { %v1441_v36 = vpop.permute.xlu1 %1440  ;;  %v1437_v51 = vpop.permute.xlu0 %1436  ;;  %v2983_v7 = vadd.f32 %v2982_v5, %v2981_v40  ;;  %v2855_v2 = vadd.f32 %v2854_v3, %v2853_v16  ;;  %v2143_v27 = vrot.slane %v4128_v10, %v3978_v8  ;;  %v1951_v63 = vrot.slane %v4328_v59, %v4095_v56 }
 0x495   : > { %v2730_v47 = vmul.f32 %v2440_v42, %v1441_v36  ;;  %v2729_v22 = vmul.f32 %v2440_v42, %v1437_v51  ;;  %v2988_v28 = vsel %vm2956_vm11, %v2734_v50, 0.0  ;;  %v2738_v30 = vmul.f32 %v4452_v6, %v4175_v37 }
 0x496   : > { %1935 = vbcast.lane.b32.xlu1 %v1929_v0, 264  ;;  %1931 = vbcast.lane.b32.xlu0 %v1929_v0, 256  ;;  %v2460_v4 = vrot.slane %v2134_v1, %v3982_v11  ;;  %v2464_v9 = vrot.slane %v2117_v13, %v3982_v11  ;;  %v4490_v55 = vrot.slane %v2131_v32, %v3982_v11  ;;  %v2860_v45 = vsel %vm1141_vm12, %v2733_v14, 0.0  ;;  %v4959_v1 = vld [vmem:[#allocation5_spill] sm:$0xff]  ;;  %v4962_v14 = vld [vmem:[#allocation16_spill] sm:$0xff] }
 0x497   : > { %v2984_v57 = vsel %vm2956_vm11, %v2730_v47, 0.0  ;;  %v2856_v20 = vsel %vm1141_vm12, %v2729_v22, 0.0  ;;  %v2133_v12 = vcombine.high %v2117_v13, %v2117_v13  ;;  %v2990_v56 = vsel %vm2956_vm11, %v2736_v23, 0.0  ;;  %v4957_v22 = vld [vmem:[#allocation8_spill] sm:$0xff] }
 0x498   : > { %v1452_v48 = vpop.permute.xlu1 %1451  ;;  %v1448_v25 = vpop.permute.xlu0 %1447  ;;  %v2985_v53 = vadd.f32 %v2984_v57, %v2983_v7  ;;  %v2857_v15 = vadd.f32 %v2856_v20, %v2855_v2  ;;  %v2735_v17 = vmul.f32 %v2452_v19, %v4169_v31  ;;  %v2740_v35 = vmul.f32 %v2460_v4, %v4184_v41 }
 0x499   : > { %v2732_v24 = vmul.f32 %v2444_v43, %v1452_v48  ;;  %v2731_v44 = vmul.f32 %v2444_v43, %v1448_v25  ;;  %v2151_v37 = vcombine.high %v2143_v27, %v2143_v27  ;;  %v1962_v52 = vrot.slane %v4328_v59, %v4100_v58  ;;  %v4960_v48 = vld [vmem:[#allocation14_spill] sm:$0xff] }
 0x49a   : > { %1946 = vbcast.lane.b32.xlu1 %v1940_v21, 264  ;;  %1942 = vbcast.lane.b32.xlu0 %v1940_v21, 256  ;;  %v2992_v36 = vsel %vm2956_vm11, %v2738_v30, 0.0  ;;  %v2742_v51 = vmul.f32 %v2464_v9, %v4190_v46  ;;  %v2135_v0 = vcombine.high %v2131_v32, %v2131_v32  ;;  %v2136_v31 = vcombine.high %v4128_v10, %v4128_v10  ;;  %v4958_v46 = vld [vmem:[#allocation12_spill] sm:$0xff]  ;;  %v4961_v32 = vld [vmem:[#allocation10_spill] sm:$0xff] }
 0x49b   : > { %v2986_v54 = vsel %vm2956_vm11, %v2732_v24, 0.0  ;;  %v2858_v26 = vsel %vm1141_vm12, %v2731_v44, 0.0  ;;  %v4507_v41 = vrot.slane %v2133_v12, %v3982_v11  ;;  %v2159_v5 = vrot.slane %v2143_v27, %v3978_v8 }
 0x49c   : > { %v2987_v38 = vadd.f32 %v2986_v54, %v2985_v53  ;;  %v2859_v62 = vadd.f32 %v2858_v26, %v2857_v15  ;;  %v4478_v60 = vpop.permute.xlu1 %1814  ;;  %v4480_v29 = vpop.permute.xlu0 %1810  ;;  %v2862_v47 = vsel %vm1141_vm12, %v2735_v17, 0.0  ;;  %v2737_v58 = vmul.f32 %v4452_v6, %v4957_v22 }
 0x49d   : > { %v2994_v61 = vsel %vm2956_vm11, %v2740_v35, 0.0  ;;  %v2744_v40 = vmul.f32 %v4490_v55, %v4958_v46  ;;  %v2173_v16 = vrot.slane %v2151_v37, %v3978_v8  ;;  %v1973_v7 = vrot.slane %v4328_v59, %v4959_v1  ;;  %v4964_v35 = vld [vmem:[#allocation11_spill] sm:$0xff]  ;;  %v4968_v1 = vld [vmem:[#allocation26_spill] sm:$0xff] }
 0x49e   : > { %v2989_v49 = vadd.f32 %v2988_v28, %v2987_v38  ;;  %1957 = vbcast.lane.b32.xlu1 %v1951_v63, 264  ;;  %1953 = vbcast.lane.b32.xlu0 %v1951_v63, 256  ;;  %v2861_v39 = vadd.f32 %v2860_v45, %v2859_v62  ;;  %v2996_v2 = vsel %vm2956_vm11, %v2742_v51, 0.0  ;;  %v2746_v6 = vmul.f32 %v4507_v41, %v4960_v48  ;;  %v4963_v28 = vld [vmem:[#allocation19_spill] sm:$0xff] }
 0x49f   : > { %v4527_v25 = vrot.slane %v2135_v0, %v3982_v11  ;;  %v2150_v21 = vrot.slane %v2136_v31, %v3978_v8  ;;  %v4531_v50 = vrot.slane %v2159_v5, %v3982_v11  ;;  %v2181_v13 = vcombine.high %v2159_v5, %v2159_v5 }
 0x4a0   : > { %v2991_v42 = vadd.f32 %v2990_v56, %v2989_v49  ;;  %v4496_v34 = vpop.permute.xlu1 %1825  ;;  %v4498_v18 = vpop.permute.xlu0 %1821  ;;  %v2863_v57 = vadd.f32 %v2862_v47, %v2861_v39  ;;  %v2864_v44 = vsel %vm1141_vm12, %v2737_v58, 0.0  ;;  %v2739_v53 = vmul.f32 %v2460_v4, %v4961_v32  ;;  %v4965_v39 = vld [vmem:[#allocation21_spill] sm:$0xff] }
 0x4a1   : > { %v2998_v15 = vsel %vm2956_vm11, %v2744_v40, 0.0  ;;  %v2748_v23 = vmul.f32 %v4527_v25, %v4962_v14  ;;  %v4539_v54 = vrot.slane %v2173_v16, %v3982_v11  ;;  %v3000_v63 = vsel %vm2956_vm11, %v2746_v6, 0.0 }
 0x4a2   : > { %v2993_v3 = vadd.f32 %v2992_v36, %v2991_v42  ;;  %1968 = vbcast.lane.b32.xlu1 %v1962_v52, 264  ;;  %1964 = vbcast.lane.b32.xlu0 %v1962_v52, 256  ;;  %v2865_v27 = vadd.f32 %v2864_v44, %v2863_v57  ;;  %v2750_v30 = vmul.f32 %v4531_v50, %v4963_v28  ;;  %v2866_v17 = vsel %vm1141_vm12, %v2739_v53, 0.0 }
 0x4a3   : > { %v2183_v4 = vcombine.high %v2173_v16, %v2173_v16  ;;  %v2152_v12 = vcombine.high %v2150_v21, %v2150_v21  ;;  %v4549_v49 = vrot.slane %v2181_v13, %v3982_v11  ;;  %v2166_v45 = vrot.slane %v2150_v21, %v3978_v8  ;;  %v4967_v16 = vld [vmem:[#allocation13_spill] sm:$0xff] }
 0x4a4   : > { %v2995_v19 = vadd.f32 %v2994_v61, %v2993_v3  ;;  %v4517_v20 = vpop.permute.xlu1 %1836  ;;  %v4519_v43 = vpop.permute.xlu0 %1832  ;;  %v2741_v37 = vmul.f32 %v2464_v9, %v4964_v35  ;;  %v3002_v42 = vsel %vm2956_vm11, %v2748_v23, 0.0  ;;  %v2752_v52 = vmul.f32 %v4539_v54, %v4965_v39  ;;  %v4966_v3 = vld [vmem:[#allocation23_spill] sm:$0xff]  ;;  %v4973_v39 = vld [vmem:[#allocation17_spill] sm:$0xff] }
 0x4a5   : > { %v2867_v51 = vadd.f32 %v2866_v17, %v2865_v27  ;;  %v3004_v5 = vsel %vm2956_vm11, %v2750_v30, 0.0  ;;  %v2754_v47 = vmul.f32 %v4549_v49, %v4966_v3  ;;  %v2492_v22 = vrot.slane %v2183_v4, %v3982_v11  ;;  %v4970_v23 = vld [vmem:[#allocation15_spill] sm:$0xff]  ;;  %v4972_v17 = vld [vmem:[#allocation32_spill] sm:$0xff] }
 0x4a6   : > { %v2997_v24 = vadd.f32 %v2996_v2, %v2995_v19  ;;  %1979 = vbcast.lane.b32.xlu1 %v1973_v7, 264  ;;  %1975 = vbcast.lane.b32.xlu0 %v1973_v7, 256  ;;  %v2180_v9 = vrot.slane %v2152_v12, %v3978_v8  ;;  %v4567_v58 = vrot.slane %v2166_v45, %v3982_v11  ;;  %v2868_v40 = vsel %vm1141_vm12, %v2741_v37, 0.0 }
 0x4a7   : > { %v2182_v61 = vcombine.high %v2166_v45, %v2166_v45  ;;  %v2743_v19 = vmul.f32 %v4490_v55, %v4967_v16  ;;  %v3006_v57 = vsel %vm2956_vm11, %v2752_v52, 0.0  ;;  %v2756_v7 = vmul.f32 %v2492_v22, %v4968_v1 }
 0x4a8   : > { %v2999_v26 = vadd.f32 %v2998_v15, %v2997_v24  ;;  %v4541_v38 = vpop.permute.xlu1 %1847  ;;  %v4543_v62 = vpop.permute.xlu0 %1843  ;;  %v2869_v2 = vadd.f32 %v2868_v40, %v2867_v51  ;;  %v3008_v13 = vsel %vm2956_vm11, %v2754_v47, 0.0  ;;  %v4969_v24 = vld [vmem:[#allocation28_spill] sm:$0xff]  ;;  %v2500_v32 = vrot.slane %v2180_v9, %v3982_v11  ;;  %v4974_v51 = vld [vmem:[#allocation34_spill] sm:$0xff] }
 0x4a9   : > { %v2758_v44 = vmul.f32 %v4567_v58, %v4969_v24  ;;  %v2184_v53 = vcombine.high %v2180_v9, %v2180_v9  ;;  %v4583_v55 = vrot.slane %v2182_v61, %v3982_v11  ;;  %v2870_v14 = vsel %vm1141_vm12, %v2743_v19, 0.0  ;;  %v4975_v19 = vld [vmem:[#allocation20_spill] sm:$0xff]  ;;  %v4976_v24 = vld [vmem:[#allocation22_spill] sm:$0xff] }
 0x4aa   : > { %v3001_v56 = vadd.f32 %v3000_v63, %v2999_v26  ;;  %v2745_v26 = vmul.f32 %v4507_v41, %v4970_v23  ;;  %v3010_v27 = vsel %vm2956_vm11, %v2756_v7, 0.0  ;;  %v4971_v63 = vld [vmem:[#allocation30_spill] sm:$0xff]  ;;  %v2871_v30 = vadd.f32 %v2870_v14, %v2869_v2 }
 0x4ab   : > { %v2760_v28 = vmul.f32 %v2500_v32, %v4971_v63  ;;  %v2762_v35 = vmul.f32 %v4583_v55, %v4972_v17  ;;  %v2508_v37 = vrot.slane %v2184_v53, %v3982_v11  ;;  %v2747_v52 = vmul.f32 %v4527_v25, %v4973_v39 }
 0x4ac   : > { %v3003_v36 = vadd.f32 %v3002_v42, %v3001_v56  ;;  %v4557_v0 = vpop.permute.xlu1 %1858  ;;  %v4559_v31 = vpop.permute.xlu0 %1854  ;;  %v3012_v56 = vsel %vm2956_vm11, %v2758_v44, 0.0  ;;  %v2872_v41 = vsel %vm1141_vm12, %v2745_v26, 0.0  ;;  %v2751_v44 = vmul.f32 %v4539_v54, %v4976_v24  ;;  %v4977_v26 = vld [vmem:[#allocation24_spill] sm:$0xff]  ;;  %v4979_v54 = vld [vmem:[#allocation18_spill] sm:$0xff] }
 0x4ad   : > { %v2873_v3 = vadd.f32 %v2872_v41, %v2871_v30  ;;  %v2874_v16 = vsel %vm1141_vm12, %v2747_v52, 0.0  ;;  %v2192_v41 = vrot.slane %v4979_v54, %v3978_v8  ;;  %v4980_v52 = vld [vmem:[#allocation29_spill] sm:$0xff] }
 0x4ae   : > { %v3005_v46 = vadd.f32 %v3004_v5, %v3003_v36  ;;  %v3014_v36 = vsel %vm2956_vm11, %v2760_v28, 0.0  ;;  %v2764_v5 = vmul.f32 %v2508_v37, %v4974_v51  ;;  %v2878_v23 = vsel %vm1141_vm12, %v2751_v44, 0.0 }
 0x4af   : > { %v2875_v1 = vadd.f32 %v2874_v16, %v2873_v3  ;;  %v4982_v16 = vld [vmem:[#allocation9_spill] sm:$0xff] }
 0x4b0   : > { %v4574_v48 = vpop.permute.xlu1 %1869  ;;  %v4576_v6 = vpop.permute.xlu0 %1865  ;;  %v3007_v21 = vadd.f32 %v3006_v57, %v3005_v46  ;;  %v3016_v46 = vsel %vm2956_vm11, %v2762_v35, 0.0  ;;  %v2749_v57 = vmul.f32 %v4531_v50, %v4975_v19  ;;  %v3018_v25 = vsel %vm2956_vm11, %v2764_v5, 0.0 }
 0x4b1   : > { %v2753_v50 = vmul.f32 %v4549_v49, %v4977_v26  ;;  %v2185_v49 = vcombine.high %v4979_v54, %v4979_v54  ;;  %v2290_v19 = vrot.slane %v4982_v16, %v3978_v8 }
 0x4b2   : > { %v3009_v15 = vadd.f32 %v3008_v13, %v3007_v21  ;;  %v2876_v13 = vsel %vm1141_vm12, %v2749_v57, 0.0 }
 0x4b3   : > { %v2877_v53 = vadd.f32 %v2876_v13, %v2875_v1  ;;  %v2880_v30 = vsel %vm1141_vm12, %v2753_v50, 0.0  ;;  %v2208_v13 = vrot.slane %v2192_v41, %v3978_v8 }
 0x4b4   : > { %v4590_v4 = vpop.permute.xlu1 %1880  ;;  %v4592_v12 = vpop.permute.xlu0 %1876  ;;  %v3011_v45 = vadd.f32 %v3010_v27, %v3009_v15 }
 0x4b5   : > { %v2879_v27 = vadd.f32 %v2878_v23, %v2877_v53  ;;  %v4983_v53 = vld [vmem:[#allocation33_spill] sm:$0xff] }
 0x4b6   : > { %v3013_v42 = vadd.f32 %v3012_v56, %v3011_v45  ;;  %v4978_v45 = vld [vmem:[#allocation27_spill] sm:$0xff]  ;;  %v2761_v23 = vmul.f32 %v4583_v55, %v4983_v53 }
 0x4b7   : > { %v2755_v56 = vmul.f32 %v2492_v22, %v4978_v45  ;;  %v2881_v17 = vadd.f32 %v2880_v30, %v2879_v27  ;;  %v2200_v22 = vcombine.high %v2192_v41, %v2192_v41  ;;  %v2512_v45 = vrot.slane %v2208_v13, %v3982_v11  ;;  %v4984_v41 = vld [vmem:[#allocation35_spill] sm:$0xff] }
 0x4b8   : > { %v4603_v47 = vpop.permute.xlu1 %1891  ;;  %v4605_v9 = vpop.permute.xlu0 %1887  ;;  %v3015_v61 = vadd.f32 %v3014_v36, %v3013_v42  ;;  %v2757_v36 = vmul.f32 %v4567_v58, %v4980_v52  ;;  %v2888_v55 = vsel %vm1141_vm12, %v2761_v23, 0.0 }
 0x4b9   : > { %v2882_v39 = vsel %vm1141_vm12, %v2755_v56, 0.0  ;;  %v2222_v24 = vrot.slane %v2200_v22, %v3978_v8  ;;  %v2230_v56 = vcombine.high %v2208_v13, %v2208_v13 }
 0x4ba   : > { %v3017_v40 = vadd.f32 %v3016_v46, %v3015_v61  ;;  %v2883_v51 = vadd.f32 %v2882_v39, %v2881_v17  ;;  %v2884_v61 = vsel %vm1141_vm12, %v2757_v36, 0.0  ;;  %v4981_v46 = vld [vmem:[#allocation31_spill] sm:$0xff]  ;;  %v2763_v39 = vmul.f32 %v2508_v37, %v4984_v41  ;;  %v4985_v36 = vld [vmem:[#allocation25_spill] sm:$0xff] }
 0x4bb   : > { %v2232_v17 = vcombine.high %v2222_v24, %v2222_v24  ;;  %v2520_v41 = vrot.slane %v2230_v56, %v3982_v11 }
 0x4bc   : > { %v4612_v7 = vadd.f32 %v3018_v25, %v3017_v40  ;;  %v1639_v2 = vpop.permute.xlu1 %1638  ;;  %v1635_v21 = vpop.permute.xlu0 %1634  ;;  %v2759_v40 = vmul.f32 %v2500_v32, %v4981_v46  ;;  %v2885_v57 = vadd.f32 %v2884_v61, %v2883_v51  ;;  %v2199_v25 = vrot.slane %v2185_v49, %v3978_v8 }
 0x4bd   : > { %v2298_v32 = vcombine.high %v2290_v19, %v2290_v19  ;;  %v2241_v51 = vrot.slane %v4985_v36, %v3978_v8  ;;  %v2766_v49 = vmul.f32 %v2512_v45, %v1639_v2  ;;  %v2765_v22 = vmul.f32 %v2512_v45, %v1635_v21 }
 0x4be   : > { %v2886_v44 = vsel %vm1141_vm12, %v2759_v40, 0.0  ;;  %v2215_v50 = vrot.slane %v2199_v25, %v3978_v8  ;;  %v2201_v52 = vcombine.high %v2199_v25, %v2199_v25  ;;  %v2516_v61 = vrot.slane %v2222_v24, %v3982_v11 }
 0x4bf   : > { %v2887_v26 = vadd.f32 %v2886_v44, %v2885_v57  ;;  %v4659_v46 = vrot.slane %v2290_v19, %v3978_v8  ;;  %v4662_v40 = vrot.slane %v2298_v32, %v3978_v8  ;;  %v2524_v23 = vrot.slane %v2232_v17, %v3982_v11 }
 0x4c0   : > { %v1650_v15 = vpop.permute.xlu1 %1649  ;;  %v1646_v14 = vpop.permute.xlu0 %1645  ;;  %v2231_v13 = vcombine.high %v2215_v50, %v2215_v50  ;;  %v2890_v2 = vsel %vm1141_vm12, %v2763_v39, 0.0  ;;  %v2528_v21 = vrot.slane %v2215_v50, %v3982_v11  ;;  %v2229_v19 = vrot.slane %v2201_v52, %v3978_v8 }
 0x4c1   : > { %v2889_v57 = vadd.f32 %v2888_v55, %v2887_v26  ;;  %v2768_v25 = vmul.f32 %v2516_v61, %v1650_v15  ;;  %v2767_v53 = vmul.f32 %v2516_v61, %v1646_v14  ;;  %v2257_v24 = vrot.slane %v2241_v51, %v3978_v8 }
 0x4c2   : > { %v3020_v32 = vsel %vm2956_vm11, %v2766_v49, 0.0  ;;  %v2892_v26 = vsel %vm1141_vm12, %v2765_v22, 0.0  ;;  %v2536_v14 = vrot.slane %v2231_v13, %v3982_v11  ;;  %v2249_v17 = vcombine.high %v2241_v51, %v2241_v51 }
 0x4c3   : > { %v2891_v15 = vadd.f32 %v2890_v2, %v2889_v57  ;;  %v2234_v39 = vcombine.high %v4985_v36, %v4985_v36  ;;  %v3022_v50 = vsel %vm2956_vm11, %v2768_v25, 0.0  ;;  %v2894_v52 = vsel %vm1141_vm12, %v2767_v53, 0.0 }
 0x4c4   : > { %v1661_v63 = vpop.permute.xlu1 %1660  ;;  %v1657_v28 = vpop.permute.xlu0 %1656  ;;  %v3021_v49 = vadd.f32 %v3020_v32, %v4612_v7  ;;  %v2544_v53 = vrot.slane %v2257_v24, %v3982_v11 }
 0x4c5   : > { %v2770_v45 = vmul.f32 %v2520_v41, %v1661_v63  ;;  %v2769_v55 = vmul.f32 %v2520_v41, %v1657_v28  ;;  %v2893_v22 = vadd.f32 %v2892_v26, %v2891_v15  ;;  %v2532_v63 = vrot.slane %v2229_v19, %v3982_v11 }
 0x4c6   : > { %v2233_v28 = vcombine.high %v2229_v19, %v2229_v19  ;;  %v3023_v2 = vadd.f32 %v3022_v50, %v3021_v49 }
 0x4c7   : > { %v3024_v57 = vsel %vm2956_vm11, %v2770_v45, 0.0  ;;  %v2896_v13 = vsel %vm1141_vm12, %v2769_v55, 0.0  ;;  %v2895_v25 = vadd.f32 %v2894_v52, %v2893_v22  ;;  %v2279_v52 = vcombine.high %v2257_v24, %v2257_v24 }
 0x4c8   : > { %v1672_v35 = vpop.permute.xlu1 %1671  ;;  %v1668_v42 = vpop.permute.xlu0 %1667  ;;  %v3025_v45 = vadd.f32 %v3024_v57, %v3023_v2 }
 0x4c9   : > { %v2772_v54 = vmul.f32 %v2524_v23, %v1672_v35  ;;  %v2771_v10 = vmul.f32 %v2524_v23, %v1668_v42  ;;  %v2271_v35 = vrot.slane %v2249_v17, %v3978_v8 }
 0x4cb   : > { %v3026_v23 = vsel %vm2956_vm11, %v2772_v54, 0.0  ;;  %v2898_v19 = vsel %vm1141_vm12, %v2771_v10, 0.0 }
 0x4cc   : > { %v4629_v5 = vpop.permute.xlu1 %1682  ;;  %v4631_v3 = vpop.permute.xlu0 %1678  ;;  %v3027_v50 = vadd.f32 %v3026_v23, %v3025_v45  ;;  %v2552_v23 = vrot.slane %v2279_v52, %v3982_v11 }
 0x4cd   : > { %v2774_v51 = vmul.f32 %v2528_v21, %v4629_v5  ;;  %v2773_v41 = vmul.f32 %v2528_v21, %v4631_v3  ;;  %v2897_v5 = vadd.f32 %v2896_v13, %v2895_v25  ;;  %v2540_v3 = vrot.slane %v2233_v28, %v3982_v11 }
 0x4ce   : > { %v2248_v21 = vrot.slane %v2234_v39, %v3978_v8 }
 0x4cf   : > { %v3028_v55 = vsel %vm2956_vm11, %v2774_v51, 0.0  ;;  %v2900_v15 = vsel %vm1141_vm12, %v2773_v41, 0.0  ;;  %v2899_v10 = vadd.f32 %v2898_v19, %v2897_v5  ;;  %v2281_v51 = vcombine.high %v2271_v35, %v2271_v35 }
 0x4d0   : > { %v4638_v58 = vpop.permute.xlu1 %1693  ;;  %v4640_v1 = vpop.permute.xlu0 %1689  ;;  %v3029_v57 = vadd.f32 %v3028_v55, %v3027_v50  ;;  %v2250_v41 = vcombine.high %v2248_v21, %v2248_v21 }
 0x4d1   : > { %v2776_v32 = vmul.f32 %v2532_v63, %v4638_v58  ;;  %v2775_v26 = vmul.f32 %v2532_v63, %v4640_v1  ;;  %v2548_v58 = vrot.slane %v2271_v35, %v3982_v11  ;;  %v2901_v13 = vadd.f32 %v2900_v15, %v2899_v10 }
 0x4d2   : > { %v2556_v55 = vrot.slane %v2281_v51, %v3982_v11 }
 0x4d3   : > { %v3030_v22 = vsel %vm2956_vm11, %v2776_v32, 0.0  ;;  %v2902_v63 = vsel %vm1141_vm12, %v2775_v26, 0.0  ;;  %v2264_v26 = vrot.slane %v2248_v21, %v3978_v8  ;;  %v2283_v21 = vcombine.high %v4982_v16, %v4982_v16 }
 0x4d4   : > { %v4648_v27 = vpop.permute.xlu1 %1704  ;;  %v4650_v30 = vpop.permute.xlu0 %1700  ;;  %v3031_v25 = vadd.f32 %v3030_v22, %v3029_v57  ;;  %v2903_v24 = vadd.f32 %v2902_v63, %v2901_v13 }
 0x4d5   : > { %v2778_v17 = vmul.f32 %v2536_v14, %v4648_v27  ;;  %v2777_v54 = vmul.f32 %v2536_v14, %v4650_v30 }
 0x4d7   : > { %v3032_v27 = vsel %vm2956_vm11, %v2778_v17, 0.0  ;;  %v2904_v30 = vsel %vm1141_vm12, %v2777_v54, 0.0 }
 0x4d8   : > { %v1716_v44 = vpop.permute.xlu1 %1715  ;;  %v1712_v37 = vpop.permute.xlu0 %1711  ;;  %v3033_v5 = vadd.f32 %v3032_v27, %v3031_v25  ;;  %v2576_v27 = vrot.slane %v4659_v46, %v3982_v11 }
 0x4d9   : > { %v2780_v39 = vmul.f32 %v2540_v3, %v1716_v44  ;;  %v2779_v28 = vmul.f32 %v2540_v3, %v1712_v37  ;;  %v2905_v3 = vadd.f32 %v2904_v30, %v2903_v24  ;;  %v2297_v30 = vrot.slane %v2283_v21, %v3978_v8 }
 0x4db   : > { %v3034_v44 = vsel %vm2956_vm11, %v2780_v39, 0.0  ;;  %v2906_v37 = vsel %vm1141_vm12, %v2779_v28, 0.0 }
 0x4dc   : > { %v1727_v56 = vpop.permute.xlu1 %1726  ;;  %v1723_v61 = vpop.permute.xlu0 %1722  ;;  %v3035_v54 = vadd.f32 %v3034_v44, %v3033_v5  ;;  %v2907_v50 = vadd.f32 %v2906_v37, %v2905_v3  ;;  %v2328_v44 = vcombine.high %v4659_v46, %v4659_v46  ;;  %v2330_v37 = vcombine.high %v4662_v40, %v4662_v40 }
 0x4dd   : > { %v2782_v14 = vmul.f32 %v2544_v53, %v1727_v56  ;;  %v2781_v2 = vmul.f32 %v2544_v53, %v1723_v61  ;;  %v2278_v56 = vrot.slane %v2250_v41, %v3978_v8 }
 0x4df   : > { %v3036_v61 = vsel %vm2956_vm11, %v2782_v14, 0.0  ;;  %v2908_v53 = vsel %vm1141_vm12, %v2781_v2, 0.0 }
 0x4e0   : > { %v1738_v42 = vpop.permute.xlu1 %1737  ;;  %v1734_v7 = vpop.permute.xlu0 %1733  ;;  %v3037_v39 = vadd.f32 %v3036_v61, %v3035_v54  ;;  %v2909_v28 = vadd.f32 %v2908_v53, %v2907_v50  ;;  %v2282_v61 = vcombine.high %v2278_v56, %v2278_v56  ;;  %v2313_v53 = vrot.slane %v2297_v30, %v3978_v8 }
 0x4e1   : > { %v2784_v35 = vmul.f32 %v2548_v58, %v1738_v42  ;;  %v2783_v45 = vmul.f32 %v2548_v58, %v1734_v7  ;;  %v2560_v42 = vrot.slane %v2264_v26, %v3982_v11 }
 0x4e3   : > { %v3038_v58 = vsel %vm2956_vm11, %v2784_v35, 0.0  ;;  %v2910_v52 = vsel %vm1141_vm12, %v2783_v45, 0.0 }
 0x4e4   : > { %v1749_v1 = vpop.permute.xlu1 %1748  ;;  %v1745_v49 = vpop.permute.xlu0 %1744  ;;  %v3039_v14 = vadd.f32 %v3038_v58, %v3037_v39  ;;  %v2911_v2 = vadd.f32 %v2910_v52, %v2909_v28  ;;  %v2580_v58 = vrot.slane %v4662_v40, %v3982_v11  ;;  %v2584_v52 = vrot.slane %v2328_v44, %v3982_v11 }
 0x4e5   : > { %v2786_v15 = vmul.f32 %v2552_v23, %v1749_v1  ;;  %v2785_v17 = vmul.f32 %v2552_v23, %v1745_v49  ;;  %v2564_v1 = vrot.slane %v2278_v56, %v3982_v11  ;;  %v2280_v49 = vcombine.high %v2264_v26, %v2264_v26 }
 0x4e6   : > { %v2798_v40 = vmul.f32 %v2576_v27, %v4478_v60  ;;  %v2799_v44 = vmul.f32 %v2580_v58, %v4498_v18  ;;  %v2801_v18 = vmul.f32 %v2584_v52, %v4519_v43  ;;  %v2332_v43 = vcombine.high %v4328_v59, %v4328_v59 }
 0x4e7   : > { %v3040_v57 = vsel %vm2956_vm11, %v2786_v15, 0.0  ;;  %v2912_v13 = vsel %vm1141_vm12, %v2785_v17, 0.0  ;;  %v2299_v15 = vcombine.high %v2297_v30, %v2297_v30 }
 0x4e8   : > { %v1760_v19 = vpop.permute.xlu1 %1759  ;;  %v1756_v32 = vpop.permute.xlu0 %1755  ;;  %v3041_v35 = vadd.f32 %v3040_v57, %v3039_v14  ;;  %v2913_v45 = vadd.f32 %v2912_v13, %v2911_v2  ;;  %v2329_v57 = vcombine.high %v2313_v53, %v2313_v53  ;;  %v2797_v14 = vmul.f32 %v2576_v27, %v4480_v29 }
 0x4e9   : > { %v2788_v22 = vmul.f32 %v2556_v55, %v1760_v19  ;;  %v2787_v63 = vmul.f32 %v2556_v55, %v1756_v32  ;;  %v2568_v55 = vrot.slane %v2280_v49, %v3982_v11  ;;  %v2327_v49 = vrot.slane %v2299_v15, %v3978_v8 }
 0x4ea   : > { %v2600_v29 = vrot.slane %v2329_v57, %v3982_v11 }
 0x4eb   : > { %v3042_v23 = vsel %vm2956_vm11, %v2788_v22, 0.0  ;;  %v2914_v19 = vsel %vm1141_vm12, %v2787_v63, 0.0  ;;  %v2588_v63 = vrot.slane %v2330_v37, %v3982_v11  ;;  %v2596_v60 = vrot.slane %v2327_v49, %v3982_v11 }
 0x4ec   : > { %v1771_v7 = vpop.permute.xlu1 %1770  ;;  %v1767_v10 = vpop.permute.xlu0 %1766  ;;  %v3043_v17 = vadd.f32 %v3042_v23, %v3041_v35  ;;  %v2915_v21 = vadd.f32 %v2914_v19, %v2913_v45 }
 0x4ed   : > { %v2790_v51 = vmul.f32 %v2560_v42, %v1771_v7  ;;  %v2789_v41 = vmul.f32 %v2560_v42, %v1767_v10 }
 0x4ef   : > { %v3044_v5 = vsel %vm2956_vm11, %v2790_v51, 0.0  ;;  %v2916_v3 = vsel %vm1141_vm12, %v2789_v41, 0.0 }
 0x4f0   : > { %v1782_v25 = vpop.permute.xlu1 %1781  ;;  %v1778_v24 = vpop.permute.xlu0 %1777  ;;  %v3045_v22 = vadd.f32 %v3044_v5, %v3043_v17  ;;  %v2917_v56 = vadd.f32 %v2916_v3, %v2915_v21 }
 0x4f1   : > { %v2792_v32 = vmul.f32 %v2564_v1, %v1782_v25  ;;  %v2791_v26 = vmul.f32 %v2564_v1, %v1778_v24  ;;  %v2572_v1 = vrot.slane %v2282_v61, %v3982_v11  ;;  %v2592_v24 = vrot.slane %v2313_v53, %v3982_v11 }
 0x4f2   : > { %v2924_v61 = vsel %vm1141_vm12, %v2797_v14, 0.0  ;;  %v2331_v53 = vcombine.high %v2327_v49, %v2327_v49  ;;  %v2346_v14 = vrot.slane %v2332_v43, %v3978_v8 }
 0x4f3   : > { %v3046_v46 = vsel %vm2956_vm11, %v2792_v32, 0.0  ;;  %v2918_v42 = vsel %vm1141_vm12, %v2791_v26, 0.0  ;;  %v2339_v32 = vrot.slane %v4328_v59, %v3978_v8  ;;  %v2800_v26 = vmul.f32 %v2580_v58, %v4496_v34 }
 0x4f4   : > { %v1793_v54 = vpop.permute.xlu1 %1792  ;;  %v1789_v50 = vpop.permute.xlu0 %1788  ;;  %v3047_v13 = vadd.f32 %v3046_v46, %v3045_v22  ;;  %v2919_v51 = vadd.f32 %v2918_v42, %v2917_v56  ;;  %v2802_v34 = vmul.f32 %v2584_v52, %v4517_v20  ;;  %v2804_v46 = vmul.f32 %v2588_v63, %v4541_v38 }
 0x4f5   : > { %v2794_v7 = vmul.f32 %v2568_v55, %v1793_v54  ;;  %v2793_v10 = vmul.f32 %v2568_v55, %v1789_v50  ;;  %v3052_v55 = vsel %vm2956_vm11, %v2798_v40, 0.0  ;;  %v2347_v21 = vcombine.high %v2339_v32, %v2339_v32 }
 0x4f6   : > { %v3054_v54 = vsel %vm2956_vm11, %v2800_v26, 0.0  ;;  %v2926_v50 = vsel %vm1141_vm12, %v2799_v44, 0.0  ;;  %v2803_v42 = vmul.f32 %v2588_v63, %v4543_v62  ;;  %v2355_v58 = vrot.slane %v2339_v32, %v3978_v8 }
 0x4f7   : > { %v3048_v39 = vsel %vm2956_vm11, %v2794_v7, 0.0  ;;  %v2920_v28 = vsel %vm1141_vm12, %v2793_v10, 0.0  ;;  %v3056_v52 = vsel %vm2956_vm11, %v2802_v34, 0.0  ;;  %v2928_v56 = vsel %vm1141_vm12, %v2801_v18, 0.0 }
 0x4f8   : > { %v1804_v41 = vpop.permute.xlu1 %1803  ;;  %v1800_v30 = vpop.permute.xlu0 %1799  ;;  %v3049_v23 = vadd.f32 %v3048_v39, %v3047_v13  ;;  %v2921_v19 = vadd.f32 %v2920_v28, %v2919_v51  ;;  %v2806_v39 = vmul.f32 %v2592_v24, %v4557_v0  ;;  %v2805_v28 = vmul.f32 %v2592_v24, %v4559_v31 }
 0x4f9   : > { %v2796_v2 = vmul.f32 %v2572_v1, %v1804_v41  ;;  %v2795_v25 = vmul.f32 %v2572_v1, %v1800_v30  ;;  %v2604_v38 = vrot.slane %v2331_v53, %v3982_v11  ;;  %v2369_v1 = vrot.slane %v2347_v21, %v3978_v8 }
 0x4fa   : > { %v3058_v49 = vsel %vm2956_vm11, %v2804_v46, 0.0  ;;  %v2930_v57 = vsel %vm1141_vm12, %v2803_v42, 0.0  ;;  %v2808_v13 = vmul.f32 %v2596_v60, %v4574_v48  ;;  %v2807_v51 = vmul.f32 %v2596_v60, %v4576_v6 }
 0x4fb   : > { %v3050_v37 = vsel %vm2956_vm11, %v2796_v2, 0.0  ;;  %v2922_v35 = vsel %vm1141_vm12, %v2795_v25, 0.0  ;;  %v2608_v0 = vrot.slane %v2355_v58, %v3982_v11  ;;  %v3060_v2 = vsel %vm2956_vm11, %v2806_v39, 0.0 }
 0x4fc   : > { %v3051_v27 = vadd.f32 %v3050_v37, %v3049_v23  ;;  %v2923_v45 = vadd.f32 %v2922_v35, %v2921_v19  ;;  %v1903_v5 = vpop.permute.xlu1 %1902  ;;  %v1899_v3 = vpop.permute.xlu0 %1898  ;;  %v2932_v25 = vsel %vm1141_vm12, %v2805_v28, 0.0  ;;  %v2810_v24 = vmul.f32 %v2600_v29, %v4590_v4 }
 0x4fd   : > { %v2809_v23 = vmul.f32 %v2600_v29, %v4592_v12  ;;  %v2612_v6 = vrot.slane %v2369_v1, %v3982_v11  ;;  %v2377_v32 = vcombine.high %v2355_v58, %v2355_v58  ;;  %v3062_v26 = vsel %vm2956_vm11, %v2808_v13, 0.0 }
 0x4fe   : > { %v3053_v15 = vadd.f32 %v3052_v55, %v3051_v27  ;;  %v2925_v17 = vadd.f32 %v2924_v61, %v2923_v45  ;;  %v2934_v44 = vsel %vm1141_vm12, %v2807_v51, 0.0  ;;  %v2812_v37 = vmul.f32 %v2604_v38, %v4603_v47 }
 0x4ff   : > { %v2811_v35 = vmul.f32 %v2604_v38, %v4605_v9  ;;  %v2379_v45 = vcombine.high %v2369_v1, %v2369_v1  ;;  %v2348_v61 = vcombine.high %v2346_v14, %v2346_v14  ;;  %v3064_v12 = vsel %vm2956_vm11, %v2810_v24, 0.0 }
 0x500   : > { %v3055_v7 = vadd.f32 %v3054_v54, %v3053_v15  ;;  %v2927_v10 = vadd.f32 %v2926_v50, %v2925_v17  ;;  %v1914_v22 = vpop.permute.xlu1 %1913  ;;  %v1910_v20 = vpop.permute.xlu0 %1909  ;;  %v2936_v29 = vsel %vm1141_vm12, %v2809_v23, 0.0  ;;  %v2814_v34 = vmul.f32 %v2608_v0, %v1903_v5 }
 0x501   : > { %v2813_v18 = vmul.f32 %v2608_v0, %v1899_v3  ;;  %v2616_v17 = vrot.slane %v2377_v32, %v3982_v11  ;;  %v2362_v47 = vrot.slane %v2346_v14, %v3978_v8  ;;  %v3066_v9 = vsel %vm2956_vm11, %v2812_v37, 0.0 }
 0x502   : > { %v3057_v62 = vadd.f32 %v3056_v52, %v3055_v7  ;;  %v2929_v63 = vadd.f32 %v2928_v56, %v2927_v10  ;;  %v2938_v21 = vsel %vm1141_vm12, %v2811_v35, 0.0  ;;  %v2816_v54 = vmul.f32 %v2612_v6, %v1914_v22 }
 0x503   : > { %v2815_v50 = vmul.f32 %v2612_v6, %v1910_v20  ;;  %v2620_v7 = vrot.slane %v2379_v45, %v3982_v11  ;;  %v2376_v5 = vrot.slane %v2348_v61, %v3978_v8  ;;  %v3068_v3 = vsel %vm2956_vm11, %v2814_v34, 0.0 }
 0x504   : > { %v3059_v41 = vadd.f32 %v3058_v49, %v3057_v62  ;;  %v2931_v30 = vadd.f32 %v2930_v57, %v2929_v63  ;;  %v1925_v40 = vpop.permute.xlu1 %1924  ;;  %v1921_v31 = vpop.permute.xlu0 %1920  ;;  %v2940_v43 = vsel %vm1141_vm12, %v2813_v18, 0.0  ;;  %v2624_v38 = vrot.slane %v2362_v47, %v3982_v11 }
 0x505   : > { %v2818_v52 = vmul.f32 %v2616_v17, %v1925_v40  ;;  %v2817_v56 = vmul.f32 %v2616_v17, %v1921_v31  ;;  %v2378_v22 = vcombine.high %v2362_v47, %v2362_v47  ;;  %v3070_v20 = vsel %vm2956_vm11, %v2816_v54, 0.0 }
 0x506   : > { %v3061_v19 = vadd.f32 %v3060_v2, %v3059_v41  ;;  %v2933_v48 = vadd.f32 %v2932_v25, %v2931_v30  ;;  %v2942_v62 = vsel %vm1141_vm12, %v2815_v50, 0.0  ;;  %v2628_v8 = vrot.slane %v2376_v5, %v3982_v11 }
 0x507   : > { %v3072_v41 = vsel %vm2956_vm11, %v2818_v52, 0.0  ;;  %v2944_v30 = vsel %vm1141_vm12, %v2817_v56, 0.0  ;;  %v2632_v2 = vrot.slane %v2378_v22, %v3982_v11  ;;  %v2380_v25 = vcombine.high %v2376_v5, %v2376_v5 }
 0x508   : > { %v3063_v60 = vadd.f32 %v3062_v26, %v3061_v19  ;;  %v2935_v27 = vadd.f32 %v2934_v44, %v2933_v48  ;;  %v1936_v55 = vpop.permute.xlu1 %1935  ;;  %v1932_v4 = vpop.permute.xlu0 %1931 }
 0x509   : > { %v2820_v63 = vmul.f32 %v2620_v7, %v1936_v55  ;;  %v2819_v1 = vmul.f32 %v2620_v7, %v1932_v4 }
 0x50a   : > { %v3065_v53 = vadd.f32 %v3064_v12, %v3063_v60  ;;  %v2937_v15 = vadd.f32 %v2936_v29, %v2935_v27  ;;  %v2636_v12 = vrot.slane %v2380_v25, %v3982_v11  ;;  %v4987_v25 = vld [vmem:[#allocation6_spill] sm:$0xff] }
 0x50b   : > { %v3074_v24 = vsel %vm2956_vm11, %v2820_v63, 0.0  ;;  %v2946_v23 = vsel %vm1141_vm12, %v2819_v1, 0.0 }
 0x50c   : > { %v3067_v46 = vadd.f32 %v3066_v9, %v3065_v53  ;;  %v2939_v42 = vadd.f32 %v2938_v21, %v2937_v15  ;;  %v1947_v10 = vpop.permute.xlu1 %1946  ;;  %v1943_v58 = vpop.permute.xlu0 %1942 }
 0x50d   : > { %v2822_v0 = vmul.f32 %v2624_v38, %v1947_v10  ;;  %v2821_v40 = vmul.f32 %v2624_v38, %v1943_v58 }
 0x50e   : > { %v3069_v39 = vadd.f32 %v3068_v3, %v3067_v46  ;;  %v2941_v28 = vadd.f32 %v2940_v43, %v2939_v42 }
 0x50f   : > { %v3076_v37 = vsel %vm2956_vm11, %v2822_v0, 0.0  ;;  %v2948_v35 = vsel %vm1141_vm12, %v2821_v40, 0.0 }
 0x510   : > { %v3071_v49 = vadd.f32 %v3070_v20, %v3069_v39  ;;  %v2943_v57 = vadd.f32 %v2942_v62, %v2941_v28  ;;  %v1958_v13 = vpop.permute.xlu1 %1957  ;;  %v1954_v51 = vpop.permute.xlu0 %1953 }
 0x511   : > { %v2824_v19 = vmul.f32 %v2628_v8, %v1958_v13  ;;  %v2823_v48 = vmul.f32 %v2628_v8, %v1954_v51  ;;  %v3666_v8 = vld [vmem:[#allocation2] ss:$0 sm:$0xff]  ;;  %v3850_v13 = vmov 0  }
 0x512   : > { %v3073_v31 = vadd.f32 %v3072_v41, %v3071_v49  ;;  %v2945_v14 = vadd.f32 %v2944_v30, %v2943_v57  ;;  %3817 = vset.pattern.permute.xlu1 %v3850_v13  ;;  %3818 = vset.pattern.permute.xlu0 %v3850_v13 }
 0x513   : > { %v3078_v4 = vsel %vm2956_vm11, %v2824_v19, 0.0  ;;  %v2950_v61 = vsel %vm1141_vm12, %v2823_v48, 0.0 }
 0x514   : > { %v3075_v6 = vadd.f32 %v3074_v24, %v3073_v31  ;;  %v2947_v32 = vadd.f32 %v2946_v23, %v2945_v14  ;;  %v1969_v26 = vpop.permute.xlu1 %1968  ;;  %v1965_v44 = vpop.permute.xlu0 %1964  ;;  %v4988_v24 = vld [vmem:[#allocation18_spill] sm:$0xff] }
 0x515   : > { %v2826_v60 = vmul.f32 %v2632_v2, %v1969_v26  ;;  %v2825_v27 = vmul.f32 %v2632_v2, %v1965_v44  ;;  %v4986_v2 = vld [vmem:[#allocation7_spill] sm:$0xff]  ;;  %v3667_v26 = vld [vmem:[%s4894_s14] ss:$0 sm:$0xff] }
 0x516   : > { %v3077_v45 = vadd.f32 %v3076_v37, %v3075_v6  ;;  %v2949_v55 = vadd.f32 %v2948_v35, %v2947_v32  ;;  %v4989_v37 = vld [vmem:[#allocation4_spill] sm:$0xff] }
 0x517   : > { %v3080_v15 = vsel %vm2956_vm11, %v2826_v60, 0.0  ;;  %v2952_v17 = vsel %vm1141_vm12, %v2825_v27, 0.0 }
 0x518   : > { %v3079_v29 = vadd.f32 %v3078_v4, %v3077_v45  ;;  %v2951_v34 = vadd.f32 %v2950_v61, %v2949_v55  ;;  %v1980_v18 = vpop.permute.xlu1 %1979  ;;  %v1976_v53 = vpop.permute.xlu0 %1975 }
 0x519   : > { %v2828_v47 = vmul.f32 %v2636_v12, %v1980_v18  ;;  %v2827_v9 = vmul.f32 %v2636_v12, %v1976_v53 }
 0x51a   : > { %v3081_v21 = vadd.f32 %v3080_v15, %v3079_v29  ;;  %v2953_v54 = vadd.f32 %v2952_v17, %v2951_v34 }
 0x51b   : > { %v3082_v50 = vsel %vm2956_vm11, %v2828_v47, 0.0  ;;  %v2954_v46 = vsel %vm1141_vm12, %v2827_v9, 0.0 }
 0x51c   : > { %v3083_v42 = vadd.f32 %v3082_v50, %v3081_v21  ;;  %v2955_v7 = vadd.f32 %v2954_v46, %v2953_v54 }
 0x51e   : > { %v3087_v11 = vsel %vm2956_vm11, %v3083_v42, -inf  ;;  %v3084_v10 = vsel %vm1141_vm12, %v2955_v7, -inf }
 0x51f   : > { %3088 = vmax.xlane.f32.xlu1 %v3087_v11  ;;  %3085 = vmax.xlane.f32.xlu0 %v3084_v10 }
 0x5ac   : > { %v3089_v58 = vpop.xlane.xlu1 %3088  ;;  %v3086_v5 = vpop.xlane.xlu0 %3085 }
 0x5ad   : > { %v3090_v3 = vsub.f32 %v3086_v5, %v2955_v7  ;;  %v3091_v43 = vsub.f32 %v3089_v58, %v3083_v42 }
 0x5af   : > { %v3092_v52 = vsel %vm1141_vm12, %v3090_v3, -inf  ;;  %v3095_v56 = vsel %vm2956_vm11, %v3091_v43, -inf }
 0x5b0   : > { %3093 = vmax.xlane.f32.xlu0 %v3092_v52 }
 0x5b4   : > { %3096 = vmax.xlane.f32.xlu0 %v3095_v56 }
 0x63d   : > { %v3094_v39 = vpop.xlane.xlu0 %3093 }
 0x63e   : > { %v3098_v28 = vsub.f32 %v3090_v3, %v3094_v39 }
 0x640   : > { %v3100_v38 = vmul.f32 1.442695, %v3098_v28 }
 0x641   : > { %v3097_v22 = vpop.xlane.xlu0 %3096 }
 0x642   : > { %3828 = vpow2.f32 %v3100_v38  ;;  %v3099_v20 = vsub.f32 %v3091_v43, %v3097_v22 }
 0x644   : > { %v3102_v62 = vmul.f32 1.442695, %v3099_v20 }
 0x646   : > { %3830 = vpow2.f32 %v3102_v62 }
 0x64c   : > { %v3829_v63 = vpop.eup %3828 }
 0x64d   : > { %v3104_v1 = vsel %vm1141_vm12, %v3829_v63, 0.0 }
 0x64e   : > { %3105 = vadd.xlane.f32.xlu1 %v3104_v1 }
 0x650   : > { %v3831_v49 = vpop.eup %3830 }
 0x651   : > { %v3107_v57 = vsel %vm2956_vm11, %v3831_v49, 0.0 }
 0x652   : > { %3108 = vadd.xlane.f32.xlu0 %v3107_v57 }
 0x65f   : > { %3248 = vperm.xlu1 %3817, %v3666_v8  }
 0x6db   : > { %v3106_v51 = vpop.xlane.xlu1 %3105 }
 0x6dc   : > { %3832 = vrcp.f32 %v3106_v51 }
 0x6df   : > { %v3109_v41 = vpop.xlane.xlu0 %3108  ;;  %v3249_v23 = vpop.permute.xlu1 %3248 }
 0x6e0   : > { %3834 = vrcp.f32 %v3109_v41 }
 0x6e6   : > { %v3833_v30 = vpop.eup %3832 }
 0x6e7   : > { %v3112_v40 = vmul.f32 %v3833_v30, %v3829_v63 }
 0x6ea   : > { %v3835_v0 = vpop.eup %3834 }
 0x6eb   : > { %v3113_v31 = vmul.f32 %v3835_v0, %v3831_v49  ;;  %v4991_v49 = vld [vmem:[#allocation3_spill] sm:$0xff] }
 0x6ed   : > { %v3795_v14 = vpack.c.bf16 %v3113_v31, %v3112_v40 }
 0x6ef   : > { %3797 = vmatprep.subr.msk.bf16.mxu0 %vm3796_vm13, %v3795_v14 }
 0x6f0   : > { %3800 = vmatpush3.bf16.xpose.msk.msra.mxu0 %vm3796_vm13, %v3795_v14 }
 0x6f7   : > { %3770 = vmatmul.mubr.msk.f32.vlgmr.msra.gmra.mrb[16].mxu0 %vm1141_vm12, %v4986_v2 }
 0x6f8   : > { %3772 = vmatprep.mubr.msk.f32.mxu0 %vm1141_vm12, %v4058_v33 }
 0x6fb   : > { %3773 = vmatmul.mubr.msk.f32.gmra.mrb[18].mxu0 %vm1141_vm12, %v4987_v25 }
 0x6fc   : > { %3775 = vmatprep.mubr.msk.f32.mxu0 %vm1141_vm12, %v4988_v24 }
 0x6ff   : > { %3776 = vmatmul.mubr.msk.f32.gmra.mrb[20].mxu0 %vm1141_vm12, %v4985_v36 }
 0x700   : > { %3778 = vmatprep.mubr.msk.f32.mxu0 %vm1141_vm12, %v4982_v16 }
 0x703   : > { %3779 = vmatmul.mubr.msk.f32.gmra.mrb[22].mxu0 %vm1141_vm12, %v4328_v59 }
 0x7ca   : > { %v3771_v19 = vpop.f32.mrb[16].mxu0 }
 0x7cb   : > { %v3252_v48 = vmul.f32 %v3771_v19, %v3249_v23  ;;  %v3202_v6 = vpop.f32.mrb[17].mxu0 }
 0x7cc   : > { %v3251_v32 = vmul.f32 %v3249_v23, %v3202_v6 }
 0x7cd   : > { %v3260_v44 = vadd.f32 %v3252_v48, %v4986_v2 }
 0x7ce   : > { %v3259_v35 = vadd.f32 %v3251_v32, %v4989_v37  ;;  %v3774_v60 = vpop.f32.mrb[18].mxu0 }
 0x7cf   : > { %v3254_v27 = vmul.f32 %v3774_v60, %v3249_v23  ;;  %v3212_v45 = vpop.f32.mrb[19].mxu0  ;;  %v3275_v55 = vmul.f32 %v3667_v26, %v3260_v44 }
 0x7d0   : > { %v3253_v61 = vmul.f32 %v3249_v23, %v3212_v45  ;;  %v3274_v29 = vmul.f32 %v3667_v26, %v3259_v35 }
 0x7d1   : > { %v3262_v4 = vadd.f32 %v3254_v27, %v4987_v25  ;;  %v3285_v12 = vsel %vm1141_vm12, %v3275_v55, 0.0 }
 0x7d2   : > { %3286 = vadd.xlane.f32.xlu0 %v3285_v12  ;;  %v3777_v34 = vpop.f32.mrb[20].mxu0  ;;  %v3261_v15 = vadd.f32 %v3253_v61, %v4058_v33  ;;  %v3282_v47 = vsel %vm1141_vm12, %v3274_v29, 0.0 }
 0x7d3   : > { %v3222_v18 = vpop.f32.mrb[21].mxu0  ;;  %v3256_v17 = vmul.f32 %v3777_v34, %v3249_v23  ;;  %v3277_v9 = vmul.f32 %v3667_v26, %v3262_v4 }
 0x7d4   : > { %v3255_v53 = vmul.f32 %v3249_v23, %v3222_v18  ;;  %v3276_v10 = vmul.f32 %v3667_v26, %v3261_v15 }
 0x7d5   : > { %v3264_v42 = vadd.f32 %v3256_v17, %v4985_v36  ;;  %v3291_v11 = vsel %vm1141_vm12, %v3277_v9, 0.0 }
 0x7d6   : > { %v3263_v21 = vadd.f32 %v3255_v53, %v4988_v24  ;;  %3283 = vadd.xlane.f32.xlu0 %v3282_v47  ;;  %v3780_v54 = vpop.f32.mrb[22].mxu0  ;;  %v3288_v3 = vsel %vm1141_vm12, %v3276_v10, 0.0 }
 0x7d7   : > { %v3232_v50 = vpop.f32.mrb[23].mxu0  ;;  %v3258_v33 = vmul.f32 %v3780_v54, %v3249_v23  ;;  %v3279_v43 = vmul.f32 %v3667_v26, %v3264_v42 }
 0x7d8   : > { %v3278_v46 = vmul.f32 %v3667_v26, %v3263_v21  ;;  %v3257_v7 = vmul.f32 %v3249_v23, %v3232_v50 }
 0x7d9   : > { %v3266_v52 = vadd.f32 %v3258_v33, %v4328_v59  ;;  %v3297_v56 = vsel %vm1141_vm12, %v3279_v43, 0.0  ;;  %v3840_v43 = vld [vmem:[%s3974_s2] sm:$0xff] }
 0x7da   : > { %3292 = vadd.xlane.f32.xlu0 %v3291_v11  ;;  %v3294_v58 = vsel %vm1141_vm12, %v3278_v46, 0.0  ;;  %v3265_v5 = vadd.f32 %v3257_v7, %v4982_v16  ;;  %v4990_v16 = vlaneseq }
 0x7db   : > { %3295 = vadd.xlane.f32.xlu1 %v3294_v58  ;;  %v3281_v28 = vmul.f32 %v3667_v26, %v3266_v52  ;;  %v575_v52 = vpack.c.bf16 %v3840_v43, %v3840_v43 }
 0x7dc   : > { %v3280_v36 = vmul.f32 %v3667_v26, %v3265_v5  ;;  %v3309_v62 = vand.u32 127, %v4990_v16  ;;  %v3827_v16 = vld [vmem:[%s4895_s15 + $0x8] sm:$0xff]  }
 0x7dd   : > { %v3303_v38 = vsel %vm1141_vm12, %v3281_v28, 0.0 }
 0x7de   : > { %3289 = vadd.xlane.f32.xlu0 %v3288_v3  ;;  %v3300_v39 = vsel %vm1141_vm12, %v3280_v36, 0.0  ;;  %v3329_v57 = vsub.s32 %v3309_v62, %v4991_v49  ;;  %vm3363_vm12 = vcmask 1043459   ;;  %vm3310_vm6 = vcmp.eq.s32.totalorder %v4991_v49, %v3309_v62 }
 0x7df   : > { %v3440_v36 = vsel %vm855_vm1, %v575_v52, 0  ;;  %vm3504_vm1 = vcmask 261120  }
 0x7e2   : > { %3298 = vadd.xlane.f32.xlu0 %v3297_v56  ;;  %v3851_v56 = vmov 0.0  }
 0x7e3   : > { %3781 = vmatprep.subr.bf16.mxu1 %v3851_v56  ;;  %3783 = vmatprep.mubr.msk.bf16.mxu1 %vm3852_vm8, %v3851_v56 }
 0x7e4   : > { %3782 = vmatpush3.bf16.msra.mxu1 %v3440_v36 }
 0x7e5   : > { %3787 = vmatprep.subr.bf16.mxu1 %v3851_v56 }
 0x7e6   : > { %3301 = vadd.xlane.f32.xlu0 %v3300_v39 }
 0x7ea   : > { %3304 = vadd.xlane.f32.xlu0 %v3303_v38 }
 0x85f   : > { %v3287_v22 = vpop.xlane.xlu0 %3286 }
 0x860   : > { %v3669_v59 = vadd.f32 -1e+08, %v3287_v22  ;;  %v3389_v40 = vrot.slane %v3287_v22, %v3329_v57 }
 0x862   : > { %v3334_v0 = vrot.slane %v3669_v59, %v3329_v57 }
 0x863   : > { %v3284_v20 = vpop.xlane.xlu0 %3283 }
 0x864   : > { %v3668_v1 = vadd.f32 -1e+08, %v3284_v20  ;;  %v3385_v51 = vrot.slane %v3284_v20, %v3329_v57  ;;  %v3826_v20 = vld [vmem:[%s4895_s15] sm:$0xff]  }
 0x866   : > { %v3330_v13 = vrot.slane %v3668_v1, %v3329_v57  ;;  %v3414_v23 = vsel %vm3359_vm14, %v3389_v40, %v3385_v51 }
 0x867   : > { %v3293_v63 = vpop.xlane.xlu0 %3292 }
 0x868   : > { %v3671_v31 = vadd.f32 -1e+08, %v3293_v63  ;;  %v3296_v14 = vpop.xlane.xlu1 %3295  ;;  %v3360_v24 = vsel %vm3359_vm14, %v3334_v0, %v3330_v13  ;;  %v3397_v26 = vrot.slane %v3293_v63, %v3329_v57  ;;  %v3680_v13 = vld [vmem:[%s4896_s16] ss:$0 sm:$0xff] }
 0x869   : > { %v3672_v19 = vadd.f32 -1e+08, %v3296_v14  ;;  %v3401_v55 = vrot.slane %v3296_v14, %v3329_v57 }
 0x86a   : > { %v3342_v32 = vrot.slane %v3671_v31, %v3329_v57 }
 0x86b   : > { %v3290_v8 = vpop.xlane.xlu0 %3289  ;;  %v3346_v45 = vrot.slane %v3672_v19, %v3329_v57 }
 0x86c   : > { %v3670_v41 = vadd.f32 -1e+08, %v3290_v8  ;;  %v3393_v30 = vrot.slane %v3290_v8, %v3329_v57 }
 0x86e   : > { %v3338_v2 = vrot.slane %v3670_v41, %v3329_v57  ;;  %v3415_v6 = vsel %vm3361_vm15, %v3393_v30, %v3414_v23  ;;  %v3681_v41 = vld [vmem:[%s4897_s17] ss:$0 sm:$0xff] }
 0x86f   : > { %v3299_v25 = vpop.xlane.xlu0 %3298  ;;  %v3416_v60 = vsel %vm3363_vm12, %v3397_v26, %v3415_v6 }
 0x870   : > { %v3362_v48 = vsel %vm3361_vm15, %v3338_v2, %v3360_v24  ;;  %v3673_v44 = vadd.f32 -1e+08, %v3299_v25  ;;  %v3405_v61 = vrot.slane %v3299_v25, %v3329_v57  ;;  %v3417_v29 = vsel %vm3365_vm2, %v3401_v55, %v3416_v60 }
 0x871   : > { %v3364_v35 = vsel %vm3363_vm12, %v3342_v32, %v3362_v48 }
 0x872   : > { %v3350_v4 = vrot.slane %v3673_v44, %v3329_v57  ;;  %v3366_v12 = vsel %vm3365_vm2, %v3346_v45, %v3364_v35  ;;  %v3418_v9 = vsel %vm3367_vm3, %v3405_v61, %v3417_v29 }
 0x873   : > { %v3302_v37 = vpop.xlane.xlu0 %3301 }
 0x874   : > { %v3674_v27 = vadd.f32 -1e+08, %v3302_v37  ;;  %v3409_v18 = vrot.slane %v3302_v37, %v3329_v57  ;;  %v3368_v47 = vsel %vm3367_vm3, %v3350_v4, %v3366_v12 }
 0x876   : > { %v3354_v34 = vrot.slane %v3674_v27, %v3329_v57  ;;  %v3419_v54 = vsel %vm3369_vm4, %v3409_v18, %v3418_v9 }
 0x877   : > { %v3305_v53 = vpop.xlane.xlu0 %3304 }
 0x878   : > { %v3675_v15 = vadd.f32 -1e+08, %v3305_v53  ;;  %v3413_v17 = vrot.slane %v3305_v53, %v3329_v57  ;;  %v3370_v50 = vsel %vm3369_vm4, %v3354_v34, %v3368_v47 }
 0x87a   : > { %v3358_v21 = vrot.slane %v3675_v15, %v3329_v57  ;;  %v3420_v42 = vsel %vm3371_vm5, %v3413_v17, %v3419_v54 }
 0x87c   : > { %v3372_v46 = vsel %vm3371_vm5, %v3358_v21, %v3370_v50 }
 0x87d   : > { %v3422_v7 = vsel %vm3310_vm6, %v3372_v46, %v3420_v42 }
 0x87e   : > { %v3424_v11 = vsel %vm3423_vm7, %v3422_v7, -inf }
 0x87f   : > { %3425 = vmax.xlane.f32.xlu0 %v3424_v11 }
 0x90c   : > { %v3426_v10 = vpop.xlane.xlu0 %3425 }
 0x90d   : > { %v3427_v58 = vsub.f32 %v3422_v7, %v3426_v10 }
 0x90f   : > { %v3428_v33 = vmul.f32 1.442695, %v3427_v58 }
 0x911   : > { %3836 = vpow2.f32 %v3428_v33 }
 0x91b   : > { %v3837_v5 = vpop.eup %3836 }
 0x91c   : > { %v3430_v3 = vsel %vm3423_vm7, %v3837_v5, 0.0 }
 0x91d   : > { %3431 = vadd.xlane.f32.xlu0 %v3430_v3 }
 0x9aa   : > { %v3432_v39 = vpop.xlane.xlu0 %3431 }
 0x9ab   : > { %3838 = vrcp.f32 %v3432_v39 }
 0x9b5   : > { %v3839_v28 = vpop.eup %3838 }
 0x9b6   : > { %v3434_v38 = vmul.f32 %v3839_v28, %v3837_v5 }
 0x9b8   : > { %v3435_v22 = vpack.c.bf16 %v3434_v38, %v3434_v38 }
 0x9ba   : > { %3784 = vmatmul.mubr.msk.bf16.vlgmr.msra.gmra.mrb[16].mxu1 %vm3423_vm7, %v3435_v22 }
 0x9bb   : > { %3791 = vmatprep.mubr.msk.bf16.mxu1 %vm3852_vm8, %v3851_v56  ;;  %3788 = vmatpush3.bf16.msra.mxu1 %v3826_v20 }
 0x9bc   : > { %3789 = vmatprep.subr.bf16.mxu1 %v3851_v56 }
 0x9bf   : > { %3790 = vmatpush3.bf16.msra.mxu1 %v3827_v16 }
 0xa8d   : > { %v3476_v62 = vpop.f32.mrb[16].mxu1 }
 0xa8e   : > { %3483 = vrot.lane.b32.xlu0 %v3476_v62, %s3853_s1  ;;  %v3785_v63 = vpop.f32.mrb[17].mxu1 }
 0xa8f   : > { %v3479_v1 = vpop.f32.mrb[18].mxu1 }
 0xa90   : > { %v3786_v49 = vpop.f32.mrb[19].mxu1 }
 0xb00   : > { %v3484_v57 = vpop.permute.xlu0 %3483 }
 0xb01   : > { %v3486_v59 = vsel %vm694_vm0, %v3840_v43, %v3484_v57  ;;  %vm3564_vm0 = vcmask 31744  }
 0xb02   : > { %v3487_v8 = vpack.c.bf16 %v3486_v59, %v3486_v59 }
 0xb04   : > { %3792 = vmatmul.mubr.msk.bf16.vlgmr.msra.gmra.mrb[20].mxu1 %vm3504_vm1, %v3487_v8 }
 0xbd7   : > { %v3542_v51 = vpop.f32.mrb[20].mxu1 }
 0xbd8   : > { %v3555_v30 = vmul.f32 %v3680_v13, %v3542_v51  ;;  %v3793_v0 = vpop.f32.mrb[21].mxu1 }
 0xbd9   : > { %v3545_v40 = vpop.f32.mrb[22].mxu1 }
 0xbda   : > { %v3563_v31 = vadd.f32 %v3681_v41, %v3555_v30  ;;  %v3794_v14 = vpop.f32.mrb[23].mxu1 }
 0xbdc   : > { %3565 = vst.msk [vmem:[%s572_s26] sm:$0xff] %vm3564_vm0, %v3563_v31 }
 0xbdd PF: > { %s30_s29 = sadd.s32 1, %s3847_s29  }
 0xbde   : > { %p27_p4 = scmp.ge.s32.totalorder %s30_s29, 4  }
 0xbe0   :  { %29 = sbr.rel (!%p27_p4) target bundleno = 4 (0x4), region = 122 }

</bundles_post_ra>
